<compile_context>
chip_gen: v7x
topology: tpu7x:2x2x1
jax: 0.10.0
libtpu: 0.0.40
codegen_flags: <defaults>
</compile_context>

<pallas_src>
import functools

import jax
import jax.numpy as jnp
from jax import lax
from jax.experimental import pallas as pl
from jax.experimental.pallas import tpu as pltpu


def _pick_tile(n: int, cap: int = 128) -> int:
    """Largest tile <= cap that divides n and keeps sublane (8) alignment."""
    if n <= cap:
        return n
    for t in range(cap, 0, -1):
        if n % t == 0 and t % 8 == 0:
            return t
    return n  # fall back to the full (untiled) extent


def _mha_kernel(q_ref, k_ref, v_ref,
                wq_ref, bq_ref, wk_ref, bk_ref, wv_ref, bv_ref,
                wm_ref, bm_ref,
                o_ref,
                k_scr, v_scr,
                *, num_heads, head_dim, kv_tile):
    """Grid = (batch, q_tile). Project -> per-head online-softmax attention -> merge."""
    n_kv = k_scr.shape[0]
    num_kv_tiles = n_kv // kv_tile
    scale = 1.0 / (head_dim ** 0.5)

    # ---- Project K and V once per batch element (first q-tile step); cache the
    # bf16 result in persistent VMEM scratch so later q-tiles reuse it. ----
    @pl.when(pl.program_id(1) == 0)
    def _project_kv():
        k_in = k_ref[0]                                       # (Nkv, d_model) bf16
        v_in = v_ref[0]
        kp = jnp.dot(k_in, wk_ref[...], preferred_element_type=jnp.float32) + bk_ref[...]
        vp = jnp.dot(v_in, wv_ref[...], preferred_element_type=jnp.float32) + bv_ref[...]
        k_scr[...] = kp.astype(k_scr.dtype)
        v_scr[...] = vp.astype(v_scr.dtype)

    # ---- Project this Q tile (1x1 Conv1d == matmul over channels). ----
    q_in = q_ref[0]                                           # (TQ, d_model) bf16
    q_proj = jnp.dot(q_in, wq_ref[...], preferred_element_type=jnp.float32) + bq_ref[...]
    q_bf = q_proj.astype(jnp.bfloat16)
    tq = q_bf.shape[0]

    # ---- Per-head flash-style attention with online softmax over key tiles.
    # Softmax statistics and the accumulator stay in f32; MXU operands are bf16. ----
    ctx_heads = []
    for h in range(num_heads):
        q_h = q_bf[:, h * head_dim:(h + 1) * head_dim]        # (TQ, hd) bf16

        def kv_step(t, carry, q_h=q_h, h=h):
            m_i, l_i, acc = carry
            start = pl.multiple_of(t * kv_tile, kv_tile)
            k_rows = k_scr[pl.ds(start, kv_tile), :]          # (TK, d_model) bf16
            v_rows = v_scr[pl.ds(start, kv_tile), :]
            k_h = k_rows[:, h * head_dim:(h + 1) * head_dim]  # (TK, hd)
            v_h = v_rows[:, h * head_dim:(h + 1) * head_dim]
            # scores[n, m] = sum_d q[n, d] * k[m, d] * scale   (contract lane dim)
            s = lax.dot_general(q_h, k_h, (((1,), (1,)), ((), ())),
                                preferred_element_type=jnp.float32) * scale
            m_new = jnp.maximum(m_i, jnp.max(s, axis=-1, keepdims=True))
            alpha = jnp.exp(m_i - m_new)
            p = jnp.exp(s - m_new)                            # unnormalized probs (f32)
            l_new = alpha * l_i + jnp.sum(p, axis=-1, keepdims=True)
            acc_new = alpha * acc + jnp.dot(p.astype(jnp.bfloat16), v_h,
                                            preferred_element_type=jnp.float32)
            return m_new, l_new, acc_new

        m0 = jnp.full((tq, 1), -jnp.inf, dtype=jnp.float32)
        l0 = jnp.zeros((tq, 1), dtype=jnp.float32)
        a0 = jnp.zeros((tq, head_dim), dtype=jnp.float32)
        _, l_f, acc_f = lax.fori_loop(0, num_kv_tiles, kv_step, (m0, l0, a0))

        # Deferred normalization: one (TQ, hd)-sized multiply, divide on the EUP.
        ctx_heads.append(acc_f * pl.reciprocal(l_f, approx=True))

    ctx = jnp.concatenate(ctx_heads, axis=-1).astype(jnp.bfloat16)   # (TQ, d_model)

    # ---- Merge 1x1 Conv1d. ----
    out = jnp.dot(ctx, wm_ref[...], preferred_element_type=jnp.float32) + bm_ref[...]
    o_ref[0] = out.astype(o_ref.dtype)


def prepare_params(params, num_heads):
    """One-time host-side weight prep (hoisted out of the per-call path).

    Conv1d weights (d_model, d_model) are row-permuted into (head, dim) channel
    order, transposed so the kernel computes x @ W^T in the (N, d_model) layout,
    and cast to bf16; biases become lane-dense (1, d_model) f32 rows.
    """
    wq, bq, wk, bk, wv, bv, wm, bm = [jnp.asarray(p) for p in params]
    d_model = wq.shape[0]
    head_dim = d_model // num_heads
    # PyTorch does proj(x).view(B, head_dim, num_heads, N): channel c = d*num_heads + h.
    # perm[h*head_dim + d] = d*num_heads + h makes heads contiguous blocks in-kernel.
    perm = jnp.array([d * num_heads + h
                      for h in range(num_heads) for d in range(head_dim)],
                     dtype=jnp.int32)

    def proj_w(w):
        return w[perm, :].T.astype(jnp.bfloat16)          # (d_model_in, d_model_out)

    def vec(b):
        return b.reshape(1, d_model).astype(jnp.float32)

    wq_p, wk_p, wv_p = proj_w(wq), proj_w(wk), proj_w(wv)
    wm_p = wm[:, perm].T.astype(jnp.bfloat16)             # merge consumes (head, dim) order
    return (wq_p, vec(bq[perm]), wk_p, vec(bk[perm]), wv_p, vec(bv[perm]),
            wm_p, vec(bm))


@functools.partial(jax.jit, static_argnums=(4,))
def multi_headed_attention(query, key, value, prepared_params, num_heads):
    """query: (B, d_model, Nq); key/value: (B, d_model, Nkv). Returns (B, d_model, Nq)."""
    B, d_model, n_q = query.shape
    _, _, n_kv = key.shape
    assert d_model % num_heads == 0
    assert value.shape == key.shape
    head_dim = d_model // num_heads
    out_dtype = query.dtype

    tq = _pick_tile(n_q)
    tkv = _pick_tile(n_kv)

    # Lane-dense (N, d_model) layout + bf16 MXU operands (halves input DMA too).
    q_t = jnp.transpose(query, (0, 2, 1)).astype(jnp.bfloat16)
    k_t = jnp.transpose(key, (0, 2, 1)).astype(jnp.bfloat16)
    v_t = jnp.transpose(value, (0, 2, 1)).astype(jnp.bfloat16)

    wq_p, bq_p, wk_p, bk_p, wv_p, bv_p, wm_p, bm_p = prepared_params

    kernel = functools.partial(_mha_kernel, num_heads=num_heads,
                               head_dim=head_dim, kv_tile=tkv)

    q_spec = pl.BlockSpec((1, tq, d_model), lambda b, qi: (b, qi, 0))
    kv_spec = pl.BlockSpec((1, n_kv, d_model), lambda b, qi: (b, 0, 0))  # DMA'd once per batch
    w_spec = pl.BlockSpec((d_model, d_model), lambda b, qi: (0, 0))
    b_spec = pl.BlockSpec((1, d_model), lambda b, qi: (0, 0))
    # TODO(synk): single-buffer the constant weight blocks (pl.Buffered(1)) once verified.

    out_t = pl.pallas_call(
        kernel,
        out_shape=jax.ShapeDtypeStruct((B, n_q, d_model), out_dtype),
        grid_spec=pltpu.PrefetchScalarGridSpec(
            num_scalar_prefetch=0,
            grid=(B, n_q // tq),
            in_specs=[q_spec, kv_spec, kv_spec,
                      w_spec, b_spec, w_spec, b_spec, w_spec, b_spec,
                      w_spec, b_spec],
            out_specs=pl.BlockSpec((1, tq, d_model), lambda b, qi: (b, qi, 0)),
            scratch_shapes=[pltpu.VMEM((n_kv, d_model), jnp.bfloat16),   # projected K cache
                            pltpu.VMEM((n_kv, d_model), jnp.bfloat16)],  # projected V cache
        ),
        compiler_params=pltpu.CompilerParams(
            dimension_semantics=("parallel", "arbitrary"),
            vmem_limit_bytes=64 * 1024 * 1024,
        ),
    )(q_t, k_t, v_t, wq_p, bq_p, wk_p, bk_p, wv_p, bv_p, wm_p, bm_p)

    return jnp.transpose(out_t, (0, 2, 1))


if __name__ == "__main__":
    num_heads = 4
    d_model = 32
    B, Nq, Nkv = 2, 256, 384          # exercises multiple q-tiles and kv-tiles
    head_dim = d_model // num_heads

    root = jax.random.PRNGKey(0)
    kq, kk, kv, kw, kb = jax.random.split(root, 5)
    query = jax.random.normal(kq, (B, d_model, Nq), jnp.float32)
    key_t = jax.random.normal(kk, (B, d_model, Nkv), jnp.float32)
    value = jax.random.normal(kv, (B, d_model, Nkv), jnp.float32)

    # nn.Conv1d(d_model, d_model, kernel_size=1) weights (kernel axis squeezed).
    # The PyTorch module deepcopy's `merge` into all three `proj` layers, so all
    # four layers share identical initial parameters — reproduce that here.
    bound = 1.0 / (d_model ** 0.5)
    w = jax.random.uniform(kw, (d_model, d_model), jnp.float32, -bound, bound)
    b = jax.random.uniform(kb, (d_model,), jnp.float32, -bound, bound)
    params = (w, b, w, b, w, b, w, b)

    prepped = prepare_params(params, num_heads)        # one-time host-side prep
    out = jax.block_until_ready(
        multi_headed_attention(query, key_t, value, prepped, num_heads))

    # Pure-JAX f32 reference mirroring the PyTorch forward exactly.
    def conv1x1(x, W, bb):
        return jnp.einsum('oc,bcn->bon', W, x) + bb[None, :, None]

    q_ = conv1x1(query, w, b).reshape(B, head_dim, num_heads, Nq)
    k_ = conv1x1(key_t, w, b).reshape(B, head_dim, num_heads, Nkv)
    v_ = conv1x1(value, w, b).reshape(B, head_dim, num_heads, Nkv)
    scores = jnp.einsum('bdhn,bdhm->bhnm', q_, k_) / head_dim ** 0.5
    prob = jax.nn.softmax(scores, axis=-1)
    ctx = jnp.einsum('bhnm,bdhm->bdhn', prob, v_)
    ref = conv1x1(ctx.reshape(B, d_model, Nq), w, b)

    err = float(jnp.max(jnp.abs(out - ref)))
    # Tolerance accounts for bf16 MXU operands + approximate EUP reciprocal.
    assert jnp.allclose(out, ref, atol=7.5e-2, rtol=7.5e-2), f"max abs err = {err}"
    print("KERNEL_OK")
</pallas_src>

<mosaic_0001>
module attributes {stable_mosaic.version = 11 : i64} {
  func.func @_mha_kernel(%arg0: i32, %arg1: i32, %arg2: memref<1x128x32xbf16, #tpu.memory_space<vmem>>, %arg3: memref<1x384x32xbf16, #tpu.memory_space<vmem>>, %arg4: memref<1x384x32xbf16, #tpu.memory_space<vmem>>, %arg5: memref<32x32xbf16, #tpu.memory_space<vmem>>, %arg6: memref<1x32xf32, #tpu.memory_space<vmem>>, %arg7: memref<32x32xbf16, #tpu.memory_space<vmem>>, %arg8: memref<1x32xf32, #tpu.memory_space<vmem>>, %arg9: memref<32x32xbf16, #tpu.memory_space<vmem>>, %arg10: memref<1x32xf32, #tpu.memory_space<vmem>>, %arg11: memref<32x32xbf16, #tpu.memory_space<vmem>>, %arg12: memref<1x32xf32, #tpu.memory_space<vmem>>, %arg13: memref<1x128x32xf32, #tpu.memory_space<vmem>>, %arg14: memref<384x32xbf16, #tpu.memory_space<vmem>>, %arg15: memref<384x32xbf16, #tpu.memory_space<vmem>>) attributes {dimension_semantics = [#tpu.dimension_semantics<parallel>, #tpu.dimension_semantics<arbitrary>], iteration_bounds = array<i64: 2, 2>, scalar_prefetch = 0 : i64, scratch_operands = 2 : i64, tpu.core_type = #tpu.core_type<tc>, window_params = [{transform_indices = @transform_0, window_bounds = array<i64: 1, 128, 32>}, {transform_indices = @transform_1, window_bounds = array<i64: 1, 384, 32>}, {transform_indices = @transform_2, window_bounds = array<i64: 1, 384, 32>}, {pipeline_mode = #tpu.pipeline_mode<synchronous>, transform_indices = @transform_3, window_bounds = array<i64: 32, 32>}, {pipeline_mode = #tpu.pipeline_mode<synchronous>, transform_indices = @transform_4, window_bounds = array<i64: 1, 32>}, {pipeline_mode = #tpu.pipeline_mode<synchronous>, transform_indices = @transform_5, window_bounds = array<i64: 32, 32>}, {pipeline_mode = #tpu.pipeline_mode<synchronous>, transform_indices = @transform_6, window_bounds = array<i64: 1, 32>}, {pipeline_mode = #tpu.pipeline_mode<synchronous>, transform_indices = @transform_7, window_bounds = array<i64: 32, 32>}, {pipeline_mode = #tpu.pipeline_mode<synchronous>, transform_indices = @transform_8, window_bounds = array<i64: 1, 32>}, {pipeline_mode = #tpu.pipeline_mode<synchronous>, transform_indices = @transform_9, window_bounds = array<i64: 32, 32>}, {pipeline_mode = #tpu.pipeline_mode<synchronous>, transform_indices = @transform_10, window_bounds = array<i64: 1, 32>}, {transform_indices = @transform_11, window_bounds = array<i64: 1, 128, 32>}]} {
    %c0_i32 = arith.constant 0 : i32
    %0 = arith.cmpi eq, %arg1, %c0_i32 : i32
    %1 = arith.extui %0 : i1 to i32
    %c0_i32_0 = arith.constant 0 : i32
    %2 = arith.cmpi ne, %1, %c0_i32_0 : i32
    scf.if %2 {
      %c0_41 = arith.constant 0 : index
      %c0_42 = arith.constant 0 : index
      %c0_43 = arith.constant 0 : index
      %57 = vector.load %arg3[%c0_41, %c0_42, %c0_43] : memref<1x384x32xbf16, #tpu.memory_space<vmem>>, vector<1x384x32xbf16>
      %58 = vector.shape_cast %57 : vector<1x384x32xbf16> to vector<384x32xbf16>
      %c0_44 = arith.constant 0 : index
      %c0_45 = arith.constant 0 : index
      %c0_46 = arith.constant 0 : index
      %59 = vector.load %arg4[%c0_44, %c0_45, %c0_46] : memref<1x384x32xbf16, #tpu.memory_space<vmem>>, vector<1x384x32xbf16>
      %60 = vector.shape_cast %59 : vector<1x384x32xbf16> to vector<384x32xbf16>
      %c0_47 = arith.constant 0 : index
      %c0_48 = arith.constant 0 : index
      %61 = vector.load %arg7[%c0_47, %c0_48] : memref<32x32xbf16, #tpu.memory_space<vmem>>, vector<32x32xbf16>
      %cst_49 = arith.constant dense<0.000000e+00> : vector<384x32xf32>
      %62 = tpu.matmul %58, %61, %cst_49 {dimension_numbers = #tpu.dot_dimension_numbers<[1], [0], [0], [1], [0, 0, 1, 1], [], []>} : vector<384x32xbf16>, vector<32x32xbf16>, vector<384x32xf32> -> vector<384x32xf32>
      %c0_50 = arith.constant 0 : index
      %c0_51 = arith.constant 0 : index
      %63 = vector.load %arg8[%c0_50, %c0_51] : memref<1x32xf32, #tpu.memory_space<vmem>>, vector<1x32xf32>
      %64 = vector.broadcast %63 : vector<1x32xf32> to vector<384x32xf32>
      %65 = arith.addf %62, %64 : vector<384x32xf32>
      %c0_52 = arith.constant 0 : index
      %c0_53 = arith.constant 0 : index
      %66 = vector.load %arg9[%c0_52, %c0_53] : memref<32x32xbf16, #tpu.memory_space<vmem>>, vector<32x32xbf16>
      %cst_54 = arith.constant dense<0.000000e+00> : vector<384x32xf32>
      %67 = tpu.matmul %60, %66, %cst_54 {dimension_numbers = #tpu.dot_dimension_numbers<[1], [0], [0], [1], [0, 0, 1, 1], [], []>} : vector<384x32xbf16>, vector<32x32xbf16>, vector<384x32xf32> -> vector<384x32xf32>
      %c0_55 = arith.constant 0 : index
      %c0_56 = arith.constant 0 : index
      %68 = vector.load %arg10[%c0_55, %c0_56] : memref<1x32xf32, #tpu.memory_space<vmem>>, vector<1x32xf32>
      %69 = vector.broadcast %68 : vector<1x32xf32> to vector<384x32xf32>
      %70 = arith.addf %67, %69 : vector<384x32xf32>
      %71 = arith.truncf %65 : vector<384x32xf32> to vector<384x32xbf16>
      %c0_57 = arith.constant 0 : index
      %c0_58 = arith.constant 0 : index
      %72 = vector.load %arg14[%c0_57, %c0_58] : memref<384x32xbf16, #tpu.memory_space<vmem>>, vector<384x32xbf16>
      tpu.vector_store %arg14[%c0_57, %c0_58], %71 {strides = array<i32>} : memref<384x32xbf16, #tpu.memory_space<vmem>>, vector<384x32xbf16>,
      %73 = arith.truncf %70 : vector<384x32xf32> to vector<384x32xbf16>
      %c0_59 = arith.constant 0 : index
      %c0_60 = arith.constant 0 : index
      %74 = vector.load %arg15[%c0_59, %c0_60] : memref<384x32xbf16, #tpu.memory_space<vmem>>, vector<384x32xbf16>
      tpu.vector_store %arg15[%c0_59, %c0_60], %73 {strides = array<i32>} : memref<384x32xbf16, #tpu.memory_space<vmem>>, vector<384x32xbf16>,
    } else {
    }
    %c0 = arith.constant 0 : index
    %c0_1 = arith.constant 0 : index
    %c0_2 = arith.constant 0 : index
    %3 = vector.load %arg2[%c0, %c0_1, %c0_2] : memref<1x128x32xbf16, #tpu.memory_space<vmem>>, vector<1x128x32xbf16>
    %4 = vector.shape_cast %3 : vector<1x128x32xbf16> to vector<128x32xbf16>
    %c0_3 = arith.constant 0 : index
    %c0_4 = arith.constant 0 : index
    %5 = vector.load %arg5[%c0_3, %c0_4] : memref<32x32xbf16, #tpu.memory_space<vmem>>, vector<32x32xbf16>
    %cst = arith.constant dense<0.000000e+00> : vector<128x32xf32>
    %6 = tpu.matmul %4, %5, %cst {dimension_numbers = #tpu.dot_dimension_numbers<[1], [0], [0], [1], [0, 0, 1, 1], [], []>} : vector<128x32xbf16>, vector<32x32xbf16>, vector<128x32xf32> -> vector<128x32xf32>
    %c0_5 = arith.constant 0 : index
    %c0_6 = arith.constant 0 : index
    %7 = vector.load %arg6[%c0_5, %c0_6] : memref<1x32xf32, #tpu.memory_space<vmem>>, vector<1x32xf32>
    %8 = vector.broadcast %7 : vector<1x32xf32> to vector<128x32xf32>
    %9 = arith.addf %6, %8 : vector<128x32xf32>
    %10 = arith.truncf %9 : vector<128x32xf32> to vector<128x32xbf16>
    %11 = vector.extract_strided_slice %10 {offsets = [0, 0], sizes = [128, 8], strides = [1, 1]} : vector<128x32xbf16> to vector<128x8xbf16>
    %cst_7 = arith.constant 0xFF800000 : f32
    %12 = vector.broadcast %cst_7 : f32 to vector<128x1xf32>
    %cst_8 = arith.constant 0.000000e+00 : f32
    %13 = vector.broadcast %cst_8 : f32 to vector<128x1xf32>
    %cst_9 = arith.constant 0.000000e+00 : f32
    %14 = vector.broadcast %cst_9 : f32 to vector<128x8xf32>
    %c0_i32_10 = arith.constant 0 : i32
    %c3_i32 = arith.constant 3 : i32
    %15 = arith.addi %c0_i32_10, %c3_i32 : i32
    %c1_i32 = arith.constant 1 : i32
    %16:3 = scf.for %arg16 = %c0_i32_10 to %15 step %c1_i32 iter_args(%arg17 = %12, %arg18 = %13, %arg19 = %14) -> (vector<128x1xf32>, vector<128x1xf32>, vector<128x8xf32>)  : i32 {
      %c128_i32 = arith.constant 128 : i32
      %57 = arith.muli %arg16, %c128_i32 : i32
      %58 = tpu.assume_multiple %57, 128 : i32
      %59 = arith.index_cast %58 : i32 to index
      %c0_41 = arith.constant 0 : index
      %60 = vector.load %arg14[%59, %c0_41] : memref<384x32xbf16, #tpu.memory_space<vmem>>, vector<128x32xbf16>
      %61 = arith.index_cast %58 : i32 to index
      %c0_42 = arith.constant 0 : index
      %62 = vector.load %arg15[%61, %c0_42] : memref<384x32xbf16, #tpu.memory_space<vmem>>, vector<128x32xbf16>
      %63 = vector.extract_strided_slice %60 {offsets = [0, 0], sizes = [128, 8], strides = [1, 1]} : vector<128x32xbf16> to vector<128x8xbf16>
      %64 = vector.extract_strided_slice %62 {offsets = [0, 0], sizes = [128, 8], strides = [1, 1]} : vector<128x32xbf16> to vector<128x8xbf16>
      %cst_43 = arith.constant dense<0.000000e+00> : vector<128x128xf32>
      %65 = tpu.matmul %11, %63, %cst_43 {dimension_numbers = #tpu.dot_dimension_numbers<[1], [1], [0], [0], [0, 0, 1, 0], [], []>} : vector<128x8xbf16>, vector<128x8xbf16>, vector<128x128xf32> -> vector<128x128xf32>
      %cst_44 = arith.constant 0.353553385 : f32
      %66 = vector.broadcast %cst_44 : f32 to vector<128x128xf32>
      %67 = arith.mulf %65, %66 : vector<128x128xf32>
      %cst_45 = arith.constant dense<0xFF800000> : vector<128xf32>
      %68 = vector.multi_reduction <maximumf>, %67, %cst_45 [1] : vector<128x128xf32> to vector<128xf32>
      %69 = vector.shape_cast %68 : vector<128xf32> to vector<128x1xf32>
      %70 = arith.maximumf %arg17, %69 : vector<128x1xf32>
      %71 = arith.subf %arg17, %70 : vector<128x1xf32>
      %72 = math.exp %71 : vector<128x1xf32>
      %73 = vector.broadcast %70 : vector<128x1xf32> to vector<128x128xf32>
      %74 = arith.subf %67, %73 : vector<128x128xf32>
      %75 = math.exp %74 : vector<128x128xf32>
      %76 = arith.mulf %72, %arg18 : vector<128x1xf32>
      %cst_46 = arith.constant dense<0.000000e+00> : vector<128xf32>
      %77 = vector.multi_reduction <add>, %75, %cst_46 [1] : vector<128x128xf32> to vector<128xf32>
      %78 = vector.shape_cast %77 : vector<128xf32> to vector<128x1xf32>
      %79 = arith.addf %76, %78 : vector<128x1xf32>
      %80 = vector.broadcast %72 : vector<128x1xf32> to vector<128x8xf32>
      %81 = arith.mulf %80, %arg19 : vector<128x8xf32>
      %82 = arith.truncf %75 : vector<128x128xf32> to vector<128x128xbf16>
      %cst_47 = arith.constant dense<0.000000e+00> : vector<128x8xf32>
      %83 = tpu.matmul %82, %64, %cst_47 {dimension_numbers = #tpu.dot_dimension_numbers<[1], [0], [0], [1], [0, 0, 1, 1], [], []>} : vector<128x128xbf16>, vector<128x8xbf16>, vector<128x8xf32> -> vector<128x8xf32>
      %84 = arith.addf %81, %83 : vector<128x8xf32>
      scf.yield %70, %79, %84 : vector<128x1xf32>, vector<128x1xf32>, vector<128x8xf32>
    }
    %c3_i32_11 = arith.constant 3 : i32
    %17 = tpu.reciprocal %16#1 {approx = true} : vector<128x1xf32> -> vector<128x1xf32>
    %18 = vector.broadcast %17 : vector<128x1xf32> to vector<128x8xf32>
    %19 = arith.mulf %16#2, %18 : vector<128x8xf32>
    %20 = vector.extract_strided_slice %10 {offsets = [0, 8], sizes = [128, 8], strides = [1, 1]} : vector<128x32xbf16> to vector<128x8xbf16>
    %cst_12 = arith.constant 0xFF800000 : f32
    %21 = vector.broadcast %cst_12 : f32 to vector<128x1xf32>
    %cst_13 = arith.constant 0.000000e+00 : f32
    %22 = vector.broadcast %cst_13 : f32 to vector<128x1xf32>
    %cst_14 = arith.constant 0.000000e+00 : f32
    %23 = vector.broadcast %cst_14 : f32 to vector<128x8xf32>
    %c0_i32_15 = arith.constant 0 : i32
    %c3_i32_16 = arith.constant 3 : i32
    %24 = arith.addi %c0_i32_15, %c3_i32_16 : i32
    %c1_i32_17 = arith.constant 1 : i32
    %25:3 = scf.for %arg16 = %c0_i32_15 to %24 step %c1_i32_17 iter_args(%arg17 = %21, %arg18 = %22, %arg19 = %23) -> (vector<128x1xf32>, vector<128x1xf32>, vector<128x8xf32>)  : i32 {
      %c128_i32 = arith.constant 128 : i32
      %57 = arith.muli %arg16, %c128_i32 : i32
      %58 = tpu.assume_multiple %57, 128 : i32
      %59 = arith.index_cast %58 : i32 to index
      %c0_41 = arith.constant 0 : index
      %60 = vector.load %arg14[%59, %c0_41] : memref<384x32xbf16, #tpu.memory_space<vmem>>, vector<128x32xbf16>
      %61 = arith.index_cast %58 : i32 to index
      %c0_42 = arith.constant 0 : index
      %62 = vector.load %arg15[%61, %c0_42] : memref<384x32xbf16, #tpu.memory_space<vmem>>, vector<128x32xbf16>
      %63 = vector.extract_strided_slice %60 {offsets = [0, 8], sizes = [128, 8], strides = [1, 1]} : vector<128x32xbf16> to vector<128x8xbf16>
      %64 = vector.extract_strided_slice %62 {offsets = [0, 8], sizes = [128, 8], strides = [1, 1]} : vector<128x32xbf16> to vector<128x8xbf16>
      %cst_43 = arith.constant dense<0.000000e+00> : vector<128x128xf32>
      %65 = tpu.matmul %20, %63, %cst_43 {dimension_numbers = #tpu.dot_dimension_numbers<[1], [1], [0], [0], [0, 0, 1, 0], [], []>} : vector<128x8xbf16>, vector<128x8xbf16>, vector<128x128xf32> -> vector<128x128xf32>
      %cst_44 = arith.constant 0.353553385 : f32
      %66 = vector.broadcast %cst_44 : f32 to vector<128x128xf32>
      %67 = arith.mulf %65, %66 : vector<128x128xf32>
      %cst_45 = arith.constant dense<0xFF800000> : vector<128xf32>
      %68 = vector.multi_reduction <maximumf>, %67, %cst_45 [1] : vector<128x128xf32> to vector<128xf32>
      %69 = vector.shape_cast %68 : vector<128xf32> to vector<128x1xf32>
      %70 = arith.maximumf %arg17, %69 : vector<128x1xf32>
      %71 = arith.subf %arg17, %70 : vector<128x1xf32>
      %72 = math.exp %71 : vector<128x1xf32>
      %73 = vector.broadcast %70 : vector<128x1xf32> to vector<128x128xf32>
      %74 = arith.subf %67, %73 : vector<128x128xf32>
      %75 = math.exp %74 : vector<128x128xf32>
      %76 = arith.mulf %72, %arg18 : vector<128x1xf32>
      %cst_46 = arith.constant dense<0.000000e+00> : vector<128xf32>
      %77 = vector.multi_reduction <add>, %75, %cst_46 [1] : vector<128x128xf32> to vector<128xf32>
      %78 = vector.shape_cast %77 : vector<128xf32> to vector<128x1xf32>
      %79 = arith.addf %76, %78 : vector<128x1xf32>
      %80 = vector.broadcast %72 : vector<128x1xf32> to vector<128x8xf32>
      %81 = arith.mulf %80, %arg19 : vector<128x8xf32>
      %82 = arith.truncf %75 : vector<128x128xf32> to vector<128x128xbf16>
      %cst_47 = arith.constant dense<0.000000e+00> : vector<128x8xf32>
      %83 = tpu.matmul %82, %64, %cst_47 {dimension_numbers = #tpu.dot_dimension_numbers<[1], [0], [0], [1], [0, 0, 1, 1], [], []>} : vector<128x128xbf16>, vector<128x8xbf16>, vector<128x8xf32> -> vector<128x8xf32>
      %84 = arith.addf %81, %83 : vector<128x8xf32>
      scf.yield %70, %79, %84 : vector<128x1xf32>, vector<128x1xf32>, vector<128x8xf32>
    }
    %c3_i32_18 = arith.constant 3 : i32
    %26 = tpu.reciprocal %25#1 {approx = true} : vector<128x1xf32> -> vector<128x1xf32>
    %27 = vector.broadcast %26 : vector<128x1xf32> to vector<128x8xf32>
    %28 = arith.mulf %25#2, %27 : vector<128x8xf32>
    %29 = vector.extract_strided_slice %10 {offsets = [0, 16], sizes = [128, 8], strides = [1, 1]} : vector<128x32xbf16> to vector<128x8xbf16>
    %cst_19 = arith.constant 0xFF800000 : f32
    %30 = vector.broadcast %cst_19 : f32 to vector<128x1xf32>
    %cst_20 = arith.constant 0.000000e+00 : f32
    %31 = vector.broadcast %cst_20 : f32 to vector<128x1xf32>
    %cst_21 = arith.constant 0.000000e+00 : f32
    %32 = vector.broadcast %cst_21 : f32 to vector<128x8xf32>
    %c0_i32_22 = arith.constant 0 : i32
    %c3_i32_23 = arith.constant 3 : i32
    %33 = arith.addi %c0_i32_22, %c3_i32_23 : i32
    %c1_i32_24 = arith.constant 1 : i32
    %34:3 = scf.for %arg16 = %c0_i32_22 to %33 step %c1_i32_24 iter_args(%arg17 = %30, %arg18 = %31, %arg19 = %32) -> (vector<128x1xf32>, vector<128x1xf32>, vector<128x8xf32>)  : i32 {
      %c128_i32 = arith.constant 128 : i32
      %57 = arith.muli %arg16, %c128_i32 : i32
      %58 = tpu.assume_multiple %57, 128 : i32
      %59 = arith.index_cast %58 : i32 to index
      %c0_41 = arith.constant 0 : index
      %60 = vector.load %arg14[%59, %c0_41] : memref<384x32xbf16, #tpu.memory_space<vmem>>, vector<128x32xbf16>
      %61 = arith.index_cast %58 : i32 to index
      %c0_42 = arith.constant 0 : index
      %62 = vector.load %arg15[%61, %c0_42] : memref<384x32xbf16, #tpu.memory_space<vmem>>, vector<128x32xbf16>
      %63 = vector.extract_strided_slice %60 {offsets = [0, 16], sizes = [128, 8], strides = [1, 1]} : vector<128x32xbf16> to vector<128x8xbf16>
      %64 = vector.extract_strided_slice %62 {offsets = [0, 16], sizes = [128, 8], strides = [1, 1]} : vector<128x32xbf16> to vector<128x8xbf16>
      %cst_43 = arith.constant dense<0.000000e+00> : vector<128x128xf32>
      %65 = tpu.matmul %29, %63, %cst_43 {dimension_numbers = #tpu.dot_dimension_numbers<[1], [1], [0], [0], [0, 0, 1, 0], [], []>} : vector<128x8xbf16>, vector<128x8xbf16>, vector<128x128xf32> -> vector<128x128xf32>
      %cst_44 = arith.constant 0.353553385 : f32
      %66 = vector.broadcast %cst_44 : f32 to vector<128x128xf32>
      %67 = arith.mulf %65, %66 : vector<128x128xf32>
      %cst_45 = arith.constant dense<0xFF800000> : vector<128xf32>
      %68 = vector.multi_reduction <maximumf>, %67, %cst_45 [1] : vector<128x128xf32> to vector<128xf32>
      %69 = vector.shape_cast %68 : vector<128xf32> to vector<128x1xf32>
      %70 = arith.maximumf %arg17, %69 : vector<128x1xf32>
      %71 = arith.subf %arg17, %70 : vector<128x1xf32>
      %72 = math.exp %71 : vector<128x1xf32>
      %73 = vector.broadcast %70 : vector<128x1xf32> to vector<128x128xf32>
      %74 = arith.subf %67, %73 : vector<128x128xf32>
      %75 = math.exp %74 : vector<128x128xf32>
      %76 = arith.mulf %72, %arg18 : vector<128x1xf32>
      %cst_46 = arith.constant dense<0.000000e+00> : vector<128xf32>
      %77 = vector.multi_reduction <add>, %75, %cst_46 [1] : vector<128x128xf32> to vector<128xf32>
      %78 = vector.shape_cast %77 : vector<128xf32> to vector<128x1xf32>
      %79 = arith.addf %76, %78 : vector<128x1xf32>
      %80 = vector.broadcast %72 : vector<128x1xf32> to vector<128x8xf32>
      %81 = arith.mulf %80, %arg19 : vector<128x8xf32>
      %82 = arith.truncf %75 : vector<128x128xf32> to vector<128x128xbf16>
      %cst_47 = arith.constant dense<0.000000e+00> : vector<128x8xf32>
      %83 = tpu.matmul %82, %64, %cst_47 {dimension_numbers = #tpu.dot_dimension_numbers<[1], [0], [0], [1], [0, 0, 1, 1], [], []>} : vector<128x128xbf16>, vector<128x8xbf16>, vector<128x8xf32> -> vector<128x8xf32>
      %84 = arith.addf %81, %83 : vector<128x8xf32>
      scf.yield %70, %79, %84 : vector<128x1xf32>, vector<128x1xf32>, vector<128x8xf32>
    }
    %c3_i32_25 = arith.constant 3 : i32
    %35 = tpu.reciprocal %34#1 {approx = true} : vector<128x1xf32> -> vector<128x1xf32>
    %36 = vector.broadcast %35 : vector<128x1xf32> to vector<128x8xf32>
    %37 = arith.mulf %34#2, %36 : vector<128x8xf32>
    %38 = vector.extract_strided_slice %10 {offsets = [0, 24], sizes = [128, 8], strides = [1, 1]} : vector<128x32xbf16> to vector<128x8xbf16>
    %cst_26 = arith.constant 0xFF800000 : f32
    %39 = vector.broadcast %cst_26 : f32 to vector<128x1xf32>
    %cst_27 = arith.constant 0.000000e+00 : f32
    %40 = vector.broadcast %cst_27 : f32 to vector<128x1xf32>
    %cst_28 = arith.constant 0.000000e+00 : f32
    %41 = vector.broadcast %cst_28 : f32 to vector<128x8xf32>
    %c0_i32_29 = arith.constant 0 : i32
    %c3_i32_30 = arith.constant 3 : i32
    %42 = arith.addi %c0_i32_29, %c3_i32_30 : i32
    %c1_i32_31 = arith.constant 1 : i32
    %43:3 = scf.for %arg16 = %c0_i32_29 to %42 step %c1_i32_31 iter_args(%arg17 = %39, %arg18 = %40, %arg19 = %41) -> (vector<128x1xf32>, vector<128x1xf32>, vector<128x8xf32>)  : i32 {
      %c128_i32 = arith.constant 128 : i32
      %57 = arith.muli %arg16, %c128_i32 : i32
      %58 = tpu.assume_multiple %57, 128 : i32
      %59 = arith.index_cast %58 : i32 to index
      %c0_41 = arith.constant 0 : index
      %60 = vector.load %arg14[%59, %c0_41] : memref<384x32xbf16, #tpu.memory_space<vmem>>, vector<128x32xbf16>
      %61 = arith.index_cast %58 : i32 to index
      %c0_42 = arith.constant 0 : index
      %62 = vector.load %arg15[%61, %c0_42] : memref<384x32xbf16, #tpu.memory_space<vmem>>, vector<128x32xbf16>
      %63 = vector.extract_strided_slice %60 {offsets = [0, 24], sizes = [128, 8], strides = [1, 1]} : vector<128x32xbf16> to vector<128x8xbf16>
      %64 = vector.extract_strided_slice %62 {offsets = [0, 24], sizes = [128, 8], strides = [1, 1]} : vector<128x32xbf16> to vector<128x8xbf16>
      %cst_43 = arith.constant dense<0.000000e+00> : vector<128x128xf32>
      %65 = tpu.matmul %38, %63, %cst_43 {dimension_numbers = #tpu.dot_dimension_numbers<[1], [1], [0], [0], [0, 0, 1, 0], [], []>} : vector<128x8xbf16>, vector<128x8xbf16>, vector<128x128xf32> -> vector<128x128xf32>
      %cst_44 = arith.constant 0.353553385 : f32
      %66 = vector.broadcast %cst_44 : f32 to vector<128x128xf32>
      %67 = arith.mulf %65, %66 : vector<128x128xf32>
      %cst_45 = arith.constant dense<0xFF800000> : vector<128xf32>
      %68 = vector.multi_reduction <maximumf>, %67, %cst_45 [1] : vector<128x128xf32> to vector<128xf32>
      %69 = vector.shape_cast %68 : vector<128xf32> to vector<128x1xf32>
      %70 = arith.maximumf %arg17, %69 : vector<128x1xf32>
      %71 = arith.subf %arg17, %70 : vector<128x1xf32>
      %72 = math.exp %71 : vector<128x1xf32>
      %73 = vector.broadcast %70 : vector<128x1xf32> to vector<128x128xf32>
      %74 = arith.subf %67, %73 : vector<128x128xf32>
      %75 = math.exp %74 : vector<128x128xf32>
      %76 = arith.mulf %72, %arg18 : vector<128x1xf32>
      %cst_46 = arith.constant dense<0.000000e+00> : vector<128xf32>
      %77 = vector.multi_reduction <add>, %75, %cst_46 [1] : vector<128x128xf32> to vector<128xf32>
      %78 = vector.shape_cast %77 : vector<128xf32> to vector<128x1xf32>
      %79 = arith.addf %76, %78 : vector<128x1xf32>
      %80 = vector.broadcast %72 : vector<128x1xf32> to vector<128x8xf32>
      %81 = arith.mulf %80, %arg19 : vector<128x8xf32>
      %82 = arith.truncf %75 : vector<128x128xf32> to vector<128x128xbf16>
      %cst_47 = arith.constant dense<0.000000e+00> : vector<128x8xf32>
      %83 = tpu.matmul %82, %64, %cst_47 {dimension_numbers = #tpu.dot_dimension_numbers<[1], [0], [0], [1], [0, 0, 1, 1], [], []>} : vector<128x128xbf16>, vector<128x8xbf16>, vector<128x8xf32> -> vector<128x8xf32>
      %84 = arith.addf %81, %83 : vector<128x8xf32>
      scf.yield %70, %79, %84 : vector<128x1xf32>, vector<128x1xf32>, vector<128x8xf32>
    }
    %c3_i32_32 = arith.constant 3 : i32
    %44 = tpu.reciprocal %43#1 {approx = true} : vector<128x1xf32> -> vector<128x1xf32>
    %45 = vector.broadcast %44 : vector<128x1xf32> to vector<128x8xf32>
    %46 = arith.mulf %43#2, %45 : vector<128x8xf32>
    %47 = tpu.concatenate %19, %28, %37, %46 in 1 : vector<128x8xf32>, vector<128x8xf32>, vector<128x8xf32>, vector<128x8xf32> -> vector<128x32xf32>
    %48 = arith.truncf %47 : vector<128x32xf32> to vector<128x32xbf16>
    %c0_33 = arith.constant 0 : index
    %c0_34 = arith.constant 0 : index
    %49 = vector.load %arg11[%c0_33, %c0_34] : memref<32x32xbf16, #tpu.memory_space<vmem>>, vector<32x32xbf16>
    %cst_35 = arith.constant dense<0.000000e+00> : vector<128x32xf32>
    %50 = tpu.matmul %48, %49, %cst_35 {dimension_numbers = #tpu.dot_dimension_numbers<[1], [0], [0], [1], [0, 0, 1, 1], [], []>} : vector<128x32xbf16>, vector<32x32xbf16>, vector<128x32xf32> -> vector<128x32xf32>
    %c0_36 = arith.constant 0 : index
    %c0_37 = arith.constant 0 : index
    %51 = vector.load %arg12[%c0_36, %c0_37] : memref<1x32xf32, #tpu.memory_space<vmem>>, vector<1x32xf32>
    %52 = vector.broadcast %51 : vector<1x32xf32> to vector<128x32xf32>
    %53 = arith.addf %50, %52 : vector<128x32xf32>
    %c0_38 = arith.constant 0 : index
    %c0_39 = arith.constant 0 : index
    %c0_40 = arith.constant 0 : index
    %54 = vector.load %arg13[%c0_38, %c0_39, %c0_40] : memref<1x128x32xf32, #tpu.memory_space<vmem>>, vector<1x128x32xf32>
    %55 = vector.shape_cast %54 : vector<1x128x32xf32> to vector<128x32xf32>
    %56 = vector.shape_cast %53 : vector<128x32xf32> to vector<1x128x32xf32>
    tpu.vector_store %arg13[%c0_38, %c0_39, %c0_40], %56 {strides = array<i32>} : memref<1x128x32xf32, #tpu.memory_space<vmem>>, vector<1x128x32xf32>,
    return
  }
  func.func @transform_0(%arg0: i32, %arg1: i32) -> (i32, i32, i32) {
    %c0_i32 = arith.constant 0 : i32
    %c0_i32_0 = arith.constant 0 : i32
    return %arg0, %arg1, %c0_i32 : i32, i32, i32
  }
  func.func @transform_1(%arg0: i32, %arg1: i32) -> (i32, i32, i32) {
    %c0_i32 = arith.constant 0 : i32
    %c0_i32_0 = arith.constant 0 : i32
    %c0_i32_1 = arith.constant 0 : i32
    return %arg0, %c0_i32, %c0_i32_0 : i32, i32, i32
  }
  func.func @transform_2(%arg0: i32, %arg1: i32) -> (i32, i32, i32) {
    %c0_i32 = arith.constant 0 : i32
    %c0_i32_0 = arith.constant 0 : i32
    %c0_i32_1 = arith.constant 0 : i32
    return %arg0, %c0_i32, %c0_i32_0 : i32, i32, i32
  }
  func.func @transform_3(%arg0: i32, %arg1: i32) -> (i32, i32) {
    %c0_i32 = arith.constant 0 : i32
    %c0_i32_0 = arith.constant 0 : i32
    %c0_i32_1 = arith.constant 0 : i32
    return %c0_i32, %c0_i32_0 : i32, i32
  }
  func.func @transform_4(%arg0: i32, %arg1: i32) -> (i32, i32) {
    %c0_i32 = arith.constant 0 : i32
    %c0_i32_0 = arith.constant 0 : i32
    %c0_i32_1 = arith.constant 0 : i32
    return %c0_i32, %c0_i32_0 : i32, i32
  }
  func.func @transform_5(%arg0: i32, %arg1: i32) -> (i32, i32) {
    %c0_i32 = arith.constant 0 : i32
    %c0_i32_0 = arith.constant 0 : i32
    %c0_i32_1 = arith.constant 0 : i32
    return %c0_i32, %c0_i32_0 : i32, i32
  }
  func.func @transform_6(%arg0: i32, %arg1: i32) -> (i32, i32) {
    %c0_i32 = arith.constant 0 : i32
    %c0_i32_0 = arith.constant 0 : i32
    %c0_i32_1 = arith.constant 0 : i32
    return %c0_i32, %c0_i32_0 : i32, i32
  }
  func.func @transform_7(%arg0: i32, %arg1: i32) -> (i32, i32) {
    %c0_i32 = arith.constant 0 : i32
    %c0_i32_0 = arith.constant 0 : i32
    %c0_i32_1 = arith.constant 0 : i32
    return %c0_i32, %c0_i32_0 : i32, i32
  }
  func.func @transform_8(%arg0: i32, %arg1: i32) -> (i32, i32) {
    %c0_i32 = arith.constant 0 : i32
    %c0_i32_0 = arith.constant 0 : i32
    %c0_i32_1 = arith.constant 0 : i32
    return %c0_i32, %c0_i32_0 : i32, i32
  }
  func.func @transform_9(%arg0: i32, %arg1: i32) -> (i32, i32) {
    %c0_i32 = arith.constant 0 : i32
    %c0_i32_0 = arith.constant 0 : i32
    %c0_i32_1 = arith.constant 0 : i32
    return %c0_i32, %c0_i32_0 : i32, i32
  }
  func.func @transform_10(%arg0: i32, %arg1: i32) -> (i32, i32) {
    %c0_i32 = arith.constant 0 : i32
    %c0_i32_0 = arith.constant 0 : i32
    %c0_i32_1 = arith.constant 0 : i32
    return %c0_i32, %c0_i32_0 : i32, i32
  }
  func.func @transform_11(%arg0: i32, %arg1: i32) -> (i32, i32, i32) {
    %c0_i32 = arith.constant 0 : i32
    %c0_i32_0 = arith.constant 0 : i32
    return %arg0, %arg1, %c0_i32 : i32, i32, i32
  }
}

</mosaic_0001>

<bundles_post_ra>
// kernel: multi_headed_attention.1
= control target key start
LH: loop header
LB: loop body
LE: loop exit
PB: predicated region body
PF: predicated region fallthrough
CT: control target
= control target key end

     0   :  { %s15603_s0 = inlined_call_operand.hbm [shape: bf16[2,256,32], index: 0, kind: input, shape index: {}]   ;;  %s15604_s1 = inlined_call_operand.hbm [shape: bf16[2,384,32], index: 1, kind: input, shape index: {}]   ;;  %s15605_s2 = inlined_call_operand.hbm [shape: bf16[2,384,32], index: 2, kind: input, shape index: {}]   ;;  %s15606_s3 = inlined_call_operand.hbm [shape: bf16[32,32], index: 3, kind: input, shape index: {}]   ;;  %s15607_s4 = inlined_call_operand.hbm [shape: f32[1,32], index: 4, kind: input, shape index: {}]   ;;  %s15608_s5 = inlined_call_operand.hbm [shape: bf16[32,32], index: 5, kind: input, shape index: {}]   ;;  %s15609_s6 = inlined_call_operand.hbm [shape: f32[1,32], index: 6, kind: input, shape index: {}]   ;;  %s15610_s7 = inlined_call_operand.hbm [shape: bf16[32,32], index: 7, kind: input, shape index: {}]   ;;  %s15611_s8 = inlined_call_operand.hbm [shape: f32[1,32], index: 8, kind: input, shape index: {}]   ;;  %s15612_s9 = inlined_call_operand.hbm [shape: bf16[32,32], index: 9, kind: input, shape index: {}]   ;;  %s15613_s10 = inlined_call_operand.hbm [shape: f32[1,32], index: 10, kind: input, shape index: {}]   ;;  %s15614_s11 = inlined_call_operand.hbm [shape: f32[2,256,32], index: 11, kind: output, shape index: {}]  }
   0x1   :  { %15763 = sst [smem:[#allocation213_spill]] %s15603_s0 }
   0x2   :  { %15764 = sst [smem:[#allocation214_spill]] %s15604_s1 }
   0x3   :  { %15765 = sst [smem:[#allocation215_spill]] %s15605_s2 }
   0x4   :  { %15766 = sst [smem:[#allocation216_spill]] %s15606_s3 }
   0x5   :  { %15767 = sst [smem:[#allocation217_spill]] %s15607_s4 }
   0x6   :  { %15768 = sst [smem:[#allocation218_spill]] %s15608_s5 }
   0x7   :  { %15769 = sst [smem:[#allocation219_spill]] %s15609_s6 }
   0x8   :  { %15770 = sst [smem:[#allocation220_spill]] %s15610_s7 }
   0x9   :  { %15771 = sst [smem:[#allocation221_spill]] %s15611_s8 }
   0xa   :  { %15772 = sst [smem:[#allocation222_spill]] %s15612_s9 }
   0xb   :  { %15773 = sst [smem:[#allocation223_spill]] %s15613_s10 }
   0xc   :  { %15774 = sst [smem:[#allocation224_spill]] %s15614_s11 }
   0xd   :  { %16 = vsyncpa [#allocation5], 0 }
   0xe   :  { %18 = vsyncpa [#allocation5 + $0x1], 0 }
   0xf   :  { %19 = vsyncpa [#allocation8], 0 }
  0x10   :  { %21 = vsyncpa [#allocation8 + $0x1], 0 }
  0x11   :  { %22 = vsyncpa [#allocation11], 0 }
  0x12   :  { %23 = vsyncpa [#allocation14], 0 }
  0x13   :  { %24 = vsyncpa [#allocation17], 0 }
  0x14   :  { %25 = vsyncpa [#allocation20], 0 }
  0x15   :  { %26 = vsyncpa [#allocation6], 0 }
  0x16   :  { %28 = vsyncpa [#allocation6 + $0x1], 0  ;;  %s11151_s17 = smov 0   ;;  %s11153_s18 = smov 0  }
  0x17   :  { %s11155_s19 = smov 0   ;;  %s11157_s20 = smov 0  }
  0x18   :  { %s11159_s21 = smov 0   ;;  %s11161_s22 = smov 0  }
  0x19   :  { %s11163_s23 = smov 0   ;;  %s11165_s24 = smov 0  }
  0x1a   :  { %s11167_s25 = smov 0   ;;  %s11169_s26 = smov 0  }
  0x1b   :  { %s11171_s27 = smov 0  }
  0x1c LB: > { %15775 = sst [smem:[#allocation30_spill]] %s10256_s20  ;;  %s11207_s28 = sadd.s32 4294967295, %s10284_s27   ;;  %s10284_s27 = sphi %s11171_s27, %s34_s27   ;;  %s10280_s26 = sphi %s11169_s26, %s16800_s26   ;;  %s10276_s25 = sphi %s11167_s25, %s16793_s25   ;;  %s10272_s24 = sphi %s11165_s24, %s16799_s24   ;;  %s10268_s23 = sphi %s11163_s23, %s16792_s23   ;;  %s10264_s22 = sphi %s11161_s22, %s16798_s22   ;;  %s10260_s21 = sphi %s11159_s21, %s16791_s21   ;;  %s10256_s20 = sphi %s11157_s20, %s16790_s20   ;;  %s10252_s19 = sphi %s11155_s19, %s16797_s19   ;;  %s10248_s18 = sphi %s11153_s18, %s16796_s18   ;;  %s10244_s17 = sphi %s11151_s17, %s16795_s17  }
  0x1d   : > { %15776 = sst [smem:[#allocation31_spill]] %s10260_s21  ;;  %p5851_p0 = scmp.ge.s32.totalorder %s10284_s27, 1 }
  0x1e   : > { %15777 = sst [smem:[#allocation32_spill]] %s10264_s22  ;;  %p15622_p1 = scmp.eq.s32.totalorder %s11207_s28, 0 }
  0x1f   : > { %15778 = sst [smem:[#allocation33_spill]] %s10268_s23  ;;  %p327_p2 = scmp.lt.s32.totalorder %s10284_s27, 5 }
  0x20   : > { %15779 = sst [smem:[#allocation34_spill]] %s10272_s24  ;;  %s11070_s30 = smov [#allocation10]  }
  0x21   : > { %15780 = sst [smem:[#allocation35_spill]] %s10276_s25  ;;  %p11212_p3 = pnand %p5851_p0, %p327_p2 }
  0x22   : > { %s339_s12 = sshll.u32 %s11070_s30, 4  ;;  %s11071_s14 = smov [#allocation13]   ;;  %s11216_s12 = int_to_ptr.vmem [resolvable:$true] %s339_s12 }
  0x23   : > { %s15781_s29 = scalar_select %p11212_p3, 1, 0 }
  0x24   : > { %p6746_p4 = pneg %p11212_p3  ;;  %s363_s15 = sshll.u32 %s11071_s14, 4  ;;  %s11226_s15 = int_to_ptr.vmem [resolvable:$true] %s363_s15 }
  0x25   : > { %15782 = sst [smem:[#allocation36_spill]] %s15781_s29  ;;  %s11072_s16 = smov [#allocation16]  }
  0x26   : > { %p11222_p5 = pnand %p6746_p4, %p15622_p1  ;;  %s11228_s11 = sshll.u32 %s11072_s16, 4  ;;  %s388_s11 = int_to_ptr.vmem [resolvable:$true] %s11228_s11 }
  0x27   : > { %s15784_s3 = sld [smem:[#allocation216_spill]] }
  0x28   : > { %s15783_s13 = scalar_select %p11222_p5, 1, 0 }
  0x29   : > { %p11238_p7 = pneg %p11222_p5 }
  0x2d   : > { %s9044_s30 = scalar_lea.hbm %s15784_s3, 256 }
  0x2e   : > { %p9045_p6 = scmp.ne.s32.totalorder %s15784_s3, %s9044_s30  ;;  %p9051_p10 = scmp.lt.u32.totalorder %s9044_s30, %s15784_s3 }
  0x30   : > { %p9047_p8 = pnand %p11238_p7, %p9045_p6 }
  0x32   : > { %p9048_p9 = pneg %p9047_p8 }
  0x34   : > { %p9053_p11 = pnand %p9051_p10, %p9048_p9 }
  0x36   : > { %9056 = shalt.err (!%p9053_p11)
}
  0x37   : > { %s9057_s2 = scalar_lea.vmem %s11216_s12, 256  ;;  %p9065_p2 = scmp.lt.s32.totalorder %s11216_s12, %s11216_s12 }
  0x38   : > { %p9058_p12 = scmp.ne.s32.totalorder %s11216_s12, %s9057_s2  ;;  %p9066_p4 = scmp.lt.s32.totalorder %s9057_s2, %s9057_s2 }
  0x3a   : > { %p9060_p13 = pnand %p9058_p12, %p11238_p7  ;;  %p9067_p6 = por %p9066_p4, %p9065_p2 }
  0x3c   : > { %p9061_p0 = pneg %p9060_p13 }
  0x3e   : > { %p9068_p8 = pnand %p9067_p6, %p9061_p0 }
  0x40   : > { %9071 = shalt.err (!%p9068_p8)
}
  0x41   : > { %s15624_s23 = smov 64   ;;  %s15627_s24 = smov 4  }
  0x42   : > { %6749 = dma.hbm_to_vmem [thread:$0]  (!%p11222_p5), %s15784_s3, 256, %s11216_s12, [#allocation11], %s15624_s23, %s15624_s23, %s15627_s24  }
  0x43   : > { %s15786_s5 = sld [smem:[#allocation218_spill]] }
  0x49   : > { %s9072_s2 = scalar_lea.hbm %s15786_s5, 256 }
  0x4a   : > { %p9073_p9 = scmp.ne.s32.totalorder %s15786_s5, %s9072_s2  ;;  %p9079_p12 = scmp.lt.u32.totalorder %s9072_s2, %s15786_s5 }
  0x4c   : > { %p9075_p10 = pnand %p9073_p9, %p11238_p7 }
  0x4e   : > { %p9076_p11 = pneg %p9075_p10 }
  0x50   : > { %p9081_p13 = pnand %p9079_p12, %p9076_p11 }
  0x52   : > { %9084 = shalt.err (!%p9081_p13)
}
  0x53   : > { %s9085_s12 = scalar_lea.vmem %s11226_s15, 256  ;;  %p9093_p6 = scmp.lt.s32.totalorder %s11226_s15, %s11226_s15 }
  0x54   : > { %p9086_p0 = scmp.ne.s32.totalorder %s11226_s15, %s9085_s12  ;;  %p9094_p8 = scmp.lt.s32.totalorder %s9085_s12, %s9085_s12 }
  0x56   : > { %p9088_p2 = pnand %p9086_p0, %p11238_p7  ;;  %p9095_p9 = por %p9094_p8, %p9093_p6 }
  0x58   : > { %p9089_p4 = pneg %p9088_p2 }
  0x5a   : > { %p9096_p10 = pnand %p9095_p9, %p9089_p4 }
  0x5c   : > { %9099 = shalt.err (!%p9096_p10)
}
  0x5d   : > { %6755 = dma.hbm_to_vmem [thread:$0]  (!%p11222_p5), %s15786_s5, 256, %s11226_s15, [#allocation14], %s15624_s23, %s15624_s23, %s15627_s24  }
  0x5e   : > { %s15787_s7 = sld [smem:[#allocation220_spill]] }
  0x64   : > { %s9100_s29 = scalar_lea.hbm %s15787_s7, 256 }
  0x65   : > { %p9101_p11 = scmp.ne.s32.totalorder %s15787_s7, %s9100_s29  ;;  %p9107_p0 = scmp.lt.u32.totalorder %s9100_s29, %s15787_s7 }
  0x67   : > { %p9103_p12 = pnand %p9101_p11, %p11238_p7 }
  0x69   : > { %p9104_p13 = pneg %p9103_p12 }
  0x6b   : > { %p9109_p2 = pnand %p9107_p0, %p9104_p13 }
  0x6d   : > { %9112 = shalt.err (!%p9109_p2)
}
  0x6e   : > { %s9113_s12 = scalar_lea.vmem %s388_s11, 256  ;;  %p9121_p9 = scmp.lt.s32.totalorder %s388_s11, %s388_s11 }
  0x6f   : > { %p9114_p4 = scmp.ne.s32.totalorder %s388_s11, %s9113_s12  ;;  %p9122_p10 = scmp.lt.s32.totalorder %s9113_s12, %s9113_s12 }
  0x71   : > { %p9116_p6 = pnand %p9114_p4, %p11238_p7  ;;  %p9123_p1 = por %p9122_p10, %p9121_p9 }
  0x73   : > { %p9117_p8 = pneg %p9116_p6 }
  0x75   : > { %p9124_p3 = pnand %p9123_p1, %p9117_p8 }
  0x77   : > { %9127 = shalt.err (!%p9124_p3)
}
  0x78   : > { %6761 = dma.hbm_to_vmem [thread:$0]  (!%p11222_p5), %s15787_s7, 256, %s388_s11, [#allocation17], %s15624_s23, %s15624_s23, %s15627_s24  }
  0x79   : > { %s11075_s21 = smov [#allocation19]   ;;  %s15788_s9 = sld [smem:[#allocation222_spill]] }
  0x7a   : > { %s411_s22 = sshll.u32 %s11075_s21, 4  ;;  %s412_s22 = int_to_ptr.vmem [resolvable:$true] %s411_s22 }
  0x7f   : > { %s9128_s30 = scalar_lea.hbm %s15788_s9, 256 }
  0x80   : > { %p9129_p1 = scmp.ne.s32.totalorder %s15788_s9, %s9128_s30  ;;  %p9135_p12 = scmp.lt.u32.totalorder %s9128_s30, %s15788_s9 }
  0x82   : > { %p9131_p3 = pnand %p9129_p1, %p11238_p7 }
  0x84   : > { %p9132_p11 = pneg %p9131_p3 }
  0x86   : > { %p9137_p13 = pnand %p9135_p12, %p9132_p11 }
  0x88   : > { %9140 = shalt.err (!%p9137_p13)
}
  0x89   : > { %s9141_s11 = scalar_lea.vmem %s412_s22, 256  ;;  %p9149_p6 = scmp.lt.s32.totalorder %s412_s22, %s412_s22 }
  0x8a   : > { %p9142_p0 = scmp.ne.s32.totalorder %s412_s22, %s9141_s11  ;;  %p9150_p8 = scmp.lt.s32.totalorder %s9141_s11, %s9141_s11 }
  0x8c   : > { %p9144_p2 = pnand %p9142_p0, %p11238_p7  ;;  %p9151_p9 = por %p9150_p8, %p9149_p6 }
  0x8e   : > { %p9145_p4 = pneg %p9144_p2 }
  0x90   : > { %p9152_p10 = pnand %p9151_p9, %p9145_p4 }
  0x92   : > { %9155 = shalt.err (!%p9152_p10)
}
  0x93   : > { %6767 = dma.hbm_to_vmem [thread:$0]  (!%p11222_p5), %s15788_s9, 256, %s412_s22, [#allocation20], %s15624_s23, %s15624_s23, %s15627_s24  }
  0x94   : > { %p15630_p1 = scmp.eq.s32.totalorder %s10284_s27, 0  ;;  %p88_p3 = scmp.ne.s32.totalorder %s10252_s19, %s10248_s18 }
  0x95   : > { %p94_p11 = scmp.ne.s32.totalorder %s10248_s18, %s10244_s17  ;;  %p15629_p12 = scmp.lt.s32.totalorder %s10284_s27, 4 }
  0x96   : > { %s459_s25 = sand.u32 1, %s10284_s27   ;;  %p90_p13 = por %p88_p3, %p15630_p1 }
  0x97   : > { %p15789_p0 = scmp.eq.s32.totalorder %s11207_s28, 0  ;;  %s461_s30 = sand.u32 1, %s10252_s19  }
  0x98   : > { %s11348_s14 = smul.u32 192, %s461_s30  ;;  %p11352_p4 = pnand %p15629_p12, %p90_p13 }
  0x99   : > { %p11343_p2 = por %p94_p11, %p15789_p0  ;;  %s15626_s17 = smul.u32 3072, %s10280_s26 }
  0x9a   : > { %s15791_s22 = scalar_select %p11352_p4, 1, 0 }
  0x9b   : > { %s15790_s29 = scalar_select %p11343_p2, 1, 0 }
  0x9c   : > { %s15792_s1 = sld [smem:[#allocation214_spill]]  ;;  %s463_s11 = scalar_lea.vmem [#allocation7], %s11348_s14 }
  0x9d   : > { %s470_s15 = sshll.u32 %s463_s11, 4  ;;  %s11076_s20 = smov [#allocation12]   ;;  %s11365_s15 = int_to_ptr.vmem [resolvable:$true] %s470_s15 }
  0x9e   : > { %s11367_s30 = sshll.u32 %s11076_s20, 4  ;;  %s11369_s21 = scalar_lea.sflag [#allocation8], %s459_s25  ;;  %s354_s30 = int_to_ptr.vmem [resolvable:$true] %s11367_s30 }
  0x9f   : > { %p15634_p8 = pneg %p11352_p4 }
  0xa2   : > { %s11362_s12 = scalar_lea.hbm %s15792_s1, %s15626_s17  ;;  %s9161_s17 = scalar_lea.hbm %s15792_s1, 6144 }
  0xa3   : > { %s9156_s23 = scalar_lea.hbm %s11362_s12, 3072  ;;  %p9162_p3 = scmp.lt.u32.totalorder %s11362_s12, %s15792_s1 }
  0xa4   : > { %p9157_p6 = scmp.ne.s32.totalorder %s11362_s12, %s9156_s23  ;;  %p9163_p11 = scmp.lt.u32.totalorder %s9161_s17, %s9156_s23 }
  0xa5   : > { %p9165_p0 = scmp.lt.u32.totalorder %s9156_s23, %s11362_s12 }
  0xa6   : > { %p9159_p9 = pnand %p15634_p8, %p9157_p6  ;;  %p9164_p13 = por %p9163_p11, %p9162_p3 }
  0xa8   : > { %p9160_p10 = pneg %p9159_p9  ;;  %p9166_p12 = por %p9165_p0, %p9164_p13 }
  0xaa   : > { %p9167_p1 = pnand %p9166_p12, %p9160_p10 }
  0xac   : > { %9170 = shalt.err (!%p9167_p1)
}
  0xad   : > { %s9171_s25 = scalar_lea.vmem %s11365_s15, 3072  ;;  %s11077_s20 = smov [#allocation7]  }
  0xae   : > { %p9172_p6 = scmp.ne.s32.totalorder %s11365_s15, %s9171_s25  ;;  %s9176_s16 = sshll.u32 %s11077_s20, 4  ;;  %s9177_s16 = int_to_ptr.vmem [resolvable:$false] %s9176_s16 }
  0xaf   : > { %s9178_s24 = scalar_lea.vmem %s9177_s16, 6144  ;;  %p9179_p5 = scmp.lt.s32.totalorder %s11365_s15, %s9177_s16 }
  0xb0   : > { %p9174_p9 = pnand %p9172_p6, %p15634_p8  ;;  %p9180_p3 = scmp.lt.s32.totalorder %s9178_s24, %s9171_s25 }
  0xb2   : > { %p9175_p2 = pneg %p9174_p9  ;;  %p9181_p11 = por %p9180_p3, %p9179_p5 }
  0xb4   : > { %p9182_p13 = pnand %p9181_p11, %p9175_p2 }
  0xb6   : > { %9185 = shalt.err (!%p9182_p13)
}
  0xb7   : > { %s15793_s23 = smov 4   ;;  %s15794_s17 = smov 64  }
  0xb8   : > { %6777 = dma.hbm_to_vmem [thread:$0]  (!%p11352_p4), %s11362_s12, 3072, %s11365_s15, %s11369_s21, %s15794_s17, %s15794_s17, %s15793_s23  }
  0xb9   : > { %s15795_s4 = sld [smem:[#allocation217_spill]] }
  0xbf   : > { %s9186_s20 = scalar_lea.hbm %s15795_s4, 16 }
  0xc0   : > { %p9187_p5 = scmp.ne.s32.totalorder %s15795_s4, %s9186_s20  ;;  %p9193_p2 = scmp.lt.u32.totalorder %s9186_s20, %s15795_s4 }
  0xc2   : > { %p9189_p1 = pnand %p9187_p5, %p11238_p7 }
  0xc4   : > { %p9190_p12 = pneg %p9189_p1 }
  0xc6   : > { %p9195_p10 = pnand %p9193_p2, %p9190_p12 }
  0xc8   : > { %9198 = shalt.err (!%p9195_p10)
}
  0xc9   : > { %s9199_s3 = scalar_lea.vmem %s354_s30, 16  ;;  %s9206_s12 = scalar_lea.vmem %s354_s30, 32 }
  0xca   : > { %p9200_p0 = scmp.ne.s32.totalorder %s354_s30, %s9199_s3  ;;  %p9207_p3 = scmp.lt.s32.totalorder %s354_s30, %s354_s30 }
  0xcb   : > { %p9208_p11 = scmp.lt.s32.totalorder %s9206_s12, %s9199_s3 }
  0xcc   : > { %p9202_p6 = pnand %p9200_p0, %p11238_p7 }
  0xcd   : > { %p9209_p13 = por %p9208_p11, %p9207_p3 }
  0xce   : > { %p9203_p9 = pneg %p9202_p6 }
  0xd0   : > { %p9210_p8 = pnand %p9209_p13, %p9203_p9 }
  0xd2   : > { %9213 = shalt.err (!%p9210_p8)
}
  0xd3   : > { %p15796_p5 = scmp.ne.s32.totalorder %s15783_s13, 0  ;;  %s11078_s1 = smov [#allocation15]  }
  0xd4   : > { %s377_s11 = sshll.u32 %s11078_s1, 4  ;;  %s11079_s20 = smov [#allocation18]   ;;  %s378_s11 = int_to_ptr.vmem [resolvable:$true] %s377_s11 }
  0xd5   : > { %6752 = dma.hbm_to_vmem [thread:$0]  (!%p15796_p5), %s15795_s4, 16, %s354_s30, [#allocation11]  }
  0xd6   : > { %s401_s25 = sshll.u32 %s11079_s20, 4  ;;  %s15797_s6 = sld [smem:[#allocation219_spill]]  ;;  %s402_s25 = int_to_ptr.vmem [resolvable:$true] %s401_s25 }
  0xdc   : > { %s9214_s5 = scalar_lea.hbm %s15797_s6, 16 }
  0xdd   : > { %p9215_p8 = scmp.ne.s32.totalorder %s15797_s6, %s9214_s5  ;;  %p9221_p2 = scmp.lt.u32.totalorder %s9214_s5, %s15797_s6 }
  0xdf   : > { %p9217_p1 = pnand %p9215_p8, %p11238_p7 }
  0xe1   : > { %p9218_p12 = pneg %p9217_p1 }
  0xe3   : > { %p9223_p10 = pnand %p9221_p2, %p9218_p12 }
  0xe5   : > { %9226 = shalt.err (!%p9223_p10)
}
  0xe6   : > { %s9227_s30 = scalar_lea.vmem %s378_s11, 16  ;;  %s9234_s2 = scalar_lea.vmem %s378_s11, 32 }
  0xe7   : > { %p9228_p0 = scmp.ne.s32.totalorder %s378_s11, %s9227_s30  ;;  %p9235_p3 = scmp.lt.s32.totalorder %s378_s11, %s378_s11 }
  0xe8   : > { %p9236_p11 = scmp.lt.s32.totalorder %s9234_s2, %s9227_s30 }
  0xe9   : > { %p9230_p6 = pnand %p9228_p0, %p11238_p7 }
  0xea   : > { %p9237_p13 = por %p9236_p11, %p9235_p3 }
  0xeb   : > { %p9231_p9 = pneg %p9230_p6 }
  0xed   : > { %p9238_p4 = pnand %p9237_p13, %p9231_p9 }
  0xef   : > { %9241 = shalt.err (!%p9238_p4)
}
  0xf0   : > { %6758 = dma.hbm_to_vmem [thread:$0]  (!%p15796_p5), %s15797_s6, 16, %s378_s11, [#allocation14]  }
  0xf1   : > { %s15798_s8 = sld [smem:[#allocation221_spill]] }
  0xf7   : > { %s9242_s16 = scalar_lea.hbm %s15798_s8, 16 }
  0xf8   : > { %p9243_p8 = scmp.ne.s32.totalorder %s15798_s8, %s9242_s16  ;;  %p9249_p4 = scmp.lt.u32.totalorder %s9242_s16, %s15798_s8 }
  0xfa   : > { %p9245_p1 = pnand %p9243_p8, %p11238_p7 }
  0xfc   : > { %p9246_p12 = pneg %p9245_p1 }
  0xfe   : > { %p9251_p2 = pnand %p9249_p4, %p9246_p12 }
 0x100   : > { %9254 = shalt.err (!%p9251_p2)
}
 0x101   : > { %s9255_s30 = scalar_lea.vmem %s402_s25, 16  ;;  %s9262_s11 = scalar_lea.vmem %s402_s25, 32 }
 0x102   : > { %p9256_p10 = scmp.ne.s32.totalorder %s402_s25, %s9255_s30  ;;  %p9263_p9 = scmp.lt.s32.totalorder %s402_s25, %s402_s25 }
 0x103   : > { %p9264_p3 = scmp.lt.s32.totalorder %s9262_s11, %s9255_s30 }
 0x104   : > { %p9258_p0 = pnand %p9256_p10, %p11238_p7 }
 0x105   : > { %p9265_p11 = por %p9264_p3, %p9263_p9 }
 0x106   : > { %p9259_p6 = pneg %p9258_p0 }
 0x108   : > { %p9266_p13 = pnand %p9265_p11, %p9259_p6 }
 0x10a   : > { %9269 = shalt.err (!%p9266_p13)
}
 0x10b   : > { %6764 = dma.hbm_to_vmem [thread:$0]  (!%p15796_p5), %s15798_s8, 16, %s402_s25, [#allocation17]  }
 0x10c   : > { %s11080_s20 = smov [#allocation21]   ;;  %s15799_s10 = sld [smem:[#allocation223_spill]] }
 0x10d   : > { %s425_s5 = sshll.u32 %s11080_s20, 4  ;;  %s426_s5 = int_to_ptr.vmem [resolvable:$true] %s425_s5 }
 0x112   : > { %s9270_s24 = scalar_lea.hbm %s15799_s10, 16 }
 0x113   : > { %p9271_p8 = scmp.ne.s32.totalorder %s15799_s10, %s9270_s24  ;;  %p9277_p4 = scmp.lt.u32.totalorder %s9270_s24, %s15799_s10 }
 0x115   : > { %p9273_p1 = pnand %p9271_p8, %p11238_p7 }
 0x117   : > { %p9274_p12 = pneg %p9273_p1 }
 0x119   : > { %p9279_p2 = pnand %p9277_p4, %p9274_p12 }
 0x11b   : > { %9282 = shalt.err (!%p9279_p2)
}
 0x11c   : > { %s9283_s25 = scalar_lea.vmem %s426_s5, 16  ;;  %s9290_s11 = scalar_lea.vmem %s426_s5, 32 }
 0x11d   : > { %p9284_p10 = scmp.ne.s32.totalorder %s426_s5, %s9283_s25  ;;  %p9291_p9 = scmp.lt.s32.totalorder %s426_s5, %s426_s5 }
 0x11e   : > { %p9292_p3 = scmp.lt.s32.totalorder %s9290_s11, %s9283_s25 }
 0x11f   : > { %p9286_p0 = pnand %p9284_p10, %p11238_p7 }
 0x120   : > { %p9293_p11 = por %p9292_p3, %p9291_p9 }
 0x121   : > { %p9287_p6 = pneg %p9286_p0 }
 0x123   : > { %p9294_p13 = pnand %p9293_p11, %p9287_p6 }
 0x125   : > { %9297 = shalt.err (!%p9294_p13)
}
 0x126   : > { %s15800_s20 = sld [smem:[#allocation35_spill]]  ;;  %s15801_s7 = sld [smem:[#allocation32_spill]] }
 0x127   : > { %s15802_s16 = sld [smem:[#allocation31_spill]]  ;;  %s15803_s0 = sld [smem:[#allocation30_spill]] }
 0x128   : > { %6770 = dma.hbm_to_vmem [thread:$0]  (!%p15796_p5), %s15799_s10, 16, %s426_s5, [#allocation20]  }
 0x129   : > { %s5850_s24 = sadd.s32 4294967294, %s10284_s27   ;;  %s46_s13 = sadd.s32 1, %s10280_s26 }
 0x12a   : > { %p15805_p1 = scmp.eq.s32.totalorder %s10284_s27, 0  ;;  %p314_p2 = scmp.eq.s32.totalorder %s11207_s28, 3 }
 0x12b   : > { %p320_p10 = scmp.eq.s32.totalorder %s5850_s24, 3  ;;  %p15808_p0 = scmp.eq.s32.totalorder %s11207_s28, 0 }
 0x12c   : > { %s43_s3 = sadd.s32 1, %s15800_s20  ;;  %s55_s12 = sadd.s32 1, %s15801_s7 }
 0x12d   : > { %p44_p7 = scmp.ge.s32.totalorder %s43_s3, 2  ;;  %p62_p8 = scmp.ne.s32.totalorder %s15801_s7, %s15802_s16 }
 0x12e   : > { %p68_p4 = scmp.ne.s32.totalorder %s15802_s16, %s15803_s0  ;;  %s436_s16 = sand.u32 1, %s15801_s7  }
 0x12f   : > { %s16802_s3 = smov (%p44_p7, %s43_s3), 0  ;;  %s16804_s13 = smov (!%p44_p7, %s46_s13), %s10280_s26 }
 0x130   : > { %15804 = sst [smem:[#allocation37_spill]] %s16802_s3  ;;  %s51_s15 = ssub.s32 %s15800_s20, %s16802_s3 }
 0x131   : > { %p11486_p12 = por %p15805_p1, %p62_p8  ;;  %p48_p5 = scmp.ge.s32.totalorder %s16804_s13, 2 }
 0x132   : > { %p11497_p6 = por %p15808_p0, %p68_p4  ;;  %p11501_p9 = por %p314_p2, %p62_p8 }
 0x133   : > { %s16806_s13 = smov (%p48_p5, %s16804_s13), 0  ;;  %p11507_p3 = por %p320_p10, %p68_p4 }
 0x134   : > { %15807 = sst [smem:[#allocation38_spill]] %s16806_s13  ;;  %s50_s11 = ssub.s32 %s10280_s26, %s16806_s13 }
 0x135   : > { %s15810_s25 = scalar_select %p11501_p9, 1, 0 }
 0x136   : > { %s15811_s2 = scalar_select %p11507_p3, 1, 0 }
 0x137   : > { %s52_s1 = sor.u32 %s51_s15, %s50_s11  ;;  %p79_p11 = scmp.eq.s32.totalorder %s50_s11, 0 }
 0x138   : > { %p53_p13 = scmp.eq.s32.totalorder %s52_s1, 0  ;;  %s15812_s0 = sadd.s32 1, %s10252_s19 }
 0x139   : > { %s11515_s24 = scalar_select %p79_p11, %s10252_s19, %s15812_s0  }
 0x13a   : > { %s16808_s7 = smov (!%p53_p13, %s15801_s7), %s55_s12  ;;  %s5861_s4 = sshll.u32 %s436_s16, 6 }
 0x13b   : > { %s5862_s6 = sshll.u32 %s15800_s20, 4  ;;  %s5863_s8 = sshll.u32 %s10280_s26, 5 }
 0x13c   : > { %s440_s9 = scalar_lea.vmem [#allocation4], %s5861_s4  ;;  %s446_s13 = sadd.s32 %s5863_s8, %s5862_s6 }
 0x13d   : > { %s449_s10 = sshll.u32 %s440_s9, 4  ;;  %s5864_s3 = sshll.u32 %s446_s13, 6  ;;  %s11522_s10 = int_to_ptr.vmem [resolvable:$true] %s449_s10 }
 0x13e   : > { %p15813_p7 = scmp.lt.s32.totalorder %s10284_s27, 4  ;;  %s15815_s0 = sld [smem:[#allocation213_spill]] }
 0x13f   : > { %s15816_s20 = smul.u32 3072, %s10280_s26  ;;  %s15817_s6 = sld [smem:[#allocation215_spill]] }
 0x140   : > { %p11528_p8 = pnand %p15813_p7, %p11486_p12  ;;  %s11544_s13 = scalar_lea.sflag [#allocation5], %s436_s16 }
 0x142   : > { %p9300_p12 = pneg %p11528_p8 }
 0x144   : > { %s11535_s12 = scalar_lea.hbm %s15815_s0, %s5864_s3  ;;  %s9303_s1 = scalar_lea.hbm %s15815_s0, 4096 }
 0x145   : > { %s11542_s8 = scalar_lea.hbm %s15817_s6, %s15816_s20  ;;  %s9298_s5 = scalar_lea.hbm %s11535_s12, 1024 }
 0x146   : > { %p9299_p1 = scmp.ne.s32.totalorder %s11535_s12, %s9298_s5  ;;  %p9304_p2 = scmp.lt.u32.totalorder %s11535_s12, %s15815_s0 }
 0x147   : > { %p9305_p10 = scmp.lt.u32.totalorder %s9303_s1, %s9298_s5  ;;  %p9307_p11 = scmp.lt.u32.totalorder %s9298_s5, %s11535_s12 }
 0x148   : > { %p9301_p5 = pnand %p9300_p12, %p9299_p1 }
 0x149   : > { %p9306_p0 = por %p9305_p10, %p9304_p2 }
 0x14a   : > { %p9302_p4 = pneg %p9301_p5 }
 0x14b   : > { %p9308_p13 = por %p9307_p11, %p9306_p0 }
 0x14d   : > { %p9309_p7 = pnand %p9308_p13, %p9302_p4 }
 0x14f   : > { %9312 = shalt.err (!%p9309_p7)
}
 0x150   : > { %s9313_s16 = scalar_lea.vmem %s11522_s10, 1024  ;;  %s11081_s20 = smov [#allocation4]  }
 0x151   : > { %p9314_p1 = scmp.ne.s32.totalorder %s11522_s10, %s9313_s16  ;;  %s9318_s3 = sshll.u32 %s11081_s20, 4  ;;  %s9319_s3 = int_to_ptr.vmem [resolvable:$false] %s9318_s3 }
 0x152   : > { %s9320_s11 = scalar_lea.vmem %s9319_s3, 2048  ;;  %p9321_p9 = scmp.lt.s32.totalorder %s11522_s10, %s9319_s3 }
 0x153   : > { %p9316_p5 = pnand %p9314_p1, %p9300_p12  ;;  %p9322_p2 = scmp.lt.s32.totalorder %s9320_s11, %s9313_s16 }
 0x155   : > { %p9317_p3 = pneg %p9316_p5  ;;  %p9323_p10 = por %p9322_p2, %p9321_p9 }
 0x157   : > { %p9324_p0 = pnand %p9323_p10, %p9317_p3 }
 0x159   : > { %9327 = shalt.err (!%p9324_p0)
}
 0x15a   : > { %6774 = dma.hbm_to_vmem [thread:$0]  (!%p11528_p8), %s11535_s12, 1024, %s11522_s10, %s11544_s13, %s15794_s17, %s15794_s17, %s15793_s23  }
 0x15b   : > { %s484_s5 = scalar_lea.vmem [#allocation9], %s11348_s14  ;;  %s9328_s4 = scalar_lea.hbm %s11542_s8, 3072 }
 0x15c   : > { %s491_s1 = sshll.u32 %s484_s5, 4  ;;  %p9329_p9 = scmp.ne.s32.totalorder %s11542_s8, %s9328_s4  ;;  %s11576_s1 = int_to_ptr.vmem [resolvable:$true] %s491_s1 }
 0x15d   : > { %p15818_p3 = scmp.ne.s32.totalorder %s15791_s22, 0  ;;  %s9333_s16 = scalar_lea.hbm %s15817_s6, 6144 }
 0x15e   : > { %p9334_p13 = scmp.lt.u32.totalorder %s11542_s8, %s15817_s6  ;;  %p9335_p7 = scmp.lt.u32.totalorder %s9333_s16, %s9328_s4 }
 0x15f   : > { %p15819_p12 = pneg %p15818_p3  ;;  %p9337_p1 = scmp.lt.u32.totalorder %s9328_s4, %s11542_s8 }
 0x160   : > { %p9336_p8 = por %p9335_p7, %p9334_p13 }
 0x161   : > { %p9331_p4 = pnand %p9329_p9, %p15819_p12 }
 0x162   : > { %p9338_p5 = por %p9337_p1, %p9336_p8 }
 0x163   : > { %p9332_p11 = pneg %p9331_p4 }
 0x165   : > { %p9339_p2 = pnand %p9338_p5, %p9332_p11 }
 0x167   : > { %9342 = shalt.err (!%p9339_p2)
}
 0x168   : > { %s9343_s10 = scalar_lea.vmem %s11576_s1, 3072  ;;  %p15820_p0 = pmov %p15819_p12 }
 0x169   : > { %p9344_p10 = scmp.ne.s32.totalorder %s11576_s1, %s9343_s10  ;;  %s11082_s14 = smov [#allocation9]  }
 0x16a   : > { %s9348_s12 = sshll.u32 %s11082_s14, 4  ;;  %s9349_s12 = int_to_ptr.vmem [resolvable:$false] %s9348_s12 }
 0x16b   : > { %p9346_p9 = pnand %p9344_p10, %p15820_p0  ;;  %s9350_s13 = scalar_lea.vmem %s9349_s12, 6144 }
 0x16c   : > { %p9351_p4 = scmp.lt.s32.totalorder %s11576_s1, %s9349_s12  ;;  %p9352_p13 = scmp.lt.s32.totalorder %s9350_s13, %s9343_s10 }
 0x16d   : > { %p9347_p12 = pneg %p9346_p9 }
 0x16e   : > { %p9353_p7 = por %p9352_p13, %p9351_p4 }
 0x170   : > { %p9354_p8 = pnand %p9353_p7, %p9347_p12 }
 0x172   : > { %9357 = shalt.err (!%p9354_p8)
}
 0x173   : > { %6780 = dma.hbm_to_vmem [thread:$0]  (!%p15818_p3), %s11542_s8, 3072, %s11576_s1, %s11369_s21, %s15794_s17, %s15794_s17, %s15793_s23  }
 0x174   : > { %s15821_s11 = sld [smem:[#allocation36_spill]] }
 0x17a   : > { %p15822_p11 = scmp.ne.s32.totalorder %s15821_s11, 0 }
 0x17c   : > { %503 = sbr.rel (%p15822_p11) target bundleno = 4620 (0x120c), region = 64 }
 0x183   : > { %s15823_s5 = sld [smem:[#allocation31_spill]] }
 0x189   : > { %s11608_s4 = sand.u32 1, %s15823_s5  }
 0x18a   : > { %s5868_s15 = sshll.u32 %s11608_s4, 6  ;;  %s506_s9 = scalar_lea.sflag [#allocation5], %s11608_s4 }
 0x18b   : > { %s11612_s16 = scalar_lea.vmem [#allocation4], %s5868_s15 }
 0x18c   : > { %10215 = dma.done.wait (%p11497_p6), %s506_s9, 1024  }
 0x18d   : > { %10217 = vsyncadd (%p11497_p6), %s506_s9, 4294966272  ;;  %s514_s21 = sand.u32 1, %s11207_s28   ;;  %s516_s22 = sand.u32 1, %s10248_s18  }
 0x18e   : > { %s6705_s23 = smul.u32 192, %s516_s22  ;;  %s515_s17 = scalar_lea.sflag [#allocation8], %s514_s21 }
 0x18f   : > { %p15824_p3 = scmp.ne.s32.totalorder %s15790_s29, 0 }
 0x190   : > { %s11620_s8 = scalar_lea.vmem [#allocation7], %s6705_s23 }
 0x191   : > { %10219 = dma.done.wait (%p15824_p3), %s515_s17, 6144  }
 0x192   : > { %10221 = vsyncadd (%p15824_p3), %s515_s17, 4294961152  ;;  %s11626_s1 = scalar_lea.vmem [#allocation9], %s6705_s23  ;;  %p15825_p1 = scmp.eq.s32.totalorder %s11207_s28, 0 }
 0x194   : > { %10223 = dma.done.wait (%p15825_p1), [#allocation11], 272   ;;  %p15826_p6 = pmov %p15825_p1 }
 0x195   : > { %p15827_p5 = pmov %p15825_p1 }
 0x196   : > { %10225 = vsyncadd (%p15826_p6), [#allocation11], 4294967024 }
 0x197   : > { %10227 = dma.done.wait (%p15827_p5), [#allocation14], 272   ;;  %p15828_p2 = pmov %p15825_p1 }
 0x198   : > { %p15829_p10 = pmov %p15825_p1 }
 0x199   : > { %10229 = vsyncadd (%p15828_p2), [#allocation14], 4294967024 }
 0x19a   : > { %10231 = dma.done.wait (%p15829_p10), [#allocation17], 272   ;;  %p15830_p0 = pmov %p15825_p1 }
 0x19c   : > { %10233 = vsyncadd (%p15830_p0), [#allocation17], 4294967024  ;;  %p15831_p9 = pmov %p15830_p0 }
 0x19d   : > { %p15832_p12 = pmov %p15830_p0 }
 0x19e   : > { %10235 = dma.done.wait (%p15831_p9), [#allocation20], 272  }
 0x19f   : > { %10237 = vsyncadd (%p15832_p12), [#allocation20], 4294967024  ;;  %s5877_s29 = sshll.u32 %s11608_s4, 7  ;;  %s15833_s20 = sld [smem:[#allocation33_spill]] }
 0x1a0   : > { %s11645_s30 = scalar_lea.vmem [#allocation22], %s5877_s29 }
 0x1a5   : > { %p5878_p4 = scmp.ne.s32.totalorder %s15833_s20, 0 }
 0x1a6   : > { %v8476_v0 = vld [vmem:[#allocation13] sm:$0xff] (!%p5878_p4)   ;;  %v8477_v1 = vld [vmem:[#allocation16] sm:$0xff] (!%p5878_p4)   ;;  %v8478_v2 = vld [vmem:[#allocation13 + $0x8] sm:$0xff] (!%p5878_p4)   ;;  %vm854_vm0 = vcmask (!%p5878_p4), 261120  }
 0x1a7   : > { %614 = sbr.rel (%p5878_p4) target bundleno = 739 (0x2e3), region = 112  ;;  %6261 = vmatprep.subr.bf16.mxu0 (!%p5878_p4), %v8476_v0  ;;  %6313 = vmatprep.subr.bf16.mxu1 (!%p5878_p4), %v8477_v1  ;;  %v8479_v3 = vld [vmem:[#allocation16 + $0x8] sm:$0xff] (!%p5878_p4)   ;;  %v8480_v4 = vld [vmem:[%s11620_s8] sm:$0xff] (!%p5878_p4)   ;;  %v8486_v10 = vld [vmem:[%s11620_s8 + $0x18] sm:$0xff] (!%p5878_p4)  }
 0x1a8   : > { %6262 = vmatpush3.bf16.msra.mxu0 (!%p5878_p4), %v8476_v0  ;;  %6314 = vmatpush3.bf16.msra.mxu1 (!%p5878_p4), %v8477_v1  ;;  %v8481_v5 = vld [vmem:[%s11626_s1] sm:$0xff] (!%p5878_p4)   ;;  %v8482_v6 = vld [vmem:[%s11620_s8 + $0x8] sm:$0xff] (!%p5878_p4)   ;;  %v8484_v8 = vld [vmem:[%s11620_s8 + $0x10] sm:$0xff] (!%p5878_p4)  }
 0x1a9   : > { %6263 = vmatprep.subr.bf16.mxu0 (!%p5878_p4), %v8478_v2  ;;  %6315 = vmatprep.subr.bf16.mxu1 (!%p5878_p4), %v8479_v3  ;;  %v8483_v7 = vld [vmem:[%s11626_s1 + $0x8] sm:$0xff] (!%p5878_p4)   ;;  %v8485_v9 = vld [vmem:[%s11626_s1 + $0x10] sm:$0xff] (!%p5878_p4)   ;;  %v8487_v11 = vld [vmem:[%s11626_s1 + $0x18] sm:$0xff] (!%p5878_p4)  }
 0x1aa   : > { %6265 = vmatprep.mubr.msk.bf16.mxu0 (!%p5878_p4), %vm854_vm0, %v8480_v4  ;;  %6317 = vmatprep.mubr.msk.bf16.mxu1 (!%p5878_p4), %vm854_vm0, %v8481_v5  ;;  %v8488_v12 = vld [vmem:[%s11620_s8 + $0x20] sm:$0xff] (!%p5878_p4)   ;;  %v8490_v14 = vld [vmem:[%s11620_s8 + $0x28] sm:$0xff] (!%p5878_p4)   ;;  %v8492_v16 = vld [vmem:[%s11620_s8 + $0x30] sm:$0xff] (!%p5878_p4)  }
 0x1ab   : > { %v8489_v13 = vld [vmem:[%s11626_s1 + $0x20] sm:$0xff] (!%p5878_p4)   ;;  %v8491_v15 = vld [vmem:[%s11626_s1 + $0x28] sm:$0xff] (!%p5878_p4)   ;;  %v8493_v17 = vld [vmem:[%s11626_s1 + $0x30] sm:$0xff] (!%p5878_p4)  }
 0x1ac   : > { %6264 = vmatpush3.bf16.msra.mxu0 (!%p5878_p4), %v8478_v2  ;;  %6316 = vmatpush3.bf16.msra.mxu1 (!%p5878_p4), %v8479_v3  ;;  %v8494_v18 = vld [vmem:[%s11620_s8 + $0x38] sm:$0xff] (!%p5878_p4)   ;;  %v8496_v20 = vld [vmem:[%s11620_s8 + $0x40] sm:$0xff] (!%p5878_p4)   ;;  %v8498_v22 = vld [vmem:[%s11620_s8 + $0x48] sm:$0xff] (!%p5878_p4)  }
 0x1ad   : > { %v8495_v19 = vld [vmem:[%s11626_s1 + $0x38] sm:$0xff] (!%p5878_p4)   ;;  %v8497_v21 = vld [vmem:[%s11626_s1 + $0x40] sm:$0xff] (!%p5878_p4)   ;;  %v8499_v23 = vld [vmem:[%s11626_s1 + $0x48] sm:$0xff] (!%p5878_p4)  }
 0x1ae   : > { %v8500_v24 = vld [vmem:[%s11620_s8 + $0x50] sm:$0xff]   ;;  %v8502_v26 = vld [vmem:[%s11620_s8 + $0x58] sm:$0xff]   ;;  %v8504_v28 = vld [vmem:[%s11620_s8 + $0x60] sm:$0xff]  }
 0x1af   : > { %6266 = vmatmul.mubr.msk.bf16.vlgmr.msra.gmra.mrb[0].mxu0 %vm854_vm0, %v8482_v6  ;;  %6318 = vmatmul.mubr.msk.bf16.vlgmr.msra.gmra.mrb[0].mxu1 %vm854_vm0, %v8483_v7  ;;  %v8501_v25 = vld [vmem:[%s11626_s1 + $0x50] sm:$0xff]   ;;  %v8503_v27 = vld [vmem:[%s11626_s1 + $0x58] sm:$0xff]   ;;  %v8505_v29 = vld [vmem:[%s11626_s1 + $0x60] sm:$0xff]  }
 0x1b0   : > { %6269 = vmatprep.mubr.msk.bf16.mxu0 %vm854_vm0, %v8484_v8  ;;  %6321 = vmatprep.mubr.msk.bf16.mxu1 %vm854_vm0, %v8485_v9  ;;  %v8506_v30 = vld [vmem:[%s11620_s8 + $0x68] sm:$0xff]   ;;  %v8508_v32 = vld [vmem:[%s11620_s8 + $0x70] sm:$0xff]   ;;  %v8510_v34 = vld [vmem:[%s11620_s8 + $0x78] sm:$0xff]  }
 0x1b1   : > { %v8507_v31 = vld [vmem:[%s11626_s1 + $0x68] sm:$0xff]   ;;  %v8509_v33 = vld [vmem:[%s11626_s1 + $0x70] sm:$0xff]   ;;  %v8511_v35 = vld [vmem:[%s11626_s1 + $0x78] sm:$0xff]  }
 0x1b2   : > { %v8512_v36 = vld [vmem:[%s11620_s8 + $0x80] sm:$0xff]   ;;  %v8514_v38 = vld [vmem:[%s11620_s8 + $0x88] sm:$0xff]   ;;  %v8516_v40 = vld [vmem:[%s11620_s8 + $0x90] sm:$0xff]  }
 0x1b3   : > { %v8513_v37 = vld [vmem:[%s11626_s1 + $0x80] sm:$0xff]   ;;  %v8515_v39 = vld [vmem:[%s11626_s1 + $0x88] sm:$0xff]   ;;  %v8517_v41 = vld [vmem:[%s11626_s1 + $0x90] sm:$0xff]  }
 0x1b4   : > { %v8518_v42 = vld [vmem:[%s11620_s8 + $0x98] sm:$0xff]   ;;  %v8520_v44 = vld [vmem:[%s11620_s8 + $0xa0] sm:$0xff]   ;;  %v8522_v46 = vld [vmem:[%s11620_s8 + $0xa8] sm:$0xff]  }
 0x1b5   : > { %v8519_v43 = vld [vmem:[%s11626_s1 + $0x98] sm:$0xff]   ;;  %v8521_v45 = vld [vmem:[%s11626_s1 + $0xa0] sm:$0xff]   ;;  %v8523_v47 = vld [vmem:[%s11626_s1 + $0xa8] sm:$0xff]  }
 0x1b6   : > { %v8524_v48 = vld [vmem:[%s11620_s8 + $0xb0] sm:$0xff]   ;;  %v8526_v50 = vld [vmem:[%s11620_s8 + $0xb8] sm:$0xff]   ;;  %v11744_v53 = vld [vmem:[#allocation15] ss:$0 sm:$0xff] }
 0x1b7   : > { %6270 = vmatmul.mubr.msk.bf16.gmra.mrb[4].mxu0 %vm854_vm0, %v8486_v10  ;;  %6322 = vmatmul.mubr.msk.bf16.gmra.mrb[4].mxu1 %vm854_vm0, %v8487_v11  ;;  %v8525_v49 = vld [vmem:[%s11626_s1 + $0xb0] sm:$0xff]   ;;  %v8527_v51 = vld [vmem:[%s11626_s1 + $0xb8] sm:$0xff]  }
 0x1b8   : > { %6273 = vmatprep.mubr.msk.bf16.mxu0 %vm854_vm0, %v8488_v12  ;;  %6325 = vmatprep.mubr.msk.bf16.mxu1 %vm854_vm0, %v8489_v13  ;;  %v11746_v55 = vld [vmem:[#allocation18] ss:$0 sm:$0xff] }
 0x1bf   : > { %6274 = vmatmul.mubr.msk.bf16.gmra.mrb[8].mxu0 %vm854_vm0, %v8490_v14  ;;  %6326 = vmatmul.mubr.msk.bf16.gmra.mrb[8].mxu1 %vm854_vm0, %v8491_v15 }
 0x1c0   : > { %6277 = vmatprep.mubr.msk.bf16.mxu0 %vm854_vm0, %v8492_v16  ;;  %6329 = vmatprep.mubr.msk.bf16.mxu1 %vm854_vm0, %v8493_v17 }
 0x1c7   : > { %6278 = vmatmul.mubr.msk.bf16.gmra.mrb[12].mxu0 %vm854_vm0, %v8494_v18  ;;  %6330 = vmatmul.mubr.msk.bf16.gmra.mrb[12].mxu1 %vm854_vm0, %v8495_v19 }
 0x1c8   : > { %6281 = vmatprep.mubr.msk.bf16.mxu0 %vm854_vm0, %v8496_v20  ;;  %6333 = vmatprep.mubr.msk.bf16.mxu1 %vm854_vm0, %v8497_v21 }
 0x1cf   : > { %6282 = vmatmul.mubr.msk.bf16.gmra.mrb[16].mxu0 %vm854_vm0, %v8498_v22  ;;  %6334 = vmatmul.mubr.msk.bf16.gmra.mrb[16].mxu1 %vm854_vm0, %v8499_v23 }
 0x1d0   : > { %6285 = vmatprep.mubr.msk.bf16.mxu0 %vm854_vm0, %v8500_v24  ;;  %6337 = vmatprep.mubr.msk.bf16.mxu1 %vm854_vm0, %v8501_v25 }
 0x1d7   : > { %6286 = vmatmul.mubr.msk.bf16.gmra.mrb[20].mxu0 %vm854_vm0, %v8502_v26  ;;  %6338 = vmatmul.mubr.msk.bf16.gmra.mrb[20].mxu1 %vm854_vm0, %v8503_v27 }
 0x1d8   : > { %6289 = vmatprep.mubr.msk.bf16.mxu0 %vm854_vm0, %v8504_v28  ;;  %6341 = vmatprep.mubr.msk.bf16.mxu1 %vm854_vm0, %v8505_v29 }
 0x1df   : > { %6290 = vmatmul.mubr.msk.bf16.gmra.mrb[24].mxu0 %vm854_vm0, %v8506_v30  ;;  %6342 = vmatmul.mubr.msk.bf16.gmra.mrb[24].mxu1 %vm854_vm0, %v8507_v31 }
 0x1e0   : > { %6293 = vmatprep.mubr.msk.bf16.mxu0 %vm854_vm0, %v8508_v32  ;;  %6345 = vmatprep.mubr.msk.bf16.mxu1 %vm854_vm0, %v8509_v33 }
 0x1e7   : > { %6294 = vmatmul.mubr.msk.bf16.gmra.mrb[28].mxu0 %vm854_vm0, %v8510_v34  ;;  %6346 = vmatmul.mubr.msk.bf16.gmra.mrb[28].mxu1 %vm854_vm0, %v8511_v35 }
 0x1e8   : > { %6297 = vmatprep.mubr.msk.bf16.mxu0 %vm854_vm0, %v8512_v36  ;;  %6349 = vmatprep.mubr.msk.bf16.mxu1 %vm854_vm0, %v8513_v37 }
 0x1ef   : > { %6298 = vmatmul.mubr.msk.bf16.gmra.mrb[32].mxu0 %vm854_vm0, %v8514_v38  ;;  %6350 = vmatmul.mubr.msk.bf16.gmra.mrb[32].mxu1 %vm854_vm0, %v8515_v39 }
 0x1f0   : > { %6301 = vmatprep.mubr.msk.bf16.mxu0 %vm854_vm0, %v8516_v40  ;;  %6353 = vmatprep.mubr.msk.bf16.mxu1 %vm854_vm0, %v8517_v41 }
 0x1f7   : > { %6302 = vmatmul.mubr.msk.bf16.gmra.mrb[36].mxu0 %vm854_vm0, %v8518_v42  ;;  %6354 = vmatmul.mubr.msk.bf16.gmra.mrb[36].mxu1 %vm854_vm0, %v8519_v43 }
 0x1f8   : > { %6305 = vmatprep.mubr.msk.bf16.mxu0 %vm854_vm0, %v8520_v44  ;;  %6357 = vmatprep.mubr.msk.bf16.mxu1 %vm854_vm0, %v8521_v45 }
 0x1ff   : > { %6306 = vmatmul.mubr.msk.bf16.gmra.mrb[40].mxu0 %vm854_vm0, %v8522_v46  ;;  %6358 = vmatmul.mubr.msk.bf16.gmra.mrb[40].mxu1 %vm854_vm0, %v8523_v47 }
 0x200   : > { %6309 = vmatprep.mubr.msk.bf16.mxu0 %vm854_vm0, %v8524_v48  ;;  %6361 = vmatprep.mubr.msk.bf16.mxu1 %vm854_vm0, %v8525_v49 }
 0x207   : > { %6310 = vmatmul.mubr.msk.bf16.gmra.mrb[44].mxu0 %vm854_vm0, %v8526_v50  ;;  %6362 = vmatmul.mubr.msk.bf16.gmra.mrb[44].mxu1 %vm854_vm0, %v8527_v51 }
 0x282   : > { %v6267_v52 = vpop.f32.mrb[0].mxu0  ;;  %v6319_v54 = vpop.f32.mrb[0].mxu1 }
 0x283   : > { %v961_v56 = vpop.f32.mrb[1].mxu0  ;;  %v1401_v57 = vpop.f32.mrb[1].mxu1  ;;  %v970_v59 = vadd.f32 %v6267_v52, %v11744_v53  ;;  %v1410_v63 = vadd.f32 %v6319_v54, %v11746_v55 }
 0x284   : > { %v6268_v58 = vpop.f32.mrb[2].mxu0  ;;  %v6320_v61 = vpop.f32.mrb[2].mxu1  ;;  %v962_v0 = vadd.f32 %v11744_v53, %v961_v56  ;;  %v1402_v4 = vadd.f32 %v11746_v55, %v1401_v57 }
 0x285   : > { %v973_v60 = vadd.f32 %v6268_v58, %v11744_v53  ;;  %v964_v62 = vpop.f32.mrb[3].mxu0  ;;  %v1413_v1 = vadd.f32 %v6320_v61, %v11746_v55  ;;  %v1404_v3 = vpop.f32.mrb[3].mxu1 }
 0x286   : > { %v965_v2 = vadd.f32 %v11744_v53, %v964_v62  ;;  %v1405_v6 = vadd.f32 %v11746_v55, %v1404_v3 }
 0x287   : > { %v1593_v5 = vpack.c.bf16 %v973_v60, %v970_v59  ;;  %v1641_v7 = vpack.c.bf16 %v1413_v1, %v1410_v63 }
 0x288   : > { %v1592_v8 = vpack.c.bf16 %v965_v2, %v962_v0  ;;  %v1640_v9 = vpack.c.bf16 %v1405_v6, %v1402_v4 }
 0x289   : > { %1617 = vst.msk [vmem:[#allocation2 + $0x8] sm:$0xff] %vm854_vm0, %v1593_v5  ;;  %1665 = vst.msk [vmem:[#allocation3 + $0x8] sm:$0xff] %vm854_vm0, %v1641_v7 }
 0x28a   : > { %1616 = vst.msk [vmem:[#allocation2] sm:$0xff] %vm854_vm0, %v1592_v8  ;;  %v6271_v10 = vpop.f32.mrb[4].mxu0  ;;  %1664 = vst.msk [vmem:[#allocation3] sm:$0xff] %vm854_vm0, %v1640_v9  ;;  %v6323_v11 = vpop.f32.mrb[4].mxu1 }
 0x28b   : > { %v977_v12 = vpop.f32.mrb[5].mxu0  ;;  %v1417_v13 = vpop.f32.mrb[5].mxu1  ;;  %v986_v15 = vadd.f32 %v6271_v10, %v11744_v53  ;;  %v1426_v19 = vadd.f32 %v6323_v11, %v11746_v55 }
 0x28c   : > { %v6272_v14 = vpop.f32.mrb[6].mxu0  ;;  %v6324_v17 = vpop.f32.mrb[6].mxu1  ;;  %v978_v20 = vadd.f32 %v11744_v53, %v977_v12  ;;  %v1418_v24 = vadd.f32 %v11746_v55, %v1417_v13 }
 0x28d   : > { %v989_v16 = vadd.f32 %v6272_v14, %v11744_v53  ;;  %v980_v18 = vpop.f32.mrb[7].mxu0  ;;  %v1429_v21 = vadd.f32 %v6324_v17, %v11746_v55  ;;  %v1420_v23 = vpop.f32.mrb[7].mxu1 }
 0x28e   : > { %v981_v22 = vadd.f32 %v11744_v53, %v980_v18  ;;  %v1421_v26 = vadd.f32 %v11746_v55, %v1420_v23 }
 0x28f   : > { %v1595_v25 = vpack.c.bf16 %v989_v16, %v986_v15  ;;  %v1643_v27 = vpack.c.bf16 %v1429_v21, %v1426_v19 }
 0x290   : > { %v1594_v28 = vpack.c.bf16 %v981_v22, %v978_v20  ;;  %v1642_v29 = vpack.c.bf16 %v1421_v26, %v1418_v24 }
 0x291   : > { %1619 = vst.msk [vmem:[#allocation2 + $0x18] sm:$0xff] %vm854_vm0, %v1595_v25  ;;  %1667 = vst.msk [vmem:[#allocation3 + $0x18] sm:$0xff] %vm854_vm0, %v1643_v27 }
 0x292   : > { %1618 = vst.msk [vmem:[#allocation2 + $0x10] sm:$0xff] %vm854_vm0, %v1594_v28  ;;  %v6275_v30 = vpop.f32.mrb[8].mxu0  ;;  %1666 = vst.msk [vmem:[#allocation3 + $0x10] sm:$0xff] %vm854_vm0, %v1642_v29  ;;  %v6327_v31 = vpop.f32.mrb[8].mxu1 }
 0x293   : > { %v993_v32 = vpop.f32.mrb[9].mxu0  ;;  %v1433_v33 = vpop.f32.mrb[9].mxu1  ;;  %v1002_v35 = vadd.f32 %v6275_v30, %v11744_v53  ;;  %v1442_v39 = vadd.f32 %v6327_v31, %v11746_v55 }
 0x294   : > { %v6276_v34 = vpop.f32.mrb[10].mxu0  ;;  %v6328_v37 = vpop.f32.mrb[10].mxu1  ;;  %v994_v40 = vadd.f32 %v11744_v53, %v993_v32  ;;  %v1434_v44 = vadd.f32 %v11746_v55, %v1433_v33 }
 0x295   : > { %v1005_v36 = vadd.f32 %v6276_v34, %v11744_v53  ;;  %v996_v38 = vpop.f32.mrb[11].mxu0  ;;  %v1445_v41 = vadd.f32 %v6328_v37, %v11746_v55  ;;  %v1436_v43 = vpop.f32.mrb[11].mxu1 }
 0x296   : > { %v997_v42 = vadd.f32 %v11744_v53, %v996_v38  ;;  %v1437_v46 = vadd.f32 %v11746_v55, %v1436_v43 }
 0x297   : > { %v1597_v45 = vpack.c.bf16 %v1005_v36, %v1002_v35  ;;  %v1645_v47 = vpack.c.bf16 %v1445_v41, %v1442_v39 }
 0x298   : > { %v1596_v48 = vpack.c.bf16 %v997_v42, %v994_v40  ;;  %v1644_v49 = vpack.c.bf16 %v1437_v46, %v1434_v44 }
 0x299   : > { %1621 = vst.msk [vmem:[#allocation2 + $0x28] sm:$0xff] %vm854_vm0, %v1597_v45  ;;  %1669 = vst.msk [vmem:[#allocation3 + $0x28] sm:$0xff] %vm854_vm0, %v1645_v47 }
 0x29a   : > { %1620 = vst.msk [vmem:[#allocation2 + $0x20] sm:$0xff] %vm854_vm0, %v1596_v48  ;;  %v6279_v50 = vpop.f32.mrb[12].mxu0  ;;  %1668 = vst.msk [vmem:[#allocation3 + $0x20] sm:$0xff] %vm854_vm0, %v1644_v49  ;;  %v6331_v51 = vpop.f32.mrb[12].mxu1 }
 0x29b   : > { %v1009_v52 = vpop.f32.mrb[13].mxu0  ;;  %v1449_v54 = vpop.f32.mrb[13].mxu1  ;;  %v1018_v57 = vadd.f32 %v6279_v50, %v11744_v53  ;;  %v1458_v61 = vadd.f32 %v6331_v51, %v11746_v55 }
 0x29c   : > { %v6280_v56 = vpop.f32.mrb[14].mxu0  ;;  %v6332_v59 = vpop.f32.mrb[14].mxu1  ;;  %v1010_v62 = vadd.f32 %v11744_v53, %v1009_v52  ;;  %v1450_v2 = vadd.f32 %v11746_v55, %v1449_v54 }
 0x29d   : > { %v1021_v58 = vadd.f32 %v6280_v56, %v11744_v53  ;;  %v1012_v60 = vpop.f32.mrb[15].mxu0  ;;  %v1461_v63 = vadd.f32 %v6332_v59, %v11746_v55  ;;  %v1452_v1 = vpop.f32.mrb[15].mxu1 }
 0x29e   : > { %v1013_v0 = vadd.f32 %v11744_v53, %v1012_v60  ;;  %v1453_v4 = vadd.f32 %v11746_v55, %v1452_v1 }
 0x29f   : > { %v1599_v3 = vpack.c.bf16 %v1021_v58, %v1018_v57  ;;  %v1647_v5 = vpack.c.bf16 %v1461_v63, %v1458_v61 }
 0x2a0   : > { %v1598_v6 = vpack.c.bf16 %v1013_v0, %v1010_v62  ;;  %v1646_v7 = vpack.c.bf16 %v1453_v4, %v1450_v2 }
 0x2a1   : > { %1623 = vst.msk [vmem:[#allocation2 + $0x38] sm:$0xff] %vm854_vm0, %v1599_v3  ;;  %1671 = vst.msk [vmem:[#allocation3 + $0x38] sm:$0xff] %vm854_vm0, %v1647_v5 }
 0x2a2   : > { %1622 = vst.msk [vmem:[#allocation2 + $0x30] sm:$0xff] %vm854_vm0, %v1598_v6  ;;  %v6283_v8 = vpop.f32.mrb[16].mxu0  ;;  %1670 = vst.msk [vmem:[#allocation3 + $0x30] sm:$0xff] %vm854_vm0, %v1646_v7  ;;  %v6335_v9 = vpop.f32.mrb[16].mxu1 }
 0x2a3   : > { %v1025_v10 = vpop.f32.mrb[17].mxu0  ;;  %v1465_v11 = vpop.f32.mrb[17].mxu1  ;;  %v1034_v13 = vadd.f32 %v6283_v8, %v11744_v53  ;;  %v1474_v17 = vadd.f32 %v6335_v9, %v11746_v55 }
 0x2a4   : > { %v6284_v12 = vpop.f32.mrb[18].mxu0  ;;  %v6336_v15 = vpop.f32.mrb[18].mxu1  ;;  %v1026_v18 = vadd.f32 %v11744_v53, %v1025_v10  ;;  %v1466_v22 = vadd.f32 %v11746_v55, %v1465_v11 }
 0x2a5   : > { %v1037_v14 = vadd.f32 %v6284_v12, %v11744_v53  ;;  %v1028_v16 = vpop.f32.mrb[19].mxu0  ;;  %v1477_v19 = vadd.f32 %v6336_v15, %v11746_v55  ;;  %v1468_v21 = vpop.f32.mrb[19].mxu1 }
 0x2a6   : > { %v1029_v20 = vadd.f32 %v11744_v53, %v1028_v16  ;;  %v1469_v24 = vadd.f32 %v11746_v55, %v1468_v21 }
 0x2a7   : > { %v1601_v23 = vpack.c.bf16 %v1037_v14, %v1034_v13  ;;  %v1649_v25 = vpack.c.bf16 %v1477_v19, %v1474_v17 }
 0x2a8   : > { %v1600_v26 = vpack.c.bf16 %v1029_v20, %v1026_v18  ;;  %v1648_v27 = vpack.c.bf16 %v1469_v24, %v1466_v22 }
 0x2a9   : > { %1625 = vst.msk [vmem:[#allocation2 + $0x48] sm:$0xff] %vm854_vm0, %v1601_v23  ;;  %1673 = vst.msk [vmem:[#allocation3 + $0x48] sm:$0xff] %vm854_vm0, %v1649_v25 }
 0x2aa   : > { %1624 = vst.msk [vmem:[#allocation2 + $0x40] sm:$0xff] %vm854_vm0, %v1600_v26  ;;  %v6287_v28 = vpop.f32.mrb[20].mxu0  ;;  %1672 = vst.msk [vmem:[#allocation3 + $0x40] sm:$0xff] %vm854_vm0, %v1648_v27  ;;  %v6339_v29 = vpop.f32.mrb[20].mxu1 }
 0x2ab   : > { %v1041_v30 = vpop.f32.mrb[21].mxu0  ;;  %v1481_v31 = vpop.f32.mrb[21].mxu1  ;;  %v1050_v33 = vadd.f32 %v6287_v28, %v11744_v53  ;;  %v1490_v37 = vadd.f32 %v6339_v29, %v11746_v55 }
 0x2ac   : > { %v6288_v32 = vpop.f32.mrb[22].mxu0  ;;  %v6340_v35 = vpop.f32.mrb[22].mxu1  ;;  %v1042_v38 = vadd.f32 %v11744_v53, %v1041_v30  ;;  %v1482_v42 = vadd.f32 %v11746_v55, %v1481_v31 }
 0x2ad   : > { %v1053_v34 = vadd.f32 %v6288_v32, %v11744_v53  ;;  %v1044_v36 = vpop.f32.mrb[23].mxu0  ;;  %v1493_v39 = vadd.f32 %v6340_v35, %v11746_v55  ;;  %v1484_v41 = vpop.f32.mrb[23].mxu1 }
 0x2ae   : > { %v1045_v40 = vadd.f32 %v11744_v53, %v1044_v36  ;;  %v1485_v44 = vadd.f32 %v11746_v55, %v1484_v41 }
 0x2af   : > { %v1603_v43 = vpack.c.bf16 %v1053_v34, %v1050_v33  ;;  %v1651_v45 = vpack.c.bf16 %v1493_v39, %v1490_v37 }
 0x2b0   : > { %v1602_v46 = vpack.c.bf16 %v1045_v40, %v1042_v38  ;;  %v1650_v47 = vpack.c.bf16 %v1485_v44, %v1482_v42 }
 0x2b1   : > { %1627 = vst.msk [vmem:[#allocation2 + $0x58] sm:$0xff] %vm854_vm0, %v1603_v43  ;;  %1675 = vst.msk [vmem:[#allocation3 + $0x58] sm:$0xff] %vm854_vm0, %v1651_v45 }
 0x2b2   : > { %1626 = vst.msk [vmem:[#allocation2 + $0x50] sm:$0xff] %vm854_vm0, %v1602_v46  ;;  %v6291_v48 = vpop.f32.mrb[24].mxu0  ;;  %1674 = vst.msk [vmem:[#allocation3 + $0x50] sm:$0xff] %vm854_vm0, %v1650_v47  ;;  %v6343_v49 = vpop.f32.mrb[24].mxu1 }
 0x2b3   : > { %v1057_v50 = vpop.f32.mrb[25].mxu0  ;;  %v1497_v51 = vpop.f32.mrb[25].mxu1  ;;  %v1066_v54 = vadd.f32 %v6291_v48, %v11744_v53  ;;  %v1506_v59 = vadd.f32 %v6343_v49, %v11746_v55 }
 0x2b4   : > { %v6292_v52 = vpop.f32.mrb[26].mxu0  ;;  %v6344_v57 = vpop.f32.mrb[26].mxu1  ;;  %v1058_v60 = vadd.f32 %v11744_v53, %v1057_v50  ;;  %v1498_v0 = vadd.f32 %v11746_v55, %v1497_v51 }
 0x2b5   : > { %v1069_v56 = vadd.f32 %v6292_v52, %v11744_v53  ;;  %v1060_v58 = vpop.f32.mrb[27].mxu0  ;;  %v1509_v61 = vadd.f32 %v6344_v57, %v11746_v55  ;;  %v1500_v63 = vpop.f32.mrb[27].mxu1 }
 0x2b6   : > { %v1061_v62 = vadd.f32 %v11744_v53, %v1060_v58  ;;  %v1501_v2 = vadd.f32 %v11746_v55, %v1500_v63 }
 0x2b7   : > { %v1605_v1 = vpack.c.bf16 %v1069_v56, %v1066_v54  ;;  %v1653_v3 = vpack.c.bf16 %v1509_v61, %v1506_v59 }
 0x2b8   : > { %v1604_v4 = vpack.c.bf16 %v1061_v62, %v1058_v60  ;;  %v1652_v5 = vpack.c.bf16 %v1501_v2, %v1498_v0 }
 0x2b9   : > { %1629 = vst.msk [vmem:[#allocation2 + $0x68] sm:$0xff] %vm854_vm0, %v1605_v1  ;;  %1677 = vst.msk [vmem:[#allocation3 + $0x68] sm:$0xff] %vm854_vm0, %v1653_v3 }
 0x2ba   : > { %1628 = vst.msk [vmem:[#allocation2 + $0x60] sm:$0xff] %vm854_vm0, %v1604_v4  ;;  %v6295_v6 = vpop.f32.mrb[28].mxu0  ;;  %1676 = vst.msk [vmem:[#allocation3 + $0x60] sm:$0xff] %vm854_vm0, %v1652_v5  ;;  %v6347_v7 = vpop.f32.mrb[28].mxu1 }
 0x2bb   : > { %v1073_v8 = vpop.f32.mrb[29].mxu0  ;;  %v1513_v9 = vpop.f32.mrb[29].mxu1  ;;  %v1082_v11 = vadd.f32 %v6295_v6, %v11744_v53  ;;  %v1522_v15 = vadd.f32 %v6347_v7, %v11746_v55 }
 0x2bc   : > { %v6296_v10 = vpop.f32.mrb[30].mxu0  ;;  %v6348_v13 = vpop.f32.mrb[30].mxu1  ;;  %v1074_v16 = vadd.f32 %v11744_v53, %v1073_v8  ;;  %v1514_v20 = vadd.f32 %v11746_v55, %v1513_v9 }
 0x2bd   : > { %v1085_v12 = vadd.f32 %v6296_v10, %v11744_v53  ;;  %v1076_v14 = vpop.f32.mrb[31].mxu0  ;;  %v1525_v17 = vadd.f32 %v6348_v13, %v11746_v55  ;;  %v1516_v19 = vpop.f32.mrb[31].mxu1 }
 0x2be   : > { %v1077_v18 = vadd.f32 %v11744_v53, %v1076_v14  ;;  %v1517_v22 = vadd.f32 %v11746_v55, %v1516_v19 }
 0x2bf   : > { %v1607_v21 = vpack.c.bf16 %v1085_v12, %v1082_v11  ;;  %v1655_v23 = vpack.c.bf16 %v1525_v17, %v1522_v15 }
 0x2c0   : > { %v1606_v24 = vpack.c.bf16 %v1077_v18, %v1074_v16  ;;  %v1654_v25 = vpack.c.bf16 %v1517_v22, %v1514_v20 }
 0x2c1   : > { %1631 = vst.msk [vmem:[#allocation2 + $0x78] sm:$0xff] %vm854_vm0, %v1607_v21  ;;  %1679 = vst.msk [vmem:[#allocation3 + $0x78] sm:$0xff] %vm854_vm0, %v1655_v23 }
 0x2c2   : > { %1630 = vst.msk [vmem:[#allocation2 + $0x70] sm:$0xff] %vm854_vm0, %v1606_v24  ;;  %v6299_v26 = vpop.f32.mrb[32].mxu0  ;;  %1678 = vst.msk [vmem:[#allocation3 + $0x70] sm:$0xff] %vm854_vm0, %v1654_v25  ;;  %v6351_v27 = vpop.f32.mrb[32].mxu1 }
 0x2c3   : > { %v1089_v28 = vpop.f32.mrb[33].mxu0  ;;  %v1529_v29 = vpop.f32.mrb[33].mxu1  ;;  %v1098_v31 = vadd.f32 %v6299_v26, %v11744_v53  ;;  %v1538_v35 = vadd.f32 %v6351_v27, %v11746_v55 }
 0x2c4   : > { %v6300_v30 = vpop.f32.mrb[34].mxu0  ;;  %v6352_v33 = vpop.f32.mrb[34].mxu1  ;;  %v1090_v36 = vadd.f32 %v11744_v53, %v1089_v28  ;;  %v1530_v40 = vadd.f32 %v11746_v55, %v1529_v29 }
 0x2c5   : > { %v1101_v32 = vadd.f32 %v6300_v30, %v11744_v53  ;;  %v1092_v34 = vpop.f32.mrb[35].mxu0  ;;  %v1541_v37 = vadd.f32 %v6352_v33, %v11746_v55  ;;  %v1532_v39 = vpop.f32.mrb[35].mxu1 }
 0x2c6   : > { %v1093_v38 = vadd.f32 %v11744_v53, %v1092_v34  ;;  %v1533_v42 = vadd.f32 %v11746_v55, %v1532_v39 }
 0x2c7   : > { %v1609_v41 = vpack.c.bf16 %v1101_v32, %v1098_v31  ;;  %v1657_v43 = vpack.c.bf16 %v1541_v37, %v1538_v35 }
 0x2c8   : > { %v1608_v44 = vpack.c.bf16 %v1093_v38, %v1090_v36  ;;  %v1656_v45 = vpack.c.bf16 %v1533_v42, %v1530_v40 }
 0x2c9   : > { %1633 = vst.msk [vmem:[#allocation2 + $0x88] sm:$0xff] %vm854_vm0, %v1609_v41  ;;  %1681 = vst.msk [vmem:[#allocation3 + $0x88] sm:$0xff] %vm854_vm0, %v1657_v43 }
 0x2ca   : > { %1632 = vst.msk [vmem:[#allocation2 + $0x80] sm:$0xff] %vm854_vm0, %v1608_v44  ;;  %v6303_v46 = vpop.f32.mrb[36].mxu0  ;;  %1680 = vst.msk [vmem:[#allocation3 + $0x80] sm:$0xff] %vm854_vm0, %v1656_v45  ;;  %v6355_v47 = vpop.f32.mrb[36].mxu1 }
 0x2cb   : > { %v1105_v48 = vpop.f32.mrb[37].mxu0  ;;  %v1545_v49 = vpop.f32.mrb[37].mxu1  ;;  %v1114_v51 = vadd.f32 %v6303_v46, %v11744_v53  ;;  %v1554_v57 = vadd.f32 %v6355_v47, %v11746_v55 }
 0x2cc   : > { %v6304_v50 = vpop.f32.mrb[38].mxu0  ;;  %v6356_v54 = vpop.f32.mrb[38].mxu1  ;;  %v1106_v58 = vadd.f32 %v11744_v53, %v1105_v48  ;;  %v1546_v62 = vadd.f32 %v11746_v55, %v1545_v49 }
 0x2cd   : > { %v1117_v52 = vadd.f32 %v6304_v50, %v11744_v53  ;;  %v1108_v56 = vpop.f32.mrb[39].mxu0  ;;  %v1557_v59 = vadd.f32 %v6356_v54, %v11746_v55  ;;  %v1548_v61 = vpop.f32.mrb[39].mxu1 }
 0x2ce   : > { %v1109_v60 = vadd.f32 %v11744_v53, %v1108_v56  ;;  %v1549_v0 = vadd.f32 %v11746_v55, %v1548_v61 }
 0x2cf   : > { %v1611_v63 = vpack.c.bf16 %v1117_v52, %v1114_v51  ;;  %v1659_v1 = vpack.c.bf16 %v1557_v59, %v1554_v57 }
 0x2d0   : > { %v1610_v2 = vpack.c.bf16 %v1109_v60, %v1106_v58  ;;  %v1658_v3 = vpack.c.bf16 %v1549_v0, %v1546_v62 }
 0x2d1   : > { %1635 = vst.msk [vmem:[#allocation2 + $0x98] sm:$0xff] %vm854_vm0, %v1611_v63  ;;  %1683 = vst.msk [vmem:[#allocation3 + $0x98] sm:$0xff] %vm854_vm0, %v1659_v1 }
 0x2d2   : > { %1634 = vst.msk [vmem:[#allocation2 + $0x90] sm:$0xff] %vm854_vm0, %v1610_v2  ;;  %v6307_v4 = vpop.f32.mrb[40].mxu0  ;;  %1682 = vst.msk [vmem:[#allocation3 + $0x90] sm:$0xff] %vm854_vm0, %v1658_v3  ;;  %v6359_v5 = vpop.f32.mrb[40].mxu1 }
 0x2d3   : > { %v1121_v6 = vpop.f32.mrb[41].mxu0  ;;  %v1561_v7 = vpop.f32.mrb[41].mxu1  ;;  %v1130_v9 = vadd.f32 %v6307_v4, %v11744_v53  ;;  %v1570_v13 = vadd.f32 %v6359_v5, %v11746_v55 }
 0x2d4   : > { %v6308_v8 = vpop.f32.mrb[42].mxu0  ;;  %v6360_v11 = vpop.f32.mrb[42].mxu1  ;;  %v1122_v14 = vadd.f32 %v11744_v53, %v1121_v6  ;;  %v1562_v18 = vadd.f32 %v11746_v55, %v1561_v7 }
 0x2d5   : > { %v1133_v10 = vadd.f32 %v6308_v8, %v11744_v53  ;;  %v1124_v12 = vpop.f32.mrb[43].mxu0  ;;  %v1573_v15 = vadd.f32 %v6360_v11, %v11746_v55  ;;  %v1564_v17 = vpop.f32.mrb[43].mxu1 }
 0x2d6   : > { %v1125_v16 = vadd.f32 %v11744_v53, %v1124_v12  ;;  %v1565_v20 = vadd.f32 %v11746_v55, %v1564_v17 }
 0x2d7   : > { %v1613_v19 = vpack.c.bf16 %v1133_v10, %v1130_v9  ;;  %v1661_v21 = vpack.c.bf16 %v1573_v15, %v1570_v13 }
 0x2d8   : > { %v1612_v22 = vpack.c.bf16 %v1125_v16, %v1122_v14  ;;  %v1660_v23 = vpack.c.bf16 %v1565_v20, %v1562_v18 }
 0x2d9   : > { %1637 = vst.msk [vmem:[#allocation2 + $0xa8] sm:$0xff] %vm854_vm0, %v1613_v19  ;;  %1685 = vst.msk [vmem:[#allocation3 + $0xa8] sm:$0xff] %vm854_vm0, %v1661_v21 }
 0x2da   : > { %1636 = vst.msk [vmem:[#allocation2 + $0xa0] sm:$0xff] %vm854_vm0, %v1612_v22  ;;  %v6311_v24 = vpop.f32.mrb[44].mxu0  ;;  %1684 = vst.msk [vmem:[#allocation3 + $0xa0] sm:$0xff] %vm854_vm0, %v1660_v23  ;;  %v6363_v25 = vpop.f32.mrb[44].mxu1 }
 0x2db   : > { %v1137_v26 = vpop.f32.mrb[45].mxu0  ;;  %v1577_v27 = vpop.f32.mrb[45].mxu1  ;;  %v1146_v29 = vadd.f32 %v6311_v24, %v11744_v53  ;;  %v1586_v33 = vadd.f32 %v6363_v25, %v11746_v55 }
 0x2dc   : > { %v6312_v28 = vpop.f32.mrb[46].mxu0  ;;  %v6364_v31 = vpop.f32.mrb[46].mxu1  ;;  %v1138_v34 = vadd.f32 %v11744_v53, %v1137_v26  ;;  %v1578_v38 = vadd.f32 %v11746_v55, %v1577_v27 }
 0x2dd   : > { %v1149_v30 = vadd.f32 %v6312_v28, %v11744_v53  ;;  %v1140_v32 = vpop.f32.mrb[47].mxu0  ;;  %v1589_v35 = vadd.f32 %v6364_v31, %v11746_v55  ;;  %v1580_v37 = vpop.f32.mrb[47].mxu1 }
 0x2de   : > { %v1141_v36 = vadd.f32 %v11744_v53, %v1140_v32  ;;  %v1581_v40 = vadd.f32 %v11746_v55, %v1580_v37 }
 0x2df   : > { %v1615_v39 = vpack.c.bf16 %v1149_v30, %v1146_v29  ;;  %v1663_v41 = vpack.c.bf16 %v1589_v35, %v1586_v33 }
 0x2e0   : > { %v1614_v42 = vpack.c.bf16 %v1141_v36, %v1138_v34  ;;  %v1662_v43 = vpack.c.bf16 %v1581_v40, %v1578_v38 }
 0x2e1   : > { %1639 = vst.msk [vmem:[#allocation2 + $0xb8] sm:$0xff] %vm854_vm0, %v1615_v39  ;;  %1687 = vst.msk [vmem:[#allocation3 + $0xb8] sm:$0xff] %vm854_vm0, %v1663_v41 }
 0x2e2   : > { %1638 = vst.msk [vmem:[#allocation2 + $0xb0] sm:$0xff] %vm854_vm0, %v1614_v42  ;;  %1686 = vst.msk [vmem:[#allocation3 + $0xb0] sm:$0xff] %vm854_vm0, %v1662_v43 }
 0x2e3 PF: > { %v8528_v44 = vld [vmem:[#allocation10] sm:$0xff]   ;;  %v8529_v53 = vld [vmem:[#allocation10 + $0x8] sm:$0xff]   ;;  %vm1767_vm1 = vcmask 261120   ;;  %v8534_v48 = vld [vmem:[%s11612_s16 + $0x10] sm:$0xff]   ;;  %v11924_v31 = vmov 0.0   ;;  %v11926_v32 = vmov 0.0  }
 0x2e4   : > { %6365 = vmatprep.subr.bf16.mxu0 %v8528_v44  ;;  %6661 = vmatprep.subr.bf16.mxu1 %v8528_v44  ;;  %v8530_v55 = vld [vmem:[%s11612_s16] sm:$0xff]   ;;  %v8532_v46 = vld [vmem:[%s11612_s16 + $0x8] sm:$0xff]   ;;  %v8535_v49 = vld [vmem:[%s11612_s16 + $0x30] sm:$0xff]   ;;  %v11928_v33 = vmov 0.0   ;;  %v11930_v34 = vmov 0.0   ;;  %v11932_v35 = vmov 0.0  }
 0x2e5   : > { %6366 = vmatpush3.bf16.msra.mxu0 %v8528_v44  ;;  %6663 = vmatpush3.bf16.msra.mxu1 %v8528_v44  ;;  %v8531_v45 = vld [vmem:[%s11612_s16 + $0x20] sm:$0xff]   ;;  %v8533_v47 = vld [vmem:[%s11612_s16 + $0x28] sm:$0xff]   ;;  %v8536_v50 = vld [vmem:[%s11612_s16 + $0x18] sm:$0xff]   ;;  %15842 = vst [vmem:[#allocation47_spill] sm:$0xff] %v11932_v35  ;;  %v11934_v36 = vmov 0.0   ;;  %v11936_v37 = vmov 0.0  }
 0x2e6   : > { %6367 = vmatprep.subr.bf16.mxu0 %v8529_v53  ;;  %6662 = vmatprep.subr.bf16.mxu1 %v8529_v53  ;;  %v8537_v51 = vld [vmem:[%s11612_s16 + $0x38] sm:$0xff]   ;;  %v5981_v54 = vld [vmem:[#allocation12] ss:$0 sm:$0xff]  ;;  %v11938_v38 = vmov 0.0   ;;  %v11940_v39 = vmov 0.0   ;;  %v11942_v40 = vmov 0.0  }
 0x2e7   : > { %6369 = vmatprep.mubr.msk.bf16.mxu0 %vm1767_vm1, %v8530_v55  ;;  %6377 = vmatprep.mubr.msk.bf16.mxu1 %vm1767_vm1, %v8531_v45  ;;  %15843 = vst [vmem:[#allocation48_spill] sm:$0xff] %v11938_v38  ;;  %v11944_v41 = vmov 0.0   ;;  %v11946_v42 = vmov 0.0   ;;  %v11948_v43 = vmov 0.0   ;;  %v11950_v44 = vmov 0.0   ;;  %s12020_s28 = smov 0  }
 0x2e8   : > { %v11954_v55 = vmov 0.0   ;;  %v11956_v45 = vmov 0.0  }
 0x2e9   : > { %6368 = vmatpush3.bf16.msra.mxu0 %v8529_v53  ;;  %6664 = vmatpush3.bf16.msra.mxu1 %v8529_v53  ;;  %v11952_v53 = vmov 0.0  }
 0x2ec   : > { %6370 = vmatmul.mubr.msk.bf16.vlgmr.msra.gmra.mrb[0].mxu0 %vm1767_vm1, %v8532_v46  ;;  %6378 = vmatmul.mubr.msk.bf16.vlgmr.msra.gmra.mrb[0].mxu1 %vm1767_vm1, %v8533_v47  ;;  %v11958_v46 = vmov 0.0   ;;  %v11960_v47 = vmov 0.0  }
 0x2ed   : > { %6373 = vmatprep.mubr.msk.bf16.mxu0 %vm1767_vm1, %v8534_v48  ;;  %6381 = vmatprep.mubr.msk.bf16.mxu1 %vm1767_vm1, %v8535_v49  ;;  %v11962_v48 = vmov 0.0   ;;  %v11964_v49 = vmov 0.0  }
 0x2f4   : > { %6374 = vmatmul.mubr.msk.bf16.gmra.mrb[4].mxu0 %vm1767_vm1, %v8536_v50  ;;  %6382 = vmatmul.mubr.msk.bf16.gmra.mrb[4].mxu1 %vm1767_vm1, %v8537_v51  ;;  %v11966_v50 = vmov 0.0   ;;  %v11968_v51 = vmov 0.0  }
 0x3bf   : > { %v6371_v52 = vpop.f32.mrb[0].mxu0  ;;  %v6379_v56 = vpop.f32.mrb[0].mxu1 }
 0x3c0   : > { %v1826_v57 = vpop.f32.mrb[1].mxu0  ;;  %v1858_v58 = vpop.f32.mrb[1].mxu1  ;;  %v1835_v61 = vadd.f32 %v6371_v52, %v5981_v54  ;;  %v1867_v62 = vadd.f32 %v6379_v56, %v5981_v54  ;;  %v11970_v52 = vmov 0.0   ;;  %v11974_v56 = vmov 0.0  }
 0x3c1   : > { %v6372_v59 = vpop.f32.mrb[2].mxu0  ;;  %v6380_v60 = vpop.f32.mrb[2].mxu1  ;;  %v1827_v3 = vadd.f32 %v5981_v54, %v1826_v57  ;;  %v1859_v4 = vadd.f32 %v5981_v54, %v1858_v58  ;;  %v11976_v57 = vmov 0.0   ;;  %v11978_v58 = vmov 0.0  }
 0x3c2   : > { %v1838_v63 = vadd.f32 %v6372_v59, %v5981_v54  ;;  %v1870_v0 = vadd.f32 %v6380_v60, %v5981_v54  ;;  %v1829_v1 = vpop.f32.mrb[3].mxu0  ;;  %v1861_v2 = vpop.f32.mrb[3].mxu1  ;;  %v11980_v59 = vmov 0.0   ;;  %v11982_v60 = vmov 0.0  }
 0x3c3   : > { %v1830_v5 = vadd.f32 %v5981_v54, %v1829_v1  ;;  %v1862_v6 = vadd.f32 %v5981_v54, %v1861_v2  ;;  %v11992_v1 = vmov -inf   ;;  %v11994_v2 = vmov -inf  }
 0x3c4   : > { %v11908_v7 = vpack.c.bf16 %v1838_v63, %v1835_v61  ;;  %v11910_v8 = vpack.c.bf16 %v1870_v0, %v1867_v62  ;;  %v11984_v61 = vmov 0.0   ;;  %v11986_v62 = vmov 0.0  }
 0x3c5   : > { %v11912_v9 = vpack.c.bf16 %v1830_v5, %v1827_v3  ;;  %v11914_v10 = vpack.c.bf16 %v1862_v6, %v1859_v4  ;;  %v11988_v63 = vmov -inf   ;;  %v11990_v0 = vmov -inf  }
 0x3c6   : > { %15834 = vst [vmem:[#allocation39_spill] sm:$0xff] %v11908_v7  ;;  %15835 = vst [vmem:[#allocation40_spill] sm:$0xff] %v11910_v8  ;;  %v11996_v3 = vmov -inf   ;;  %v11998_v4 = vmov -inf   ;;  %v12000_v5 = vmov -inf   ;;  %v12002_v6 = vmov -inf  }
 0x3c7   : > { %15836 = vst [vmem:[#allocation41_spill] sm:$0xff] %v11912_v9  ;;  %15837 = vst [vmem:[#allocation42_spill] sm:$0xff] %v11914_v10  ;;  %v6375_v11 = vpop.f32.mrb[4].mxu0  ;;  %v6383_v12 = vpop.f32.mrb[4].mxu1 }
 0x3c8   : > { %v1842_v13 = vpop.f32.mrb[5].mxu0  ;;  %v1874_v14 = vpop.f32.mrb[5].mxu1  ;;  %v1851_v17 = vadd.f32 %v6375_v11, %v5981_v54  ;;  %v1883_v18 = vadd.f32 %v6383_v12, %v5981_v54  ;;  %v12004_v11 = vmov -inf   ;;  %v12006_v12 = vmov -inf  }
 0x3c9   : > { %v6376_v15 = vpop.f32.mrb[6].mxu0  ;;  %v6384_v16 = vpop.f32.mrb[6].mxu1  ;;  %v1843_v23 = vadd.f32 %v5981_v54, %v1842_v13  ;;  %v1875_v24 = vadd.f32 %v5981_v54, %v1874_v14  ;;  %v12008_v13 = vmov -inf   ;;  %v12010_v14 = vmov -inf  }
 0x3ca   : > { %v1854_v19 = vadd.f32 %v6376_v15, %v5981_v54  ;;  %v1886_v20 = vadd.f32 %v6384_v16, %v5981_v54  ;;  %v1845_v21 = vpop.f32.mrb[7].mxu0  ;;  %v1877_v22 = vpop.f32.mrb[7].mxu1  ;;  %v12012_v15 = vmov -inf   ;;  %v12014_v16 = vmov -inf  }
 0x3cb   : > { %v1846_v25 = vadd.f32 %v5981_v54, %v1845_v21  ;;  %v1878_v26 = vadd.f32 %v5981_v54, %v1877_v22  ;;  %v11972_v54 = vmov 0.0  }
 0x3cc   : > { %v11916_v27 = vpack.c.bf16 %v1854_v19, %v1851_v17  ;;  %v11918_v28 = vpack.c.bf16 %v1886_v20, %v1883_v18  ;;  %v12016_v17 = vmov -inf   ;;  %v12018_v18 = vmov -inf  }
 0x3cd   : > { %v11920_v29 = vpack.c.bf16 %v1846_v25, %v1843_v23  ;;  %v11922_v30 = vpack.c.bf16 %v1878_v26, %v1875_v24 }
 0x3ce   : > { %15838 = vst [vmem:[#allocation43_spill] sm:$0xff] %v11916_v27  ;;  %15839 = vst [vmem:[#allocation44_spill] sm:$0xff] %v11918_v28 }
 0x3cf   : > { %15840 = vst [vmem:[#allocation45_spill] sm:$0xff] %v11920_v29  ;;  %15841 = vst [vmem:[#allocation46_spill] sm:$0xff] %v11922_v30 }
 0x3d0 LB: >> { %15846 = vst [vmem:[#allocation49_spill] sm:$0xff] %v10288_v31  ;;  %15847 = vst [vmem:[#allocation50_spill] sm:$0xff] %v10292_v32  ;;  %v15850_v35 = vld [vmem:[#allocation47_spill] sm:$0xff]  ;;  %v15854_v38 = vld [vmem:[#allocation48_spill] sm:$0xff]  ;;  %vm1974_vm2 = vcmask 64512   ;;  %s6000_s3 = sshll.u32 %s10480_s28, 7  ;;  %s10480_s28 = sphi %s12020_s28, %s16026_s28   ;;  %v10476_v18 = vphi %v12018_v18, %v16025_v18   ;;  %v10472_v17 = vphi %v12016_v17, %v16024_v17   ;;  %v10468_v16 = vphi %v12014_v16, %v16023_v16   ;;  %v10464_v15 = vphi %v12012_v15, %v16022_v15   ;;  %v10460_v14 = vphi %v12010_v14, %v16021_v14   ;;  %v10456_v13 = vphi %v12008_v13, %v16020_v13   ;;  %v10452_v12 = vphi %v12006_v12, %v16019_v12   ;;  %v10448_v11 = vphi %v12004_v11, %v16018_v11   ;;  %v10444_v6 = vphi %v12002_v6, %v16017_v6   ;;  %v10440_v5 = vphi %v12000_v5, %v16016_v5   ;;  %v10436_v4 = vphi %v11998_v4, %v16015_v4   ;;  %v10432_v3 = vphi %v11996_v3, %v16014_v3   ;;  %v10428_v2 = vphi %v11994_v2, %v16013_v2   ;;  %v10424_v1 = vphi %v11992_v1, %v16012_v1   ;;  %v10420_v0 = vphi %v11990_v0, %v16011_v0   ;;  %v10416_v63 = vphi %v11988_v63, %v16010_v63   ;;  %v10412_v62 = vphi %v11986_v62, %v16009_v62   ;;  %v10408_v61 = vphi %v11984_v61, %v16008_v61   ;;  %v10404_v60 = vphi %v11982_v60, %v16007_v60   ;;  %v10400_v59 = vphi %v11980_v59, %v16006_v59   ;;  %v10396_v58 = vphi %v11978_v58, %v16005_v58   ;;  %v10392_v57 = vphi %v11976_v57, %v16004_v57   ;;  %v10388_v56 = vphi %v11974_v56, %v16003_v56   ;;  %v10384_v54 = vphi %v11972_v54, %v16002_v54   ;;  %v10380_v52 = vphi %v11970_v52, %v16001_v52   ;;  %v10376_v51 = vphi %v11968_v51, %v16000_v51   ;;  %v10372_v50 = vphi %v11966_v50, %v15999_v50   ;;  %v10368_v49 = vphi %v11964_v49, %v15998_v49   ;;  %v10364_v48 = vphi %v11962_v48, %v15997_v48   ;;  %v10360_v47 = vphi %v11960_v47, %v15996_v47   ;;  %v10356_v46 = vphi %v11958_v46, %v15995_v46   ;;  %v10352_v45 = vphi %v11956_v45, %v15994_v45   ;;  %v10348_v55 = vphi %v11954_v55, %v15993_v55   ;;  %v10344_v53 = vphi %v11952_v53, %v15992_v53   ;;  %v10340_v44 = vphi %v11950_v44, %v15991_v44   ;;  %v10336_v43 = vphi %v11948_v43, %v15990_v43   ;;  %v10332_v42 = vphi %v11946_v42, %v15989_v42   ;;  %v10328_v41 = vphi %v11944_v41, %v15988_v41   ;;  %v10324_v40 = vphi %v11942_v40, %v15987_v40   ;;  %v10320_v39 = vphi %v11940_v39, %v15986_v39   ;;  %v10312_v37 = vphi %v11936_v37, %v15983_v37   ;;  %v10308_v36 = vphi %v11934_v36, %v15981_v36   ;;  %v10300_v34 = vphi %v11930_v34, %v15979_v34   ;;  %v10296_v33 = vphi %v11928_v33, %v15978_v33   ;;  %v10292_v32 = vphi %v11926_v32, %v15977_v32   ;;  %v10288_v31 = vphi %v11924_v31, %v15976_v31  }
 0x3d1   : >> { %15848 = vst [vmem:[#allocation51_spill] sm:$0xff] %v10296_v33  ;;  %15849 = vst [vmem:[#allocation52_spill] sm:$0xff] %v10300_v34  ;;  %v15864_v9 = vld [vmem:[#allocation41_spill] sm:$0xff]  ;;  %s12172_s10 = sshra.s32 %s6000_s3, 4  ;;  %v15865_v7 = vld [vmem:[#allocation39_spill] sm:$0xff]  ;;  %s1902_s11 = sadd.s32 1, %s10480_s28  }
 0x3d2   : >> { %15851 = vst [vmem:[#allocation47_spill] sm:$0xff] %v15850_v35  ;;  %15852 = vst [vmem:[#allocation53_spill] sm:$0xff] %v10308_v36  ;;  %6401 = vmatprep.mubr.msk.bf16.mxu0 %vm1974_vm2, %v15864_v9  ;;  %s6001_s14 = sshll.u32 %s12172_s10, 3  ;;  %v15868_v10 = vld [vmem:[#allocation42_spill] sm:$0xff]  ;;  %v15869_v8 = vld [vmem:[#allocation40_spill] sm:$0xff]  ;;  %p12566_p13 = scmp.ge.s32.totalorder %s1902_s11, 3  }
 0x3d3   : >> { %15853 = vst [vmem:[#allocation54_spill] sm:$0xff] %v10312_v37  ;;  %15855 = vst [vmem:[#allocation48_spill] sm:$0xff] %v15854_v38  ;;  %s1955_s12 = scalar_lea.vmem [#allocation2], %s6001_s14  ;;  %s12209_s13 = scalar_lea.vmem [#allocation3], %s6001_s14 }
 0x3d4   : >> { %15856 = vst [vmem:[#allocation55_spill] sm:$0xff] %v10320_v39  ;;  %15857 = vst [vmem:[#allocation56_spill] sm:$0xff] %v10324_v40  ;;  %v1956_v19 = vld [vmem:[%s1955_s12] sm:$0xff]  ;;  %v1957_v20 = vld [vmem:[%s1955_s12 + $0x8] sm:$0xff]  ;;  %s16026_s28 = smov %s1902_s11  ;;  %s12880_s15 = smov (%p12566_p13), 0  }
 0x3d5   : >> { %15858 = vst [vmem:[#allocation57_spill] sm:$0xff] %v10328_v41  ;;  %15859 = vst [vmem:[#allocation58_spill] sm:$0xff] %v10332_v42  ;;  %6669 = vmatprep.subr.msk.bf16.mxu0 %vm1974_vm2, %v1956_v19  ;;  %v2000_v21 = vsel %vm1974_vm2, %v1956_v19, 0  ;;  %v2003_v22 = vsel %vm1974_vm2, %v1957_v20, 0  ;;  %v1958_v23 = vld [vmem:[%s1955_s12 + $0x10] sm:$0xff]  ;;  %v1959_v25 = vld [vmem:[%s1955_s12 + $0x18] sm:$0xff] }
 0x3d6   : >> { %15860 = vst [vmem:[#allocation59_spill] sm:$0xff] %v10336_v43  ;;  %15861 = vst [vmem:[#allocation60_spill] sm:$0xff] %v10344_v53  ;;  %6386 = vmatpush3.bf16.xpose.msra.mxu0 %v2000_v21  ;;  %v2006_v24 = vsel %vm1974_vm2, %v1958_v23, 0  ;;  %v2009_v26 = vsel %vm1974_vm2, %v1959_v25, 0  ;;  %v1960_v9 = vld [vmem:[%s1955_s12 + $0x20] sm:$0xff]  ;;  %v1961_v21 = vld [vmem:[%s1955_s12 + $0x28] sm:$0xff] }
 0x3d7   : >> { %15862 = vst [vmem:[#allocation61_spill] sm:$0xff] %v10348_v55  ;;  %15863 = vst [vmem:[#allocation62_spill] sm:$0xff] %v10424_v1  ;;  %6670 = vmatprep.subr.msk.bf16.mxu0 %vm1974_vm2, %v1957_v20  ;;  %v2012_v19 = vsel %vm1974_vm2, %v1960_v9, 0  ;;  %v2015_v20 = vsel %vm1974_vm2, %v1961_v21, 0  ;;  %v15866_v29 = vld [vmem:[#allocation45_spill] sm:$0xff]  ;;  %v15867_v27 = vld [vmem:[#allocation43_spill] sm:$0xff] }
 0x3d8   : >> { %v15870_v30 = vld [vmem:[#allocation46_spill] sm:$0xff]  ;;  %v15871_v28 = vld [vmem:[#allocation44_spill] sm:$0xff] }
 0x3d9   : >> { %v1970_v32 = vld [vmem:[%s12209_s13 + $0x20] sm:$0xff]  ;;  %v1972_v35 = vld [vmem:[%s12209_s13 + $0x30] sm:$0xff] }
 0x3de   : >> { %6388 = vmatpush3.bf16.xpose.msra.mxu0 %v2003_v22  ;;  %v1962_v22 = vld [vmem:[%s1955_s12 + $0x30] sm:$0xff] }
 0x3df   : >> { %6671 = vmatprep.subr.msk.bf16.mxu0 %vm1974_vm2, %v1958_v23  ;;  %v2018_v23 = vsel %vm1974_vm2, %v1962_v22, 0 }
 0x3e6   : >> { %6390 = vmatpush3.bf16.xpose.msra.mxu0 %v2006_v24  ;;  %v1963_v24 = vld [vmem:[%s1955_s12 + $0x38] sm:$0xff] }
 0x3e7   : >> { %6672 = vmatprep.subr.msk.bf16.mxu0 %vm1974_vm2, %v1959_v25  ;;  %v2021_v25 = vsel %vm1974_vm2, %v1963_v24, 0 }
 0x3ee   : >> { %6392 = vmatpush3.bf16.xpose.msra.mxu0 %v2009_v26  ;;  %v1967_v26 = vld [vmem:[%s12209_s13 + $0x8] sm:$0xff] }
 0x3ef   : >> { %6673 = vmatprep.subr.msk.bf16.mxu0 %vm1974_vm2, %v1960_v9  ;;  %v1966_v9 = vld [vmem:[%s12209_s13] sm:$0xff] }
 0x3f0   : >> { %6417 = vmatprep.subr.bf16.mxu1 %v1966_v9 }
 0x3f1   : >> { %6418 = vmatpush3.bf16.msra.mxu1 %v1966_v9 }
 0x3f2   : >> { %6419 = vmatprep.subr.bf16.mxu1 %v1967_v26 }
 0x3f5   : >> { %6420 = vmatpush3.bf16.msra.mxu1 %v1967_v26 }
 0x3f6   : >> { %6394 = vmatpush3.bf16.xpose.msra.mxu0 %v2012_v19 }
 0x3f7   : >> { %6674 = vmatprep.subr.msk.bf16.mxu0 %vm1974_vm2, %v1961_v21 }
 0x3fe   : >> { %6396 = vmatpush3.bf16.xpose.msra.mxu0 %v2015_v20 }
 0x3ff   : >> { %6675 = vmatprep.subr.msk.bf16.mxu0 %vm1974_vm2, %v1962_v22 }
 0x406   : >> { %6398 = vmatpush3.bf16.xpose.msra.mxu0 %v2018_v23 }
 0x407   : >> { %6676 = vmatprep.subr.msk.bf16.mxu0 %vm1974_vm2, %v1963_v24 }
 0x40e   : >> { %6400 = vmatpush3.bf16.xpose.msra.mxu0 %v2021_v25 }
 0x415   : >> { %6402 = vmatmul.mubr.msk.bf16.vlgmr.msra.gmra.mrb[0].mxu0 %vm1974_vm2, %v15865_v7  ;;  %v1968_v7 = vld [vmem:[%s12209_s13 + $0x10] sm:$0xff] }
 0x416   : >> { %6405 = vmatprep.mubr.msk.bf16.mxu0 %vm1974_vm2, %v15866_v29  ;;  %6421 = vmatprep.subr.bf16.mxu1 %v1968_v7 }
 0x417   : >> { %6422 = vmatpush3.bf16.msra.mxu1 %v1968_v7 }
 0x41d   : >> { %6406 = vmatmul.mubr.msk.bf16.gmra.mrb[4].mxu0 %vm1974_vm2, %v15867_v27 }
 0x41e   : >> { %6409 = vmatprep.mubr.msk.bf16.mxu0 %vm1974_vm2, %v15868_v10 }
 0x425   : >> { %6410 = vmatmul.mubr.msk.bf16.gmra.mrb[8].mxu0 %vm1974_vm2, %v15869_v8 }
 0x426   : >> { %6413 = vmatprep.mubr.msk.bf16.mxu0 %vm1974_vm2, %v15870_v30 }
 0x42d   : >> { %6414 = vmatmul.mubr.msk.bf16.gmra.mrb[12].mxu0 %vm1974_vm2, %v15871_v28 }
 0x4e8   : >> { %v6403_v19 = vpop.f32.mrb[0].mxu0 }
 0x4e9   : >> { %v12213_v21 = vmul.f32 0.35355338, %v6403_v19  ;;  %v2057_v20 = vpop.f32.mrb[1].mxu0 }
 0x4ea   : >> { %v12215_v22 = vmul.f32 0.35355338, %v2057_v20  ;;  %v6404_v23 = vpop.f32.mrb[2].mxu0 }
 0x4eb   : >> { %2140 = vmax.xlane.f32.xlu1 %v12213_v21  ;;  %v2060_v24 = vpop.f32.mrb[3].mxu0  ;;  %v12219_v25 = vmul.f32 0.35355338, %v6404_v23 }
 0x4ec   : >> { %2136 = vmax.xlane.f32.xlu0 %v12215_v22  ;;  %v12221_v28 = vmul.f32 0.35355338, %v2060_v24 }
 0x4ef   : >> { %2142 = vmax.xlane.f32.xlu1 %v12219_v25 }
 0x4f0   : >> { %2138 = vmax.xlane.f32.xlu0 %v12221_v28  ;;  %v6407_v9 = vpop.f32.mrb[4].mxu0 }
 0x4f1   : >> { %v2073_v26 = vpop.f32.mrb[5].mxu0  ;;  %v12230_v10 = vmul.f32 0.35355338, %v6407_v9 }
 0x4f2   : >> { %v12225_v19 = vmul.f32 0.35355338, %v2073_v26  ;;  %v6408_v20 = vpop.f32.mrb[6].mxu0 }
 0x4f3   : >> { %v2076_v30 = vpop.f32.mrb[7].mxu0  ;;  %v12233_v23 = vmul.f32 0.35355338, %v6408_v20  ;;  %v1969_v20 = vld [vmem:[%s12209_s13 + $0x18] sm:$0xff] }
 0x4f4   : >> { %v12227_v8 = vmul.f32 0.35355338, %v2076_v30  ;;  %2144 = vmax.xlane.f32.xlu0 %v12225_v19  ;;  %6423 = vmatprep.subr.bf16.mxu1 %v1969_v20 }
 0x4f5   : >> { %6424 = vmatpush3.bf16.msra.mxu1 %v1969_v20  ;;  %v1971_v20 = vld [vmem:[%s12209_s13 + $0x28] sm:$0xff] }
 0x4f6   : >> { %2146 = vmax.xlane.f32.xlu1 %v12227_v8  ;;  %6425 = vmatprep.subr.bf16.mxu1 %v1970_v32 }
 0x4f8   : >> { %2148 = vmax.xlane.f32.xlu0 %v12230_v10  ;;  %v6411_v24 = vpop.f32.mrb[8].mxu0 }
 0x4f9   : >> { %v2089_v27 = vpop.f32.mrb[9].mxu0  ;;  %v12243_v9 = vmul.f32 0.35355338, %v6411_v24  ;;  %6426 = vmatpush3.bf16.msra.mxu1 %v1970_v32 }
 0x4fa   : >> { %v12236_v29 = vmul.f32 0.35355338, %v2089_v27  ;;  %2150 = vmax.xlane.f32.xlu1 %v12233_v23  ;;  %v6412_v26 = vpop.f32.mrb[10].mxu0  ;;  %6427 = vmatprep.subr.bf16.mxu1 %v1971_v20 }
 0x4fb   : >> { %v2092_v30 = vpop.f32.mrb[11].mxu0  ;;  %v12247_v31 = vmul.f32 0.35355338, %v6412_v26 }
 0x4fc   : >> { %v12240_v33 = vmul.f32 0.35355338, %v2092_v30  ;;  %2152 = vmax.xlane.f32.xlu0 %v12236_v29 }
 0x4fd   : >> { %6428 = vmatpush3.bf16.msra.mxu1 %v1971_v20 }
 0x4fe   : >> { %2154 = vmax.xlane.f32.xlu1 %v12240_v33  ;;  %6429 = vmatprep.subr.bf16.mxu1 %v1972_v35 }
 0x500   : >> { %2156 = vmax.xlane.f32.xlu0 %v12243_v9  ;;  %v6415_v27 = vpop.f32.mrb[12].mxu0 }
 0x501   : >> { %v2105_v34 = vpop.f32.mrb[13].mxu0  ;;  %v12257_v26 = vmul.f32 0.35355338, %v6415_v27  ;;  %6430 = vmatpush3.bf16.msra.mxu1 %v1972_v35 }
 0x502   : >> { %v12250_v30 = vmul.f32 0.35355338, %v2105_v34  ;;  %2158 = vmax.xlane.f32.xlu1 %v12247_v31  ;;  %v6416_v7 = vpop.f32.mrb[14].mxu0 }
 0x503   : >> { %v2108_v24 = vpop.f32.mrb[15].mxu0  ;;  %15873 = vst [vmem:[#allocation64_spill] sm:$0xff] %v12257_v26  ;;  %v12261_v34 = vmul.f32 0.35355338, %v6416_v7 }
 0x504   : >> { %15872 = vst [vmem:[#allocation63_spill] sm:$0xff] %v12250_v30  ;;  %v12254_v37 = vmul.f32 0.35355338, %v2108_v24  ;;  %2160 = vmax.xlane.f32.xlu0 %v12250_v30  ;;  %v1973_v24 = vld [vmem:[%s12209_s13 + $0x38] sm:$0xff] }
 0x505   : >> { %6431 = vmatprep.subr.bf16.mxu1 %v1973_v24 }
 0x506   : >> { %2162 = vmax.xlane.f32.xlu1 %v12254_v37  ;;  %6432 = vmatpush3.bf16.msra.mxu1 %v1973_v24 }
 0x508   : >> { %2164 = vmax.xlane.f32.xlu0 %v12257_v26 }
 0x50a   : >> { %2166 = vmax.xlane.f32.xlu1 %v12261_v34 }
 0x578   : >> { %v2141_v32 = vpop.xlane.xlu1 %2140 }
 0x579   : >> { %v12268_v27 = vmax.f32 %v10468_v16, %v2141_v32   ;;  %v2137_v38 = vpop.xlane.xlu0 %2136 }
 0x57a   : >> { %v12271_v7 = vmax.f32 %v10476_v18, %v2137_v38  }
 0x57b   : >> { %15874 = vst [vmem:[#allocation65_spill] sm:$0xff] %v12268_v27  ;;  %v2234_v20 = vsub.f32 %v12213_v21, %v12268_v27 }
 0x57c   : >> { %15875 = vst [vmem:[#allocation66_spill] sm:$0xff] %v12271_v7  ;;  %v2232_v24 = vsub.f32 %v12215_v22, %v12271_v7  ;;  %v2143_v41 = vpop.xlane.xlu1 %2142 }
 0x57d   : >> { %v2252_v39 = vmul.f32 1.442695, %v2234_v20  ;;  %v12282_v32 = vmax.f32 %v10464_v15, %v2143_v41   ;;  %v2139_v42 = vpop.xlane.xlu0 %2138 }
 0x57e   : >> { %v12285_v38 = vmax.f32 %v10472_v17, %v2139_v42   ;;  %v2248_v40 = vmul.f32 1.442695, %v2232_v24 }
 0x57f   : >> { %15876 = vst [vmem:[#allocation67_spill] sm:$0xff] %v12282_v32  ;;  %v15877_v26 = vmov %v12282_v32  ;;  %8538 = vpow2.f32 %v2252_v39 }
 0x580   : >> { %15878 = vst [vmem:[#allocation68_spill] sm:$0xff] %v12285_v38  ;;  %v15879_v30 = vmov %v12285_v38  ;;  %v2235_v21 = vsub.f32 %v12219_v25, %v15877_v26  ;;  %8540 = vpow2.f32 %v2248_v40 }
 0x581   : >> { %v2233_v20 = vsub.f32 %v12221_v28, %v15879_v30  ;;  %v2145_v32 = vpop.xlane.xlu0 %2144 }
 0x582   : >> { %v2254_v41 = vmul.f32 1.442695, %v2235_v21  ;;  %v12296_v42 = vmax.f32 %v10460_v14, %v2145_v32  }
 0x583   : >> { %v2250_v35 = vmul.f32 1.442695, %v2233_v20  ;;  %v2147_v24 = vpop.xlane.xlu1 %2146 }
 0x584   : >> { %15880 = vst [vmem:[#allocation69_spill] sm:$0xff] %v12296_v42  ;;  %v15881_v7 = vmov %v12296_v42  ;;  %8542 = vpow2.f32 %v2254_v41  ;;  %v12303_v25 = vmax.f32 %v10456_v13, %v2147_v24  }
 0x585   : >> { %v2236_v39 = vsub.f32 %v12225_v19, %v15881_v7  ;;  %v2149_v22 = vpop.xlane.xlu0 %2148  ;;  %8544 = vpow2.f32 %v2250_v35 }
 0x586   : >> { %15882 = vst [vmem:[#allocation70_spill] sm:$0xff] %v12303_v25  ;;  %v2237_v21 = vsub.f32 %v12227_v8, %v12303_v25  ;;  %v12310_v40 = vmax.f32 %v10452_v12, %v2149_v22  }
 0x587   : >> { %v2151_v41 = vpop.xlane.xlu1 %2150  ;;  %v2256_v32 = vmul.f32 1.442695, %v2236_v39 }
 0x588   : >> { %15883 = vst [vmem:[#allocation71_spill] sm:$0xff] %v12310_v40  ;;  %v15884_v20 = vmov %v12310_v40  ;;  %v12313_v42 = vmax.f32 %v10448_v11, %v2151_v41   ;;  %v2258_v19 = vmul.f32 1.442695, %v2237_v21 }
 0x589   : >> { %v2238_v35 = vsub.f32 %v12230_v10, %v15884_v20  ;;  %v2153_v36 = vpop.xlane.xlu0 %2152  ;;  %v8539_v28 = vpop.eup %8538 }
 0x58a   : >> { %15885 = vst [vmem:[#allocation72_spill] sm:$0xff] %v12313_v42  ;;  %v15886_v38 = vmov %v12313_v42  ;;  %v12324_v39 = vmax.f32 %v10444_v6, %v2153_v36   ;;  %8546 = vpow2.f32 %v2258_v19  ;;  %2300 = vadd.xlane.f32.xlu0 %v8539_v28  ;;  %v8541_v24 = vpop.eup %8540 }
 0x58b   : >> { %v2239_v22 = vsub.f32 %v12233_v23, %v15886_v38  ;;  %v2260_v40 = vmul.f32 1.442695, %v2238_v35  ;;  %v2155_v21 = vpop.xlane.xlu1 %2154  ;;  %8548 = vpow2.f32 %v2256_v32 }
 0x58c   : >> { %15887 = vst [vmem:[#allocation73_spill] sm:$0xff] %v12324_v39  ;;  %v15888_v25 = vmov %v12324_v39  ;;  %v12331_v8 = vmax.f32 %v10440_v5, %v2155_v21  }
 0x58d   : >> { %v2262_v41 = vmul.f32 1.442695, %v2239_v22  ;;  %v2240_v42 = vsub.f32 %v12236_v29, %v15888_v25  ;;  %v2157_v23 = vpop.xlane.xlu0 %2156  ;;  %8550 = vpow2.f32 %v2260_v40 }
 0x58e   : >> { %15889 = vst [vmem:[#allocation74_spill] sm:$0xff] %v12331_v8  ;;  %v8543_v53 = vpop.eup %8542  ;;  %v12334_v36 = vmax.f32 %v10436_v4, %v2157_v23   ;;  %v2241_v22 = vsub.f32 %v12240_v33, %v12331_v8  ;;  %2296 = vadd.xlane.f32.xlu0 %v8541_v24 }
 0x58f   : >> { %v2264_v35 = vmul.f32 1.442695, %v2240_v42  ;;  %2302 = vadd.xlane.f32.xlu1 %v8543_v53  ;;  %v2159_v29 = vpop.xlane.xlu1 %2158  ;;  %v8545_v39 = vpop.eup %8544  ;;  %8552 = vpow2.f32 %v2262_v41  ;;  %v2361_v43 = vpack.c.bf16 %v8543_v53, %v8539_v28  ;;  %v15895_v28 = vld [vmem:[#allocation63_spill] sm:$0xff] }
 0x590   : >> { %15890 = vst [vmem:[#allocation75_spill] sm:$0xff] %v12334_v36  ;;  %v15891_v19 = vmov %v12334_v36  ;;  %v12345_v23 = vmax.f32 %v10432_v3, %v2159_v29   ;;  %v2266_v42 = vmul.f32 1.442695, %v2241_v22  ;;  %v2360_v32 = vpack.c.bf16 %v8545_v39, %v8541_v24 }
 0x591   : >> { %v2242_v40 = vsub.f32 %v12243_v9, %v15891_v19  ;;  %v2161_v36 = vpop.xlane.xlu0 %2160  ;;  %8554 = vpow2.f32 %v2264_v35 }
 0x592   : >> { %15892 = vst [vmem:[#allocation76_spill] sm:$0xff] %v12345_v23  ;;  %v2243_v41 = vsub.f32 %v12247_v31, %v12345_v23  ;;  %v12352_v21 = vmax.f32 %v10428_v2, %v2161_v36   ;;  %6433 = vmatprep.mubr.bf16.mxu1 %v2360_v32  ;;  %8556 = vpow2.f32 %v2266_v42 }
 0x593   : >> { %v2268_v10 = vmul.f32 1.442695, %v2242_v40  ;;  %2298 = vadd.xlane.f32.xlu1 %v8545_v39  ;;  %v2163_v9 = vpop.xlane.xlu1 %2162  ;;  %6434 = vmatmul.mubr.bf16.vlgmr.msra.gmra.mrb[0].mxu1 %v2361_v43 }
 0x594   : >> { %15893 = vst [vmem:[#allocation77_spill] sm:$0xff] %v12352_v21  ;;  %v12355_v22 = vmax.f32 %v10424_v1, %v2163_v9   ;;  %v8547_v24 = vpop.eup %8546  ;;  %v2270_v29 = vmul.f32 1.442695, %v2243_v41  ;;  %v2244_v35 = vsub.f32 %v15895_v28, %v12352_v21 }
 0x595   : >> { %v2165_v31 = vpop.xlane.xlu0 %2164  ;;  %v8549_v40 = vpop.eup %8548  ;;  %8558 = vpow2.f32 %v2268_v10  ;;  %v15898_v10 = vld [vmem:[#allocation64_spill] sm:$0xff] }
 0x596   : >> { %15894 = vst [vmem:[#allocation78_spill] sm:$0xff] %v12355_v22  ;;  %v2245_v43 = vsub.f32 %v12254_v37, %v12355_v22  ;;  %v12366_v39 = vmax.f32 %v10420_v0, %v2165_v31   ;;  %v2272_v42 = vmul.f32 1.442695, %v2244_v35  ;;  %v2362_v41 = vpack.c.bf16 %v8547_v24, %v8549_v40 }
 0x597   : >> { %v2167_v36 = vpop.xlane.xlu1 %2166  ;;  %v8551_v33 = vpop.eup %8550  ;;  %8560 = vpow2.f32 %v2270_v29 }
 0x598   : >> { %15896 = vst [vmem:[#allocation79_spill] sm:$0xff] %v12366_v39  ;;  %v15897_v9 = vmov %v12366_v39  ;;  %v2274_v53 = vmul.f32 1.442695, %v2245_v43  ;;  %v12373_v32 = vmax.f32 %v10416_v63, %v2167_v36   ;;  %6437 = vmatprep.mubr.bf16.mxu1 %v2362_v41  ;;  %2308 = vadd.xlane.f32.xlu0 %v8551_v33  ;;  %8562 = vpow2.f32 %v2272_v42 }
 0x599   : >> { %v2246_v55 = vsub.f32 %v15898_v10, %v15897_v9  ;;  %v8553_v37 = vpop.eup %8552 }
 0x59a   : >> { %v15899_v1 = vmov %v12373_v32  ;;  %2310 = vadd.xlane.f32.xlu1 %v8553_v37  ;;  %8564 = vpow2.f32 %v2274_v53  ;;  %v2363_v43 = vpack.c.bf16 %v8553_v37, %v8551_v33 }
 0x59b   : >> { %v2276_v31 = vmul.f32 1.442695, %v2246_v55  ;;  %v2247_v29 = vsub.f32 %v12261_v34, %v15899_v1  ;;  %v8555_v39 = vpop.eup %8554 }
 0x59c   : >> { %2304 = vadd.xlane.f32.xlu0 %v8549_v40  ;;  %v8557_v10 = vpop.eup %8556  ;;  %6438 = vmatmul.mubr.bf16.gmra.mrb[4].mxu1 %v2363_v43 }
 0x59d   : >> { %v2278_v28 = vmul.f32 1.442695, %v2247_v29  ;;  %8566 = vpow2.f32 %v2276_v31  ;;  %v2364_v32 = vpack.c.bf16 %v8557_v10, %v8555_v39  ;;  %v15901_v31 = vld [vmem:[#allocation66_spill] sm:$0xff] }
 0x59e   : >> { %2306 = vadd.xlane.f32.xlu1 %v8547_v24  ;;  %v15902_v43 = vsub.f32 %v10476_v18, %v15901_v31  ;;  %v15906_v18 = vsub.f32 %v10448_v11, %v15886_v38 }
 0x59f   : >> { %v8559_v36 = vpop.eup %8558  ;;  %8568 = vpow2.f32 %v2278_v28  ;;  %6441 = vmatprep.mubr.bf16.mxu1 %v2364_v32  ;;  %v15900_v28 = vsub.f32 %v10468_v16, %v12268_v27  ;;  %v15905_v16 = vsub.f32 %v10452_v12, %v15884_v20  ;;  %v15909_v12 = vld [vmem:[#allocation70_spill] sm:$0xff] }
 0x5a0   : >> { %2316 = vadd.xlane.f32.xlu0 %v8559_v36 }
 0x5a1   : >> { %v8561_v55 = vpop.eup %8560  ;;  %v2204_v37 = vmul.f32 1.442695, %v15900_v28 }
 0x5a2   : >> { %2318 = vadd.xlane.f32.xlu1 %v8561_v55  ;;  %v2365_v42 = vpack.c.bf16 %v8561_v55, %v8559_v36  ;;  %v8563_v41 = vpop.eup %8562  ;;  %v15904_v36 = vsub.f32 %v10472_v17, %v15879_v30  ;;  %v15907_v17 = vsub.f32 %v10460_v14, %v15881_v7  ;;  %v15911_v14 = vsub.f32 %v10436_v4, %v15891_v19 }
 0x5a3   : >> { %8570 = vpow2.f32 %v2204_v37  ;;  %v15910_v37 = vsub.f32 %v10456_v13, %v15909_v12  ;;  %v15914_v13 = vsub.f32 %v10432_v3, %v12345_v23 }
 0x5a4   : >> { %2312 = vadd.xlane.f32.xlu0 %v8555_v39  ;;  %v8565_v34 = vpop.eup %8564  ;;  %6442 = vmatmul.mubr.bf16.gmra.mrb[8].mxu1 %v2365_v42  ;;  %v2200_v39 = vmul.f32 1.442695, %v15902_v43  ;;  %v2202_v55 = vmul.f32 1.442695, %v15904_v36 }
 0x5a5   : >> { %v2366_v33 = vpack.c.bf16 %v8565_v34, %v8563_v41  ;;  %v2210_v11 = vmul.f32 1.442695, %v15910_v37 }
 0x5a6   : >> { %2314 = vadd.xlane.f32.xlu1 %v8557_v10  ;;  %v15903_v10 = vsub.f32 %v10464_v15, %v15877_v26  ;;  %8572 = vpow2.f32 %v2200_v39 }
 0x5a7   : >> { %v8567_v53 = vpop.eup %8566  ;;  %6445 = vmatprep.mubr.bf16.mxu1 %v2366_v33 }
 0x5a8   : >> { %2320 = vadd.xlane.f32.xlu0 %v8563_v41  ;;  %v2206_v32 = vmul.f32 1.442695, %v15903_v10  ;;  %v2212_v41 = vmul.f32 1.442695, %v15905_v16 }
 0x5a9   : >> { %v8569_v40 = vpop.eup %8568 }
 0x5aa   : >> { %2322 = vadd.xlane.f32.xlu1 %v8565_v34  ;;  %v2367_v24 = vpack.c.bf16 %v8569_v40, %v8567_v53  ;;  %8574 = vpow2.f32 %v2206_v32  ;;  %v2214_v34 = vmul.f32 1.442695, %v15906_v18  ;;  %v2220_v32 = vmul.f32 1.442695, %v15911_v14 }
 0x5ab   : >> { %8576 = vpow2.f32 %v2202_v55  ;;  %v2222_v55 = vmul.f32 1.442695, %v15914_v13 }
 0x5ac   : >> { %2324 = vadd.xlane.f32.xlu0 %v8567_v53  ;;  %6446 = vmatmul.mubr.bf16.gmra.mrb[12].mxu1 %v2367_v24  ;;  %8578 = vpow2.f32 %v2212_v41  ;;  %v15915_v41 = vsub.f32 %v10444_v6, %v15888_v25 }
 0x5ad   : >> { %v12391_v42 = vpop.eup %8570  ;;  %8580 = vpow2.f32 %v2214_v34 }
 0x5ae   : >> { %2326 = vadd.xlane.f32.xlu1 %v8569_v40  ;;  %v2282_v15 = vmul.f32 %v10404_v60, %v12391_v42  ;;  %v2208_v40 = vmul.f32 1.442695, %v15907_v17  ;;  %v2216_v18 = vmul.f32 1.442695, %v15915_v41 }
 0x5b0   : >> { %v12399_v33 = vpop.eup %8572  ;;  %8582 = vpow2.f32 %v2208_v40 }
 0x5b1   : >> { %v2280_v31 = vmul.f32 %v10412_v62, %v12399_v33  ;;  %8584 = vpow2.f32 %v2210_v11 }
 0x5b2   : >> { %8586 = vpow2.f32 %v2220_v32 }
 0x5b3   : >> { %8588 = vpow2.f32 %v2222_v55 }
 0x5b4   : >> { %v12403_v53 = vpop.eup %8574  ;;  %8590 = vpow2.f32 %v2216_v18 }
 0x5b5   : >> { %v2283_v43 = vmul.f32 %v10400_v59, %v12403_v53  ;;  %v12417_v39 = vpop.eup %8576 }
 0x5b6   : >> { %v2281_v16 = vmul.f32 %v10408_v61, %v12417_v39  ;;  %v12436_v34 = vpop.eup %8578 }
 0x5b7   : >> { %v12441_v3 = vpop.eup %8580  ;;  %v2286_v6 = vmul.f32 %v10388_v56, %v12436_v34 }
 0x5b8   : >> { %v2287_v11 = vmul.f32 %v10384_v54, %v12441_v3 }
 0x5ba   : >> { %v12448_v40 = vpop.eup %8582 }
 0x5bb   : >> { %v2284_v32 = vmul.f32 %v10396_v58, %v12448_v40 }
 0x617   : >> { %v2301_v24 = vpop.xlane.xlu0 %2300 }
 0x618   : >> { %v12408_v60 = vadd.f32 %v2301_v24, %v2282_v15   ;;  %v15918_v15 = vsub.f32 %v10428_v2, %v12352_v21  ;;  %v15922_v2 = vsub.f32 %v10420_v0, %v15897_v9 }
 0x61a   : >> { %15908 = vst [vmem:[#allocation80_spill] sm:$0xff] %v12408_v60  ;;  %v2224_v17 = vmul.f32 1.442695, %v15918_v15 }
 0x61b   : >> { %v2297_v36 = vpop.xlane.xlu0 %2296 }
 0x61c   : >> { %v2303_v60 = vpop.xlane.xlu1 %2302  ;;  %v12422_v62 = vadd.f32 %v2297_v36, %v2280_v31   ;;  %v12457_v31 = vpop.eup %8584 }
 0x61d   : >> { %v12424_v59 = vadd.f32 %v2303_v60, %v2283_v43   ;;  %v2228_v43 = vmul.f32 1.442695, %v15922_v2  ;;  %v12466_v36 = vpop.eup %8586  ;;  %v2285_v0 = vmul.f32 %v10392_v57, %v12457_v31 }
 0x61e   : >> { %15912 = vst [vmem:[#allocation81_spill] sm:$0xff] %v12422_v62  ;;  %v12475_v55 = vpop.eup %8588 }
 0x61f   : >> { %15913 = vst [vmem:[#allocation82_spill] sm:$0xff] %v12424_v59  ;;  %v15917_v59 = vsub.f32 %v10440_v5, %v12331_v8  ;;  %v8591_v41 = vpop.eup %8590 }
 0x620   : >> { %v2299_v4 = vpop.xlane.xlu1 %2298 }
 0x621   : >> { %v12434_v61 = vadd.f32 %v2299_v4, %v2281_v16   ;;  %v2218_v62 = vmul.f32 1.442695, %v15917_v59  ;;  %v2290_v16 = vmul.f32 %v10372_v50, %v12466_v36  ;;  %v2288_v59 = vmul.f32 %v10380_v52, %v8591_v41 }
 0x623   : >> { %15916 = vst [vmem:[#allocation83_spill] sm:$0xff] %v12434_v61  ;;  %8592 = vpow2.f32 %v2218_v62  ;;  %v15919_v61 = vld [vmem:[#allocation62_spill] sm:$0xff] }
 0x624   : >> { %v15920_v12 = vsub.f32 %v15919_v61, %v12355_v22  ;;  %8594 = vpow2.f32 %v2224_v17 }
 0x625   : >> { %v2309_v5 = vpop.xlane.xlu0 %2308 }
 0x626   : >> { %v2226_v37 = vmul.f32 1.442695, %v15920_v12  ;;  %v12453_v56 = vadd.f32 %v2309_v5, %v2286_v6  }
 0x627   : >> { %v2311_v14 = vpop.xlane.xlu1 %2310 }
 0x628   : >> { %15921 = vst [vmem:[#allocation84_spill] sm:$0xff] %v12453_v56  ;;  %v12462_v54 = vadd.f32 %v2311_v14, %v2287_v11   ;;  %8596 = vpow2.f32 %v2226_v37  ;;  %v15924_v56 = vsub.f32 %v10416_v63, %v15899_v1  ;;  %v15935_v14 = vld [vmem:[#allocation61_spill] sm:$0xff] }
 0x629   : >> { %v2305_v13 = vpop.xlane.xlu0 %2304  ;;  %8598 = vpow2.f32 %v2228_v43  ;;  %v2346_v43 = vmul.f32 %v10340_v44, %v12391_v42  ;;  %v15942_v42 = vld [vmem:[#allocation56_spill] sm:$0xff] }
 0x62a   : >> { %15923 = vst [vmem:[#allocation85_spill] sm:$0xff] %v12462_v54  ;;  %v2230_v60 = vmul.f32 1.442695, %v15924_v56  ;;  %v12471_v58 = vadd.f32 %v2305_v13, %v2284_v32   ;;  %v2344_v32 = vmul.f32 %v15935_v14, %v12399_v33  ;;  %v15937_v56 = vld [vmem:[#allocation59_spill] sm:$0xff]  ;;  %v2350_v33 = vmul.f32 %v15942_v42, %v12436_v34 }
 0x62b   : >> { %v2307_v54 = vpop.xlane.xlu1 %2306 }
 0x62c   : >> { %15925 = vst [vmem:[#allocation86_spill] sm:$0xff] %v12471_v58  ;;  %v12477_v57 = vadd.f32 %v2307_v54, %v2285_v0   ;;  %8600 = vpow2.f32 %v2230_v60  ;;  %v2291_v58 = vmul.f32 %v10368_v49, %v12475_v55  ;;  %v2347_v60 = vmul.f32 %v15937_v56, %v12403_v53  ;;  %v15939_v0 = vld [vmem:[#allocation60_spill] sm:$0xff] }
 0x62d   : >> { %v2317_v18 = vpop.xlane.xlu0 %2316  ;;  %v8593_v63 = vpop.eup %8592  ;;  %v2345_v54 = vmul.f32 %v15939_v0, %v12417_v39  ;;  %v15970_v0 = vld [vmem:[#allocation51_spill] sm:$0xff] }
 0x62e   : >> { %15926 = vst [vmem:[#allocation87_spill] sm:$0xff] %v12477_v57  ;;  %v12481_v50 = vadd.f32 %v2317_v18, %v2290_v16   ;;  %v8595_v62 = vpop.eup %8594  ;;  %v2289_v57 = vmul.f32 %v10376_v51, %v8593_v63 }
 0x62f   : >> { %v2319_v4 = vpop.xlane.xlu1 %2318 }
 0x630   : >> { %15927 = vst [vmem:[#allocation88_spill] sm:$0xff] %v12481_v50  ;;  %v12485_v49 = vadd.f32 %v2319_v4, %v2291_v58   ;;  %v2292_v50 = vmul.f32 %v10364_v48, %v8595_v62  ;;  %v15945_v4 = vld [vmem:[#allocation55_spill] sm:$0xff] }
 0x631   : >> { %v2313_v15 = vpop.xlane.xlu0 %2312 }
 0x632   : >> { %15928 = vst [vmem:[#allocation89_spill] sm:$0xff] %v12485_v49  ;;  %v12488_v52 = vadd.f32 %v2313_v15, %v2288_v59   ;;  %v8597_v17 = vpop.eup %8596  ;;  %v2351_v59 = vmul.f32 %v15945_v4, %v12441_v3  ;;  %v15947_v15 = vld [vmem:[#allocation57_spill] sm:$0xff]  ;;  %v16015_v4 = vld [vmem:[#allocation75_spill] sm:$0xff] }
 0x633   : >> { %v2315_v6 = vpop.xlane.xlu1 %2314  ;;  %v8599_v61 = vpop.eup %8598  ;;  %v2293_v49 = vmul.f32 %v10360_v47, %v8597_v17 }
 0x634   : >> { %15929 = vst [vmem:[#allocation90_spill] sm:$0xff] %v12488_v52  ;;  %v12491_v51 = vadd.f32 %v2315_v6, %v2289_v57   ;;  %v2294_v52 = vmul.f32 %v10356_v46, %v8599_v61  ;;  %v2349_v57 = vmul.f32 %v15947_v15, %v12457_v31  ;;  %v15951_v6 = vld [vmem:[#allocation53_spill] sm:$0xff]  ;;  %v16022_v15 = vld [vmem:[#allocation67_spill] sm:$0xff] }
 0x635   : >> { %v2321_v12 = vpop.xlane.xlu0 %2320 }
 0x636   : >> { %15930 = vst [vmem:[#allocation91_spill] sm:$0xff] %v12491_v51  ;;  %v12494_v48 = vadd.f32 %v2321_v12, %v2292_v50   ;;  %v8601_v37 = vpop.eup %8600  ;;  %v2354_v50 = vmul.f32 %v15951_v6, %v12466_v36  ;;  %v16017_v6 = vld [vmem:[#allocation73_spill] sm:$0xff] }
 0x637   : >> { %v2323_v5 = vpop.xlane.xlu1 %2322  ;;  %v2295_v2 = vmul.f32 %v10352_v45, %v8601_v37 }
 0x638   : >> { %15931 = vst [vmem:[#allocation92_spill] sm:$0xff] %v12494_v48  ;;  %v12497_v47 = vadd.f32 %v2323_v5, %v2293_v49   ;;  %v15955_v5 = vld [vmem:[#allocation47_spill] sm:$0xff] }
 0x639   : >> { %v2325_v11 = vpop.xlane.xlu0 %2324 }
 0x63a   : >> { %15932 = vst [vmem:[#allocation93_spill] sm:$0xff] %v12497_v47  ;;  %v12500_v46 = vadd.f32 %v2325_v11, %v2294_v52   ;;  %v2355_v52 = vmul.f32 %v15955_v5, %v12475_v55  ;;  %v16016_v5 = vld [vmem:[#allocation74_spill] sm:$0xff] }
 0x63b   : >> { %v2327_v51 = vpop.xlane.xlu1 %2326 }
 0x63c   : >> { %v15933_v23 = vmov %v12500_v46  ;;  %v12503_v45 = vadd.f32 %v2327_v51, %v2295_v2   ;;  %v15958_v2 = vld [vmem:[#allocation54_spill] sm:$0xff] }
 0x63d   : >> { %v2353_v51 = vmul.f32 %v15958_v2, %v8593_v63  ;;  %v2357_v63 = vmul.f32 %v15970_v0, %v8597_v17  ;;  %v16011_v0 = vld [vmem:[#allocation79_spill] sm:$0xff]  ;;  %v16013_v2 = vld [vmem:[#allocation77_spill] sm:$0xff]  ;;  %v16024_v17 = vld [vmem:[#allocation68_spill] sm:$0xff] }
 0x63e   : >> { %v15934_v21 = vmov %v12503_v45  ;;  %v12786_v2 = vmov (%p12566_p13), 0.0   ;;  %v12814_v0 = vmov (%p12566_p13), 0.0  }
 0x641   : > { %v16042_v17 = vld [vmem:[#allocation93_spill] sm:$0xff] (%p12566_p13) }
 0x666   : >> { %v6435_v48 = vpop.f32.mrb[0].mxu1 }
 0x667   : >> { %v12509_v44 = vadd.f32 %v6435_v48, %v2346_v43   ;;  %v2402_v47 = vpop.f32.mrb[1].mxu1 }
 0x668   : >> { %v12513_v13 = vadd.f32 %v2402_v47, %v2344_v32   ;;  %v6436_v46 = vpop.f32.mrb[2].mxu1  ;;  %v15963_v32 = vld [vmem:[#allocation50_spill] sm:$0xff] }
 0x669   : >> { %v15936_v22 = vmov %v12509_v44  ;;  %v12517_v43 = vadd.f32 %v6436_v46, %v2347_v60   ;;  %v2405_v45 = vpop.f32.mrb[3].mxu1  ;;  %v15943_v44 = vld [vmem:[#allocation58_spill] sm:$0xff]  ;;  %v2358_v47 = vmul.f32 %v15963_v32, %v8599_v61  ;;  %v16008_v61 = vld [vmem:[#allocation83_spill] sm:$0xff] }
 0x66a   : >> { %v15938_v9 = vmov %v12513_v13  ;;  %v12519_v53 = vadd.f32 %v2405_v45, %v2345_v54   ;;  %v2348_v18 = vmul.f32 %v15943_v44, %v12448_v40  ;;  %v15967_v13 = vld [vmem:[#allocation49_spill] sm:$0xff]  ;;  %v15991_v44 = vmov %v15936_v22 }
 0x66b   : >> { %v15940_v24 = vmov %v12517_v43  ;;  %v2359_v55 = vmul.f32 %v15967_v13, %v8601_v37  ;;  %v15994_v45 = vmov %v15934_v21  ;;  %v16020_v13 = vld [vmem:[#allocation70_spill] sm:$0xff] }
 0x66c   : >> { %v15941_v29 = vmov %v12519_v53  ;;  %v12808_v13 = vmov (%p12566_p13), 0.0  }
 0x66f   : >> { %v6439_v16 = vpop.f32.mrb[4].mxu1 }
 0x670   : >> { %v12525_v40 = vadd.f32 %v6439_v16, %v2350_v33   ;;  %v2418_v58 = vpop.f32.mrb[5].mxu1  ;;  %v16023_v16 = vld [vmem:[#allocation65_spill] sm:$0xff] }
 0x671   : >> { %v12529_v42 = vadd.f32 %v2418_v58, %v2348_v18   ;;  %v6440_v39 = vpop.f32.mrb[6].mxu1  ;;  %v16005_v58 = vld [vmem:[#allocation86_spill] sm:$0xff] }
 0x672   : >> { %v15944_v28 = vmov %v12525_v40  ;;  %v12533_v39 = vadd.f32 %v6440_v39, %v2351_v59   ;;  %v2421_v53 = vpop.f32.mrb[7].mxu1  ;;  %v15952_v40 = vld [vmem:[#allocation48_spill] sm:$0xff]  ;;  %v16006_v59 = vld [vmem:[#allocation82_spill] sm:$0xff] }
 0x673   : >> { %v15946_v35 = vmov %v12529_v42  ;;  %v12535_v34 = vadd.f32 %v2421_v53, %v2349_v57   ;;  %v2352_v49 = vmul.f32 %v15952_v40, %v8591_v41  ;;  %v15964_v41 = vld [vmem:[#allocation52_spill] sm:$0xff]  ;;  %v15987_v40 = vmov %v15944_v28  ;;  %v16004_v57 = vld [vmem:[#allocation87_spill] sm:$0xff]  ;;  %v16025_v18 = vld [vmem:[#allocation66_spill] sm:$0xff] }
 0x674   : >> { %15948 = vst [vmem:[#allocation94_spill] sm:$0xff] %v12533_v39  ;;  %v15949_v26 = vmov %v12533_v39  ;;  %v2356_v60 = vmul.f32 %v15964_v41, %v8595_v62  ;;  %v15989_v42 = vmov %v15946_v35  ;;  %v15992_v53 = vmov %v15941_v29  ;;  %v16009_v62 = vld [vmem:[#allocation81_spill] sm:$0xff] }
 0x675   : >> { %v15950_v7 = vmov %v12535_v34  ;;  %v15986_v39 = vmov %v15949_v26  ;;  %v16034_v18 = vld [vmem:[#allocation85_spill] sm:$0xff] (%p12566_p13)  ;;  %v16036_v26 = vld [vmem:[#allocation91_spill] sm:$0xff] (%p12566_p13) }
 0x676   : >> { %v15988_v41 = vmov %v15950_v7  ;;  %v16038_v62 = vld [vmem:[#allocation89_spill] sm:$0xff] (%p12566_p13) }
 0x677   : >> { %v6443_v12 = vpop.f32.mrb[8].mxu1  ;;  %v12802_v41 = vmov (%p12566_p13), 0.0  }
 0x678   : >> { %v12540_v36 = vadd.f32 %v6443_v12, %v2354_v50   ;;  %v2434_v3 = vpop.f32.mrb[9].mxu1  ;;  %v15999_v50 = vld [vmem:[#allocation88_spill] sm:$0xff]  ;;  %v16019_v12 = vld [vmem:[#allocation71_spill] sm:$0xff] }
 0x679   : >> { %v12544_v11 = vadd.f32 %v2434_v3, %v2352_v49   ;;  %v6444_v31 = vpop.f32.mrb[10].mxu1  ;;  %v15998_v49 = vld [vmem:[#allocation89_spill] sm:$0xff]  ;;  %v16014_v3 = vld [vmem:[#allocation76_spill] sm:$0xff] }
 0x67a   : >> { %15953 = vst [vmem:[#allocation95_spill] sm:$0xff] %v12540_v36  ;;  %v15954_v30 = vmov %v12540_v36  ;;  %v12547_v43 = vadd.f32 %v6444_v31, %v2355_v52   ;;  %v2437_v48 = vpop.f32.mrb[11].mxu1  ;;  %v16001_v52 = vld [vmem:[#allocation90_spill] sm:$0xff] }
 0x67b   : >> { %15956 = vst [vmem:[#allocation96_spill] sm:$0xff] %v12544_v11  ;;  %v12549_v14 = vadd.f32 %v2437_v48, %v2353_v51   ;;  %v15984_v27 = vmov %v12544_v11  ;;  %v15997_v48 = vld [vmem:[#allocation92_spill] sm:$0xff]  ;;  %v16000_v51 = vld [vmem:[#allocation91_spill] sm:$0xff]  ;;  %v16048_v16 = vld [vmem:[#allocation94_spill] sm:$0xff] (%p12566_p13) }
 0x67c   : >> { %15959 = vst [vmem:[#allocation97_spill] sm:$0xff] %v12547_v43  ;;  %v15960_v38 = vmov %v12547_v43  ;;  %15985 = vst [vmem:[#allocation48_spill] sm:$0xff] %v15984_v27  ;;  %v15990_v43 = vmov %v15940_v24  ;;  %v16018_v11 = vld [vmem:[#allocation72_spill] sm:$0xff]  ;;  %v16035_v27 = vld [vmem:[#allocation90_spill] sm:$0xff] (%p12566_p13)  ;;  %v12788_v51 = vmov (%p12566_p13), 0.0   ;;  %v12792_v48 = vmov (%p12566_p13), 0.0  }
 0x67d   : >> { %15961 = vst [vmem:[#allocation98_spill] sm:$0xff] %v12549_v14  ;;  %15980 = vst [vmem:[#allocation47_spill] sm:$0xff] %v15960_v38  ;;  %v15982_v25 = vmov %v12549_v14  ;;  %v16021_v14 = vld [vmem:[#allocation69_spill] sm:$0xff]  ;;  %v16031_v38 = vld [vmem:[#allocation86_spill] sm:$0xff] (%p12566_p13)  ;;  %v12790_v43 = vmov (%p12566_p13), 0.0  }
 0x67e   : >> { %v15983_v37 = vmov %v15982_v25  ;;  %v16033_v25 = vld [vmem:[#allocation84_spill] sm:$0xff] (%p12566_p13)  ;;  %v12794_v14 = vmov (%p12566_p13), 0.0  }
 0x67f   : >> { %v6447_v56 = vpop.f32.mrb[12].mxu1 }
 0x680   : >> { %v12553_v32 = vadd.f32 %v6447_v56, %v2358_v47   ;;  %v2450_v36 = vpop.f32.mrb[13].mxu1  ;;  %v15996_v47 = vld [vmem:[#allocation93_spill] sm:$0xff]  ;;  %v16003_v56 = vld [vmem:[#allocation84_spill] sm:$0xff] }
 0x681   : >> { %v12556_v34 = vadd.f32 %v2450_v36, %v2356_v60   ;;  %v6448_v46 = vpop.f32.mrb[14].mxu1  ;;  %v15981_v36 = vmov %v15954_v30  ;;  %v16007_v60 = vld [vmem:[#allocation80_spill] sm:$0xff]  ;;  %v16032_v30 = vld [vmem:[#allocation87_spill] sm:$0xff] (%p12566_p13)  ;;  %v12798_v47 = vmov (%p12566_p13), 0.0   ;;  %v12800_v56 = vmov (%p12566_p13), 0.0  }
 0x682   : >> { %15965 = vst [vmem:[#allocation99_spill] sm:$0xff] %v12553_v32  ;;  %v15966_v10 = vmov %v12553_v32  ;;  %v12559_v31 = vadd.f32 %v6448_v46, %v2359_v55   ;;  %v2453_v54 = vpop.f32.mrb[15].mxu1  ;;  %v15993_v55 = vmov %v15938_v9  ;;  %v15995_v46 = vmov %v15933_v23  ;;  %1901 = sbr.rel (!%p12566_p13) target bundleno = 976 (0x3d0), region = 205  ;;  %v16050_v44 = vld [vmem:[#allocation96_spill] sm:$0xff] (%p12566_p13)  ;;  %v16054_v39 = vld [vmem:[#allocation95_spill] sm:$0xff] (%p12566_p13) }
 0x683   : >> { %15968 = vst [vmem:[#allocation100_spill] sm:$0xff] %v12556_v34  ;;  %v15969_v20 = vmov %v12556_v34  ;;  %v12561_v33 = vadd.f32 %v2453_v54, %v2357_v63   ;;  %v15977_v32 = vmov %v15966_v10  ;;  %v16002_v54 = vld [vmem:[#allocation85_spill] sm:$0xff]  ;;  %v16010_v63 = vmov %v15899_v1  ;;  %v16012_v1 = vld [vmem:[#allocation78_spill] sm:$0xff]  ;;  %v16028_v10 = vld [vmem:[#allocation83_spill] sm:$0xff] (%p12566_p13) }
 0x684   : >> { %15971 = vst [vmem:[#allocation101_spill] sm:$0xff] %v12559_v31  ;;  %v15972_v8 = vmov %v12559_v31  ;;  %v15979_v34 = vmov %v15969_v20  ;;  %v16030_v20 = vld [vmem:[#allocation82_spill] sm:$0xff] (%p12566_p13)  ;;  %v16056_v57 = vld [vmem:[#allocation97_spill] sm:$0xff] (%p12566_p13)  ;;  %v12796_v32 = vmov (%p12566_p13), 0.0   ;;  %v12804_v60 = vmov (%p12566_p13), 0.0  }
 0x685   : >> { %15973 = vst [vmem:[#allocation102_spill] sm:$0xff] %v12561_v33  ;;  %v15974_v19 = vmov %v12561_v33  ;;  %v15976_v31 = vmov %v15972_v8  ;;  %v16027_v8 = vld [vmem:[#allocation81_spill] sm:$0xff] (%p12566_p13)  ;;  %v16052_v4 = vld [vmem:[#allocation98_spill] sm:$0xff] (%p12566_p13)  ;;  %v12806_v36 = vmov (%p12566_p13), 0.0   ;;  %v12810_v55 = vmov (%p12566_p13), 0.0  }
 0x686   : >> { %v15978_v33 = vmov %v15974_v19  ;;  %8602 = vrcp.f32 (%p12566_p13), %v16027_v8  ;;  %v16029_v19 = vld [vmem:[#allocation80_spill] sm:$0xff] (%p12566_p13)  ;;  %v12784_v31 = vmov (%p12566_p13), 0.0   ;;  %v12812_v46 = vmov (%p12566_p13), 0.0  }
 0x687   : > { %8604 = vrcp.f32 (%p12566_p13), %v16028_v10  ;;  %v16037_v8 = vld [vmem:[#allocation88_spill] sm:$0xff] (%p12566_p13)  ;;  %v12816_v63 = vmov (%p12566_p13), 0.0   ;;  %v12818_v54 = vmov (%p12566_p13), 0.0  }
 0x688   : > { %8606 = vrcp.f32 (%p12566_p13), %v16029_v19  ;;  %v16040_v19 = vld [vmem:[#allocation92_spill] sm:$0xff] (%p12566_p13) }
 0x689   : > { %8608 = vrcp.f32 %v16030_v20  ;;  %v16062_v3 = vld [vmem:[#allocation99_spill] sm:$0xff] }
 0x68a   : > { %8610 = vrcp.f32 %v16031_v38  ;;  %v16058_v34 = vld [vmem:[#allocation100_spill] sm:$0xff] }
 0x68b   : > { %8612 = vrcp.f32 %v16032_v30  ;;  %v16064_v52 = vld [vmem:[#allocation101_spill] sm:$0xff] }
 0x68c   : > { %8614 = vrcp.f32 %v16033_v25  ;;  %v16060_v12 = vld [vmem:[#allocation102_spill] sm:$0xff] }
 0x68d   : > { %8616 = vrcp.f32 %v16034_v18  ;;  %v12820_v18 = vmov 0.0  }
 0x68e   : > { %8618 = vrcp.f32 %v16035_v27 }
 0x68f   : > { %8620 = vrcp.f32 %v16036_v26 }
 0x690   : > { %v8603_v1 = vpop.eup %8602  ;;  %8622 = vrcp.f32 %v16037_v8  ;;  %v12824_v8 = vmov 0.0  }
 0x691   : > { %v8605_v10 = vpop.eup %8604  ;;  %8624 = vrcp.f32 %v16038_v62  ;;  %v12733_v20 = vmul.f32 %v8603_v1, %v15938_v9  ;;  %v12822_v1 = vmov 0.0   ;;  %v12828_v62 = vmov 0.0  }
 0x692   : > { %v8607_v38 = vpop.eup %8606  ;;  %8626 = vrcp.f32 %v16040_v19  ;;  %v12737_v30 = vmul.f32 %v8605_v10, %v15941_v29  ;;  %v12826_v10 = vmov 0.0   ;;  %v12832_v19 = vmov 0.0  }
 0x693   : > { %16039 = vst [vmem:[#allocation79_spill] sm:$0xff] %v12733_v20  ;;  %v8609_v25 = vpop.eup %8608  ;;  %8628 = vrcp.f32 %v16042_v17  ;;  %v12741_v26 = vmul.f32 %v8607_v38, %v15936_v22  ;;  %v12830_v38 = vmov 0.0   ;;  %v12836_v17 = vmov 0.0  }
 0x694   : > { %16041 = vst [vmem:[#allocation78_spill] sm:$0xff] %v12737_v30  ;;  %v8611_v27 = vpop.eup %8610  ;;  %8630 = vrcp.f32 %v15933_v23  ;;  %v12745_v61 = vmul.f32 %v8609_v25, %v15940_v24  ;;  %v12834_v25 = vmov 0.0  }
 0x695   : > { %16043 = vst [vmem:[#allocation77_spill] sm:$0xff] %v12741_v26  ;;  %v8613_v9 = vpop.eup %8612  ;;  %8632 = vrcp.f32 %v15934_v21  ;;  %v12749_v37 = vmul.f32 %v8611_v27, %v15946_v35  ;;  %v12838_v27 = vmov 0.0  }
 0x696   : > { %16044 = vst [vmem:[#allocation76_spill] sm:$0xff] %v12745_v61  ;;  %v8615_v29 = vpop.eup %8614  ;;  %v12752_v45 = vmul.f32 %v8613_v9, %v15950_v7  ;;  %v12840_v9 = vmov 0.0  }
 0x697   : > { %16045 = vst [vmem:[#allocation75_spill] sm:$0xff] %v12749_v37  ;;  %v8617_v42 = vpop.eup %8616  ;;  %v12755_v22 = vmul.f32 %v8615_v29, %v15944_v28  ;;  %v12842_v29 = vmov 0.0  }
 0x698   : > { %16046 = vst [vmem:[#allocation74_spill] sm:$0xff] %v12752_v45  ;;  %v8619_v33 = vpop.eup %8618  ;;  %v12758_v23 = vmul.f32 %v8617_v42, %v16048_v16  ;;  %v12844_v42 = vmov 0.0   ;;  %v12848_v16 = vmov -inf  }
 0x699   : > { %16047 = vst [vmem:[#allocation73_spill] sm:$0xff] %v12755_v22  ;;  %v8621_v24 = vpop.eup %8620  ;;  %v12761_v58 = vmul.f32 %v8619_v33, %v16050_v44  ;;  %v12846_v33 = vmov 0.0   ;;  %v12852_v44 = vmov -inf  }
 0x69a   : > { %16049 = vst [vmem:[#allocation72_spill] sm:$0xff] %v12758_v23  ;;  %v8623_v21 = vpop.eup %8622  ;;  %v12764_v35 = vmul.f32 %v8621_v24, %v16052_v4  ;;  %v12850_v24 = vmov -inf   ;;  %v12856_v4 = vmov -inf  }
 0x69b   : > { %16051 = vst [vmem:[#allocation71_spill] sm:$0xff] %v12761_v58  ;;  %v8625_v59 = vpop.eup %8624  ;;  %v12767_v7 = vmul.f32 %v8623_v21, %v16054_v39  ;;  %v12854_v21 = vmov -inf   ;;  %v12860_v39 = vmov -inf  }
 0x69c   : > { %16053 = vst [vmem:[#allocation70_spill] sm:$0xff] %v12764_v35  ;;  %v8627_v15 = vpop.eup %8626  ;;  %v12770_v28 = vmul.f32 %v8625_v59, %v16056_v57  ;;  %v12858_v59 = vmov -inf   ;;  %v12864_v57 = vmov -inf  }
 0x69d   : > { %16055 = vst [vmem:[#allocation69_spill] sm:$0xff] %v12767_v7  ;;  %v8629_v53 = vpop.eup %8628  ;;  %v12773_v6 = vmul.f32 %v8627_v15, %v16058_v34  ;;  %v12862_v15 = vmov -inf   ;;  %v12868_v34 = vmov -inf  }
 0x69e   : > { %16057 = vst [vmem:[#allocation67_spill] sm:$0xff] %v12770_v28  ;;  %v8631_v50 = vpop.eup %8630  ;;  %v12776_v40 = vmul.f32 %v8629_v53, %v16060_v12  ;;  %v12866_v53 = vmov -inf   ;;  %v12872_v12 = vmov -inf  }
 0x69f   : > { %16059 = vst [vmem:[#allocation65_spill] sm:$0xff] %v12773_v6  ;;  %v8633_v49 = vpop.eup %8632  ;;  %v12779_v5 = vmul.f32 %v8631_v50, %v16062_v3  ;;  %v12870_v50 = vmov -inf   ;;  %v12876_v3 = vmov -inf  }
 0x6a0   : > { %16061 = vst [vmem:[#allocation68_spill] sm:$0xff] %v12776_v40  ;;  %v12782_v11 = vmul.f32 %v8633_v49, %v16064_v52  ;;  %v12874_v49 = vmov -inf   ;;  %v12878_v52 = vmov -inf  }
 0x6a1   : > { %16063 = vst [vmem:[#allocation66_spill] sm:$0xff] %v12779_v5 }
 0x6a2   : > { %16065 = vst [vmem:[#allocation47_spill] sm:$0xff] %v12782_v11 }
 0x6a3 LB: >> { %16066 = vst [vmem:[#allocation103_spill] sm:$0xff] %v10484_v31  ;;  %16067 = vst [vmem:[#allocation104_spill] sm:$0xff] %v10488_v2  ;;  %s6011_s9 = sshll.u32 %s10676_s15, 7  ;;  %s11083_s23 = smov 120   ;;  %s10676_s15 = sphi %s12880_s15, %s16249_s15   ;;  %v10672_v52 = vphi %v12878_v52, %v16248_v52   ;;  %v10668_v3 = vphi %v12876_v3, %v16247_v3   ;;  %v10664_v49 = vphi %v12874_v49, %v16246_v49   ;;  %v10660_v12 = vphi %v12872_v12, %v16245_v12   ;;  %v10656_v50 = vphi %v12870_v50, %v16244_v50   ;;  %v10652_v34 = vphi %v12868_v34, %v16243_v34   ;;  %v10648_v53 = vphi %v12866_v53, %v16242_v53   ;;  %v10644_v57 = vphi %v12864_v57, %v16241_v57   ;;  %v10640_v15 = vphi %v12862_v15, %v16240_v15   ;;  %v10636_v39 = vphi %v12860_v39, %v16239_v39   ;;  %v10632_v59 = vphi %v12858_v59, %v16238_v59   ;;  %v10628_v4 = vphi %v12856_v4, %v16237_v4   ;;  %v10624_v21 = vphi %v12854_v21, %v16236_v21   ;;  %v10620_v44 = vphi %v12852_v44, %v16235_v44   ;;  %v10616_v24 = vphi %v12850_v24, %v16234_v24   ;;  %v10612_v16 = vphi %v12848_v16, %v16233_v16   ;;  %v10608_v33 = vphi %v12846_v33, %v16232_v33   ;;  %v10604_v42 = vphi %v12844_v42, %v16231_v42   ;;  %v10600_v29 = vphi %v12842_v29, %v16230_v29   ;;  %v10596_v9 = vphi %v12840_v9, %v16229_v9   ;;  %v10592_v27 = vphi %v12838_v27, %v16228_v27   ;;  %v10588_v17 = vphi %v12836_v17, %v16227_v17   ;;  %v10584_v25 = vphi %v12834_v25, %v16226_v25   ;;  %v10580_v19 = vphi %v12832_v19, %v16225_v19   ;;  %v10576_v38 = vphi %v12830_v38, %v16224_v38   ;;  %v10572_v62 = vphi %v12828_v62, %v16223_v62   ;;  %v10568_v10 = vphi %v12826_v10, %v16222_v10   ;;  %v10564_v8 = vphi %v12824_v8, %v16221_v8   ;;  %v10560_v1 = vphi %v12822_v1, %v16220_v1   ;;  %v10556_v18 = vphi %v12820_v18, %v16219_v18   ;;  %v10552_v54 = vphi %v12818_v54, %v16218_v54   ;;  %v10548_v63 = vphi %v12816_v63, %v16217_v63   ;;  %v10544_v0 = vphi %v12814_v0, %v16216_v0   ;;  %v10540_v46 = vphi %v12812_v46, %v16215_v46   ;;  %v10536_v55 = vphi %v12810_v55, %v16214_v55   ;;  %v10532_v13 = vphi %v12808_v13, %v16213_v13   ;;  %v10528_v36 = vphi %v12806_v36, %v16212_v36   ;;  %v10524_v60 = vphi %v12804_v60, %v16211_v60   ;;  %v10520_v41 = vphi %v12802_v41, %v16210_v41   ;;  %v10516_v56 = vphi %v12800_v56, %v16209_v56   ;;  %v10512_v47 = vphi %v12798_v47, %v16208_v47   ;;  %v10508_v32 = vphi %v12796_v32, %v16207_v32   ;;  %v10504_v14 = vphi %v12794_v14, %v16206_v14   ;;  %v10500_v48 = vphi %v12792_v48, %v16204_v48   ;;  %v10496_v43 = vphi %v12790_v43, %v16203_v43   ;;  %v10492_v51 = vphi %v12788_v51, %v16202_v51   ;;  %v10488_v2 = vphi %v12786_v2, %v16201_v2   ;;  %v10484_v31 = vphi %v12784_v31, %v16199_v31  }
 0x6a4   : >> { %16068 = vst [vmem:[#allocation105_spill] sm:$0xff] %v10492_v51  ;;  %16069 = vst [vmem:[#allocation106_spill] sm:$0xff] %v10496_v43  ;;  %s2568_s16 = sshra.s32 %s6011_s9, 4  ;;  %s2518_s8 = sadd.s32 1, %s10676_s15  }
 0x6a5   : >> { %16070 = vst [vmem:[#allocation107_spill] sm:$0xff] %v10500_v48  ;;  %16071 = vst [vmem:[#allocation108_spill] sm:$0xff] %v10504_v14  ;;  %s6012_s21 = sshll.u32 %s2568_s16, 3  ;;  %p13439_p7 = scmp.ge.s32.totalorder %s2518_s8, 3  }
 0x6a6   : >> { %16072 = vst [vmem:[#allocation109_spill] sm:$0xff] %v10508_v32  ;;  %16073 = vst [vmem:[#allocation110_spill] sm:$0xff] %v10512_v47  ;;  %s2571_s22 = scalar_lea.vmem [#allocation2], %s6012_s21  ;;  %s13054_s17 = scalar_lea.vmem [#allocation3], %s6012_s21 }
 0x6a7   : >> { %16074 = vst [vmem:[#allocation111_spill] sm:$0xff] %v10516_v56  ;;  %16075 = vst [vmem:[#allocation112_spill] sm:$0xff] %v10520_v41  ;;  %v2572_v22 = vld [vmem:[%s2571_s22] sm:$0xff]  ;;  %v2574_v23 = vld [vmem:[%s2571_s22 + $0x10] sm:$0xff]  ;;  %s16249_s15 = smov %s2518_s8  ;;  %s13753_s29 = smov (%p13439_p7), 0  }
 0x6a8   : >> { %16076 = vst [vmem:[#allocation113_spill] sm:$0xff] %v10524_v60  ;;  %16077 = vst [vmem:[#allocation114_spill] sm:$0xff] %v10528_v36  ;;  %2622 = vrot.lane.b32.xlu0 %v2572_v22, %s11083_s23  ;;  %2626 = vrot.lane.b32.xlu1 %v2574_v23, %s11083_s23  ;;  %v2573_v5 = vld [vmem:[%s2571_s22 + $0x8] sm:$0xff]  ;;  %v2575_v11 = vld [vmem:[%s2571_s22 + $0x18] sm:$0xff] }
 0x6a9   : >> { %16078 = vst [vmem:[#allocation115_spill] sm:$0xff] %v10532_v13  ;;  %16079 = vst [vmem:[#allocation116_spill] sm:$0xff] %v10536_v55  ;;  %v2576_v37 = vld [vmem:[%s2571_s22 + $0x20] sm:$0xff]  ;;  %v2577_v45 = vld [vmem:[%s2571_s22 + $0x28] sm:$0xff] }
 0x6aa   : >> { %16080 = vst [vmem:[#allocation117_spill] sm:$0xff] %v10540_v46  ;;  %16081 = vst [vmem:[#allocation118_spill] sm:$0xff] %v10544_v0  ;;  %v2578_v6 = vld [vmem:[%s2571_s22 + $0x30] sm:$0xff]  ;;  %v2579_v40 = vld [vmem:[%s2571_s22 + $0x38] sm:$0xff] }
 0x6ab   : >> { %16082 = vst [vmem:[#allocation119_spill] sm:$0xff] %v10664_v49  ;;  %v16083_v22 = vld [vmem:[#allocation41_spill] sm:$0xff]  ;;  %v16084_v23 = vld [vmem:[#allocation39_spill] sm:$0xff] }
 0x6ac   : >> { %2624 = vrot.lane.b32.xlu0 %v2573_v5, %s11083_s23  ;;  %2628 = vrot.lane.b32.xlu1 %v2575_v11, %s11083_s23  ;;  %v16085_v5 = vld [vmem:[#allocation45_spill] sm:$0xff]  ;;  %v16086_v11 = vld [vmem:[#allocation43_spill] sm:$0xff] }
 0x6b0   : >> { %2630 = vrot.lane.b32.xlu0 %v2576_v37, %s11083_s23  ;;  %2632 = vrot.lane.b32.xlu1 %v2577_v45, %s11083_s23  ;;  %v16087_v37 = vld [vmem:[#allocation42_spill] sm:$0xff]  ;;  %v16088_v45 = vld [vmem:[#allocation40_spill] sm:$0xff] }
 0x6b4   : >> { %2634 = vrot.lane.b32.xlu0 %v2578_v6, %s11083_s23  ;;  %2636 = vrot.lane.b32.xlu1 %v2579_v40, %s11083_s23  ;;  %v16089_v6 = vld [vmem:[#allocation46_spill] sm:$0xff]  ;;  %v16090_v40 = vld [vmem:[#allocation44_spill] sm:$0xff] }
 0x6b8   : >> { %2598 = vrot.lane.b32.xlu0 %v16083_v22, %s11083_s23  ;;  %2600 = vrot.lane.b32.xlu1 %v16084_v23, %s11083_s23  ;;  %v2582_v22 = vld [vmem:[%s13054_s17] sm:$0xff]  ;;  %v2583_v23 = vld [vmem:[%s13054_s17 + $0x8] sm:$0xff] }
 0x6bc   : >> { %2602 = vrot.lane.b32.xlu0 %v16085_v5, %s11083_s23  ;;  %2604 = vrot.lane.b32.xlu1 %v16086_v11, %s11083_s23  ;;  %v2584_v5 = vld [vmem:[%s13054_s17 + $0x10] sm:$0xff]  ;;  %v2585_v11 = vld [vmem:[%s13054_s17 + $0x18] sm:$0xff] }
 0x6c0   : >> { %2606 = vrot.lane.b32.xlu0 %v16087_v37, %s11083_s23  ;;  %2608 = vrot.lane.b32.xlu1 %v16088_v45, %s11083_s23  ;;  %v2586_v37 = vld [vmem:[%s13054_s17 + $0x20] sm:$0xff]  ;;  %v2587_v45 = vld [vmem:[%s13054_s17 + $0x28] sm:$0xff] }
 0x6c4   : >> { %2610 = vrot.lane.b32.xlu0 %v16089_v6, %s11083_s23  ;;  %2612 = vrot.lane.b32.xlu1 %v16090_v40, %s11083_s23 }
 0x6c8   : >> { %3040 = vrot.lane.b32.xlu1 %v2582_v22, %s11083_s23  ;;  %3042 = vrot.lane.b32.xlu0 %v2583_v23, %s11083_s23 }
 0x6cc   : >> { %3044 = vrot.lane.b32.xlu1 %v2584_v5, %s11083_s23  ;;  %3046 = vrot.lane.b32.xlu0 %v2585_v11, %s11083_s23 }
 0x6d0   : >> { %3048 = vrot.lane.b32.xlu1 %v2586_v37, %s11083_s23  ;;  %3050 = vrot.lane.b32.xlu0 %v2587_v45, %s11083_s23 }
 0x71a   : >> { %v2623_v6 = vpop.permute.xlu0 %2622  ;;  %v2627_v5 = vpop.permute.xlu1 %2626 }
 0x71b   : >> { %6677 = vmatprep.subr.msk.bf16.mxu0 %vm1974_vm2, %v2623_v6  ;;  %v2664_v40 = vsel %vm1974_vm2, %v2623_v6, 0  ;;  %v2670_v37 = vsel %vm1974_vm2, %v2627_v5, 0 }
 0x71c   : >> { %6450 = vmatpush3.bf16.xpose.msra.mxu0 %v2664_v40 }
 0x71e   : >> { %v2625_v22 = vpop.permute.xlu0 %2624  ;;  %v2629_v45 = vpop.permute.xlu1 %2628 }
 0x71f   : >> { %6678 = vmatprep.subr.msk.bf16.mxu0 %vm1974_vm2, %v2625_v22  ;;  %v2667_v23 = vsel %vm1974_vm2, %v2625_v22, 0  ;;  %v2673_v6 = vsel %vm1974_vm2, %v2629_v45, 0 }
 0x722   : >> { %v2631_v26 = vpop.permute.xlu0 %2630  ;;  %v2633_v22 = vpop.permute.xlu1 %2632 }
 0x723   : >> { %v2676_v40 = vsel %vm1974_vm2, %v2631_v26, 0 }
 0x724   : >> { %6452 = vmatpush3.bf16.xpose.msra.mxu0 %v2667_v23  ;;  %v2679_v23 = vsel %vm1974_vm2, %v2633_v22, 0 }
 0x725   : >> { %6679 = vmatprep.subr.msk.bf16.mxu0 %vm1974_vm2, %v2627_v5 }
 0x726   : >> { %v2635_v11 = vpop.permute.xlu0 %2634  ;;  %v2637_v5 = vpop.permute.xlu1 %2636 }
 0x72a   : >> { %v2599_v58 = vpop.permute.xlu0 %2598 }
 0x72b   : >> { %6465 = vmatprep.mubr.msk.bf16.mxu0 %vm1974_vm2, %v2599_v58  ;;  %v2682_v58 = vsel %vm1974_vm2, %v2635_v11, 0 }
 0x72c   : >> { %6454 = vmatpush3.bf16.xpose.msra.mxu0 %v2670_v37  ;;  %v2685_v37 = vsel %vm1974_vm2, %v2637_v5, 0 }
 0x72d   : >> { %6680 = vmatprep.subr.msk.bf16.mxu0 %vm1974_vm2, %v2629_v45  ;;  %v2601_v45 = vpop.permute.xlu1 %2600 }
 0x734   : >> { %6456 = vmatpush3.bf16.xpose.msra.mxu0 %v2673_v6  ;;  %v2605_v6 = vpop.permute.xlu1 %2604 }
 0x735   : >> { %6681 = vmatprep.subr.msk.bf16.mxu0 %vm1974_vm2, %v2631_v26  ;;  %v2603_v26 = vpop.permute.xlu0 %2602 }
 0x73c   : >> { %6458 = vmatpush3.bf16.xpose.msra.mxu0 %v2676_v40  ;;  %v2607_v40 = vpop.permute.xlu0 %2606 }
 0x73d   : >> { %6682 = vmatprep.subr.msk.bf16.mxu0 %vm1974_vm2, %v2633_v22 }
 0x740   : >> { %v2611_v22 = vpop.permute.xlu0 %2610 }
 0x744   : >> { %6460 = vmatpush3.bf16.xpose.msra.mxu0 %v2679_v23 }
 0x745   : >> { %6683 = vmatprep.subr.msk.bf16.mxu0 %vm1974_vm2, %v2635_v11  ;;  %v2609_v11 = vpop.permute.xlu1 %2608 }
 0x749   : >> { %v2613_v23 = vpop.permute.xlu1 %2612 }
 0x74c   : >> { %6462 = vmatpush3.bf16.xpose.msra.mxu0 %v2682_v58 }
 0x74d   : >> { %6684 = vmatprep.subr.msk.bf16.mxu0 %vm1974_vm2, %v2637_v5  ;;  %v3041_v58 = vpop.permute.xlu1 %3040  ;;  %v3043_v5 = vpop.permute.xlu0 %3042 }
 0x74e   : >> { %6481 = vmatprep.subr.bf16.mxu1 %v3041_v58 }
 0x74f   : >> { %6482 = vmatpush3.bf16.msra.mxu1 %v3041_v58 }
 0x750   : >> { %6483 = vmatprep.subr.bf16.mxu1 %v3043_v5 }
 0x753   : >> { %6484 = vmatpush3.bf16.msra.mxu1 %v3043_v5 }
 0x754   : >> { %6464 = vmatpush3.bf16.xpose.msra.mxu0 %v2685_v37  ;;  %v3045_v37 = vpop.permute.xlu1 %3044 }
 0x755   : >> { %6485 = vmatprep.subr.bf16.mxu1 %v3045_v37 }
 0x757   : >> { %6486 = vmatpush3.bf16.msra.mxu1 %v3045_v37 }
 0x75b   : >> { %6466 = vmatmul.mubr.msk.bf16.vlgmr.msra.gmra.mrb[0].mxu0 %vm1974_vm2, %v2601_v45  ;;  %v3047_v45 = vpop.permute.xlu0 %3046 }
 0x75c   : >> { %6469 = vmatprep.mubr.msk.bf16.mxu0 %vm1974_vm2, %v2603_v26  ;;  %6487 = vmatprep.subr.bf16.mxu1 %v3047_v45  ;;  %v3049_v26 = vpop.permute.xlu1 %3048 }
 0x75d   : >> { %6488 = vmatpush3.bf16.msra.mxu1 %v3047_v45 }
 0x75e   : >> { %6489 = vmatprep.subr.bf16.mxu1 %v3049_v26 }
 0x761   : >> { %6490 = vmatpush3.bf16.msra.mxu1 %v3049_v26 }
 0x763   : >> { %6470 = vmatmul.mubr.msk.bf16.gmra.mrb[4].mxu0 %vm1974_vm2, %v2605_v6  ;;  %v3051_v6 = vpop.permute.xlu0 %3050 }
 0x764   : >> { %6473 = vmatprep.mubr.msk.bf16.mxu0 %vm1974_vm2, %v2607_v40  ;;  %6491 = vmatprep.subr.bf16.mxu1 %v3051_v6 }
 0x765   : >> { %6492 = vmatpush3.bf16.msra.mxu1 %v3051_v6 }
 0x76b   : >> { %6474 = vmatmul.mubr.msk.bf16.gmra.mrb[8].mxu0 %vm1974_vm2, %v2609_v11 }
 0x76c   : >> { %6477 = vmatprep.mubr.msk.bf16.mxu0 %vm1974_vm2, %v2611_v22 }
 0x773   : >> { %6478 = vmatmul.mubr.msk.bf16.gmra.mrb[12].mxu0 %vm1974_vm2, %v2613_v23 }
 0x82e   : >> { %v6467_v40 = vpop.f32.mrb[0].mxu0 }
 0x82f   : >> { %v2786_v11 = vmul.f32 0.35355338, %v6467_v40  ;;  %v2721_v22 = vpop.f32.mrb[1].mxu0 }
 0x830   : >> { %v6468_v23 = vpop.f32.mrb[2].mxu0  ;;  %v2784_v5 = vmul.f32 0.35355338, %v2721_v22 }
 0x831   : >> { %2804 = vmax.xlane.f32.xlu0 %v2786_v11  ;;  %v2724_v58 = vpop.f32.mrb[3].mxu0  ;;  %v13095_v7 = vmul.f32 0.35355338, %v6468_v23 }
 0x832   : >> { %v13092_v35 = vmul.f32 0.35355338, %v2724_v58 }
 0x834   : >> { %2802 = vmax.xlane.f32.xlu1 %v13092_v35 }
 0x835   : >> { %2800 = vmax.xlane.f32.xlu0 %v2784_v5 }
 0x836   : >> { %v6471_v37 = vpop.f32.mrb[4].mxu0 }
 0x837   : >> { %v13097_v45 = vmul.f32 0.35355338, %v6471_v37  ;;  %v2737_v26 = vpop.f32.mrb[5].mxu0 }
 0x838   : >> { %v6472_v28 = vpop.f32.mrb[6].mxu0  ;;  %v13101_v40 = vmul.f32 0.35355338, %v2737_v26 }
 0x839   : >> { %2806 = vmax.xlane.f32.xlu0 %v13095_v7  ;;  %2812 = vmax.xlane.f32.xlu1 %v13097_v45  ;;  %v2740_v6 = vpop.f32.mrb[7].mxu0  ;;  %v13103_v58 = vmul.f32 0.35355338, %v6472_v28 }
 0x83a   : >> { %v13107_v23 = vmul.f32 0.35355338, %v2740_v6 }
 0x83d   : >> { %2808 = vmax.xlane.f32.xlu1 %v13101_v40  ;;  %2814 = vmax.xlane.f32.xlu0 %v13103_v58 }
 0x83e   : >> { %v6475_v22 = vpop.f32.mrb[8].mxu0 }
 0x83f   : >> { %v13109_v37 = vmul.f32 0.35355338, %v6475_v22  ;;  %v2753_v20 = vpop.f32.mrb[9].mxu0 }
 0x840   : >> { %v6476_v30 = vpop.f32.mrb[10].mxu0  ;;  %v13113_v26 = vmul.f32 0.35355338, %v2753_v20 }
 0x841   : >> { %2810 = vmax.xlane.f32.xlu0 %v13107_v23  ;;  %2820 = vmax.xlane.f32.xlu1 %v13109_v37  ;;  %v2756_v61 = vpop.f32.mrb[11].mxu0  ;;  %v13115_v28 = vmul.f32 0.35355338, %v6476_v30 }
 0x842   : >> { %v13119_v22 = vmul.f32 0.35355338, %v2756_v61  ;;  %v2588_v61 = vld [vmem:[%s13054_s17 + $0x30] sm:$0xff] }
 0x844   : >> { %16091 = vst [vmem:[#allocation120_spill] sm:$0xff] %v13119_v22 }
 0x845   : >> { %2816 = vmax.xlane.f32.xlu1 %v13113_v26  ;;  %2822 = vmax.xlane.f32.xlu0 %v13115_v28 }
 0x846   : >> { %v6479_v6 = vpop.f32.mrb[12].mxu0 }
 0x847   : >> { %v13121_v51 = vmul.f32 0.35355338, %v6479_v6  ;;  %v2769_v31 = vpop.f32.mrb[13].mxu0  ;;  %v2589_v6 = vld [vmem:[%s13054_s17 + $0x38] sm:$0xff] }
 0x848   : >> { %v6480_v43 = vpop.f32.mrb[14].mxu0  ;;  %v13125_v30 = vmul.f32 0.35355338, %v2769_v31 }
 0x849   : >> { %2818 = vmax.xlane.f32.xlu0 %v13119_v22  ;;  %2828 = vmax.xlane.f32.xlu1 %v13121_v51  ;;  %v2772_v20 = vpop.f32.mrb[15].mxu0  ;;  %v13127_v2 = vmul.f32 0.35355338, %v6480_v43 }
 0x84a   : >> { %v13131_v32 = vmul.f32 0.35355338, %v2772_v20 }
 0x84d   : >> { %2824 = vmax.xlane.f32.xlu1 %v13125_v30  ;;  %2830 = vmax.xlane.f32.xlu0 %v13127_v2 }
 0x851   : >> { %2826 = vmax.xlane.f32.xlu0 %v13131_v32 }
 0x85e   : >> { %3052 = vrot.lane.b32.xlu1 %v2588_v61, %s11083_s23 }
 0x867   : >> { %3054 = vrot.lane.b32.xlu0 %v2589_v6, %s11083_s23 }
 0x8be   : >> { %v2805_v48 = vpop.xlane.xlu0 %2804 }
 0x8bf   : >> { %v13139_v31 = vmax.f32 %v10664_v49, %v2805_v48  }
 0x8c1   : >> { %16092 = vst [vmem:[#allocation48_spill] sm:$0xff] %v13139_v31  ;;  %v16093_v22 = vmov %v13139_v31  ;;  %v2803_v14 = vpop.xlane.xlu1 %2802 }
 0x8c2   : >> { %v2898_v47 = vsub.f32 %v2786_v11, %v16093_v22  ;;  %v13145_v20 = vmax.f32 %v10668_v3, %v2803_v14   ;;  %v2801_v60 = vpop.xlane.xlu0 %2800 }
 0x8c3   : >> { %v13148_v61 = vmax.f32 %v10672_v52, %v2801_v60  }
 0x8c4   : >> { %16094 = vst [vmem:[#allocation81_spill] sm:$0xff] %v13145_v20  ;;  %v2916_v56 = vmul.f32 1.442695, %v2898_v47  ;;  %v2897_v48 = vsub.f32 %v13092_v35, %v13145_v20 }
 0x8c5   : >> { %16095 = vst [vmem:[#allocation83_spill] sm:$0xff] %v13148_v61  ;;  %v2896_v11 = vsub.f32 %v2784_v5, %v13148_v61 }
 0x8c6   : >> { %8634 = vpow2.f32 %v2916_v56  ;;  %v2813_v43 = vpop.xlane.xlu1 %2812  ;;  %v2807_v14 = vpop.xlane.xlu0 %2806  ;;  %v2914_v41 = vmul.f32 1.442695, %v2897_v48 }
 0x8c7   : >> { %v2912_v36 = vmul.f32 1.442695, %v2896_v11  ;;  %v13158_v47 = vmax.f32 %v10648_v53, %v2813_v43   ;;  %v13161_v60 = vmax.f32 %v10660_v12, %v2807_v14  }
 0x8c9   : >> { %16096 = vst [vmem:[#allocation80_spill] sm:$0xff] %v13158_v47  ;;  %v16097_v22 = vmov %v13158_v47  ;;  %v16098_v49 = vmov %v13161_v60  ;;  %8636 = vpow2.f32 %v2912_v36 }
 0x8ca   : >> { %v2902_v35 = vsub.f32 %v13097_v45, %v16097_v22  ;;  %v2899_v56 = vsub.f32 %v13095_v7, %v16098_v49  ;;  %v2809_v11 = vpop.xlane.xlu1 %2808  ;;  %v2815_v31 = vpop.xlane.xlu0 %2814  ;;  %8638 = vpow2.f32 %v2914_v41 }
 0x8cb   : >> { %v13172_v14 = vmax.f32 %v10656_v50, %v2809_v11   ;;  %v13175_v48 = vmax.f32 %v10644_v57, %v2815_v31  }
 0x8cc   : >> { %v2924_v43 = vmul.f32 1.442695, %v2902_v35  ;;  %v2918_v47 = vmul.f32 1.442695, %v2899_v56 }
 0x8cd   : >> { %16099 = vst [vmem:[#allocation82_spill] sm:$0xff] %v13172_v14  ;;  %v16100_v20 = vmov %v13172_v14  ;;  %16101 = vst [vmem:[#allocation86_spill] sm:$0xff] %v13175_v48  ;;  %v16102_v6 = vmov %v13175_v48 }
 0x8ce   : >> { %8640 = vpow2.f32 %v2924_v43  ;;  %v2900_v60 = vsub.f32 %v13101_v40, %v16100_v20  ;;  %v2821_v36 = vpop.xlane.xlu1 %2820  ;;  %v2811_v35 = vpop.xlane.xlu0 %2810  ;;  %v2903_v43 = vsub.f32 %v13103_v58, %v16102_v6 }
 0x8cf   : >> { %v13184_v56 = vmax.f32 %v10632_v59, %v2821_v36   ;;  %v13187_v14 = vmax.f32 %v10652_v34, %v2811_v35   ;;  %8642 = vpow2.f32 %v2918_v47 }
 0x8d0   : >> { %v13189_v31 = vpop.eup %8634  ;;  %v2920_v41 = vmul.f32 1.442695, %v2900_v60 }
 0x8d1   : >> { %16103 = vst [vmem:[#allocation87_spill] sm:$0xff] %v13184_v56  ;;  %v16104_v11 = vmov %v13184_v56  ;;  %16105 = vst [vmem:[#allocation121_spill] sm:$0xff] %v13187_v14  ;;  %v16106_v5 = vmov %v13187_v14  ;;  %2964 = vadd.xlane.f32.xlu1 %v13189_v31  ;;  %v2926_v14 = vmul.f32 1.442695, %v2903_v43 }
 0x8d2   : >> { %v2906_v48 = vsub.f32 %v13109_v37, %v16104_v11  ;;  %v2901_v35 = vsub.f32 %v13107_v23, %v16106_v5  ;;  %v2817_v56 = vpop.xlane.xlu1 %2816  ;;  %v2823_v47 = vpop.xlane.xlu0 %2822  ;;  %8644 = vpow2.f32 %v2920_v41 }
 0x8d3   : >> { %v13203_v58 = vmax.f32 %v10640_v15, %v2817_v56   ;;  %v13206_v7 = vmax.f32 %v10628_v4, %v2823_v47   ;;  %v8637_v37 = vpop.eup %8636 }
 0x8d4   : >> { %v2932_v60 = vmul.f32 1.442695, %v2906_v48  ;;  %v2922_v40 = vmul.f32 1.442695, %v2901_v35  ;;  %v8639_v48 = vpop.eup %8638 }
 0x8d5   : >> { %16107 = vst [vmem:[#allocation84_spill] sm:$0xff] %v13203_v58  ;;  %16108 = vst [vmem:[#allocation85_spill] sm:$0xff] %v13206_v7  ;;  %v2904_v45 = vsub.f32 %v13113_v26, %v13203_v58  ;;  %2960 = vadd.xlane.f32.xlu1 %v8637_v37  ;;  %v2907_v26 = vsub.f32 %v13115_v28, %v13206_v7 }
 0x8d6   : >> { %v2829_v41 = vpop.xlane.xlu1 %2828  ;;  %v2819_v43 = vpop.xlane.xlu0 %2818  ;;  %8646 = vpow2.f32 %v2932_v60 }
 0x8d7   : >> { %v13215_v56 = vmax.f32 %v10616_v24, %v2829_v41   ;;  %v13218_v47 = vmax.f32 %v10636_v39, %v2819_v43   ;;  %8648 = vpow2.f32 %v2926_v14  ;;  %v2928_v36 = vmul.f32 1.442695, %v2904_v45  ;;  %v16113_v41 = vld [vmem:[#allocation120_spill] sm:$0xff] }
 0x8d8   : >> { %v13220_v46 = vpop.eup %8640  ;;  %8650 = vpow2.f32 %v2922_v40  ;;  %v3024_v43 = vpack.c.bf16 %v8639_v48, %v8637_v37  ;;  %v2934_v45 = vmul.f32 1.442695, %v2907_v26 }
 0x8d9   : >> { %16109 = vst [vmem:[#allocation90_spill] sm:$0xff] %v13215_v56  ;;  %v16110_v5 = vmov %v13215_v56  ;;  %16111 = vst [vmem:[#allocation122_spill] sm:$0xff] %v13218_v47  ;;  %v16112_v35 = vmov %v13218_v47  ;;  %v8643_v13 = vpop.eup %8642  ;;  %2972 = vadd.xlane.f32.xlu1 %v13220_v46  ;;  %8652 = vpow2.f32 %v2928_v36 }
 0x8da   : >> { %v2905_v56 = vsub.f32 %v16113_v41, %v16112_v35  ;;  %v2825_v47 = vpop.xlane.xlu1 %2824  ;;  %v2831_v14 = vpop.xlane.xlu0 %2830  ;;  %2966 = vadd.xlane.f32.xlu0 %v8643_v13  ;;  %6497 = vmatprep.mubr.bf16.mxu1 %v3024_v43  ;;  %v2910_v36 = vsub.f32 %v13121_v51, %v16110_v5  ;;  %8654 = vpow2.f32 %v2934_v45 }
 0x8db   : >> { %v13232_v28 = vmax.f32 %v10624_v21, %v2825_v47   ;;  %v13235_v40 = vmax.f32 %v10612_v16, %v2831_v14  }
 0x8dc   : >> { %v8645_v23 = vpop.eup %8644  ;;  %v2930_v60 = vmul.f32 1.442695, %v2905_v56  ;;  %v2940_v41 = vmul.f32 1.442695, %v2910_v36 }
 0x8dd   : >> { %16114 = vst [vmem:[#allocation91_spill] sm:$0xff] %v13232_v28  ;;  %16115 = vst [vmem:[#allocation88_spill] sm:$0xff] %v13235_v40  ;;  %v2908_v37 = vsub.f32 %v13125_v30, %v13232_v28  ;;  %2968 = vadd.xlane.f32.xlu1 %v8645_v23  ;;  %v2911_v45 = vsub.f32 %v13127_v2, %v13235_v40 }
 0x8de   : >> { %v3053_v26 = vpop.permute.xlu1 %3052  ;;  %v2827_v43 = vpop.xlane.xlu0 %2826  ;;  %2962 = vadd.xlane.f32.xlu0 %v8639_v48  ;;  %8656 = vpow2.f32 %v2930_v60 }
 0x8df   : >> { %v2936_v0 = vmul.f32 1.442695, %v2908_v37  ;;  %v13246_v14 = vmax.f32 %v10620_v44, %v2827_v43   ;;  %6493 = vmatprep.subr.bf16.mxu1 %v3053_v26 }
 0x8e0   : >> { %6494 = vmatpush3.bf16.msra.mxu1 %v3053_v26  ;;  %v8647_v56 = vpop.eup %8646  ;;  %v3025_v26 = vpack.c.bf16 %v8643_v13, %v13189_v31 }
 0x8e1   : >> { %16116 = vst [vmem:[#allocation89_spill] sm:$0xff] %v13246_v14  ;;  %v16117_v35 = vmov %v13246_v14  ;;  %v8649_v47 = vpop.eup %8648  ;;  %2980 = vadd.xlane.f32.xlu1 %v8647_v56  ;;  %8658 = vpow2.f32 %v2936_v0 }
 0x8e2   : >> { %v2909_v51 = vsub.f32 %v13131_v32, %v16117_v35  ;;  %v3055_v55 = vpop.permute.xlu0 %3054  ;;  %v8651_v37 = vpop.eup %8650  ;;  %2974 = vadd.xlane.f32.xlu0 %v8649_v47  ;;  %8660 = vpow2.f32 %v2940_v41  ;;  %v2942_v32 = vmul.f32 1.442695, %v2911_v45  ;;  %v16119_v45 = vld [vmem:[#allocation48_spill] sm:$0xff] }
 0x8e3   : >> { %6495 = vmatprep.subr.bf16.mxu1 %v3055_v55  ;;  %v8653_v60 = vpop.eup %8652  ;;  %v3026_v43 = vpack.c.bf16 %v8651_v37, %v8645_v23 }
 0x8e4   : >> { %v2938_v48 = vmul.f32 1.442695, %v2909_v51  ;;  %6496 = vmatpush3.bf16.msra.mxu1 %v3055_v55  ;;  %v8655_v36 = vpop.eup %8654  ;;  %v3027_v51 = vpack.c.bf16 %v8649_v47, %v13220_v46 }
 0x8e5   : >> { %2976 = vadd.xlane.f32.xlu1 %v8653_v60  ;;  %v3029_v31 = vpack.c.bf16 %v8655_v36, %v8647_v56  ;;  %v16122_v56 = vsub.f32 %v10648_v53, %v16097_v22  ;;  %v16127_v53 = vsub.f32 %v10632_v59, %v16104_v11  ;;  %v16131_v59 = vld [vmem:[#allocation121_spill] sm:$0xff] }
 0x8e6   : >> { %8662 = vpow2.f32 %v2938_v48  ;;  %2970 = vadd.xlane.f32.xlu0 %v8651_v37  ;;  %v16118_v48 = vld [vmem:[#allocation119_spill] sm:$0xff] }
 0x8e7   : >> { %6498 = vmatmul.mubr.bf16.vlgmr.msra.gmra.mrb[0].mxu1 %v3025_v26  ;;  %8664 = vpow2.f32 %v2942_v32  ;;  %v16120_v46 = vsub.f32 %v16118_v48, %v16119_v45  ;;  %v16123_v32 = vsub.f32 %v10660_v12, %v16098_v49 }
 0x8e8   : >> { %6501 = vmatprep.mubr.bf16.mxu1 %v3026_v43  ;;  %v8657_v0 = vpop.eup %8656  ;;  %v2876_v43 = vmul.f32 1.442695, %v16122_v56 }
 0x8e9   : >> { %v3028_v2 = vpack.c.bf16 %v8657_v0, %v8653_v60  ;;  %v2868_v47 = vmul.f32 1.442695, %v16120_v46  ;;  %v16121_v60 = vsub.f32 %v10672_v52, %v13148_v61  ;;  %v16133_v46 = vsub.f32 %v10652_v34, %v16131_v59 }
 0x8ea   : >> { %2982 = vadd.xlane.f32.xlu0 %v8655_v36  ;;  %v2870_v36 = vmul.f32 1.442695, %v16123_v32 }
 0x8eb   : >> { %v8659_v14 = vpop.eup %8658  ;;  %8666 = vpow2.f32 %v2868_v47  ;;  %v2864_v26 = vmul.f32 1.442695, %v16121_v60  ;;  %v2874_v47 = vmul.f32 1.442695, %v16133_v46 }
 0x8ec   : >> { %2984 = vadd.xlane.f32.xlu1 %v8659_v14  ;;  %v8661_v13 = vpop.eup %8660 }
 0x8ed   : >> { %8668 = vpow2.f32 %v2864_v26 }
 0x8ee   : >> { %2978 = vadd.xlane.f32.xlu0 %v8657_v0  ;;  %8670 = vpow2.f32 %v2876_v43  ;;  %v16124_v0 = vsub.f32 %v10656_v50, %v16100_v20  ;;  %v16128_v50 = vsub.f32 %v10644_v57, %v16102_v6 }
 0x8ef   : >> { %6502 = vmatmul.mubr.bf16.gmra.mrb[4].mxu1 %v3027_v51  ;;  %8672 = vpow2.f32 %v2870_v36 }
 0x8f0   : >> { %6505 = vmatprep.mubr.bf16.mxu1 %v3028_v2  ;;  %v8663_v55 = vpop.eup %8662  ;;  %2988 = vadd.xlane.f32.xlu1 %v8661_v13  ;;  %v16125_v2 = vld [vmem:[#allocation81_spill] sm:$0xff] }
 0x8f1   : >> { %v8665_v23 = vpop.eup %8664  ;;  %v3030_v41 = vpack.c.bf16 %v8663_v55, %v8659_v14  ;;  %v2872_v14 = vmul.f32 1.442695, %v16124_v0  ;;  %v16126_v52 = vsub.f32 %v10668_v3, %v16125_v2  ;;  %v16130_v3 = vsub.f32 %v10640_v15, %v13203_v58 }
 0x8f2   : >> { %2986 = vadd.xlane.f32.xlu0 %v8663_v55  ;;  %v3031_v37 = vpack.c.bf16 %v8665_v23, %v8661_v13  ;;  %v2884_v55 = vmul.f32 1.442695, %v16127_v53 }
 0x8f3   : >> { %v2866_v13 = vmul.f32 1.442695, %v16126_v52  ;;  %8674 = vpow2.f32 %v2872_v14  ;;  %v2880_v48 = vmul.f32 1.442695, %v16130_v3  ;;  %v16132_v52 = vmov %v16131_v59 }
 0x8f5   : >> { %v13271_v51 = vpop.eup %8666  ;;  %8676 = vpow2.f32 %v2866_v13 }
 0x8f6   : >> { %2990 = vadd.xlane.f32.xlu0 %v8665_v23  ;;  %v2946_v12 = vmul.f32 %v10600_v29, %v13271_v51  ;;  %8678 = vpow2.f32 %v2884_v55 }
 0x8f7   : >> { %6506 = vmatmul.mubr.bf16.gmra.mrb[8].mxu1 %v3029_v31  ;;  %v2878_v31 = vmul.f32 1.442695, %v16128_v50 }
 0x8f8   : >> { %6509 = vmatprep.mubr.bf16.mxu1 %v3030_v41 }
 0x8f9   : >> { %8680 = vpow2.f32 %v2878_v31 }
 0x8fa   : >> { %8682 = vpow2.f32 %v2880_v48 }
 0x8fb   : >> { %8684 = vpow2.f32 %v2874_v47 }
 0x8ff   : >> { %6510 = vmatmul.mubr.bf16.gmra.mrb[12].mxu1 %v3031_v37  ;;  %v13284_v37 = vpop.eup %8668 }
 0x900   : >> { %v2944_v60 = vmul.f32 %v10608_v33, %v13284_v37  ;;  %v13296_v57 = vpop.eup %8670 }
 0x901   : >> { %v13298_v43 = vpop.eup %8672  ;;  %v2950_v34 = vmul.f32 %v10584_v25, %v13296_v57 }
 0x902   : >> { %v13307_v32 = vpop.eup %8674  ;;  %v2947_v36 = vmul.f32 %v10596_v9, %v13298_v43 }
 0x903   : >> { %v13311_v14 = vpop.eup %8676  ;;  %v2948_v50 = vmul.f32 %v10592_v27, %v13307_v32 }
 0x904   : >> { %v13325_v31 = vpop.eup %8678 }
 0x905   : >> { %v13329_v3 = vpop.eup %8680  ;;  %v2954_v46 = vmul.f32 %v10568_v10, %v13325_v31 }
 0x906   : >> { %v13343_v47 = vpop.eup %8682 }
 0x95e   : >> { %v2965_v41 = vpop.xlane.xlu1 %2964 }
 0x95f   : >> { %v13286_v29 = vadd.f32 %v2965_v41, %v2946_v12   ;;  %v2945_v41 = vmul.f32 %v10604_v42, %v13311_v14 }
 0x961   : >> { %16129 = vst [vmem:[#allocation92_spill] sm:$0xff] %v13286_v29  ;;  %v16135_v29 = vsub.f32 %v10628_v4, %v13206_v7  ;;  %v16139_v4 = vld [vmem:[#allocation122_spill] sm:$0xff] }
 0x962   : >> { %v2961_v56 = vpop.xlane.xlu1 %2960  ;;  %v16140_v53 = vmov %v16139_v4  ;;  %v16141_v55 = vsub.f32 %v10636_v39, %v16139_v4  ;;  %v16145_v39 = vsub.f32 %v10620_v44, %v16117_v35 }
 0x963   : >> { %v13300_v33 = vadd.f32 %v2961_v56, %v2944_v60   ;;  %v2886_v15 = vmul.f32 1.442695, %v16135_v29  ;;  %v8685_v56 = vpop.eup %8684  ;;  %v2952_v29 = vmul.f32 %v10576_v38, %v13343_v47 }
 0x964   : >> { %v2882_v12 = vmul.f32 1.442695, %v16141_v55  ;;  %v2890_v59 = vmul.f32 1.442695, %v16145_v39  ;;  %v16158_v39 = vld [vmem:[#allocation118_spill] sm:$0xff] }
 0x965   : >> { %16134 = vst [vmem:[#allocation93_spill] sm:$0xff] %v13300_v33  ;;  %v16137_v33 = vsub.f32 %v10624_v21, %v13232_v28  ;;  %8686 = vpow2.f32 %v2886_v15  ;;  %v2949_v15 = vmul.f32 %v10588_v17, %v8685_v56 }
 0x966   : >> { %v2973_v0 = vpop.xlane.xlu1 %2972 }
 0x967   : >> { %v2967_v2 = vpop.xlane.xlu0 %2966  ;;  %v13313_v25 = vadd.f32 %v2973_v0, %v2950_v34   ;;  %v2888_v13 = vmul.f32 1.442695, %v16137_v33 }
 0x968   : >> { %v13318_v9 = vadd.f32 %v2967_v2, %v2947_v36  }
 0x969   : >> { %16136 = vst [vmem:[#allocation94_spill] sm:$0xff] %v13313_v25  ;;  %8688 = vpow2.f32 %v2888_v13 }
 0x96a   : >> { %16138 = vst [vmem:[#allocation96_spill] sm:$0xff] %v13318_v9  ;;  %v2969_v25 = vpop.xlane.xlu1 %2968  ;;  %v16143_v9 = vsub.f32 %v10616_v24, %v16110_v5  ;;  %8690 = vpow2.f32 %v2882_v12 }
 0x96b   : >> { %v2963_v21 = vpop.xlane.xlu0 %2962  ;;  %v13331_v27 = vadd.f32 %v2969_v25, %v2948_v50  }
 0x96c   : >> { %v2892_v48 = vmul.f32 1.442695, %v16143_v9  ;;  %v13336_v42 = vadd.f32 %v2963_v21, %v2945_v41  }
 0x96d   : >> { %16142 = vst [vmem:[#allocation98_spill] sm:$0xff] %v13331_v27  ;;  %v2951_v27 = vmul.f32 %v10580_v19, %v13329_v3 }
 0x96e   : >> { %16144 = vst [vmem:[#allocation95_spill] sm:$0xff] %v13336_v42  ;;  %v2981_v60 = vpop.xlane.xlu1 %2980  ;;  %8692 = vpow2.f32 %v2892_v48  ;;  %v16148_v42 = vsub.f32 %v10612_v16, %v13235_v40 }
 0x96f   : >> { %v2975_v24 = vpop.xlane.xlu0 %2974  ;;  %v13347_v10 = vadd.f32 %v2981_v60, %v2954_v46   ;;  %8694 = vpow2.f32 %v2890_v59  ;;  %v8687_v36 = vpop.eup %8686  ;;  %v3008_v59 = vmul.f32 %v16158_v39, %v13284_v37  ;;  %v16162_v60 = vld [vmem:[#allocation117_spill] sm:$0xff]  ;;  %v16187_v39 = vld [vmem:[#allocation106_spill] sm:$0xff] }
 0x970   : >> { %v13349_v19 = vadd.f32 %v2975_v24, %v2951_v27   ;;  %v2894_v44 = vmul.f32 1.442695, %v16148_v42  ;;  %v16160_v27 = vld [vmem:[#allocation115_spill] sm:$0xff]  ;;  %v3009_v24 = vmul.f32 %v16162_v60, %v13311_v14 }
 0x971   : >> { %16146 = vst [vmem:[#allocation97_spill] sm:$0xff] %v13347_v10 }
 0x972   : >> { %16147 = vst [vmem:[#allocation100_spill] sm:$0xff] %v13349_v19  ;;  %v2977_v34 = vpop.xlane.xlu1 %2976  ;;  %8696 = vpow2.f32 %v2894_v44  ;;  %v2955_v19 = vmul.f32 %v10564_v8, %v8687_v36 }
 0x973   : >> { %v2971_v0 = vpop.xlane.xlu0 %2970  ;;  %v13357_v38 = vadd.f32 %v2977_v34, %v2952_v29   ;;  %v8689_v10 = vpop.eup %8688  ;;  %v16166_v29 = vld [vmem:[#allocation114_spill] sm:$0xff]  ;;  %v16168_v34 = vld [vmem:[#allocation111_spill] sm:$0xff] }
 0x974   : >> { %v13359_v17 = vadd.f32 %v2971_v0, %v2949_v15   ;;  %v8691_v2 = vpop.eup %8690  ;;  %v2956_v33 = vmul.f32 %v10560_v1, %v8689_v10  ;;  %v3012_v15 = vmul.f32 %v16166_v29, %v13307_v32  ;;  %v16230_v29 = vld [vmem:[#allocation92_spill] sm:$0xff] }
 0x975   : >> { %16149 = vst [vmem:[#allocation102_spill] sm:$0xff] %v13357_v38  ;;  %v2953_v4 = vmul.f32 %v10572_v62, %v8691_v2 }
 0x976   : >> { %16150 = vst [vmem:[#allocation99_spill] sm:$0xff] %v13359_v17 }
 0x977   : >> { %v2983_v16 = vpop.xlane.xlu0 %2982 }
 0x978   : >> { %v13362_v8 = vadd.f32 %v2983_v16, %v2955_v19   ;;  %v8693_v13 = vpop.eup %8692  ;;  %v16170_v16 = vld [vmem:[#allocation113_spill] sm:$0xff] }
 0x979   : >> { %v2985_v55 = vpop.xlane.xlu1 %2984  ;;  %v8695_v12 = vpop.eup %8694  ;;  %v2958_v38 = vmul.f32 %v10552_v54, %v8693_v13 }
 0x97a   : >> { %16151 = vst [vmem:[#allocation101_spill] sm:$0xff] %v13362_v8  ;;  %v13366_v1 = vadd.f32 %v2985_v55, %v2956_v33   ;;  %v2957_v17 = vmul.f32 %v10556_v18, %v8695_v12  ;;  %v3013_v33 = vmul.f32 %v16170_v16, %v8685_v56  ;;  %v16233_v16 = vld [vmem:[#allocation88_spill] sm:$0xff] }
 0x97b   : >> { %v2979_v50 = vpop.xlane.xlu0 %2978 }
 0x97c   : >> { %16152 = vst [vmem:[#allocation123_spill] sm:$0xff] %v13366_v1  ;;  %v13368_v62 = vadd.f32 %v2979_v50, %v2953_v4   ;;  %v8697_v25 = vpop.eup %8696  ;;  %v16157_v1 = vld [vmem:[#allocation116_spill] sm:$0xff]  ;;  %v16175_v50 = vld [vmem:[#allocation110_spill] sm:$0xff] }
 0x97d   : >> { %v2989_v41 = vpop.xlane.xlu1 %2988  ;;  %v2959_v8 = vmul.f32 %v10548_v63, %v8697_v25  ;;  %v3010_v48 = vmul.f32 %v16157_v1, %v13271_v51  ;;  %v16165_v51 = vld [vmem:[#allocation112_spill] sm:$0xff] }
 0x97e   : >> { %16153 = vst [vmem:[#allocation124_spill] sm:$0xff] %v13368_v62  ;;  %v13372_v54 = vadd.f32 %v2989_v41, %v2958_v38   ;;  %v3014_v37 = vmul.f32 %v16165_v51, %v13296_v57  ;;  %v16174_v57 = vld [vmem:[#allocation108_spill] sm:$0xff]  ;;  %v3016_v38 = vmul.f32 %v16175_v50, %v13343_v47 }
 0x97f   : >> { %v2987_v21 = vpop.xlane.xlu0 %2986  ;;  %v16244_v50 = vld [vmem:[#allocation82_spill] sm:$0xff] }
 0x980   : >> { %16154 = vst [vmem:[#allocation125_spill] sm:$0xff] %v13372_v54  ;;  %v13374_v18 = vadd.f32 %v2987_v21, %v2957_v17   ;;  %v3011_v54 = vmul.f32 %v16160_v27, %v13298_v43  ;;  %v16178_v17 = vld [vmem:[#allocation107_spill] sm:$0xff] }
 0x981   : >> { %v16190_v27 = vld [vmem:[#allocation103_spill] sm:$0xff] }
 0x982   : >> { %16155 = vst [vmem:[#allocation126_spill] sm:$0xff] %v13374_v18 }
 0x983   : >> { %v2991_v9 = vpop.xlane.xlu0 %2990 }
 0x984   : >> { %v13377_v63 = vadd.f32 %v2991_v9, %v2959_v8   ;;  %v16181_v8 = vld [vmem:[#allocation109_spill] sm:$0xff] }
 0x986   : >> { %16156 = vst [vmem:[#allocation127_spill] sm:$0xff] %v13377_v63 }
 0x9ba   : >> { %v6499_v62 = vpop.f32.mrb[0].mxu1 }
 0x9bb   : >> { %v13383_v55 = vadd.f32 %v6499_v62, %v3010_v48   ;;  %v3098_v46 = vpop.f32.mrb[1].mxu1 }
 0x9bc   : >> { %v13387_v0 = vadd.f32 %v3098_v46, %v3008_v59   ;;  %v6500_v18 = vpop.f32.mrb[2].mxu1  ;;  %v3020_v59 = vmul.f32 %v16187_v39, %v8689_v10  ;;  %v16222_v10 = vld [vmem:[#allocation97_spill] sm:$0xff]  ;;  %v16239_v39 = vmov %v16140_v53  ;;  %v16242_v53 = vld [vmem:[#allocation80_spill] sm:$0xff] }
 0x9bd   : >> { %v16159_v20 = vmov %v13383_v55  ;;  %v13391_v63 = vadd.f32 %v6500_v18, %v3011_v54   ;;  %v3101_v42 = vpop.f32.mrb[3].mxu1  ;;  %v3018_v55 = vmul.f32 %v16174_v57, %v13325_v31  ;;  %v16186_v31 = vld [vmem:[#allocation104_spill] sm:$0xff]  ;;  %v16193_v54 = vld [vmem:[#allocation105_spill] sm:$0xff]  ;;  %v16261_v53 = vld [vmem:[#allocation101_spill] sm:$0xff] (%p13439_p7)  ;;  %v13671_v39 = vmov (%p13439_p7), 0.0  }
 0x9be   : >> { %v16161_v26 = vmov %v13387_v0  ;;  %v13393_v46 = vadd.f32 %v3101_v42, %v3009_v24   ;;  %v3015_v0 = vmul.f32 %v16168_v34, %v13329_v3  ;;  %v3022_v1 = vmul.f32 %v16186_v31, %v8693_v13  ;;  %v16231_v42 = vld [vmem:[#allocation95_spill] sm:$0xff]  ;;  %v16234_v24 = vld [vmem:[#allocation90_spill] sm:$0xff] }
 0x9bf   : >> { %v16163_v23 = vmov %v13391_v63  ;;  %v3021_v18 = vmul.f32 %v16193_v54, %v8695_v12  ;;  %v16217_v63 = vld [vmem:[#allocation127_spill] sm:$0xff]  ;;  %v16218_v54 = vld [vmem:[#allocation125_spill] sm:$0xff]  ;;  %v16241_v57 = vld [vmem:[#allocation86_spill] sm:$0xff]  ;;  %v16243_v34 = vmov %v16132_v52  ;;  %v16245_v12 = vmov %v16098_v49 }
 0x9c0   : >> { %v16164_v45 = vmov %v13393_v46  ;;  %v16213_v13 = vmov %v16163_v23  ;;  %v16246_v49 = vld [vmem:[#allocation48_spill] sm:$0xff]  ;;  %v16248_v52 = vld [vmem:[#allocation83_spill] sm:$0xff]  ;;  %v13683_v54 = vmov (%p13439_p7), 0.0  }
 0x9c1   : > { %v16257_v52 = vld [vmem:[#allocation100_spill] sm:$0xff] (%p13439_p7)  ;;  %v16267_v13 = vld [vmem:[#allocation125_spill] sm:$0xff] (%p13439_p7) }
 0x9c2   : >> { %v6503_v44 = vpop.f32.mrb[4].mxu1 }
 0x9c3   : >> { %v13399_v41 = vadd.f32 %v6503_v44, %v3014_v37   ;;  %v3114_v43 = vpop.f32.mrb[5].mxu1  ;;  %v16235_v44 = vld [vmem:[#allocation89_spill] sm:$0xff] }
 0x9c4   : >> { %v13403_v19 = vadd.f32 %v3114_v43, %v3012_v15   ;;  %v6504_v14 = vpop.f32.mrb[6].mxu1  ;;  %v16240_v15 = vld [vmem:[#allocation84_spill] sm:$0xff] }
 0x9c5   : >> { %v16167_v11 = vmov %v13399_v41  ;;  %v13406_v56 = vadd.f32 %v6504_v14, %v3015_v0   ;;  %v3117_v4 = vpop.f32.mrb[7].mxu1  ;;  %v3019_v41 = vmul.f32 %v16178_v17, %v8687_v36  ;;  %v3023_v36 = vmul.f32 %v16190_v27, %v8697_v25  ;;  %v16226_v25 = vld [vmem:[#allocation94_spill] sm:$0xff]  ;;  %v16227_v17 = vld [vmem:[#allocation99_spill] sm:$0xff] }
 0x9c6   : >> { %v16169_v61 = vmov %v13403_v19  ;;  %v13408_v60 = vadd.f32 %v3117_v4, %v3013_v33   ;;  %v16216_v0 = vmov %v16161_v26  ;;  %v16225_v19 = vld [vmem:[#allocation100_spill] sm:$0xff]  ;;  %v16228_v27 = vld [vmem:[#allocation98_spill] sm:$0xff]  ;;  %v16232_v33 = vld [vmem:[#allocation93_spill] sm:$0xff] }
 0x9c7   : >> { %16171 = vst [vmem:[#allocation128_spill] sm:$0xff] %v13406_v56  ;;  %v16172_v6 = vmov %v13406_v56  ;;  %v3017_v56 = vmul.f32 %v16181_v8, %v8691_v2  ;;  %v16221_v8 = vld [vmem:[#allocation101_spill] sm:$0xff]  ;;  %v16269_v25 = vld [vmem:[#allocation127_spill] sm:$0xff] (%p13439_p7)  ;;  %v13677_v27 = vmov (%p13439_p7), 0.0  }
 0x9c8   : >> { %v16173_v58 = vmov %v13408_v60  ;;  %v16237_v4 = vld [vmem:[#allocation85_spill] sm:$0xff]  ;;  %v13659_v8 = vmov (%p13439_p7), 0.0  }
 0x9c9   : >> { %v16211_v60 = vmov %v16173_v58 }
 0x9ca   : >> { %v6507_v32 = vpop.f32.mrb[8].mxu1 }
 0x9cb   : >> { %v13414_v14 = vadd.f32 %v6507_v32, %v3018_v55   ;;  %v3130_v3 = vpop.f32.mrb[9].mxu1  ;;  %v16214_v55 = vmov %v16159_v20 }
 0x9cc   : >> { %v13417_v47 = vadd.f32 %v3130_v3, %v3016_v38   ;;  %v6508_v21 = vpop.f32.mrb[10].mxu1  ;;  %v16224_v38 = vld [vmem:[#allocation102_spill] sm:$0xff]  ;;  %v16247_v3 = vld [vmem:[#allocation81_spill] sm:$0xff] }
 0x9cd   : >> { %16176 = vst [vmem:[#allocation129_spill] sm:$0xff] %v13414_v14  ;;  %v13420_v48 = vadd.f32 %v6508_v21, %v3019_v41   ;;  %v3133_v9 = vpop.f32.mrb[11].mxu1  ;;  %v16205_v37 = vmov %v13414_v14  ;;  %v16210_v41 = vmov %v16167_v11  ;;  %v16236_v21 = vld [vmem:[#allocation91_spill] sm:$0xff] }
 0x9ce   : >> { %16179 = vst [vmem:[#allocation130_spill] sm:$0xff] %v13417_v47  ;;  %v16180_v35 = vmov %v13417_v47  ;;  %v13422_v32 = vadd.f32 %v3133_v9, %v3017_v56   ;;  %v16206_v14 = vmov %v16205_v37  ;;  %v16209_v56 = vmov %v16172_v6  ;;  %v16229_v9 = vld [vmem:[#allocation96_spill] sm:$0xff]  ;;  %v16255_v37 = vld [vmem:[#allocation99_spill] sm:$0xff] (%p13439_p7) }
 0x9cf   : >> { %16182 = vst [vmem:[#allocation131_spill] sm:$0xff] %v13420_v48  ;;  %v16183_v22 = vmov %v13420_v48  ;;  %v16259_v6 = vld [vmem:[#allocation124_spill] sm:$0xff] (%p13439_p7)  ;;  %v13657_v21 = vmov (%p13439_p7), 0.0   ;;  %v13661_v56 = vmov (%p13439_p7), 0.0   ;;  %v13663_v9 = vmov (%p13439_p7), 0.0  }
 0x9d0   : >> { %16184 = vst [vmem:[#allocation132_spill] sm:$0xff] %v13422_v32  ;;  %v16185_v7 = vmov %v13422_v32 }
 0x9d1   : >> { %v16207_v32 = vmov %v16185_v7  ;;  %v16256_v7 = vld [vmem:[#allocation94_spill] sm:$0xff] (%p13439_p7) }
 0x9d2   : >> { %v6511_v62 = vpop.f32.mrb[12].mxu1 }
 0x9d3   : >> { %v13426_v2 = vadd.f32 %v6511_v62, %v3022_v1   ;;  %v3146_v46 = vpop.f32.mrb[13].mxu1  ;;  %v16220_v1 = vld [vmem:[#allocation123_spill] sm:$0xff]  ;;  %v16223_v62 = vld [vmem:[#allocation124_spill] sm:$0xff]  ;;  %2517 = sbr.rel (!%p13439_p7) target bundleno = 1699 (0x6a3), region = 216 }
 0x9d4   : >> { %v13429_v43 = vadd.f32 %v3146_v46, %v3020_v59   ;;  %v6512_v47 = vpop.f32.mrb[14].mxu1  ;;  %v16215_v46 = vmov %v16164_v45  ;;  %v16238_v59 = vld [vmem:[#allocation87_spill] sm:$0xff]  ;;  %v16279_v19 = vld [vmem:[#allocation129_spill] sm:$0xff] (%p13439_p7)  ;;  %v13667_v1 = vmov (%p13439_p7), 0.0   ;;  %v13669_v62 = vmov (%p13439_p7), 0.0  }
 0x9d5   : >> { %16188 = vst [vmem:[#allocation133_spill] sm:$0xff] %v13426_v2  ;;  %v13432_v31 = vadd.f32 %v6512_v47, %v3023_v36   ;;  %v3149_v48 = vpop.f32.mrb[15].mxu1  ;;  %v16200_v28 = vmov %v13426_v2  ;;  %v16208_v47 = vmov %v16180_v35  ;;  %v16212_v36 = vmov %v16169_v61  ;;  %v16258_v35 = vld [vmem:[#allocation102_spill] sm:$0xff] (%p13439_p7) }
 0x9d6   : >> { %16191 = vst [vmem:[#allocation134_spill] sm:$0xff] %v13429_v43  ;;  %v16192_v40 = vmov %v13429_v43  ;;  %v13434_v51 = vadd.f32 %v3149_v48, %v3021_v18   ;;  %v16201_v2 = vmov %v16200_v28  ;;  %v16204_v48 = vmov %v16183_v22  ;;  %v16219_v18 = vld [vmem:[#allocation126_spill] sm:$0xff]  ;;  %v16251_v28 = vld [vmem:[#allocation95_spill] sm:$0xff] (%p13439_p7) }
 0x9d7   : >> { %16194 = vst [vmem:[#allocation135_spill] sm:$0xff] %v13432_v31  ;;  %v16195_v5 = vmov %v13432_v31  ;;  %v16203_v43 = vmov %v16192_v40  ;;  %v16253_v40 = vld [vmem:[#allocation96_spill] sm:$0xff] (%p13439_p7)  ;;  %v16254_v22 = vld [vmem:[#allocation98_spill] sm:$0xff] (%p13439_p7)  ;;  %v16281_v16 = vld [vmem:[#allocation131_spill] sm:$0xff] (%p13439_p7)  ;;  %v13673_v59 = vmov (%p13439_p7), 0.0   ;;  %v13675_v46 = vmov (%p13439_p7), 0.0  }
 0x9d8   : >> { %16196 = vst [vmem:[#allocation136_spill] sm:$0xff] %v13434_v51  ;;  %v16197_v30 = vmov %v13434_v51  ;;  %v16199_v31 = vmov %v16195_v5  ;;  %v16250_v5 = vld [vmem:[#allocation93_spill] sm:$0xff] (%p13439_p7)  ;;  %v16265_v2 = vld [vmem:[#allocation126_spill] sm:$0xff] (%p13439_p7)  ;;  %v16277_v34 = vld [vmem:[#allocation132_spill] sm:$0xff] (%p13439_p7)  ;;  %v13679_v36 = vmov (%p13439_p7), 0.0   ;;  %v13681_v47 = vmov (%p13439_p7), 0.0  }
 0x9d9   : >> { %v16202_v51 = vmov %v16197_v30  ;;  %8698 = vrcp.f32 (%p13439_p7), %v16250_v5  ;;  %v16252_v30 = vld [vmem:[#allocation92_spill] sm:$0xff] (%p13439_p7)  ;;  %v16260_v5 = vld [vmem:[#allocation97_spill] sm:$0xff] (%p13439_p7)  ;;  %v16275_v29 = vld [vmem:[#allocation130_spill] sm:$0xff] (%p13439_p7)  ;;  %v13665_v31 = vmov (%p13439_p7), 0.0   ;;  %v13685_v18 = vmov (%p13439_p7), 0.0  }
 0x9da   : > { %8700 = vrcp.f32 %v16251_v28  ;;  %v16273_v51 = vld [vmem:[#allocation128_spill] sm:$0xff]  ;;  %v13687_v48 = vmov 0.0  }
 0x9db   : > { %8702 = vrcp.f32 %v16252_v30  ;;  %v16263_v30 = vld [vmem:[#allocation123_spill] sm:$0xff] }
 0x9dc   : > { %8704 = vrcp.f32 %v16253_v40 }
 0x9dd   : > { %8706 = vrcp.f32 %v16254_v22  ;;  %v16283_v4 = vld [vmem:[#allocation134_spill] sm:$0xff] }
 0x9de   : > { %8708 = vrcp.f32 %v16255_v37  ;;  %v16287_v37 = vld [vmem:[#allocation133_spill] sm:$0xff]  ;;  %v16289_v17 = vld [vmem:[#allocation135_spill] sm:$0xff] }
 0x9df   : > { %8710 = vrcp.f32 %v16256_v7  ;;  %v16285_v32 = vld [vmem:[#allocation136_spill] sm:$0xff] }
 0x9e0   : > { %8712 = vrcp.f32 %v16257_v52  ;;  %v13689_v52 = vmov 0.0  }
 0x9e1   : > { %8714 = vrcp.f32 %v16258_v35 }
 0x9e2   : > { %8716 = vrcp.f32 %v16259_v6 }
 0x9e3   : > { %v8699_v49 = vpop.eup %8698  ;;  %8718 = vrcp.f32 %v16260_v5  ;;  %v13693_v5 = vmov 0.0  }
 0x9e4   : > { %v8701_v28 = vpop.eup %8700  ;;  %8720 = vrcp.f32 %v16261_v53  ;;  %v13606_v40 = vmul.f32 %v8699_v49, %v16161_v26  ;;  %v13691_v49 = vmov 0.0   ;;  %v13697_v53 = vmov 0.0  }
 0x9e5   : > { %v8703_v22 = vpop.eup %8702  ;;  %8722 = vrcp.f32 %v16263_v30  ;;  %v13610_v7 = vmul.f32 %v8701_v28, %v16164_v45  ;;  %v13695_v28 = vmov 0.0   ;;  %v13701_v30 = vmov 0.0  }
 0x9e6   : > { %16262 = vst [vmem:[#allocation88_spill] sm:$0xff] %v13606_v40  ;;  %v8705_v10 = vpop.eup %8704  ;;  %8724 = vrcp.f32 %v16265_v2  ;;  %v13614_v6 = vmul.f32 %v8703_v22, %v16159_v20  ;;  %v13699_v22 = vmov 0.0   ;;  %v13705_v2 = vmov 0.0  }
 0x9e7   : > { %16264 = vst [vmem:[#allocation90_spill] sm:$0xff] %v13610_v7  ;;  %v8707_v35 = vpop.eup %8706  ;;  %8726 = vrcp.f32 %v16267_v13  ;;  %v13618_v12 = vmul.f32 %v8705_v10, %v16163_v23  ;;  %v13703_v10 = vmov 0.0   ;;  %v13709_v13 = vmov 0.0  }
 0x9e8   : > { %16266 = vst [vmem:[#allocation89_spill] sm:$0xff] %v13614_v6  ;;  %v8709_v26 = vpop.eup %8708  ;;  %8728 = vrcp.f32 %v16269_v25  ;;  %v13622_v60 = vmul.f32 %v8707_v35, %v16169_v61  ;;  %v13707_v35 = vmov 0.0   ;;  %v13713_v25 = vmov 0.0  }
 0x9e9   : > { %16268 = vst [vmem:[#allocation91_spill] sm:$0xff] %v13618_v12  ;;  %v8711_v45 = vpop.eup %8710  ;;  %v13625_v24 = vmul.f32 %v8709_v26, %v16173_v58  ;;  %v13711_v26 = vmov 0.0  }
 0x9ea   : > { %16270 = vst [vmem:[#allocation85_spill] sm:$0xff] %v13622_v60  ;;  %v8713_v63 = vpop.eup %8712  ;;  %v13628_v20 = vmul.f32 %v8711_v45, %v16167_v11  ;;  %v13715_v45 = vmov 0.0  }
 0x9eb   : > { %16271 = vst [vmem:[#allocation87_spill] sm:$0xff] %v13625_v24  ;;  %v8715_v42 = vpop.eup %8714  ;;  %v13631_v44 = vmul.f32 %v8713_v63, %v16273_v51  ;;  %v13717_v63 = vmov 0.0   ;;  %v13721_v51 = vmov -inf  }
 0x9ec   : > { %16272 = vst [vmem:[#allocation84_spill] sm:$0xff] %v13628_v20  ;;  %v8717_v23 = vpop.eup %8716  ;;  %v13634_v15 = vmul.f32 %v8715_v42, %v16275_v29  ;;  %v13719_v42 = vmov 0.0   ;;  %v13725_v29 = vmov -inf  }
 0x9ed   : > { %16274 = vst [vmem:[#allocation86_spill] sm:$0xff] %v13631_v44  ;;  %v8719_v43 = vpop.eup %8718  ;;  %v13637_v61 = vmul.f32 %v8717_v23, %v16277_v34  ;;  %v13723_v23 = vmov -inf   ;;  %v13729_v34 = vmov -inf  }
 0x9ee   : > { %16276 = vst [vmem:[#allocation80_spill] sm:$0xff] %v13634_v15  ;;  %v8721_v0 = vpop.eup %8720  ;;  %v13640_v58 = vmul.f32 %v8719_v43, %v16279_v19  ;;  %v13727_v43 = vmov -inf   ;;  %v13733_v19 = vmov -inf  }
 0x9ef   : > { %16278 = vst [vmem:[#allocation82_spill] sm:$0xff] %v13637_v61  ;;  %v8723_v14 = vpop.eup %8722  ;;  %v13643_v11 = vmul.f32 %v8721_v0, %v16281_v16  ;;  %v13731_v0 = vmov -inf   ;;  %v13737_v16 = vmov -inf  }
 0x9f0   : > { %16280 = vst [vmem:[#allocation48_spill] sm:$0xff] %v13640_v58  ;;  %v8725_v33 = vpop.eup %8724  ;;  %v13646_v57 = vmul.f32 %v8723_v14, %v16283_v4  ;;  %v13735_v14 = vmov -inf   ;;  %v13741_v4 = vmov -inf  }
 0x9f1   : > { %16282 = vst [vmem:[#allocation81_spill] sm:$0xff] %v13643_v11  ;;  %v8727_v55 = vpop.eup %8726  ;;  %v13649_v50 = vmul.f32 %v8725_v33, %v16285_v32  ;;  %v13739_v33 = vmov -inf   ;;  %v13745_v32 = vmov -inf  }
 0x9f2   : > { %16284 = vst [vmem:[#allocation83_spill] sm:$0xff] %v13646_v57  ;;  %v8729_v38 = vpop.eup %8728  ;;  %v13652_v3 = vmul.f32 %v8727_v55, %v16287_v37  ;;  %v13743_v55 = vmov -inf   ;;  %v13749_v37 = vmov -inf  }
 0x9f3   : > { %16286 = vst [vmem:[#allocation93_spill] sm:$0xff] %v13649_v50  ;;  %v13655_v41 = vmul.f32 %v8729_v38, %v16289_v17  ;;  %v13747_v38 = vmov -inf   ;;  %v13751_v17 = vmov -inf  }
 0x9f4   : > { %16288 = vst [vmem:[#allocation95_spill] sm:$0xff] %v13652_v3 }
 0x9f5   : > { %16290 = vst [vmem:[#allocation92_spill] sm:$0xff] %v13655_v41 }
 0x9f6 LB: >> { %16291 = vst [vmem:[#allocation137_spill] sm:$0xff] %v10680_v21  ;;  %16292 = vst [vmem:[#allocation138_spill] sm:$0xff] %v10684_v8  ;;  %s6022_s20 = sshll.u32 %s10872_s29, 7  ;;  %s11084_s14 = smov 112   ;;  %s10872_s29 = sphi %s13753_s29, %s16474_s29   ;;  %v10868_v17 = vphi %v13751_v17, %v16473_v17   ;;  %v10864_v37 = vphi %v13749_v37, %v16472_v37   ;;  %v10860_v38 = vphi %v13747_v38, %v16471_v38   ;;  %v10856_v32 = vphi %v13745_v32, %v16470_v32   ;;  %v10852_v55 = vphi %v13743_v55, %v16469_v55   ;;  %v10848_v4 = vphi %v13741_v4, %v16468_v4   ;;  %v10844_v33 = vphi %v13739_v33, %v16467_v33   ;;  %v10840_v16 = vphi %v13737_v16, %v16466_v16   ;;  %v10836_v14 = vphi %v13735_v14, %v16465_v14   ;;  %v10832_v19 = vphi %v13733_v19, %v16464_v19   ;;  %v10828_v0 = vphi %v13731_v0, %v16463_v0   ;;  %v10824_v34 = vphi %v13729_v34, %v16462_v34   ;;  %v10820_v43 = vphi %v13727_v43, %v16461_v43   ;;  %v10816_v29 = vphi %v13725_v29, %v16460_v29   ;;  %v10812_v23 = vphi %v13723_v23, %v16459_v23   ;;  %v10808_v51 = vphi %v13721_v51, %v16458_v51   ;;  %v10804_v42 = vphi %v13719_v42, %v16457_v42   ;;  %v10800_v63 = vphi %v13717_v63, %v16456_v63   ;;  %v10796_v45 = vphi %v13715_v45, %v16455_v45   ;;  %v10792_v25 = vphi %v13713_v25, %v16454_v25   ;;  %v10788_v26 = vphi %v13711_v26, %v16453_v26   ;;  %v10784_v13 = vphi %v13709_v13, %v16452_v13   ;;  %v10780_v35 = vphi %v13707_v35, %v16451_v35   ;;  %v10776_v2 = vphi %v13705_v2, %v16450_v2   ;;  %v10772_v10 = vphi %v13703_v10, %v16449_v10   ;;  %v10768_v30 = vphi %v13701_v30, %v16448_v30   ;;  %v10764_v22 = vphi %v13699_v22, %v16447_v22   ;;  %v10760_v53 = vphi %v13697_v53, %v16446_v53   ;;  %v10756_v28 = vphi %v13695_v28, %v16445_v28   ;;  %v10752_v5 = vphi %v13693_v5, %v16444_v5   ;;  %v10748_v49 = vphi %v13691_v49, %v16443_v49   ;;  %v10744_v52 = vphi %v13689_v52, %v16442_v52   ;;  %v10740_v48 = vphi %v13687_v48, %v16441_v48   ;;  %v10736_v18 = vphi %v13685_v18, %v16440_v18   ;;  %v10732_v54 = vphi %v13683_v54, %v16439_v54   ;;  %v10728_v47 = vphi %v13681_v47, %v16438_v47   ;;  %v10724_v36 = vphi %v13679_v36, %v16437_v36   ;;  %v10720_v27 = vphi %v13677_v27, %v16436_v27   ;;  %v10716_v46 = vphi %v13675_v46, %v16435_v46   ;;  %v10712_v59 = vphi %v13673_v59, %v16434_v59   ;;  %v10708_v39 = vphi %v13671_v39, %v16433_v39   ;;  %v10704_v62 = vphi %v13669_v62, %v16432_v62   ;;  %v10700_v1 = vphi %v13667_v1, %v16431_v1   ;;  %v10696_v31 = vphi %v13665_v31, %v16429_v31   ;;  %v10692_v9 = vphi %v13663_v9, %v16428_v9   ;;  %v10688_v56 = vphi %v13661_v56, %v16426_v56   ;;  %v10684_v8 = vphi %v13659_v8, %v16425_v8   ;;  %v10680_v21 = vphi %v13657_v21, %v16424_v21  }
 0x9f7   : >> { %16293 = vst [vmem:[#allocation139_spill] sm:$0xff] %v10688_v56  ;;  %16294 = vst [vmem:[#allocation140_spill] sm:$0xff] %v10692_v9  ;;  %s3264_s28 = sshra.s32 %s6022_s20, 4  ;;  %s3214_s13 = sadd.s32 1, %s10872_s29  }
 0x9f8   : >> { %16295 = vst [vmem:[#allocation141_spill] sm:$0xff] %v10696_v31  ;;  %16296 = vst [vmem:[#allocation142_spill] sm:$0xff] %v10700_v1  ;;  %s6023_s3 = sshll.u32 %s3264_s28, 3  ;;  %p14312_p8 = scmp.ge.s32.totalorder %s3214_s13, 3  }
 0x9f9   : >> { %16297 = vst [vmem:[#allocation143_spill] sm:$0xff] %v10704_v62  ;;  %16298 = vst [vmem:[#allocation144_spill] sm:$0xff] %v10708_v39  ;;  %s3267_s10 = scalar_lea.vmem [#allocation2], %s6023_s3  ;;  %s13927_s12 = scalar_lea.vmem [#allocation3], %s6023_s3 }
 0x9fa   : >> { %16299 = vst [vmem:[#allocation145_spill] sm:$0xff] %v10712_v59  ;;  %16300 = vst [vmem:[#allocation146_spill] sm:$0xff] %v10716_v46  ;;  %v3268_v44 = vld [vmem:[%s3267_s10] sm:$0xff]  ;;  %v3270_v20 = vld [vmem:[%s3267_s10 + $0x10] sm:$0xff]  ;;  %s16474_s29 = smov %s3214_s13  ;;  %s14626_s5 = smov (%p14312_p8), 0  }
 0x9fb   : >> { %16301 = vst [vmem:[#allocation147_spill] sm:$0xff] %v10720_v27  ;;  %16302 = vst [vmem:[#allocation148_spill] sm:$0xff] %v10724_v36  ;;  %3318 = vrot.lane.b32.xlu0 %v3268_v44, %s11084_s14  ;;  %3322 = vrot.lane.b32.xlu1 %v3270_v20, %s11084_s14  ;;  %v3269_v41 = vld [vmem:[%s3267_s10 + $0x8] sm:$0xff]  ;;  %v3271_v3 = vld [vmem:[%s3267_s10 + $0x18] sm:$0xff] }
 0x9fc   : >> { %16303 = vst [vmem:[#allocation149_spill] sm:$0xff] %v10728_v47  ;;  %16304 = vst [vmem:[#allocation150_spill] sm:$0xff] %v10732_v54  ;;  %v3272_v24 = vld [vmem:[%s3267_s10 + $0x20] sm:$0xff]  ;;  %v3273_v60 = vld [vmem:[%s3267_s10 + $0x28] sm:$0xff] }
 0x9fd   : >> { %16305 = vst [vmem:[#allocation151_spill] sm:$0xff] %v10736_v18  ;;  %16306 = vst [vmem:[#allocation152_spill] sm:$0xff] %v10740_v48  ;;  %v3274_v50 = vld [vmem:[%s3267_s10 + $0x30] sm:$0xff]  ;;  %v3275_v57 = vld [vmem:[%s3267_s10 + $0x38] sm:$0xff] }
 0x9fe   : >> { %16307 = vst [vmem:[#allocation153_spill] sm:$0xff] %v10860_v38  ;;  %v16308_v20 = vld [vmem:[#allocation41_spill] sm:$0xff]  ;;  %v16309_v44 = vld [vmem:[#allocation39_spill] sm:$0xff] }
 0x9ff   : >> { %3320 = vrot.lane.b32.xlu0 %v3269_v41, %s11084_s14  ;;  %3324 = vrot.lane.b32.xlu1 %v3271_v3, %s11084_s14  ;;  %v16310_v3 = vld [vmem:[#allocation45_spill] sm:$0xff]  ;;  %v16311_v41 = vld [vmem:[#allocation43_spill] sm:$0xff] }
 0xa03   : >> { %3326 = vrot.lane.b32.xlu0 %v3272_v24, %s11084_s14  ;;  %3328 = vrot.lane.b32.xlu1 %v3273_v60, %s11084_s14  ;;  %v16312_v60 = vld [vmem:[#allocation42_spill] sm:$0xff]  ;;  %v16313_v24 = vld [vmem:[#allocation40_spill] sm:$0xff] }
 0xa07   : >> { %3330 = vrot.lane.b32.xlu0 %v3274_v50, %s11084_s14  ;;  %3332 = vrot.lane.b32.xlu1 %v3275_v57, %s11084_s14  ;;  %v16314_v57 = vld [vmem:[#allocation46_spill] sm:$0xff]  ;;  %v16315_v50 = vld [vmem:[#allocation44_spill] sm:$0xff] }
 0xa0b   : >> { %3294 = vrot.lane.b32.xlu0 %v16308_v20, %s11084_s14  ;;  %3296 = vrot.lane.b32.xlu1 %v16309_v44, %s11084_s14  ;;  %v3278_v20 = vld [vmem:[%s13927_s12] sm:$0xff]  ;;  %v3279_v44 = vld [vmem:[%s13927_s12 + $0x8] sm:$0xff] }
 0xa0f   : >> { %3298 = vrot.lane.b32.xlu0 %v16310_v3, %s11084_s14  ;;  %3300 = vrot.lane.b32.xlu1 %v16311_v41, %s11084_s14  ;;  %v3280_v3 = vld [vmem:[%s13927_s12 + $0x10] sm:$0xff]  ;;  %v3281_v41 = vld [vmem:[%s13927_s12 + $0x18] sm:$0xff] }
 0xa13   : >> { %3302 = vrot.lane.b32.xlu0 %v16312_v60, %s11084_s14  ;;  %3304 = vrot.lane.b32.xlu1 %v16313_v24, %s11084_s14  ;;  %v3282_v60 = vld [vmem:[%s13927_s12 + $0x20] sm:$0xff]  ;;  %v3283_v24 = vld [vmem:[%s13927_s12 + $0x28] sm:$0xff] }
 0xa17   : >> { %3306 = vrot.lane.b32.xlu0 %v16314_v57, %s11084_s14  ;;  %3308 = vrot.lane.b32.xlu1 %v16315_v50, %s11084_s14 }
 0xa1b   : >> { %3736 = vrot.lane.b32.xlu1 %v3278_v20, %s11084_s14  ;;  %3738 = vrot.lane.b32.xlu0 %v3279_v44, %s11084_s14 }
 0xa1f   : >> { %3740 = vrot.lane.b32.xlu1 %v3280_v3, %s11084_s14  ;;  %3742 = vrot.lane.b32.xlu0 %v3281_v41, %s11084_s14 }
 0xa23   : >> { %3744 = vrot.lane.b32.xlu1 %v3282_v60, %s11084_s14  ;;  %3746 = vrot.lane.b32.xlu0 %v3283_v24, %s11084_s14 }
 0xa6d   : >> { %v3319_v57 = vpop.permute.xlu0 %3318  ;;  %v3323_v3 = vpop.permute.xlu1 %3322 }
 0xa6e   : >> { %6685 = vmatprep.subr.msk.bf16.mxu0 %vm1974_vm2, %v3319_v57  ;;  %v3360_v50 = vsel %vm1974_vm2, %v3319_v57, 0  ;;  %v3366_v60 = vsel %vm1974_vm2, %v3323_v3, 0 }
 0xa6f   : >> { %6514 = vmatpush3.bf16.xpose.msra.mxu0 %v3360_v50 }
 0xa71   : >> { %v3321_v20 = vpop.permute.xlu0 %3320  ;;  %v3325_v24 = vpop.permute.xlu1 %3324 }
 0xa72   : >> { %6686 = vmatprep.subr.msk.bf16.mxu0 %vm1974_vm2, %v3321_v20  ;;  %v3363_v44 = vsel %vm1974_vm2, %v3321_v20, 0  ;;  %v3369_v57 = vsel %vm1974_vm2, %v3325_v24, 0 }
 0xa75   : >> { %v3327_v61 = vpop.permute.xlu0 %3326  ;;  %v3329_v20 = vpop.permute.xlu1 %3328 }
 0xa76   : >> { %v3372_v50 = vsel %vm1974_vm2, %v3327_v61, 0 }
 0xa77   : >> { %6516 = vmatpush3.bf16.xpose.msra.mxu0 %v3363_v44  ;;  %v3375_v44 = vsel %vm1974_vm2, %v3329_v20, 0 }
 0xa78   : >> { %6687 = vmatprep.subr.msk.bf16.mxu0 %vm1974_vm2, %v3323_v3 }
 0xa79   : >> { %v3331_v41 = vpop.permute.xlu0 %3330  ;;  %v3333_v3 = vpop.permute.xlu1 %3332 }
 0xa7d   : >> { %v3295_v15 = vpop.permute.xlu0 %3294 }
 0xa7e   : >> { %6529 = vmatprep.mubr.msk.bf16.mxu0 %vm1974_vm2, %v3295_v15  ;;  %v3378_v15 = vsel %vm1974_vm2, %v3331_v41, 0 }
 0xa7f   : >> { %6518 = vmatpush3.bf16.xpose.msra.mxu0 %v3366_v60  ;;  %v3381_v60 = vsel %vm1974_vm2, %v3333_v3, 0 }
 0xa80   : >> { %6688 = vmatprep.subr.msk.bf16.mxu0 %vm1974_vm2, %v3325_v24  ;;  %v3297_v24 = vpop.permute.xlu1 %3296 }
 0xa87   : >> { %6520 = vmatpush3.bf16.xpose.msra.mxu0 %v3369_v57  ;;  %v3301_v57 = vpop.permute.xlu1 %3300 }
 0xa88   : >> { %6689 = vmatprep.subr.msk.bf16.mxu0 %vm1974_vm2, %v3327_v61  ;;  %v3299_v61 = vpop.permute.xlu0 %3298 }
 0xa8f   : >> { %6522 = vmatpush3.bf16.xpose.msra.mxu0 %v3372_v50  ;;  %v3303_v50 = vpop.permute.xlu0 %3302 }
 0xa90   : >> { %6690 = vmatprep.subr.msk.bf16.mxu0 %vm1974_vm2, %v3329_v20 }
 0xa93   : >> { %v3307_v20 = vpop.permute.xlu0 %3306 }
 0xa97   : >> { %6524 = vmatpush3.bf16.xpose.msra.mxu0 %v3375_v44 }
 0xa98   : >> { %6691 = vmatprep.subr.msk.bf16.mxu0 %vm1974_vm2, %v3331_v41  ;;  %v3305_v41 = vpop.permute.xlu1 %3304 }
 0xa9c   : >> { %v3309_v44 = vpop.permute.xlu1 %3308 }
 0xa9f   : >> { %6526 = vmatpush3.bf16.xpose.msra.mxu0 %v3378_v15 }
 0xaa0   : >> { %6692 = vmatprep.subr.msk.bf16.mxu0 %vm1974_vm2, %v3333_v3  ;;  %v3737_v15 = vpop.permute.xlu1 %3736  ;;  %v3739_v3 = vpop.permute.xlu0 %3738 }
 0xaa1   : >> { %6545 = vmatprep.subr.bf16.mxu1 %v3737_v15 }
 0xaa2   : >> { %6546 = vmatpush3.bf16.msra.mxu1 %v3737_v15 }
 0xaa3   : >> { %6547 = vmatprep.subr.bf16.mxu1 %v3739_v3 }
 0xaa6   : >> { %6548 = vmatpush3.bf16.msra.mxu1 %v3739_v3 }
 0xaa7   : >> { %6528 = vmatpush3.bf16.xpose.msra.mxu0 %v3381_v60  ;;  %v3741_v60 = vpop.permute.xlu1 %3740 }
 0xaa8   : >> { %6549 = vmatprep.subr.bf16.mxu1 %v3741_v60 }
 0xaaa   : >> { %6550 = vmatpush3.bf16.msra.mxu1 %v3741_v60 }
 0xaae   : >> { %6530 = vmatmul.mubr.msk.bf16.vlgmr.msra.gmra.mrb[0].mxu0 %vm1974_vm2, %v3297_v24  ;;  %v3743_v24 = vpop.permute.xlu0 %3742 }
 0xaaf   : >> { %6533 = vmatprep.mubr.msk.bf16.mxu0 %vm1974_vm2, %v3299_v61  ;;  %6551 = vmatprep.subr.bf16.mxu1 %v3743_v24  ;;  %v3745_v61 = vpop.permute.xlu1 %3744 }
 0xab0   : >> { %6552 = vmatpush3.bf16.msra.mxu1 %v3743_v24 }
 0xab1   : >> { %6553 = vmatprep.subr.bf16.mxu1 %v3745_v61 }
 0xab4   : >> { %6554 = vmatpush3.bf16.msra.mxu1 %v3745_v61 }
 0xab6   : >> { %6534 = vmatmul.mubr.msk.bf16.gmra.mrb[4].mxu0 %vm1974_vm2, %v3301_v57  ;;  %v3747_v57 = vpop.permute.xlu0 %3746 }
 0xab7   : >> { %6537 = vmatprep.mubr.msk.bf16.mxu0 %vm1974_vm2, %v3303_v50  ;;  %6555 = vmatprep.subr.bf16.mxu1 %v3747_v57 }
 0xab8   : >> { %6556 = vmatpush3.bf16.msra.mxu1 %v3747_v57 }
 0xabe   : >> { %6538 = vmatmul.mubr.msk.bf16.gmra.mrb[8].mxu0 %vm1974_vm2, %v3305_v41 }
 0xabf   : >> { %6541 = vmatprep.mubr.msk.bf16.mxu0 %vm1974_vm2, %v3307_v20 }
 0xac6   : >> { %6542 = vmatmul.mubr.msk.bf16.gmra.mrb[12].mxu0 %vm1974_vm2, %v3309_v44 }
 0xb81   : >> { %v6531_v50 = vpop.f32.mrb[0].mxu0 }
 0xb82   : >> { %v3482_v41 = vmul.f32 0.35355338, %v6531_v50  ;;  %v3417_v20 = vpop.f32.mrb[1].mxu0 }
 0xb83   : >> { %v6532_v44 = vpop.f32.mrb[2].mxu0  ;;  %v3480_v3 = vmul.f32 0.35355338, %v3417_v20 }
 0xb84   : >> { %3500 = vmax.xlane.f32.xlu0 %v3482_v41  ;;  %v3420_v15 = vpop.f32.mrb[3].mxu0  ;;  %v13968_v58 = vmul.f32 0.35355338, %v6532_v44 }
 0xb85   : >> { %v13965_v11 = vmul.f32 0.35355338, %v3420_v15 }
 0xb87   : >> { %3498 = vmax.xlane.f32.xlu1 %v13965_v11 }
 0xb88   : >> { %3496 = vmax.xlane.f32.xlu0 %v3480_v3 }
 0xb89   : >> { %v6535_v60 = vpop.f32.mrb[4].mxu0 }
 0xb8a   : >> { %v13970_v24 = vmul.f32 0.35355338, %v6535_v60  ;;  %v3433_v61 = vpop.f32.mrb[5].mxu0 }
 0xb8b   : >> { %v6536_v7 = vpop.f32.mrb[6].mxu0  ;;  %v13974_v50 = vmul.f32 0.35355338, %v3433_v61 }
 0xb8c   : >> { %3502 = vmax.xlane.f32.xlu0 %v13968_v58  ;;  %3508 = vmax.xlane.f32.xlu1 %v13970_v24  ;;  %v3436_v57 = vpop.f32.mrb[7].mxu0  ;;  %v13976_v15 = vmul.f32 0.35355338, %v6536_v7 }
 0xb8d   : >> { %v13980_v44 = vmul.f32 0.35355338, %v3436_v57 }
 0xb90   : >> { %3504 = vmax.xlane.f32.xlu1 %v13974_v50  ;;  %3510 = vmax.xlane.f32.xlu0 %v13976_v15 }
 0xb91   : >> { %v6539_v20 = vpop.f32.mrb[8].mxu0 }
 0xb92   : >> { %v13982_v60 = vmul.f32 0.35355338, %v6539_v20  ;;  %v3449_v40 = vpop.f32.mrb[9].mxu0 }
 0xb93   : >> { %v6540_v12 = vpop.f32.mrb[10].mxu0  ;;  %v13986_v61 = vmul.f32 0.35355338, %v3449_v40 }
 0xb94   : >> { %3506 = vmax.xlane.f32.xlu0 %v13980_v44  ;;  %3516 = vmax.xlane.f32.xlu1 %v13982_v60  ;;  %v3452_v6 = vpop.f32.mrb[11].mxu0  ;;  %v13988_v7 = vmul.f32 0.35355338, %v6540_v12 }
 0xb95   : >> { %v13992_v20 = vmul.f32 0.35355338, %v3452_v6  ;;  %v3284_v6 = vld [vmem:[%s13927_s12 + $0x30] sm:$0xff] }
 0xb97   : >> { %16316 = vst [vmem:[#allocation154_spill] sm:$0xff] %v13992_v20 }
 0xb98   : >> { %3512 = vmax.xlane.f32.xlu1 %v13986_v61  ;;  %3518 = vmax.xlane.f32.xlu0 %v13988_v7 }
 0xb99   : >> { %v6543_v57 = vpop.f32.mrb[12].mxu0 }
 0xb9a   : >> { %v13994_v56 = vmul.f32 0.35355338, %v6543_v57  ;;  %v3465_v21 = vpop.f32.mrb[13].mxu0  ;;  %v3285_v57 = vld [vmem:[%s13927_s12 + $0x38] sm:$0xff] }
 0xb9b   : >> { %v6544_v9 = vpop.f32.mrb[14].mxu0  ;;  %v13998_v12 = vmul.f32 0.35355338, %v3465_v21 }
 0xb9c   : >> { %3514 = vmax.xlane.f32.xlu0 %v13992_v20  ;;  %3524 = vmax.xlane.f32.xlu1 %v13994_v56  ;;  %v3468_v40 = vpop.f32.mrb[15].mxu0  ;;  %v14000_v8 = vmul.f32 0.35355338, %v6544_v9 }
 0xb9d   : >> { %v14004_v62 = vmul.f32 0.35355338, %v3468_v40 }
 0xba0   : >> { %3520 = vmax.xlane.f32.xlu1 %v13998_v12  ;;  %3526 = vmax.xlane.f32.xlu0 %v14000_v8 }
 0xba4   : >> { %3522 = vmax.xlane.f32.xlu0 %v14004_v62 }
 0xbb1   : >> { %3748 = vrot.lane.b32.xlu1 %v3284_v6, %s11084_s14 }
 0xbba   : >> { %3750 = vrot.lane.b32.xlu0 %v3285_v57, %s11084_s14 }
 0xc11   : >> { %v3501_v31 = vpop.xlane.xlu0 %3500 }
 0xc12   : >> { %v14012_v21 = vmax.f32 %v10860_v38, %v3501_v31  }
 0xc14   : >> { %16317 = vst [vmem:[#allocation96_spill] sm:$0xff] %v14012_v21  ;;  %v16318_v20 = vmov %v14012_v21  ;;  %v3499_v1 = vpop.xlane.xlu1 %3498 }
 0xc15   : >> { %v3594_v39 = vsub.f32 %v3482_v41, %v16318_v20  ;;  %v14018_v40 = vmax.f32 %v10864_v37, %v3499_v1   ;;  %v3497_v27 = vpop.xlane.xlu0 %3496 }
 0xc16   : >> { %v14021_v6 = vmax.f32 %v10868_v17, %v3497_v27  }
 0xc17   : >> { %16319 = vst [vmem:[#allocation98_spill] sm:$0xff] %v14018_v40  ;;  %v3612_v59 = vmul.f32 1.442695, %v3594_v39  ;;  %v3593_v31 = vsub.f32 %v13965_v11, %v14018_v40 }
 0xc18   : >> { %16320 = vst [vmem:[#allocation99_spill] sm:$0xff] %v14021_v6  ;;  %v3592_v41 = vsub.f32 %v3480_v3, %v14021_v6 }
 0xc19   : >> { %8730 = vpow2.f32 %v3612_v59  ;;  %v3509_v9 = vpop.xlane.xlu1 %3508  ;;  %v3503_v1 = vpop.xlane.xlu0 %3502  ;;  %v3610_v46 = vmul.f32 1.442695, %v3593_v31 }
 0xc1a   : >> { %v3608_v36 = vmul.f32 1.442695, %v3592_v41  ;;  %v14031_v39 = vmax.f32 %v10844_v33, %v3509_v9   ;;  %v14034_v27 = vmax.f32 %v10856_v32, %v3503_v1  }
 0xc1c   : >> { %16321 = vst [vmem:[#allocation94_spill] sm:$0xff] %v14031_v39  ;;  %v16322_v20 = vmov %v14031_v39  ;;  %v16323_v38 = vmov %v14034_v27  ;;  %8732 = vpow2.f32 %v3608_v36 }
 0xc1d   : >> { %v3598_v11 = vsub.f32 %v13970_v24, %v16322_v20  ;;  %v3595_v59 = vsub.f32 %v13968_v58, %v16323_v38  ;;  %v3505_v41 = vpop.xlane.xlu1 %3504  ;;  %v3511_v21 = vpop.xlane.xlu0 %3510  ;;  %8734 = vpow2.f32 %v3610_v46 }
 0xc1e   : >> { %v14045_v1 = vmax.f32 %v10852_v55, %v3505_v41   ;;  %v14048_v31 = vmax.f32 %v10840_v16, %v3511_v21  }
 0xc1f   : >> { %v3620_v9 = vmul.f32 1.442695, %v3598_v11  ;;  %v3614_v39 = vmul.f32 1.442695, %v3595_v59 }
 0xc20   : >> { %16324 = vst [vmem:[#allocation100_spill] sm:$0xff] %v14045_v1  ;;  %v16325_v40 = vmov %v14045_v1  ;;  %16326 = vst [vmem:[#allocation102_spill] sm:$0xff] %v14048_v31  ;;  %v16327_v57 = vmov %v14048_v31 }
 0xc21   : >> { %8736 = vpow2.f32 %v3620_v9  ;;  %v3596_v27 = vsub.f32 %v13974_v50, %v16325_v40  ;;  %v3517_v36 = vpop.xlane.xlu1 %3516  ;;  %v3507_v11 = vpop.xlane.xlu0 %3506  ;;  %v3599_v9 = vsub.f32 %v13976_v15, %v16327_v57 }
 0xc22   : >> { %v14057_v59 = vmax.f32 %v10828_v0, %v3517_v36   ;;  %v14060_v1 = vmax.f32 %v10848_v4, %v3507_v11   ;;  %8738 = vpow2.f32 %v3614_v39 }
 0xc23   : >> { %v14062_v21 = vpop.eup %8730  ;;  %v3616_v46 = vmul.f32 1.442695, %v3596_v27 }
 0xc24   : >> { %16328 = vst [vmem:[#allocation124_spill] sm:$0xff] %v14057_v59  ;;  %v16329_v41 = vmov %v14057_v59  ;;  %16330 = vst [vmem:[#allocation155_spill] sm:$0xff] %v14060_v1  ;;  %v16331_v3 = vmov %v14060_v1  ;;  %3660 = vadd.xlane.f32.xlu1 %v14062_v21  ;;  %v3622_v1 = vmul.f32 1.442695, %v3599_v9 }
 0xc25   : >> { %v3602_v31 = vsub.f32 %v13982_v60, %v16329_v41  ;;  %v3597_v11 = vsub.f32 %v13980_v44, %v16331_v3  ;;  %v3513_v59 = vpop.xlane.xlu1 %3512  ;;  %v3519_v39 = vpop.xlane.xlu0 %3518  ;;  %8740 = vpow2.f32 %v3616_v46 }
 0xc26   : >> { %v14076_v15 = vmax.f32 %v10836_v14, %v3513_v59   ;;  %v14079_v58 = vmax.f32 %v10824_v34, %v3519_v39   ;;  %v8733_v60 = vpop.eup %8732 }
 0xc27   : >> { %v3628_v27 = vmul.f32 1.442695, %v3602_v31  ;;  %v3618_v50 = vmul.f32 1.442695, %v3597_v11  ;;  %v8735_v31 = vpop.eup %8734 }
 0xc28   : >> { %16332 = vst [vmem:[#allocation97_spill] sm:$0xff] %v14076_v15  ;;  %16333 = vst [vmem:[#allocation101_spill] sm:$0xff] %v14079_v58  ;;  %v3600_v24 = vsub.f32 %v13986_v61, %v14076_v15  ;;  %3656 = vadd.xlane.f32.xlu1 %v8733_v60  ;;  %v3603_v61 = vsub.f32 %v13988_v7, %v14079_v58 }
 0xc29   : >> { %v3525_v46 = vpop.xlane.xlu1 %3524  ;;  %v3515_v9 = vpop.xlane.xlu0 %3514  ;;  %8742 = vpow2.f32 %v3628_v27 }
 0xc2a   : >> { %v14088_v59 = vmax.f32 %v10812_v23, %v3525_v46   ;;  %v14091_v39 = vmax.f32 %v10832_v19, %v3515_v9   ;;  %8744 = vpow2.f32 %v3622_v1  ;;  %v3624_v36 = vmul.f32 1.442695, %v3600_v24  ;;  %v16338_v46 = vld [vmem:[#allocation154_spill] sm:$0xff] }
 0xc2b   : >> { %v14093_v18 = vpop.eup %8736  ;;  %8746 = vpow2.f32 %v3618_v50  ;;  %v3720_v9 = vpack.c.bf16 %v8735_v31, %v8733_v60  ;;  %v3630_v24 = vmul.f32 1.442695, %v3603_v61 }
 0xc2c   : >> { %16334 = vst [vmem:[#allocation123_spill] sm:$0xff] %v14088_v59  ;;  %v16335_v3 = vmov %v14088_v59  ;;  %16336 = vst [vmem:[#allocation156_spill] sm:$0xff] %v14091_v39  ;;  %v16337_v11 = vmov %v14091_v39  ;;  %v8739_v47 = vpop.eup %8738  ;;  %3668 = vadd.xlane.f32.xlu1 %v14093_v18  ;;  %8748 = vpow2.f32 %v3624_v36 }
 0xc2d   : >> { %v3601_v59 = vsub.f32 %v16338_v46, %v16337_v11  ;;  %v3521_v39 = vpop.xlane.xlu1 %3520  ;;  %v3527_v1 = vpop.xlane.xlu0 %3526  ;;  %3662 = vadd.xlane.f32.xlu0 %v8739_v47  ;;  %6561 = vmatprep.mubr.bf16.mxu1 %v3720_v9  ;;  %v3606_v36 = vsub.f32 %v13994_v56, %v16335_v3  ;;  %8750 = vpow2.f32 %v3630_v24 }
 0xc2e   : >> { %v14105_v7 = vmax.f32 %v10820_v43, %v3521_v39   ;;  %v14108_v50 = vmax.f32 %v10808_v51, %v3527_v1  }
 0xc2f   : >> { %v8741_v44 = vpop.eup %8740  ;;  %v3626_v27 = vmul.f32 1.442695, %v3601_v59  ;;  %v3636_v46 = vmul.f32 1.442695, %v3606_v36 }
 0xc30   : >> { %16339 = vst [vmem:[#allocation126_spill] sm:$0xff] %v14105_v7  ;;  %16340 = vst [vmem:[#allocation125_spill] sm:$0xff] %v14108_v50  ;;  %v3604_v60 = vsub.f32 %v13998_v12, %v14105_v7  ;;  %3664 = vadd.xlane.f32.xlu1 %v8741_v44  ;;  %v3607_v24 = vsub.f32 %v14000_v8, %v14108_v50 }
 0xc31   : >> { %v3749_v61 = vpop.permute.xlu1 %3748  ;;  %v3523_v9 = vpop.xlane.xlu0 %3522  ;;  %3658 = vadd.xlane.f32.xlu0 %v8735_v31  ;;  %8752 = vpow2.f32 %v3626_v27 }
 0xc32   : >> { %v3632_v48 = vmul.f32 1.442695, %v3604_v60  ;;  %v14119_v1 = vmax.f32 %v10816_v29, %v3523_v9   ;;  %6557 = vmatprep.subr.bf16.mxu1 %v3749_v61 }
 0xc33   : >> { %6558 = vmatpush3.bf16.msra.mxu1 %v3749_v61  ;;  %v8743_v59 = vpop.eup %8742  ;;  %v3721_v61 = vpack.c.bf16 %v8739_v47, %v14062_v21 }
 0xc34   : >> { %16341 = vst [vmem:[#allocation127_spill] sm:$0xff] %v14119_v1  ;;  %v16342_v11 = vmov %v14119_v1  ;;  %v8745_v39 = vpop.eup %8744  ;;  %3676 = vadd.xlane.f32.xlu1 %v8743_v59  ;;  %8754 = vpow2.f32 %v3632_v48 }
 0xc35   : >> { %v3605_v56 = vsub.f32 %v14004_v62, %v16342_v11  ;;  %v3751_v54 = vpop.permute.xlu0 %3750  ;;  %v8747_v60 = vpop.eup %8746  ;;  %3670 = vadd.xlane.f32.xlu0 %v8745_v39  ;;  %8756 = vpow2.f32 %v3636_v46  ;;  %v3638_v62 = vmul.f32 1.442695, %v3607_v24  ;;  %v16344_v24 = vld [vmem:[#allocation96_spill] sm:$0xff] }
 0xc36   : >> { %6559 = vmatprep.subr.bf16.mxu1 %v3751_v54  ;;  %v8749_v27 = vpop.eup %8748  ;;  %v3722_v9 = vpack.c.bf16 %v8747_v60, %v8741_v44 }
 0xc37   : >> { %v3634_v31 = vmul.f32 1.442695, %v3605_v56  ;;  %6560 = vmatpush3.bf16.msra.mxu1 %v3751_v54  ;;  %v8751_v36 = vpop.eup %8750  ;;  %v3723_v56 = vpack.c.bf16 %v8745_v39, %v14093_v18 }
 0xc38   : >> { %3672 = vadd.xlane.f32.xlu1 %v8749_v27  ;;  %v3725_v21 = vpack.c.bf16 %v8751_v36, %v8743_v59  ;;  %v16347_v59 = vsub.f32 %v10844_v33, %v16322_v20  ;;  %v16352_v33 = vsub.f32 %v10828_v0, %v16329_v41  ;;  %v16356_v0 = vld [vmem:[#allocation155_spill] sm:$0xff] }
 0xc39   : >> { %8758 = vpow2.f32 %v3634_v31  ;;  %3666 = vadd.xlane.f32.xlu0 %v8747_v60  ;;  %v16343_v31 = vld [vmem:[#allocation153_spill] sm:$0xff] }
 0xc3a   : >> { %6562 = vmatmul.mubr.bf16.vlgmr.msra.gmra.mrb[0].mxu1 %v3721_v61  ;;  %8760 = vpow2.f32 %v3638_v62  ;;  %v16345_v18 = vsub.f32 %v16343_v31, %v16344_v24  ;;  %v16348_v62 = vsub.f32 %v10856_v32, %v16323_v38 }
 0xc3b   : >> { %6565 = vmatprep.mubr.bf16.mxu1 %v3722_v9  ;;  %v8753_v48 = vpop.eup %8752  ;;  %v3572_v9 = vmul.f32 1.442695, %v16347_v59 }
 0xc3c   : >> { %v3724_v8 = vpack.c.bf16 %v8753_v48, %v8749_v27  ;;  %v3564_v39 = vmul.f32 1.442695, %v16345_v18  ;;  %v16346_v27 = vsub.f32 %v10868_v17, %v14021_v6  ;;  %v16358_v18 = vsub.f32 %v10848_v4, %v16356_v0 }
 0xc3d   : >> { %3678 = vadd.xlane.f32.xlu0 %v8751_v36  ;;  %v3566_v36 = vmul.f32 1.442695, %v16348_v62 }
 0xc3e   : >> { %v8755_v1 = vpop.eup %8754  ;;  %8762 = vpow2.f32 %v3564_v39  ;;  %v3560_v61 = vmul.f32 1.442695, %v16346_v27  ;;  %v3570_v39 = vmul.f32 1.442695, %v16358_v18 }
 0xc3f   : >> { %3680 = vadd.xlane.f32.xlu1 %v8755_v1  ;;  %v8757_v47 = vpop.eup %8756 }
 0xc40   : >> { %8764 = vpow2.f32 %v3560_v61 }
 0xc41   : >> { %3674 = vadd.xlane.f32.xlu0 %v8753_v48  ;;  %8766 = vpow2.f32 %v3572_v9  ;;  %v16349_v48 = vsub.f32 %v10852_v55, %v16325_v40  ;;  %v16353_v55 = vsub.f32 %v10840_v16, %v16327_v57 }
 0xc42   : >> { %6566 = vmatmul.mubr.bf16.gmra.mrb[4].mxu1 %v3723_v56  ;;  %8768 = vpow2.f32 %v3566_v36 }
 0xc43   : >> { %6569 = vmatprep.mubr.bf16.mxu1 %v3724_v8  ;;  %v8759_v54 = vpop.eup %8758  ;;  %3684 = vadd.xlane.f32.xlu1 %v8757_v47  ;;  %v16350_v8 = vld [vmem:[#allocation98_spill] sm:$0xff] }
 0xc44   : >> { %v8761_v44 = vpop.eup %8760  ;;  %v3726_v46 = vpack.c.bf16 %v8759_v54, %v8755_v1  ;;  %v3568_v1 = vmul.f32 1.442695, %v16349_v48  ;;  %v16351_v17 = vsub.f32 %v10864_v37, %v16350_v8  ;;  %v16355_v37 = vsub.f32 %v10836_v14, %v14076_v15 }
 0xc45   : >> { %3682 = vadd.xlane.f32.xlu0 %v8759_v54  ;;  %v3727_v60 = vpack.c.bf16 %v8761_v44, %v8757_v47  ;;  %v3580_v54 = vmul.f32 1.442695, %v16352_v33 }
 0xc46   : >> { %v3562_v47 = vmul.f32 1.442695, %v16351_v17  ;;  %8770 = vpow2.f32 %v3568_v1  ;;  %v3576_v31 = vmul.f32 1.442695, %v16355_v37  ;;  %v16357_v17 = vmov %v16356_v0 }
 0xc48   : >> { %v14144_v56 = vpop.eup %8762  ;;  %8772 = vpow2.f32 %v3562_v47 }
 0xc49   : >> { %3686 = vadd.xlane.f32.xlu0 %v8761_v44  ;;  %v3642_v32 = vmul.f32 %v10796_v45, %v14144_v56  ;;  %8774 = vpow2.f32 %v3580_v54 }
 0xc4a   : >> { %6570 = vmatmul.mubr.bf16.gmra.mrb[8].mxu1 %v3725_v21  ;;  %v3574_v21 = vmul.f32 1.442695, %v16353_v55 }
 0xc4b   : >> { %6573 = vmatprep.mubr.bf16.mxu1 %v3726_v46 }
 0xc4c   : >> { %8776 = vpow2.f32 %v3574_v21 }
 0xc4d   : >> { %8778 = vpow2.f32 %v3576_v31 }
 0xc4e   : >> { %8780 = vpow2.f32 %v3570_v39 }
 0xc52   : >> { %6574 = vmatmul.mubr.bf16.gmra.mrb[12].mxu1 %v3727_v60  ;;  %v14157_v60 = vpop.eup %8764 }
 0xc53   : >> { %v3640_v27 = vmul.f32 %v10804_v42, %v14157_v60  ;;  %v14169_v16 = vpop.eup %8766 }
 0xc54   : >> { %v14171_v9 = vpop.eup %8768  ;;  %v3646_v4 = vmul.f32 %v10780_v35, %v14169_v16 }
 0xc55   : >> { %v14180_v62 = vpop.eup %8770  ;;  %v3643_v36 = vmul.f32 %v10792_v25, %v14171_v9 }
 0xc56   : >> { %v14184_v1 = vpop.eup %8772  ;;  %v3644_v55 = vmul.f32 %v10788_v26, %v14180_v62 }
 0xc57   : >> { %v14198_v21 = vpop.eup %8774 }
 0xc58   : >> { %v14202_v37 = vpop.eup %8776  ;;  %v3650_v18 = vmul.f32 %v10764_v22, %v14198_v21 }
 0xc59   : >> { %v14216_v39 = vpop.eup %8778 }
 0xcb1   : >> { %v3661_v46 = vpop.xlane.xlu1 %3660 }
 0xcb2   : >> { %v14159_v45 = vadd.f32 %v3661_v46, %v3642_v32   ;;  %v3641_v46 = vmul.f32 %v10800_v63, %v14184_v1 }
 0xcb4   : >> { %16354 = vst [vmem:[#allocation128_spill] sm:$0xff] %v14159_v45  ;;  %v16360_v45 = vsub.f32 %v10824_v34, %v14079_v58  ;;  %v16364_v34 = vld [vmem:[#allocation156_spill] sm:$0xff] }
 0xcb5   : >> { %v3657_v59 = vpop.xlane.xlu1 %3656  ;;  %v16365_v33 = vmov %v16364_v34  ;;  %v16366_v54 = vsub.f32 %v10832_v19, %v16364_v34  ;;  %v16370_v19 = vsub.f32 %v10816_v29, %v16342_v11 }
 0xcb6   : >> { %v14173_v42 = vadd.f32 %v3657_v59, %v3640_v27   ;;  %v3582_v14 = vmul.f32 1.442695, %v16360_v45  ;;  %v8781_v59 = vpop.eup %8780  ;;  %v3648_v45 = vmul.f32 %v10772_v10, %v14216_v39 }
 0xcb7   : >> { %v3578_v32 = vmul.f32 1.442695, %v16366_v54  ;;  %v3586_v0 = vmul.f32 1.442695, %v16370_v19  ;;  %v16383_v19 = vld [vmem:[#allocation152_spill] sm:$0xff] }
 0xcb8   : >> { %16359 = vst [vmem:[#allocation130_spill] sm:$0xff] %v14173_v42  ;;  %v16362_v42 = vsub.f32 %v10820_v43, %v14105_v7  ;;  %8782 = vpow2.f32 %v3582_v14  ;;  %v3645_v14 = vmul.f32 %v10784_v13, %v8781_v59 }
 0xcb9   : >> { %v3669_v48 = vpop.xlane.xlu1 %3668 }
 0xcba   : >> { %v3663_v8 = vpop.xlane.xlu0 %3662  ;;  %v14186_v35 = vadd.f32 %v3669_v48, %v3646_v4   ;;  %v3584_v47 = vmul.f32 1.442695, %v16362_v42 }
 0xcbb   : >> { %v14191_v25 = vadd.f32 %v3663_v8, %v3643_v36  }
 0xcbc   : >> { %16361 = vst [vmem:[#allocation132_spill] sm:$0xff] %v14186_v35  ;;  %8784 = vpow2.f32 %v3584_v47 }
 0xcbd   : >> { %16363 = vst [vmem:[#allocation129_spill] sm:$0xff] %v14191_v25  ;;  %v3665_v35 = vpop.xlane.xlu1 %3664  ;;  %v16368_v25 = vsub.f32 %v10812_v23, %v16335_v3  ;;  %8786 = vpow2.f32 %v3578_v32 }
 0xcbe   : >> { %v3659_v43 = vpop.xlane.xlu0 %3658  ;;  %v14204_v26 = vadd.f32 %v3665_v35, %v3644_v55  }
 0xcbf   : >> { %v3588_v31 = vmul.f32 1.442695, %v16368_v25  ;;  %v14209_v63 = vadd.f32 %v3659_v43, %v3641_v46  }
 0xcc0   : >> { %16367 = vst [vmem:[#allocation131_spill] sm:$0xff] %v14204_v26  ;;  %v3647_v26 = vmul.f32 %v10776_v2, %v14202_v37 }
 0xcc1   : >> { %16369 = vst [vmem:[#allocation134_spill] sm:$0xff] %v14209_v63  ;;  %v3677_v27 = vpop.xlane.xlu1 %3676  ;;  %8788 = vpow2.f32 %v3588_v31  ;;  %v16373_v63 = vsub.f32 %v10808_v51, %v14108_v50 }
 0xcc2   : >> { %v3671_v23 = vpop.xlane.xlu0 %3670  ;;  %v14220_v22 = vadd.f32 %v3677_v27, %v3650_v18   ;;  %8790 = vpow2.f32 %v3586_v0  ;;  %v8783_v36 = vpop.eup %8782  ;;  %v3704_v0 = vmul.f32 %v16383_v19, %v14157_v60  ;;  %v16387_v27 = vld [vmem:[#allocation151_spill] sm:$0xff]  ;;  %v16412_v19 = vld [vmem:[#allocation140_spill] sm:$0xff] }
 0xcc3   : >> { %v14222_v2 = vadd.f32 %v3671_v23, %v3647_v26   ;;  %v3590_v29 = vmul.f32 1.442695, %v16373_v63  ;;  %v16385_v26 = vld [vmem:[#allocation149_spill] sm:$0xff]  ;;  %v3705_v23 = vmul.f32 %v16387_v27, %v14184_v1 }
 0xcc4   : >> { %16371 = vst [vmem:[#allocation136_spill] sm:$0xff] %v14220_v22 }
 0xcc5   : >> { %16372 = vst [vmem:[#allocation133_spill] sm:$0xff] %v14222_v2  ;;  %v3673_v4 = vpop.xlane.xlu1 %3672  ;;  %8792 = vpow2.f32 %v3590_v29  ;;  %v3651_v2 = vmul.f32 %v10760_v53, %v8783_v36 }
 0xcc6   : >> { %v3667_v48 = vpop.xlane.xlu0 %3666  ;;  %v14230_v10 = vadd.f32 %v3673_v4, %v3648_v45   ;;  %v8785_v22 = vpop.eup %8784  ;;  %v16391_v45 = vld [vmem:[#allocation148_spill] sm:$0xff]  ;;  %v16393_v4 = vld [vmem:[#allocation145_spill] sm:$0xff] }
 0xcc7   : >> { %v14232_v13 = vadd.f32 %v3667_v48, %v3645_v14   ;;  %v8787_v8 = vpop.eup %8786  ;;  %v3652_v42 = vmul.f32 %v10756_v28, %v8785_v22  ;;  %v3708_v14 = vmul.f32 %v16391_v45, %v14180_v62  ;;  %v16455_v45 = vld [vmem:[#allocation128_spill] sm:$0xff] }
 0xcc8   : >> { %16374 = vst [vmem:[#allocation135_spill] sm:$0xff] %v14230_v10  ;;  %v3649_v34 = vmul.f32 %v10768_v30, %v8787_v8 }
 0xcc9   : >> { %16375 = vst [vmem:[#allocation157_spill] sm:$0xff] %v14232_v13 }
 0xcca   : >> { %v3679_v51 = vpop.xlane.xlu0 %3678 }
 0xccb   : >> { %v14235_v53 = vadd.f32 %v3679_v51, %v3651_v2   ;;  %v8789_v47 = vpop.eup %8788  ;;  %v16395_v51 = vld [vmem:[#allocation147_spill] sm:$0xff] }
 0xccc   : >> { %v3681_v54 = vpop.xlane.xlu1 %3680  ;;  %v8791_v32 = vpop.eup %8790  ;;  %v3654_v10 = vmul.f32 %v10748_v49, %v8789_v47 }
 0xccd   : >> { %16376 = vst [vmem:[#allocation158_spill] sm:$0xff] %v14235_v53  ;;  %v14239_v28 = vadd.f32 %v3681_v54, %v3652_v42   ;;  %v3653_v13 = vmul.f32 %v10752_v5, %v8791_v32  ;;  %v3709_v42 = vmul.f32 %v16395_v51, %v8781_v59  ;;  %v16458_v51 = vld [vmem:[#allocation125_spill] sm:$0xff] }
 0xcce   : >> { %v3675_v55 = vpop.xlane.xlu0 %3674 }
 0xccf   : >> { %16377 = vst [vmem:[#allocation159_spill] sm:$0xff] %v14239_v28  ;;  %v14241_v30 = vadd.f32 %v3675_v55, %v3649_v34   ;;  %v8793_v35 = vpop.eup %8792  ;;  %v16382_v28 = vld [vmem:[#allocation150_spill] sm:$0xff]  ;;  %v16400_v55 = vld [vmem:[#allocation144_spill] sm:$0xff] }
 0xcd0   : >> { %v3685_v46 = vpop.xlane.xlu1 %3684  ;;  %v3655_v53 = vmul.f32 %v10744_v52, %v8793_v35  ;;  %v3706_v31 = vmul.f32 %v16382_v28, %v14144_v56  ;;  %v16390_v56 = vld [vmem:[#allocation146_spill] sm:$0xff] }
 0xcd1   : >> { %16378 = vst [vmem:[#allocation160_spill] sm:$0xff] %v14241_v30  ;;  %v14245_v49 = vadd.f32 %v3685_v46, %v3654_v10   ;;  %v3710_v60 = vmul.f32 %v16390_v56, %v14169_v16  ;;  %v16399_v16 = vld [vmem:[#allocation142_spill] sm:$0xff]  ;;  %v3712_v10 = vmul.f32 %v16400_v55, %v14216_v39  ;;  %v16469_v55 = vld [vmem:[#allocation100_spill] sm:$0xff] }
 0xcd2   : >> { %v3683_v43 = vpop.xlane.xlu0 %3682 }
 0xcd3   : >> { %16379 = vst [vmem:[#allocation161_spill] sm:$0xff] %v14245_v49  ;;  %v14247_v5 = vadd.f32 %v3683_v43, %v3653_v13   ;;  %v3707_v49 = vmul.f32 %v16385_v26, %v14171_v9  ;;  %v16403_v13 = vld [vmem:[#allocation141_spill] sm:$0xff] }
 0xcd4   : >> { %v16415_v26 = vld [vmem:[#allocation137_spill] sm:$0xff] }
 0xcd5   : >> { %16380 = vst [vmem:[#allocation162_spill] sm:$0xff] %v14247_v5 }
 0xcd6   : >> { %v3687_v25 = vpop.xlane.xlu0 %3686 }
 0xcd7   : >> { %v14250_v52 = vadd.f32 %v3687_v25, %v3655_v53   ;;  %v16406_v53 = vld [vmem:[#allocation143_spill] sm:$0xff] }
 0xcd9   : >> { %16381 = vst [vmem:[#allocation163_spill] sm:$0xff] %v14250_v52 }
 0xd0d   : >> { %v6563_v30 = vpop.f32.mrb[0].mxu1 }
 0xd0e   : >> { %v14256_v54 = vadd.f32 %v6563_v30, %v3706_v31   ;;  %v3794_v18 = vpop.f32.mrb[1].mxu1 }
 0xd0f   : >> { %v14260_v48 = vadd.f32 %v3794_v18, %v3704_v0   ;;  %v6564_v5 = vpop.f32.mrb[2].mxu1  ;;  %v3716_v0 = vmul.f32 %v16412_v19, %v8785_v22  ;;  %v16447_v22 = vld [vmem:[#allocation136_spill] sm:$0xff]  ;;  %v16464_v19 = vmov %v16365_v33  ;;  %v16467_v33 = vld [vmem:[#allocation94_spill] sm:$0xff] }
 0xd10   : >> { %v16384_v40 = vmov %v14256_v54  ;;  %v14264_v52 = vadd.f32 %v6564_v5, %v3707_v49   ;;  %v3797_v63 = vpop.f32.mrb[3].mxu1  ;;  %v3714_v54 = vmul.f32 %v16399_v16, %v14198_v21  ;;  %v16411_v21 = vld [vmem:[#allocation138_spill] sm:$0xff]  ;;  %v16418_v49 = vld [vmem:[#allocation139_spill] sm:$0xff]  ;;  %v14544_v19 = vmov (%p14312_p8), 0.0  }
 0xd11   : >> { %v16386_v61 = vmov %v14260_v48  ;;  %v14266_v18 = vadd.f32 %v3797_v63, %v3705_v23   ;;  %v3711_v48 = vmul.f32 %v16393_v4, %v14202_v37  ;;  %v3718_v28 = vmul.f32 %v16411_v21, %v8789_v47  ;;  %v16456_v63 = vld [vmem:[#allocation134_spill] sm:$0xff]  ;;  %v16459_v23 = vld [vmem:[#allocation123_spill] sm:$0xff] }
 0xd12   : >> { %v16388_v44 = vmov %v14264_v52  ;;  %v3717_v5 = vmul.f32 %v16418_v49, %v8791_v32  ;;  %v16442_v52 = vld [vmem:[#allocation163_spill] sm:$0xff]  ;;  %v16443_v49 = vld [vmem:[#allocation161_spill] sm:$0xff]  ;;  %v16466_v16 = vld [vmem:[#allocation102_spill] sm:$0xff]  ;;  %v16468_v4 = vmov %v16357_v17  ;;  %v16470_v32 = vmov %v16323_v38 }
 0xd13   : >> { %v16389_v24 = vmov %v14266_v18  ;;  %v16438_v47 = vmov %v16388_v44  ;;  %v16471_v38 = vld [vmem:[#allocation96_spill] sm:$0xff]  ;;  %v16473_v17 = vld [vmem:[#allocation99_spill] sm:$0xff]  ;;  %v16486_v33 = vld [vmem:[#allocation158_spill] sm:$0xff] (%p14312_p8)  ;;  %v14556_v49 = vmov (%p14312_p8), 0.0  }
 0xd14   : > { %v16482_v17 = vld [vmem:[#allocation133_spill] sm:$0xff] (%p14312_p8) }
 0xd15   : >> { %v6567_v29 = vpop.f32.mrb[4].mxu1  ;;  %v16492_v47 = vld [vmem:[#allocation161_spill] sm:$0xff] (%p14312_p8) }
 0xd16   : >> { %v14272_v46 = vadd.f32 %v6567_v29, %v3710_v60   ;;  %v3810_v9 = vpop.f32.mrb[5].mxu1  ;;  %v16460_v29 = vld [vmem:[#allocation127_spill] sm:$0xff] }
 0xd17   : >> { %v14276_v2 = vadd.f32 %v3810_v9, %v3708_v14   ;;  %v6568_v1 = vpop.f32.mrb[6].mxu1  ;;  %v16465_v14 = vld [vmem:[#allocation97_spill] sm:$0xff] }
 0xd18   : >> { %v16392_v41 = vmov %v14272_v46  ;;  %v14279_v59 = vadd.f32 %v6568_v1, %v3711_v48   ;;  %v3813_v34 = vpop.f32.mrb[7].mxu1  ;;  %v3715_v46 = vmul.f32 %v16403_v13, %v8783_v36  ;;  %v3719_v36 = vmul.f32 %v16415_v26, %v8793_v35  ;;  %v16451_v35 = vld [vmem:[#allocation132_spill] sm:$0xff]  ;;  %v16452_v13 = vld [vmem:[#allocation157_spill] sm:$0xff]  ;;  %v16453_v26 = vld [vmem:[#allocation131_spill] sm:$0xff] }
 0xd19   : >> { %v16394_v6 = vmov %v14276_v2  ;;  %v14281_v27 = vadd.f32 %v3813_v34, %v3709_v42   ;;  %v16441_v48 = vmov %v16386_v61  ;;  %v16450_v2 = vld [vmem:[#allocation133_spill] sm:$0xff]  ;;  %v16457_v42 = vld [vmem:[#allocation130_spill] sm:$0xff]  ;;  %v16494_v35 = vld [vmem:[#allocation163_spill] sm:$0xff] (%p14312_p8)  ;;  %v14550_v26 = vmov (%p14312_p8), 0.0  }
 0xd1a   : >> { %16396 = vst [vmem:[#allocation164_spill] sm:$0xff] %v14279_v59  ;;  %v16397_v57 = vmov %v14279_v59  ;;  %v3713_v59 = vmul.f32 %v16406_v53, %v8787_v8  ;;  %v16446_v53 = vld [vmem:[#allocation158_spill] sm:$0xff]  ;;  %v16462_v34 = vld [vmem:[#allocation101_spill] sm:$0xff] }
 0xd1b   : >> { %v16398_v15 = vmov %v14281_v27  ;;  %v14532_v53 = vmov (%p14312_p8), 0.0  }
 0xd1c   : >> { %v16436_v27 = vmov %v16398_v15 }
 0xd1d   : >> { %v6571_v62 = vpop.f32.mrb[8].mxu1 }
 0xd1e   : >> { %v14287_v1 = vadd.f32 %v6571_v62, %v3714_v54   ;;  %v3826_v37 = vpop.f32.mrb[9].mxu1  ;;  %v16439_v54 = vmov %v16384_v40 }
 0xd1f   : >> { %v14290_v39 = vadd.f32 %v3826_v37, %v3712_v10   ;;  %v6572_v43 = vpop.f32.mrb[10].mxu1  ;;  %v16449_v10 = vld [vmem:[#allocation135_spill] sm:$0xff]  ;;  %v16472_v37 = vld [vmem:[#allocation98_spill] sm:$0xff] }
 0xd20   : >> { %16401 = vst [vmem:[#allocation165_spill] sm:$0xff] %v14287_v1  ;;  %v14293_v31 = vadd.f32 %v6572_v43, %v3715_v46   ;;  %v3829_v25 = vpop.f32.mrb[11].mxu1  ;;  %v16430_v60 = vmov %v14287_v1  ;;  %v16435_v46 = vmov %v16392_v41  ;;  %v16461_v43 = vld [vmem:[#allocation126_spill] sm:$0xff] }
 0xd21   : >> { %16404 = vst [vmem:[#allocation166_spill] sm:$0xff] %v14290_v39  ;;  %v16405_v11 = vmov %v14290_v39  ;;  %v14295_v62 = vadd.f32 %v3829_v25, %v3713_v59   ;;  %v16431_v1 = vmov %v16430_v60  ;;  %v16434_v59 = vmov %v16397_v57  ;;  %v16454_v25 = vld [vmem:[#allocation129_spill] sm:$0xff]  ;;  %v16484_v57 = vld [vmem:[#allocation160_spill] sm:$0xff] (%p14312_p8) }
 0xd22   : >> { %16407 = vst [vmem:[#allocation167_spill] sm:$0xff] %v14293_v31  ;;  %v16408_v20 = vmov %v14293_v31  ;;  %v16480_v60 = vld [vmem:[#allocation157_spill] sm:$0xff] (%p14312_p8)  ;;  %v14530_v43 = vmov (%p14312_p8), 0.0   ;;  %v14534_v59 = vmov (%p14312_p8), 0.0   ;;  %v14536_v25 = vmov (%p14312_p8), 0.0  }
 0xd23   : >> { %16409 = vst [vmem:[#allocation168_spill] sm:$0xff] %v14295_v62  ;;  %v16410_v58 = vmov %v14295_v62 }
 0xd24   : >> { %v16432_v62 = vmov %v16410_v58  ;;  %v16481_v58 = vld [vmem:[#allocation132_spill] sm:$0xff] (%p14312_p8) }
 0xd25   : >> { %v6575_v30 = vpop.f32.mrb[12].mxu1 }
 0xd26   : >> { %v14299_v8 = vadd.f32 %v6575_v30, %v3718_v28   ;;  %v3842_v18 = vpop.f32.mrb[13].mxu1  ;;  %v16445_v28 = vld [vmem:[#allocation159_spill] sm:$0xff]  ;;  %v16448_v30 = vld [vmem:[#allocation160_spill] sm:$0xff]  ;;  %3213 = sbr.rel (!%p14312_p8) target bundleno = 2550 (0x9f6), region = 227 }
 0xd27   : >> { %v14302_v9 = vadd.f32 %v3842_v18, %v3716_v0   ;;  %v6576_v39 = vpop.f32.mrb[14].mxu1  ;;  %v16440_v18 = vmov %v16389_v24  ;;  %v16463_v0 = vld [vmem:[#allocation124_spill] sm:$0xff]  ;;  %v16504_v2 = vld [vmem:[#allocation165_spill] sm:$0xff] (%p14312_p8)  ;;  %v14540_v28 = vmov (%p14312_p8), 0.0   ;;  %v14542_v30 = vmov (%p14312_p8), 0.0  }
 0xd28   : >> { %16413 = vst [vmem:[#allocation169_spill] sm:$0xff] %v14299_v8  ;;  %v16414_v7 = vmov %v14299_v8  ;;  %v14305_v21 = vadd.f32 %v6576_v39, %v3719_v36   ;;  %v3845_v31 = vpop.f32.mrb[15].mxu1  ;;  %v16433_v39 = vmov %v16405_v11  ;;  %v16437_v36 = vmov %v16394_v6  ;;  %v16483_v11 = vld [vmem:[#allocation135_spill] sm:$0xff] (%p14312_p8)  ;;  %v16500_v45 = vld [vmem:[#allocation166_spill] sm:$0xff] (%p14312_p8) }
 0xd29   : >> { %16416 = vst [vmem:[#allocation170_spill] sm:$0xff] %v14302_v9  ;;  %v14307_v56 = vadd.f32 %v3845_v31, %v3717_v5   ;;  %v16425_v8 = vmov %v16414_v7  ;;  %v16427_v50 = vmov %v14302_v9  ;;  %v16429_v31 = vmov %v16408_v20  ;;  %v16444_v5 = vld [vmem:[#allocation162_spill] sm:$0xff]  ;;  %v16479_v20 = vld [vmem:[#allocation131_spill] sm:$0xff] (%p14312_p8) }
 0xd2a   : >> { %16419 = vst [vmem:[#allocation171_spill] sm:$0xff] %v14305_v21  ;;  %v16420_v3 = vmov %v14305_v21  ;;  %v16428_v9 = vmov %v16427_v50  ;;  %v16476_v7 = vld [vmem:[#allocation134_spill] sm:$0xff] (%p14312_p8)  ;;  %v16478_v50 = vld [vmem:[#allocation129_spill] sm:$0xff] (%p14312_p8)  ;;  %v16502_v4 = vld [vmem:[#allocation168_spill] sm:$0xff] (%p14312_p8)  ;;  %v14546_v0 = vmov (%p14312_p8), 0.0   ;;  %v14548_v18 = vmov (%p14312_p8), 0.0  }
 0xd2b   : >> { %16421 = vst [vmem:[#allocation172_spill] sm:$0xff] %v14307_v56  ;;  %v16422_v12 = vmov %v14307_v56  ;;  %v16424_v21 = vmov %v16420_v3  ;;  %v16475_v3 = vld [vmem:[#allocation130_spill] sm:$0xff] (%p14312_p8)  ;;  %v16506_v51 = vld [vmem:[#allocation167_spill] sm:$0xff] (%p14312_p8)  ;;  %v14552_v36 = vmov (%p14312_p8), 0.0   ;;  %v14554_v39 = vmov (%p14312_p8), 0.0  }
 0xd2c   : >> { %v16426_v56 = vmov %v16422_v12  ;;  %8794 = vrcp.f32 (%p14312_p8), %v16475_v3  ;;  %v16477_v12 = vld [vmem:[#allocation128_spill] sm:$0xff] (%p14312_p8)  ;;  %v16490_v8 = vld [vmem:[#allocation162_spill] sm:$0xff] (%p14312_p8)  ;;  %v14538_v21 = vmov (%p14312_p8), 0.0   ;;  %v14558_v5 = vmov (%p14312_p8), 0.0  }
 0xd2d   : > { %8796 = vrcp.f32 %v16476_v7  ;;  %v16485_v3 = vld [vmem:[#allocation136_spill] sm:$0xff]  ;;  %v14560_v31 = vmov 0.0  }
 0xd2e   : > { %8798 = vrcp.f32 %v16477_v12  ;;  %v16488_v12 = vld [vmem:[#allocation159_spill] sm:$0xff]  ;;  %v16498_v56 = vld [vmem:[#allocation164_spill] sm:$0xff] }
 0xd2f   : > { %8800 = vrcp.f32 %v16478_v50 }
 0xd30   : > { %8802 = vrcp.f32 %v16479_v20  ;;  %v16508_v34 = vld [vmem:[#allocation170_spill] sm:$0xff] }
 0xd31   : > { %8804 = vrcp.f32 %v16480_v60  ;;  %v16512_v60 = vld [vmem:[#allocation169_spill] sm:$0xff]  ;;  %v16514_v13 = vld [vmem:[#allocation171_spill] sm:$0xff] }
 0xd32   : > { %8806 = vrcp.f32 %v16481_v58  ;;  %v16510_v62 = vld [vmem:[#allocation172_spill] sm:$0xff] }
 0xd33   : > { %8808 = vrcp.f32 %v16482_v17  ;;  %v14562_v17 = vmov 0.0  }
 0xd34   : > { %8810 = vrcp.f32 %v16483_v11 }
 0xd35   : > { %8812 = vrcp.f32 %v16484_v57 }
 0xd36   : > { %v8795_v38 = vpop.eup %8794  ;;  %8814 = vrcp.f32 %v16485_v3  ;;  %v14566_v3 = vmov 0.0  }
 0xd37   : > { %v8797_v7 = vpop.eup %8796  ;;  %8816 = vrcp.f32 %v16486_v33  ;;  %v14479_v50 = vmul.f32 %v8795_v38, %v16386_v61  ;;  %v14564_v38 = vmov 0.0   ;;  %v14570_v33 = vmov 0.0  }
 0xd38   : > { %v8799_v20 = vpop.eup %8798  ;;  %8818 = vrcp.f32 %v16488_v12  ;;  %v14483_v58 = vmul.f32 %v8797_v7, %v16389_v24  ;;  %v14568_v7 = vmov 0.0   ;;  %v14574_v12 = vmov 0.0  }
 0xd39   : > { %16487 = vst [vmem:[#allocation125_spill] sm:$0xff] %v14479_v50  ;;  %v8801_v22 = vpop.eup %8800  ;;  %8820 = vrcp.f32 %v16490_v8  ;;  %v14487_v57 = vmul.f32 %v8799_v20, %v16384_v40  ;;  %v14572_v20 = vmov 0.0   ;;  %v14578_v8 = vmov 0.0  }
 0xd3a   : > { %16489 = vst [vmem:[#allocation123_spill] sm:$0xff] %v14483_v58  ;;  %v8803_v11 = vpop.eup %8802  ;;  %8822 = vrcp.f32 %v16492_v47  ;;  %v14491_v32 = vmul.f32 %v8801_v22, %v16388_v44  ;;  %v14576_v22 = vmov 0.0   ;;  %v14582_v47 = vmov 0.0  }
 0xd3b   : > { %16491 = vst [vmem:[#allocation127_spill] sm:$0xff] %v14487_v57  ;;  %v8805_v61 = vpop.eup %8804  ;;  %8824 = vrcp.f32 %v16494_v35  ;;  %v14495_v27 = vmul.f32 %v8803_v11, %v16394_v6  ;;  %v14580_v11 = vmov 0.0   ;;  %v14586_v35 = vmov 0.0  }
 0xd3c   : > { %16493 = vst [vmem:[#allocation126_spill] sm:$0xff] %v14491_v32  ;;  %v8807_v24 = vpop.eup %8806  ;;  %v14498_v23 = vmul.f32 %v8805_v61, %v16398_v15  ;;  %v14584_v61 = vmov 0.0  }
 0xd3d   : > { %16495 = vst [vmem:[#allocation101_spill] sm:$0xff] %v14495_v27  ;;  %v8809_v52 = vpop.eup %8808  ;;  %v14501_v40 = vmul.f32 %v8807_v24, %v16392_v41  ;;  %v14588_v24 = vmov 0.0  }
 0xd3e   : > { %16496 = vst [vmem:[#allocation124_spill] sm:$0xff] %v14498_v23  ;;  %v8811_v63 = vpop.eup %8810  ;;  %v14504_v29 = vmul.f32 %v8809_v52, %v16498_v56  ;;  %v14590_v52 = vmov 0.0   ;;  %v14594_v56 = vmov -inf  }
 0xd3f   : > { %16497 = vst [vmem:[#allocation97_spill] sm:$0xff] %v14501_v40  ;;  %v8813_v44 = vpop.eup %8812  ;;  %v14507_v14 = vmul.f32 %v8811_v63, %v16500_v45  ;;  %v14592_v63 = vmov 0.0   ;;  %v14598_v45 = vmov -inf  }
 0xd40   : > { %16499 = vst [vmem:[#allocation102_spill] sm:$0xff] %v14504_v29  ;;  %v8815_v9 = vpop.eup %8814  ;;  %v14510_v6 = vmul.f32 %v8813_v44, %v16502_v4  ;;  %v14596_v44 = vmov -inf   ;;  %v14602_v4 = vmov -inf  }
 0xd41   : > { %16501 = vst [vmem:[#allocation94_spill] sm:$0xff] %v14507_v14  ;;  %v8817_v48 = vpop.eup %8816  ;;  %v14513_v15 = vmul.f32 %v8815_v9, %v16504_v2  ;;  %v14600_v9 = vmov -inf   ;;  %v14606_v2 = vmov -inf  }
 0xd42   : > { %16503 = vst [vmem:[#allocation100_spill] sm:$0xff] %v14510_v6  ;;  %v8819_v1 = vpop.eup %8818  ;;  %v14516_v41 = vmul.f32 %v8817_v48, %v16506_v51  ;;  %v14604_v48 = vmov -inf   ;;  %v14610_v51 = vmov -inf  }
 0xd43   : > { %16505 = vst [vmem:[#allocation96_spill] sm:$0xff] %v14513_v15  ;;  %v8821_v42 = vpop.eup %8820  ;;  %v14519_v16 = vmul.f32 %v8819_v1, %v16508_v34  ;;  %v14608_v1 = vmov -inf   ;;  %v14614_v34 = vmov -inf  }
 0xd44   : > { %16507 = vst [vmem:[#allocation98_spill] sm:$0xff] %v14516_v41  ;;  %v8823_v54 = vpop.eup %8822  ;;  %v14522_v55 = vmul.f32 %v8821_v42, %v16510_v62  ;;  %v14612_v42 = vmov -inf   ;;  %v14618_v62 = vmov -inf  }
 0xd45   : > { %16509 = vst [vmem:[#allocation99_spill] sm:$0xff] %v14519_v16  ;;  %v8825_v10 = vpop.eup %8824  ;;  %v14525_v37 = vmul.f32 %v8823_v54, %v16512_v60  ;;  %v14616_v54 = vmov -inf   ;;  %v14622_v60 = vmov -inf  }
 0xd46   : > { %16511 = vst [vmem:[#allocation130_spill] sm:$0xff] %v14522_v55  ;;  %v14528_v46 = vmul.f32 %v8825_v10, %v16514_v13  ;;  %v14620_v10 = vmov -inf   ;;  %v14624_v13 = vmov -inf  }
 0xd47   : > { %16513 = vst [vmem:[#allocation134_spill] sm:$0xff] %v14525_v37 }
 0xd48   : > { %16515 = vst [vmem:[#allocation128_spill] sm:$0xff] %v14528_v46 }
 0xd49 LB: >> { %16516 = vst [vmem:[#allocation173_spill] sm:$0xff] %v10876_v43  ;;  %16517 = vst [vmem:[#allocation174_spill] sm:$0xff] %v10880_v53  ;;  %s6033_s15 = sshll.u32 %s11068_s5, 7  ;;  %s11085_s22 = smov 104   ;;  %s11068_s5 = sphi %s14626_s5, %s16706_s5   ;;  %v11064_v13 = vphi %v14624_v13, %v16705_v13   ;;  %v11060_v60 = vphi %v14622_v60, %v16704_v60   ;;  %v11056_v10 = vphi %v14620_v10, %v16703_v10   ;;  %v11052_v62 = vphi %v14618_v62, %v16702_v62   ;;  %v11048_v54 = vphi %v14616_v54, %v16701_v54   ;;  %v11044_v34 = vphi %v14614_v34, %v16700_v34   ;;  %v11040_v42 = vphi %v14612_v42, %v16699_v42   ;;  %v11036_v51 = vphi %v14610_v51, %v16698_v51   ;;  %v11032_v1 = vphi %v14608_v1, %v16697_v1   ;;  %v11028_v2 = vphi %v14606_v2, %v16696_v2   ;;  %v11024_v48 = vphi %v14604_v48, %v16695_v48   ;;  %v11020_v4 = vphi %v14602_v4, %v16694_v4   ;;  %v11016_v9 = vphi %v14600_v9, %v16693_v9   ;;  %v11012_v45 = vphi %v14598_v45, %v16692_v45   ;;  %v11008_v44 = vphi %v14596_v44, %v16691_v44   ;;  %v11004_v56 = vphi %v14594_v56, %v16690_v56   ;;  %v11000_v63 = vphi %v14592_v63, %v16689_v63   ;;  %v10996_v52 = vphi %v14590_v52, %v16688_v52   ;;  %v10992_v24 = vphi %v14588_v24, %v16687_v24   ;;  %v10988_v35 = vphi %v14586_v35, %v16686_v35   ;;  %v10984_v61 = vphi %v14584_v61, %v16685_v61   ;;  %v10980_v47 = vphi %v14582_v47, %v16684_v47   ;;  %v10976_v11 = vphi %v14580_v11, %v16683_v11   ;;  %v10972_v8 = vphi %v14578_v8, %v16682_v8   ;;  %v10968_v22 = vphi %v14576_v22, %v16681_v22   ;;  %v10964_v12 = vphi %v14574_v12, %v16680_v12   ;;  %v10960_v20 = vphi %v14572_v20, %v16679_v20   ;;  %v10956_v33 = vphi %v14570_v33, %v16678_v33   ;;  %v10952_v7 = vphi %v14568_v7, %v16677_v7   ;;  %v10948_v3 = vphi %v14566_v3, %v16676_v3   ;;  %v10944_v38 = vphi %v14564_v38, %v16675_v38   ;;  %v10940_v17 = vphi %v14562_v17, %v16674_v17   ;;  %v10936_v31 = vphi %v14560_v31, %v16673_v31   ;;  %v10932_v5 = vphi %v14558_v5, %v16672_v5   ;;  %v10928_v49 = vphi %v14556_v49, %v16671_v49   ;;  %v10924_v39 = vphi %v14554_v39, %v16670_v39   ;;  %v10920_v36 = vphi %v14552_v36, %v16668_v36   ;;  %v10916_v26 = vphi %v14550_v26, %v16666_v26   ;;  %v10912_v18 = vphi %v14548_v18, %v16664_v18   ;;  %v10908_v0 = vphi %v14546_v0, %v16663_v0   ;;  %v10904_v19 = vphi %v14544_v19, %v16662_v19   ;;  %v10900_v30 = vphi %v14542_v30, %v16661_v30   ;;  %v10896_v28 = vphi %v14540_v28, %v16660_v28   ;;  %v10892_v21 = vphi %v14538_v21, %v16659_v21   ;;  %v10888_v25 = vphi %v14536_v25, %v16658_v25   ;;  %v10884_v59 = vphi %v14534_v59, %v16656_v59   ;;  %v10880_v53 = vphi %v14532_v53, %v16655_v53   ;;  %v10876_v43 = vphi %v14530_v43, %v16653_v43  }
 0xd4a   : >> { %16518 = vst [vmem:[#allocation175_spill] sm:$0xff] %v10884_v59  ;;  %16519 = vst [vmem:[#allocation176_spill] sm:$0xff] %v10888_v25  ;;  %s3960_s9 = sshra.s32 %s6033_s15, 4  ;;  %s3910_s17 = sadd.s32 1, %s11068_s5  }
 0xd4b   : >> { %16520 = vst [vmem:[#allocation177_spill] sm:$0xff] %v10892_v21  ;;  %16521 = vst [vmem:[#allocation178_spill] sm:$0xff] %v10896_v28  ;;  %s6034_s16 = sshll.u32 %s3960_s9, 3  ;;  %p15185_p11 = scmp.ge.s32.totalorder %s3910_s17, 3  }
 0xd4c   : >> { %16522 = vst [vmem:[#allocation179_spill] sm:$0xff] %v10900_v30  ;;  %16523 = vst [vmem:[#allocation180_spill] sm:$0xff] %v10904_v19  ;;  %s3963_s21 = scalar_lea.vmem [#allocation2], %s6034_s16  ;;  %s14800_s23 = scalar_lea.vmem [#allocation3], %s6034_s16  ;;  %vm4810_vm3 = vcmask (%p15185_p11), 130048   ;;  %vm4827_vm4 = vcmask (%p15185_p11), 195584  }
 0xd4d   : >> { %16524 = vst [vmem:[#allocation181_spill] sm:$0xff] %v10908_v0  ;;  %16525 = vst [vmem:[#allocation182_spill] sm:$0xff] %v10912_v18  ;;  %v3964_v29 = vld [vmem:[%s3963_s21] sm:$0xff]  ;;  %v3966_v40 = vld [vmem:[%s3963_s21 + $0x10] sm:$0xff]  ;;  %s16706_s5 = smov %s3910_s17  ;;  %s11086_s1 = smov (%p15185_p11), 8  }
 0xd4e   : >> { %16526 = vst [vmem:[#allocation183_spill] sm:$0xff] %v10916_v26  ;;  %16527 = vst [vmem:[#allocation184_spill] sm:$0xff] %v10920_v36  ;;  %4014 = vrot.lane.b32.xlu0 %v3964_v29, %s11085_s22  ;;  %4018 = vrot.lane.b32.xlu1 %v3966_v40, %s11085_s22  ;;  %v3965_v46 = vld [vmem:[%s3963_s21 + $0x8] sm:$0xff]  ;;  %v3967_v37 = vld [vmem:[%s3963_s21 + $0x18] sm:$0xff]  ;;  %s11087_s29 = smov (%p15185_p11), 16   ;;  %s11088_s20 = smov (%p15185_p11), 24  }
 0xd4f   : >> { %16528 = vst [vmem:[#allocation185_spill] sm:$0xff] %v10924_v39  ;;  %16529 = vst [vmem:[#allocation186_spill] sm:$0xff] %v10928_v49  ;;  %v3968_v23 = vld [vmem:[%s3963_s21 + $0x20] sm:$0xff]  ;;  %v3969_v27 = vld [vmem:[%s3963_s21 + $0x28] sm:$0xff]  ;;  %s16784_s28 = sld [smem:[#allocation33_spill]] (%p15185_p11)  ;;  %s16785_s3 = sld [smem:[#allocation34_spill]] (%p15185_p11) }
 0xd50   : >> { %16530 = vst [vmem:[#allocation187_spill] sm:$0xff] %v10932_v5  ;;  %16531 = vst [vmem:[#allocation188_spill] sm:$0xff] %v10936_v31  ;;  %v3970_v55 = vld [vmem:[%s3963_s21 + $0x30] sm:$0xff]  ;;  %v3971_v16 = vld [vmem:[%s3963_s21 + $0x38] sm:$0xff]  ;;  %s5028_s11 = sshll.u32 (%p15185_p11), %s11645_s30, 4  ;;  %s16786_s9 = sld [smem:[#allocation224_spill]] (%p15185_p11)  ;;  %s15535_s11 = int_to_ptr.vmem [resolvable:$true] %s5028_s11 }
 0xd51   : >> { %16532 = vst [vmem:[#allocation189_spill] sm:$0xff] %v11056_v10  ;;  %v16533_v40 = vld [vmem:[#allocation41_spill] sm:$0xff]  ;;  %v16534_v29 = vld [vmem:[#allocation39_spill] sm:$0xff]  ;;  %s5013_s21 = scalar_lea.sflag (%p15185_p11), [#allocation6], %s11608_s4  ;;  %p16787_p1 = scmp.ne.s32.totalorder (%p15185_p11), %s15810_s25, 0 }
 0xd52   : >> { %4016 = vrot.lane.b32.xlu0 %v3965_v46, %s11085_s22  ;;  %4020 = vrot.lane.b32.xlu1 %v3967_v37, %s11085_s22  ;;  %v16535_v37 = vld [vmem:[#allocation45_spill] sm:$0xff]  ;;  %v16536_v46 = vld [vmem:[#allocation43_spill] sm:$0xff] }
 0xd55   : > { %s6056_s10 = sshll.u32 (%p15185_p11), %s16784_s28, 4  ;;  %s6057_s14 = sshll.u32 (%p15185_p11), %s16785_s3, 5 }
 0xd56   : >> { %4022 = vrot.lane.b32.xlu0 %v3968_v23, %s11085_s22  ;;  %4024 = vrot.lane.b32.xlu1 %v3969_v27, %s11085_s22  ;;  %v16537_v27 = vld [vmem:[#allocation42_spill] sm:$0xff]  ;;  %v16538_v23 = vld [vmem:[#allocation40_spill] sm:$0xff]  ;;  %s5025_s12 = sadd.s32 (%p15185_p11), %s6057_s14, %s6056_s10 }
 0xd57   : > { %s6058_s13 = sshll.u32 (%p15185_p11), %s5025_s12, 7 }
 0xd58   : > { %s15529_s16 = scalar_lea.hbm (%p15185_p11), %s16786_s9, %s6058_s13 }
 0xd5a   : >> { %4026 = vrot.lane.b32.xlu0 %v3970_v55, %s11085_s22  ;;  %4028 = vrot.lane.b32.xlu1 %v3971_v16, %s11085_s22  ;;  %v16539_v16 = vld [vmem:[#allocation46_spill] sm:$0xff]  ;;  %v16540_v55 = vld [vmem:[#allocation44_spill] sm:$0xff] }
 0xd5e   : >> { %3990 = vrot.lane.b32.xlu0 %v16533_v40, %s11085_s22  ;;  %3992 = vrot.lane.b32.xlu1 %v16534_v29, %s11085_s22  ;;  %v3974_v40 = vld [vmem:[%s14800_s23] sm:$0xff]  ;;  %v3975_v29 = vld [vmem:[%s14800_s23 + $0x8] sm:$0xff] }
 0xd62   : >> { %3994 = vrot.lane.b32.xlu0 %v16535_v37, %s11085_s22  ;;  %3996 = vrot.lane.b32.xlu1 %v16536_v46, %s11085_s22  ;;  %v3976_v37 = vld [vmem:[%s14800_s23 + $0x10] sm:$0xff]  ;;  %v3977_v46 = vld [vmem:[%s14800_s23 + $0x18] sm:$0xff] }
 0xd66   : >> { %3998 = vrot.lane.b32.xlu0 %v16537_v27, %s11085_s22  ;;  %4000 = vrot.lane.b32.xlu1 %v16538_v23, %s11085_s22  ;;  %v3978_v27 = vld [vmem:[%s14800_s23 + $0x20] sm:$0xff]  ;;  %v3979_v23 = vld [vmem:[%s14800_s23 + $0x28] sm:$0xff] }
 0xd6a   : >> { %4002 = vrot.lane.b32.xlu0 %v16539_v16, %s11085_s22  ;;  %4004 = vrot.lane.b32.xlu1 %v16540_v55, %s11085_s22 }
 0xd6e   : >> { %4432 = vrot.lane.b32.xlu1 %v3974_v40, %s11085_s22  ;;  %4434 = vrot.lane.b32.xlu0 %v3975_v29, %s11085_s22 }
 0xd72   : >> { %4436 = vrot.lane.b32.xlu1 %v3976_v37, %s11085_s22  ;;  %4438 = vrot.lane.b32.xlu0 %v3977_v46, %s11085_s22 }
 0xd76   : >> { %4440 = vrot.lane.b32.xlu1 %v3978_v27, %s11085_s22  ;;  %4442 = vrot.lane.b32.xlu0 %v3979_v23, %s11085_s22 }
 0xdc0   : >> { %v4015_v16 = vpop.permute.xlu0 %4014  ;;  %v4019_v37 = vpop.permute.xlu1 %4018 }
 0xdc1   : >> { %6693 = vmatprep.subr.msk.bf16.mxu0 %vm1974_vm2, %v4015_v16  ;;  %v4056_v55 = vsel %vm1974_vm2, %v4015_v16, 0  ;;  %v4062_v27 = vsel %vm1974_vm2, %v4019_v37, 0 }
 0xdc2   : >> { %6578 = vmatpush3.bf16.xpose.msra.mxu0 %v4056_v55 }
 0xdc4   : >> { %v4017_v40 = vpop.permute.xlu0 %4016  ;;  %v4021_v23 = vpop.permute.xlu1 %4020 }
 0xdc5   : >> { %6694 = vmatprep.subr.msk.bf16.mxu0 %vm1974_vm2, %v4017_v40  ;;  %v4059_v29 = vsel %vm1974_vm2, %v4017_v40, 0  ;;  %v4065_v16 = vsel %vm1974_vm2, %v4021_v23, 0 }
 0xdc8   : >> { %v4023_v32 = vpop.permute.xlu0 %4022  ;;  %v4025_v40 = vpop.permute.xlu1 %4024 }
 0xdc9   : >> { %v4068_v55 = vsel %vm1974_vm2, %v4023_v32, 0 }
 0xdca   : >> { %6580 = vmatpush3.bf16.xpose.msra.mxu0 %v4059_v29  ;;  %v4071_v29 = vsel %vm1974_vm2, %v4025_v40, 0 }
 0xdcb   : >> { %6695 = vmatprep.subr.msk.bf16.mxu0 %vm1974_vm2, %v4019_v37 }
 0xdcc   : >> { %v4027_v46 = vpop.permute.xlu0 %4026  ;;  %v4029_v37 = vpop.permute.xlu1 %4028 }
 0xdd0   : >> { %v3991_v57 = vpop.permute.xlu0 %3990 }
 0xdd1   : >> { %6593 = vmatprep.mubr.msk.bf16.mxu0 %vm1974_vm2, %v3991_v57  ;;  %v4074_v57 = vsel %vm1974_vm2, %v4027_v46, 0 }
 0xdd2   : >> { %6582 = vmatpush3.bf16.xpose.msra.mxu0 %v4062_v27  ;;  %v4077_v27 = vsel %vm1974_vm2, %v4029_v37, 0 }
 0xdd3   : >> { %6696 = vmatprep.subr.msk.bf16.mxu0 %vm1974_vm2, %v4021_v23  ;;  %v3993_v23 = vpop.permute.xlu1 %3992 }
 0xdda   : >> { %6584 = vmatpush3.bf16.xpose.msra.mxu0 %v4065_v16  ;;  %v3997_v16 = vpop.permute.xlu1 %3996 }
 0xddb   : >> { %6697 = vmatprep.subr.msk.bf16.mxu0 %vm1974_vm2, %v4023_v32  ;;  %v3995_v32 = vpop.permute.xlu0 %3994 }
 0xde2   : >> { %6586 = vmatpush3.bf16.xpose.msra.mxu0 %v4068_v55  ;;  %v3999_v55 = vpop.permute.xlu0 %3998 }
 0xde3   : >> { %6698 = vmatprep.subr.msk.bf16.mxu0 %vm1974_vm2, %v4025_v40 }
 0xde6   : >> { %v4003_v40 = vpop.permute.xlu0 %4002 }
 0xdea   : >> { %6588 = vmatpush3.bf16.xpose.msra.mxu0 %v4071_v29 }
 0xdeb   : >> { %6699 = vmatprep.subr.msk.bf16.mxu0 %vm1974_vm2, %v4027_v46  ;;  %v4001_v46 = vpop.permute.xlu1 %4000 }
 0xdef   : >> { %v4005_v29 = vpop.permute.xlu1 %4004 }
 0xdf2   : >> { %6590 = vmatpush3.bf16.xpose.msra.mxu0 %v4074_v57 }
 0xdf3   : >> { %6700 = vmatprep.subr.msk.bf16.mxu0 %vm1974_vm2, %v4029_v37  ;;  %v4433_v57 = vpop.permute.xlu1 %4432  ;;  %v4435_v37 = vpop.permute.xlu0 %4434 }
 0xdf4   : >> { %6609 = vmatprep.subr.bf16.mxu1 %v4433_v57 }
 0xdf5   : >> { %6610 = vmatpush3.bf16.msra.mxu1 %v4433_v57 }
 0xdf6   : >> { %6611 = vmatprep.subr.bf16.mxu1 %v4435_v37 }
 0xdf9   : >> { %6612 = vmatpush3.bf16.msra.mxu1 %v4435_v37 }
 0xdfa   : >> { %6592 = vmatpush3.bf16.xpose.msra.mxu0 %v4077_v27  ;;  %v4437_v27 = vpop.permute.xlu1 %4436 }
 0xdfb   : >> { %6613 = vmatprep.subr.bf16.mxu1 %v4437_v27 }
 0xdfd   : >> { %6614 = vmatpush3.bf16.msra.mxu1 %v4437_v27 }
 0xe01   : >> { %6594 = vmatmul.mubr.msk.bf16.vlgmr.msra.gmra.mrb[0].mxu0 %vm1974_vm2, %v3993_v23  ;;  %v4439_v23 = vpop.permute.xlu0 %4438 }
 0xe02   : >> { %6597 = vmatprep.mubr.msk.bf16.mxu0 %vm1974_vm2, %v3995_v32  ;;  %6615 = vmatprep.subr.bf16.mxu1 %v4439_v23  ;;  %v4441_v32 = vpop.permute.xlu1 %4440 }
 0xe03   : >> { %6616 = vmatpush3.bf16.msra.mxu1 %v4439_v23 }
 0xe04   : >> { %6617 = vmatprep.subr.bf16.mxu1 %v4441_v32 }
 0xe07   : >> { %6618 = vmatpush3.bf16.msra.mxu1 %v4441_v32 }
 0xe09   : >> { %6598 = vmatmul.mubr.msk.bf16.gmra.mrb[4].mxu0 %vm1974_vm2, %v3997_v16  ;;  %v4443_v16 = vpop.permute.xlu0 %4442 }
 0xe0a   : >> { %6601 = vmatprep.mubr.msk.bf16.mxu0 %vm1974_vm2, %v3999_v55  ;;  %6619 = vmatprep.subr.bf16.mxu1 %v4443_v16 }
 0xe0b   : >> { %6620 = vmatpush3.bf16.msra.mxu1 %v4443_v16 }
 0xe11   : >> { %6602 = vmatmul.mubr.msk.bf16.gmra.mrb[8].mxu0 %vm1974_vm2, %v4001_v46 }
 0xe12   : >> { %6605 = vmatprep.mubr.msk.bf16.mxu0 %vm1974_vm2, %v4003_v40 }
 0xe19   : >> { %6606 = vmatmul.mubr.msk.bf16.gmra.mrb[12].mxu0 %vm1974_vm2, %v4005_v29 }
 0xed4   : >> { %v6595_v55 = vpop.f32.mrb[0].mxu0 }
 0xed5   : >> { %v4178_v46 = vmul.f32 0.35355338, %v6595_v55  ;;  %v4113_v40 = vpop.f32.mrb[1].mxu0 }
 0xed6   : >> { %v6596_v29 = vpop.f32.mrb[2].mxu0  ;;  %v4176_v37 = vmul.f32 0.35355338, %v4113_v40 }
 0xed7   : >> { %4196 = vmax.xlane.f32.xlu0 %v4178_v46  ;;  %v4116_v57 = vpop.f32.mrb[3].mxu0  ;;  %v14841_v15 = vmul.f32 0.35355338, %v6596_v29 }
 0xed8   : >> { %v14838_v41 = vmul.f32 0.35355338, %v4116_v57 }
 0xeda   : >> { %4194 = vmax.xlane.f32.xlu1 %v14838_v41 }
 0xedb   : >> { %4192 = vmax.xlane.f32.xlu0 %v4176_v37 }
 0xedc   : >> { %v6599_v27 = vpop.f32.mrb[4].mxu0 }
 0xedd   : >> { %v14843_v23 = vmul.f32 0.35355338, %v6599_v27  ;;  %v4129_v32 = vpop.f32.mrb[5].mxu0 }
 0xede   : >> { %v6600_v58 = vpop.f32.mrb[6].mxu0  ;;  %v14847_v55 = vmul.f32 0.35355338, %v4129_v32 }
 0xedf   : >> { %4198 = vmax.xlane.f32.xlu0 %v14841_v15  ;;  %4204 = vmax.xlane.f32.xlu1 %v14843_v23  ;;  %v4132_v16 = vpop.f32.mrb[7].mxu0  ;;  %v14849_v57 = vmul.f32 0.35355338, %v6600_v58 }
 0xee0   : >> { %v14853_v29 = vmul.f32 0.35355338, %v4132_v16 }
 0xee3   : >> { %4200 = vmax.xlane.f32.xlu1 %v14847_v55  ;;  %4206 = vmax.xlane.f32.xlu0 %v14849_v57 }
 0xee4   : >> { %v6603_v40 = vpop.f32.mrb[8].mxu0 }
 0xee5   : >> { %v14855_v27 = vmul.f32 0.35355338, %v6603_v40  ;;  %v4145_v50 = vpop.f32.mrb[9].mxu0 }
 0xee6   : >> { %v6604_v6 = vpop.f32.mrb[10].mxu0  ;;  %v14859_v32 = vmul.f32 0.35355338, %v4145_v50 }
 0xee7   : >> { %4202 = vmax.xlane.f32.xlu0 %v14853_v29  ;;  %4212 = vmax.xlane.f32.xlu1 %v14855_v27  ;;  %v4148_v14 = vpop.f32.mrb[11].mxu0  ;;  %v14861_v58 = vmul.f32 0.35355338, %v6604_v6 }
 0xee8   : >> { %v14865_v40 = vmul.f32 0.35355338, %v4148_v14  ;;  %v3980_v14 = vld [vmem:[%s14800_s23 + $0x30] sm:$0xff] }
 0xeea   : >> { %16541 = vst [vmem:[#allocation190_spill] sm:$0xff] %v14865_v40 }
 0xeeb   : >> { %4208 = vmax.xlane.f32.xlu1 %v14859_v32  ;;  %4214 = vmax.xlane.f32.xlu0 %v14861_v58 }
 0xeec   : >> { %v6607_v16 = vpop.f32.mrb[12].mxu0 }
 0xeed   : >> { %v14867_v59 = vmul.f32 0.35355338, %v6607_v16  ;;  %v4161_v43 = vpop.f32.mrb[13].mxu0  ;;  %v3981_v16 = vld [vmem:[%s14800_s23 + $0x38] sm:$0xff]  ;;  %s11089_s23 = smov (%p15185_p11), [#allocation22]  }
 0xeee   : >> { %v6608_v25 = vpop.f32.mrb[14].mxu0  ;;  %v14871_v6 = vmul.f32 0.35355338, %v4161_v43  ;;  %s9362_s17 = sshll.u32 (%p15185_p11), %s11089_s23, 4  ;;  %s9363_s17 = int_to_ptr.vmem [resolvable:$false] %s9362_s17 }
 0xeef   : >> { %4210 = vmax.xlane.f32.xlu0 %v14865_v40  ;;  %4220 = vmax.xlane.f32.xlu1 %v14867_v59  ;;  %v4164_v50 = vpop.f32.mrb[15].mxu0  ;;  %v14873_v53 = vmul.f32 0.35355338, %v6608_v25  ;;  %s9364_s8 = scalar_lea.vmem (%p15185_p11), %s9363_s17, 4096  ;;  %p9365_p2 = scmp.lt.s32.totalorder (%p15185_p11), %s15535_s11, %s9363_s17 }
 0xef0   : >> { %v14877_v30 = vmul.f32 0.35355338, %v4164_v50 }
 0xef3   : >> { %4216 = vmax.xlane.f32.xlu1 %v14871_v6  ;;  %4222 = vmax.xlane.f32.xlu0 %v14873_v53 }
 0xef7   : >> { %4218 = vmax.xlane.f32.xlu0 %v14877_v30 }
 0xf04   : >> { %4444 = vrot.lane.b32.xlu1 %v3980_v14, %s11085_s22 }
 0xf0d   : >> { %4446 = vrot.lane.b32.xlu0 %v3981_v16, %s11085_s22  ;;  %s9358_s22 = scalar_lea.vmem (%p15185_p11), %s15535_s11, 2048 }
 0xf0e   : > { %p9359_p3 = scmp.ne.s32.totalorder (%p15185_p11), %s15535_s11, %s9358_s22  ;;  %p9366_p10 = scmp.lt.s32.totalorder (%p15185_p11), %s9364_s8, %s9358_s22 }
 0xf10   : > { %p9360_p6 = pnand (%p15185_p11), %p9359_p3, %p16787_p1  ;;  %p9367_p0 = por (%p15185_p11), %p9366_p10, %p9365_p2 }
 0xf12   : > { %p9361_p5 = pneg (%p15185_p11), %p9360_p6 }
 0xf14   : > { %p9368_p9 = pnand (%p15185_p11), %p9367_p0, %p9361_p5 }
 0xf64   : >> { %v4197_v21 = vpop.xlane.xlu0 %4196 }
 0xf65   : >> { %v14885_v43 = vmax.f32 %v11056_v10, %v4197_v21  }
 0xf67   : >> { %16542 = vst [vmem:[#allocation129_spill] sm:$0xff] %v14885_v43  ;;  %v16543_v40 = vmov %v14885_v43  ;;  %v4195_v28 = vpop.xlane.xlu1 %4194 }
 0xf68   : >> { %v4290_v19 = vsub.f32 %v4178_v46, %v16543_v40  ;;  %v14891_v50 = vmax.f32 %v11060_v60, %v4195_v28   ;;  %v4193_v26 = vpop.xlane.xlu0 %4192 }
 0xf69   : >> { %v14894_v14 = vmax.f32 %v11064_v13, %v4193_v26  }
 0xf6a   : >> { %16544 = vst [vmem:[#allocation131_spill] sm:$0xff] %v14891_v50  ;;  %v4308_v0 = vmul.f32 1.442695, %v4290_v19  ;;  %v4289_v21 = vsub.f32 %v14838_v41, %v14891_v50 }
 0xf6b   : >> { %16545 = vst [vmem:[#allocation157_spill] sm:$0xff] %v14894_v14  ;;  %v4288_v46 = vsub.f32 %v4176_v37, %v14894_v14 }
 0xf6c   : >> { %8826 = vpow2.f32 %v4308_v0  ;;  %v4205_v25 = vpop.xlane.xlu1 %4204  ;;  %v4199_v28 = vpop.xlane.xlu0 %4198  ;;  %v4306_v18 = vmul.f32 1.442695, %v4289_v21 }
 0xf6d   : >> { %v4304_v36 = vmul.f32 1.442695, %v4288_v46  ;;  %v14904_v19 = vmax.f32 %v11040_v42, %v4205_v25   ;;  %v14907_v26 = vmax.f32 %v11052_v62, %v4199_v28  }
 0xf6f   : >> { %16546 = vst [vmem:[#allocation132_spill] sm:$0xff] %v14904_v19  ;;  %v16547_v40 = vmov %v14904_v19  ;;  %v16548_v10 = vmov %v14907_v26  ;;  %8828 = vpow2.f32 %v4304_v36 }
 0xf70   : >> { %v4294_v41 = vsub.f32 %v14843_v23, %v16547_v40  ;;  %v4291_v0 = vsub.f32 %v14841_v15, %v16548_v10  ;;  %v4201_v46 = vpop.xlane.xlu1 %4200  ;;  %v4207_v43 = vpop.xlane.xlu0 %4206  ;;  %8830 = vpow2.f32 %v4306_v18 }
 0xf71   : >> { %v14918_v28 = vmax.f32 %v11048_v54, %v4201_v46   ;;  %v14921_v21 = vmax.f32 %v11036_v51, %v4207_v43  }
 0xf72   : >> { %v4316_v25 = vmul.f32 1.442695, %v4294_v41  ;;  %v4310_v19 = vmul.f32 1.442695, %v4291_v0 }
 0xf73   : >> { %16549 = vst [vmem:[#allocation133_spill] sm:$0xff] %v14918_v28  ;;  %v16550_v50 = vmov %v14918_v28  ;;  %16551 = vst [vmem:[#allocation135_spill] sm:$0xff] %v14921_v21  ;;  %v16552_v16 = vmov %v14921_v21 }
 0xf74   : >> { %8832 = vpow2.f32 %v4316_v25  ;;  %v4292_v26 = vsub.f32 %v14847_v55, %v16550_v50  ;;  %v4213_v36 = vpop.xlane.xlu1 %4212  ;;  %v4203_v41 = vpop.xlane.xlu0 %4202  ;;  %v4295_v25 = vsub.f32 %v14849_v57, %v16552_v16 }
 0xf75   : >> { %v14930_v0 = vmax.f32 %v11024_v48, %v4213_v36   ;;  %v14933_v28 = vmax.f32 %v11044_v34, %v4203_v41   ;;  %8834 = vpow2.f32 %v4310_v19 }
 0xf76   : >> { %v14935_v43 = vpop.eup %8826  ;;  %v4312_v18 = vmul.f32 1.442695, %v4292_v26 }
 0xf77   : >> { %16553 = vst [vmem:[#allocation160_spill] sm:$0xff] %v14930_v0  ;;  %v16554_v46 = vmov %v14930_v0  ;;  %16555 = vst [vmem:[#allocation191_spill] sm:$0xff] %v14933_v28  ;;  %v16556_v37 = vmov %v14933_v28  ;;  %4356 = vadd.xlane.f32.xlu1 %v14935_v43  ;;  %v4318_v28 = vmul.f32 1.442695, %v4295_v25 }
 0xf78   : >> { %v4298_v21 = vsub.f32 %v14855_v27, %v16554_v46  ;;  %v4293_v41 = vsub.f32 %v14853_v29, %v16556_v37  ;;  %v4209_v0 = vpop.xlane.xlu1 %4208  ;;  %v4215_v19 = vpop.xlane.xlu0 %4214  ;;  %8836 = vpow2.f32 %v4312_v18 }
 0xf79   : >> { %v14949_v57 = vmax.f32 %v11032_v1, %v4209_v0   ;;  %v14952_v15 = vmax.f32 %v11020_v4, %v4215_v19   ;;  %v8829_v27 = vpop.eup %8828 }
 0xf7a   : >> { %v4324_v26 = vmul.f32 1.442695, %v4298_v21  ;;  %v4314_v55 = vmul.f32 1.442695, %v4293_v41  ;;  %v8831_v21 = vpop.eup %8830 }
 0xf7b   : >> { %16557 = vst [vmem:[#allocation136_spill] sm:$0xff] %v14949_v57  ;;  %16558 = vst [vmem:[#allocation158_spill] sm:$0xff] %v14952_v15  ;;  %v4296_v23 = vsub.f32 %v14859_v32, %v14949_v57  ;;  %4352 = vadd.xlane.f32.xlu1 %v8829_v27  ;;  %v4299_v32 = vsub.f32 %v14861_v58, %v14952_v15 }
 0xf7c   : >> { %v4221_v18 = vpop.xlane.xlu1 %4220  ;;  %v4211_v25 = vpop.xlane.xlu0 %4210  ;;  %8838 = vpow2.f32 %v4324_v26 }
 0xf7d   : >> { %v14961_v0 = vmax.f32 %v11008_v44, %v4221_v18   ;;  %v14964_v19 = vmax.f32 %v11028_v2, %v4211_v25   ;;  %8840 = vpow2.f32 %v4318_v28  ;;  %v4320_v36 = vmul.f32 1.442695, %v4296_v23  ;;  %v16563_v18 = vld [vmem:[#allocation190_spill] sm:$0xff] }
 0xf7e   : >> { %v14966_v5 = vpop.eup %8832  ;;  %8842 = vpow2.f32 %v4314_v55  ;;  %v4416_v25 = vpack.c.bf16 %v8831_v21, %v8829_v27  ;;  %v4326_v23 = vmul.f32 1.442695, %v4299_v32 }
 0xf7f   : >> { %16559 = vst [vmem:[#allocation159_spill] sm:$0xff] %v14961_v0  ;;  %v16560_v37 = vmov %v14961_v0  ;;  %16561 = vst [vmem:[#allocation192_spill] sm:$0xff] %v14964_v19  ;;  %v16562_v41 = vmov %v14964_v19  ;;  %v8835_v39 = vpop.eup %8834  ;;  %4364 = vadd.xlane.f32.xlu1 %v14966_v5  ;;  %8844 = vpow2.f32 %v4320_v36 }
 0xf80   : >> { %v4297_v0 = vsub.f32 %v16563_v18, %v16562_v41  ;;  %v4217_v19 = vpop.xlane.xlu1 %4216  ;;  %v4223_v28 = vpop.xlane.xlu0 %4222  ;;  %4358 = vadd.xlane.f32.xlu0 %v8835_v39  ;;  %6625 = vmatprep.mubr.bf16.mxu1 %v4416_v25  ;;  %v4302_v36 = vsub.f32 %v14867_v59, %v16560_v37  ;;  %8846 = vpow2.f32 %v4326_v23 }
 0xf81   : >> { %v14978_v58 = vmax.f32 %v11016_v9, %v4217_v19   ;;  %v14981_v55 = vmax.f32 %v11004_v56, %v4223_v28  }
 0xf82   : >> { %v8837_v29 = vpop.eup %8836  ;;  %v4322_v26 = vmul.f32 1.442695, %v4297_v0  ;;  %v4332_v18 = vmul.f32 1.442695, %v4302_v36 }
 0xf83   : >> { %16564 = vst [vmem:[#allocation162_spill] sm:$0xff] %v14978_v58  ;;  %16565 = vst [vmem:[#allocation161_spill] sm:$0xff] %v14981_v55  ;;  %v4300_v27 = vsub.f32 %v14871_v6, %v14978_v58  ;;  %4360 = vadd.xlane.f32.xlu1 %v8837_v29  ;;  %v4303_v23 = vsub.f32 %v14873_v53, %v14981_v55 }
 0xf84   : >> { %v4445_v32 = vpop.permute.xlu1 %4444  ;;  %v4219_v25 = vpop.xlane.xlu0 %4218  ;;  %4354 = vadd.xlane.f32.xlu0 %v8831_v21  ;;  %8848 = vpow2.f32 %v4322_v26 }
 0xf85   : >> { %v4328_v31 = vmul.f32 1.442695, %v4300_v27  ;;  %v14992_v28 = vmax.f32 %v11012_v45, %v4219_v25   ;;  %6621 = vmatprep.subr.bf16.mxu1 %v4445_v32 }
 0xf86   : >> { %6622 = vmatpush3.bf16.msra.mxu1 %v4445_v32  ;;  %v8839_v0 = vpop.eup %8838  ;;  %v4417_v32 = vpack.c.bf16 %v8835_v39, %v14935_v43 }
 0xf87   : >> { %16566 = vst [vmem:[#allocation163_spill] sm:$0xff] %v14992_v28  ;;  %v16567_v41 = vmov %v14992_v28  ;;  %v8841_v19 = vpop.eup %8840  ;;  %4372 = vadd.xlane.f32.xlu1 %v8839_v0  ;;  %8850 = vpow2.f32 %v4328_v31 }
 0xf88   : >> { %v4301_v59 = vsub.f32 %v14877_v30, %v16567_v41  ;;  %v4447_v49 = vpop.permute.xlu0 %4446  ;;  %v8843_v27 = vpop.eup %8842  ;;  %4366 = vadd.xlane.f32.xlu0 %v8841_v19  ;;  %8852 = vpow2.f32 %v4332_v18  ;;  %v4334_v30 = vmul.f32 1.442695, %v4303_v23  ;;  %v16569_v23 = vld [vmem:[#allocation129_spill] sm:$0xff] }
 0xf89   : >> { %6623 = vmatprep.subr.bf16.mxu1 %v4447_v49  ;;  %v8845_v26 = vpop.eup %8844  ;;  %v4418_v25 = vpack.c.bf16 %v8843_v27, %v8837_v29 }
 0xf8a   : >> { %v4330_v21 = vmul.f32 1.442695, %v4301_v59  ;;  %6624 = vmatpush3.bf16.msra.mxu1 %v4447_v49  ;;  %v8847_v36 = vpop.eup %8846  ;;  %v4419_v59 = vpack.c.bf16 %v8841_v19, %v14966_v5 }
 0xf8b   : >> { %4368 = vadd.xlane.f32.xlu1 %v8845_v26  ;;  %v4421_v43 = vpack.c.bf16 %v8847_v36, %v8839_v0  ;;  %v16572_v0 = vsub.f32 %v11040_v42, %v16547_v40  ;;  %v16577_v42 = vsub.f32 %v11024_v48, %v16554_v46  ;;  %v16581_v48 = vld [vmem:[#allocation191_spill] sm:$0xff] }
 0xf8c   : >> { %8854 = vpow2.f32 %v4330_v21  ;;  %4362 = vadd.xlane.f32.xlu0 %v8843_v27  ;;  %v16568_v21 = vld [vmem:[#allocation189_spill] sm:$0xff] }
 0xf8d   : >> { %6626 = vmatmul.mubr.bf16.vlgmr.msra.gmra.mrb[0].mxu1 %v4417_v32  ;;  %8856 = vpow2.f32 %v4334_v30  ;;  %v16570_v5 = vsub.f32 %v16568_v21, %v16569_v23  ;;  %v16573_v30 = vsub.f32 %v11052_v62, %v16548_v10 }
 0xf8e   : >> { %6629 = vmatprep.mubr.bf16.mxu1 %v4418_v25  ;;  %v8849_v31 = vpop.eup %8848  ;;  %v4268_v25 = vmul.f32 1.442695, %v16572_v0 }
 0xf8f   : >> { %v4420_v53 = vpack.c.bf16 %v8849_v31, %v8845_v26  ;;  %v4260_v19 = vmul.f32 1.442695, %v16570_v5  ;;  %v16571_v26 = vsub.f32 %v11064_v13, %v14894_v14  ;;  %v16583_v5 = vsub.f32 %v11044_v34, %v16581_v48 }
 0xf90   : >> { %4374 = vadd.xlane.f32.xlu0 %v8847_v36  ;;  %v4262_v36 = vmul.f32 1.442695, %v16573_v30 }
 0xf91   : >> { %v8851_v28 = vpop.eup %8850  ;;  %8858 = vpow2.f32 %v4260_v19  ;;  %v4256_v32 = vmul.f32 1.442695, %v16571_v26  ;;  %v4266_v19 = vmul.f32 1.442695, %v16583_v5 }
 0xf92   : >> { %4376 = vadd.xlane.f32.xlu1 %v8851_v28  ;;  %v8853_v39 = vpop.eup %8852 }
 0xf93   : >> { %8860 = vpow2.f32 %v4256_v32 }
 0xf94   : >> { %4370 = vadd.xlane.f32.xlu0 %v8849_v31  ;;  %8862 = vpow2.f32 %v4268_v25  ;;  %v16574_v31 = vsub.f32 %v11048_v54, %v16550_v50  ;;  %v16578_v54 = vsub.f32 %v11036_v51, %v16552_v16 }
 0xf95   : >> { %6630 = vmatmul.mubr.bf16.gmra.mrb[4].mxu1 %v4419_v59  ;;  %8864 = vpow2.f32 %v4262_v36 }
 0xf96   : >> { %6633 = vmatprep.mubr.bf16.mxu1 %v4420_v53  ;;  %v8855_v49 = vpop.eup %8854  ;;  %4380 = vadd.xlane.f32.xlu1 %v8853_v39  ;;  %v16575_v53 = vld [vmem:[#allocation131_spill] sm:$0xff] }
 0xf97   : >> { %v8857_v29 = vpop.eup %8856  ;;  %v4422_v18 = vpack.c.bf16 %v8855_v49, %v8851_v28  ;;  %v4264_v28 = vmul.f32 1.442695, %v16574_v31  ;;  %v16576_v13 = vsub.f32 %v11060_v60, %v16575_v53  ;;  %v16580_v60 = vsub.f32 %v11032_v1, %v14949_v57 }
 0xf98   : >> { %4378 = vadd.xlane.f32.xlu0 %v8855_v49  ;;  %v4423_v27 = vpack.c.bf16 %v8857_v29, %v8853_v39  ;;  %v4276_v49 = vmul.f32 1.442695, %v16577_v42 }
 0xf99   : >> { %v4258_v39 = vmul.f32 1.442695, %v16576_v13  ;;  %8866 = vpow2.f32 %v4264_v28  ;;  %v4272_v21 = vmul.f32 1.442695, %v16580_v60  ;;  %v16582_v13 = vmov %v16581_v48 }
 0xf9b   : >> { %v15017_v59 = vpop.eup %8858  ;;  %8868 = vpow2.f32 %v4258_v39 }
 0xf9c   : >> { %4382 = vadd.xlane.f32.xlu0 %v8857_v29  ;;  %v4338_v62 = vmul.f32 %v10992_v24, %v15017_v59  ;;  %8870 = vpow2.f32 %v4276_v49 }
 0xf9d   : >> { %6634 = vmatmul.mubr.bf16.gmra.mrb[8].mxu1 %v4421_v43  ;;  %v4270_v43 = vmul.f32 1.442695, %v16578_v54 }
 0xf9e   : >> { %6637 = vmatprep.mubr.bf16.mxu1 %v4422_v18 }
 0xf9f   : >> { %8872 = vpow2.f32 %v4270_v43 }
 0xfa0   : >> { %8874 = vpow2.f32 %v4272_v21 }
 0xfa1   : >> { %8876 = vpow2.f32 %v4266_v19 }
 0xfa5   : >> { %6638 = vmatmul.mubr.bf16.gmra.mrb[12].mxu1 %v4423_v27  ;;  %v15030_v27 = vpop.eup %8860 }
 0xfa6   : >> { %v4336_v26 = vmul.f32 %v11000_v63, %v15030_v27  ;;  %v15042_v51 = vpop.eup %8862 }
 0xfa7   : >> { %v15044_v25 = vpop.eup %8864  ;;  %v4342_v34 = vmul.f32 %v10976_v11, %v15042_v51 }
 0xfa8   : >> { %v15053_v30 = vpop.eup %8866  ;;  %v4339_v36 = vmul.f32 %v10988_v35, %v15044_v25 }
 0xfa9   : >> { %v15057_v28 = vpop.eup %8868  ;;  %v4340_v54 = vmul.f32 %v10984_v61, %v15053_v30 }
 0xfaa   : >> { %v15071_v43 = vpop.eup %8870 }
 0xfab   : >> { %v15075_v60 = vpop.eup %8872  ;;  %v4346_v5 = vmul.f32 %v10960_v20, %v15071_v43 }
 0xfac   : >> { %v15089_v19 = vpop.eup %8874 }
0x1004   : >> { %v4357_v18 = vpop.xlane.xlu1 %4356 }
0x1005   : >> { %v15032_v24 = vadd.f32 %v4357_v18, %v4338_v62   ;;  %v4337_v18 = vmul.f32 %v10996_v52, %v15057_v28 }
0x1007   : >> { %16579 = vst [vmem:[#allocation164_spill] sm:$0xff] %v15032_v24  ;;  %v16585_v24 = vsub.f32 %v11020_v4, %v14952_v15  ;;  %v16589_v4 = vld [vmem:[#allocation192_spill] sm:$0xff] }
0x1008   : >> { %v4353_v0 = vpop.xlane.xlu1 %4352  ;;  %v16590_v42 = vmov %v16589_v4  ;;  %v16591_v49 = vsub.f32 %v11028_v2, %v16589_v4  ;;  %v16595_v2 = vsub.f32 %v11012_v45, %v16567_v41 }
0x1009   : >> { %v15046_v63 = vadd.f32 %v4353_v0, %v4336_v26   ;;  %v4278_v1 = vmul.f32 1.442695, %v16585_v24  ;;  %v8877_v0 = vpop.eup %8876  ;;  %v4344_v24 = vmul.f32 %v10968_v22, %v15089_v19 }
0x100a   : >> { %v4274_v62 = vmul.f32 1.442695, %v16591_v49  ;;  %v4282_v48 = vmul.f32 1.442695, %v16595_v2  ;;  %v16608_v2 = vld [vmem:[#allocation188_spill] sm:$0xff] }
0x100b   : >> { %16584 = vst [vmem:[#allocation166_spill] sm:$0xff] %v15046_v63  ;;  %v16587_v63 = vsub.f32 %v11016_v9, %v14978_v58  ;;  %8878 = vpow2.f32 %v4278_v1  ;;  %v4341_v1 = vmul.f32 %v10980_v47, %v8877_v0 }
0x100c   : >> { %v4365_v31 = vpop.xlane.xlu1 %4364 }
0x100d   : >> { %v4359_v53 = vpop.xlane.xlu0 %4358  ;;  %v15059_v11 = vadd.f32 %v4365_v31, %v4342_v34   ;;  %v4280_v39 = vmul.f32 1.442695, %v16587_v63 }
0x100e   : >> { %v15064_v35 = vadd.f32 %v4359_v53, %v4339_v36  }
0x100f   : >> { %16586 = vst [vmem:[#allocation168_spill] sm:$0xff] %v15059_v11  ;;  %8880 = vpow2.f32 %v4280_v39 }
0x1010   : >> { %16588 = vst [vmem:[#allocation165_spill] sm:$0xff] %v15064_v35  ;;  %v4361_v11 = vpop.xlane.xlu1 %4360  ;;  %v16593_v35 = vsub.f32 %v11008_v44, %v16560_v37  ;;  %8882 = vpow2.f32 %v4274_v62 }
0x1011   : >> { %v4355_v9 = vpop.xlane.xlu0 %4354  ;;  %v15077_v61 = vadd.f32 %v4361_v11, %v4340_v54  }
0x1012   : >> { %v4284_v21 = vmul.f32 1.442695, %v16593_v35  ;;  %v15082_v52 = vadd.f32 %v4355_v9, %v4337_v18  }
0x1013   : >> { %16592 = vst [vmem:[#allocation167_spill] sm:$0xff] %v15077_v61  ;;  %v4343_v61 = vmul.f32 %v10972_v8, %v15075_v60 }
0x1014   : >> { %16594 = vst [vmem:[#allocation170_spill] sm:$0xff] %v15082_v52  ;;  %v4373_v26 = vpop.xlane.xlu1 %4372  ;;  %8884 = vpow2.f32 %v4284_v21  ;;  %v16598_v52 = vsub.f32 %v11004_v56, %v14981_v55 }
0x1015   : >> { %v4367_v44 = vpop.xlane.xlu0 %4366  ;;  %v15093_v20 = vadd.f32 %v4373_v26, %v4346_v5   ;;  %8886 = vpow2.f32 %v4282_v48  ;;  %v8879_v36 = vpop.eup %8878  ;;  %v4400_v48 = vmul.f32 %v16608_v2, %v15030_v27  ;;  %v16613_v26 = vld [vmem:[#allocation187_spill] sm:$0xff]  ;;  %v16641_v2 = vld [vmem:[#allocation176_spill] sm:$0xff] }
0x1016   : >> { %v15095_v8 = vadd.f32 %v4367_v44, %v4343_v61   ;;  %v4286_v45 = vmul.f32 1.442695, %v16598_v52  ;;  %v16611_v61 = vld [vmem:[#allocation185_spill] sm:$0xff]  ;;  %v4401_v44 = vmul.f32 %v16613_v26, %v15057_v28 }
0x1017   : >> { %16596 = vst [vmem:[#allocation172_spill] sm:$0xff] %v15093_v20 }
0x1018   : >> { %16597 = vst [vmem:[#allocation169_spill] sm:$0xff] %v15095_v8  ;;  %v4369_v34 = vpop.xlane.xlu1 %4368  ;;  %8888 = vpow2.f32 %v4286_v45  ;;  %v4347_v8 = vmul.f32 %v10956_v33, %v8879_v36 }
0x1019   : >> { %v4363_v31 = vpop.xlane.xlu0 %4362  ;;  %v15103_v22 = vadd.f32 %v4369_v34, %v4344_v24   ;;  %v8881_v20 = vpop.eup %8880  ;;  %v16619_v24 = vld [vmem:[#allocation184_spill] sm:$0xff]  ;;  %v16622_v34 = vld [vmem:[#allocation181_spill] sm:$0xff] }
0x101a   : >> { %v15105_v47 = vadd.f32 %v4363_v31, %v4341_v1   ;;  %v8883_v53 = vpop.eup %8882  ;;  %v4348_v63 = vmul.f32 %v10952_v7, %v8881_v20  ;;  %v4404_v1 = vmul.f32 %v16619_v24, %v15053_v30  ;;  %v16687_v24 = vld [vmem:[#allocation164_spill] sm:$0xff] }
0x101b   : >> { %16599 = vst [vmem:[#allocation171_spill] sm:$0xff] %v15103_v22  ;;  %v4345_v4 = vmul.f32 %v10964_v12, %v8883_v53 }
0x101c   : >> { %16600 = vst [vmem:[#allocation193_spill] sm:$0xff] %v15105_v47 }
0x101d   : >> { %v4375_v56 = vpop.xlane.xlu0 %4374 }
0x101e   : >> { %v15108_v33 = vadd.f32 %v4375_v56, %v4347_v8   ;;  %v8885_v39 = vpop.eup %8884  ;;  %v16625_v56 = vld [vmem:[#allocation183_spill] sm:$0xff] }
0x101f   : >> { %v4377_v49 = vpop.xlane.xlu1 %4376  ;;  %v8887_v62 = vpop.eup %8886  ;;  %v4350_v22 = vmul.f32 %v10944_v38, %v8885_v39 }
0x1020   : >> { %16601 = vst [vmem:[#allocation194_spill] sm:$0xff] %v15108_v33  ;;  %v15112_v7 = vadd.f32 %v4377_v49, %v4348_v63   ;;  %v4349_v47 = vmul.f32 %v10948_v3, %v8887_v62  ;;  %v4405_v63 = vmul.f32 %v16625_v56, %v8877_v0  ;;  %v16690_v56 = vld [vmem:[#allocation161_spill] sm:$0xff] }
0x1021   : >> { %v4371_v54 = vpop.xlane.xlu0 %4370 }
0x1022   : >> { %16602 = vst [vmem:[#allocation195_spill] sm:$0xff] %v15112_v7  ;;  %v15114_v12 = vadd.f32 %v4371_v54, %v4345_v4   ;;  %v8889_v11 = vpop.eup %8888  ;;  %v16607_v7 = vld [vmem:[#allocation186_spill] sm:$0xff]  ;;  %v16631_v54 = vld [vmem:[#allocation180_spill] sm:$0xff] }
0x1023   : >> { %v4381_v18 = vpop.xlane.xlu1 %4380  ;;  %v4351_v33 = vmul.f32 %v10940_v17, %v8889_v11  ;;  %v4402_v21 = vmul.f32 %v16607_v7, %v15017_v59  ;;  %v16618_v59 = vld [vmem:[#allocation182_spill] sm:$0xff] }
0x1024   : >> { %16603 = vst [vmem:[#allocation196_spill] sm:$0xff] %v15114_v12  ;;  %v15118_v38 = vadd.f32 %v4381_v18, %v4350_v22   ;;  %v4406_v27 = vmul.f32 %v16618_v59, %v15042_v51  ;;  %v16630_v51 = vld [vmem:[#allocation178_spill] sm:$0xff]  ;;  %v4408_v22 = vmul.f32 %v16631_v54, %v15089_v19  ;;  %v16701_v54 = vld [vmem:[#allocation133_spill] sm:$0xff] }
0x1025   : >> { %v4379_v9 = vpop.xlane.xlu0 %4378 }
0x1026   : >> { %16604 = vst [vmem:[#allocation197_spill] sm:$0xff] %v15118_v38  ;;  %v15120_v3 = vadd.f32 %v4379_v9, %v4349_v47   ;;  %v4403_v38 = vmul.f32 %v16611_v61, %v15044_v25  ;;  %v16634_v47 = vld [vmem:[#allocation177_spill] sm:$0xff] }
0x1027   : >> { %v16644_v61 = vld [vmem:[#allocation173_spill] sm:$0xff] }
0x1028   : >> { %16605 = vst [vmem:[#allocation198_spill] sm:$0xff] %v15120_v3 }
0x1029   : >> { %v4383_v35 = vpop.xlane.xlu0 %4382 }
0x102a   : >> { %v15123_v17 = vadd.f32 %v4383_v35, %v4351_v33   ;;  %v16636_v33 = vld [vmem:[#allocation179_spill] sm:$0xff] }
0x102c   : >> { %16606 = vst [vmem:[#allocation199_spill] sm:$0xff] %v15123_v17 }
0x1060   : >> { %v6627_v12 = vpop.f32.mrb[0].mxu1 }
0x1061   : >> { %v15129_v49 = vadd.f32 %v6627_v12, %v4402_v21   ;;  %v4490_v5 = vpop.f32.mrb[1].mxu1 }
0x1062   : >> { %v15133_v31 = vadd.f32 %v4490_v5, %v4400_v48   ;;  %v6628_v3 = vpop.f32.mrb[2].mxu1  ;;  %v4412_v48 = vmul.f32 %v16641_v2, %v8881_v20  ;;  %v16679_v20 = vld [vmem:[#allocation172_spill] sm:$0xff]  ;;  %v16696_v2 = vmov %v16590_v42 }
0x1063   : >> { %16609 = vst [vmem:[#allocation200_spill] sm:$0xff] %v15129_v49  ;;  %v16610_v50 = vmov %v15129_v49  ;;  %v15137_v17 = vadd.f32 %v6628_v3, %v4403_v38   ;;  %v4493_v52 = vpop.f32.mrb[3].mxu1  ;;  %v4410_v49 = vmul.f32 %v16630_v51, %v15071_v43  ;;  %v16640_v43 = vld [vmem:[#allocation174_spill] sm:$0xff]  ;;  %v16647_v38 = vld [vmem:[#allocation175_spill] sm:$0xff]  ;;  %v16699_v42 = vld [vmem:[#allocation132_spill] sm:$0xff] }
0x1064   : >> { %v16612_v32 = vmov %v15133_v31  ;;  %v15139_v5 = vadd.f32 %v4493_v52, %v4401_v44   ;;  %v4407_v31 = vmul.f32 %v16622_v34, %v15075_v60  ;;  %v4414_v7 = vmul.f32 %v16640_v43, %v8885_v39  ;;  %v16688_v52 = vld [vmem:[#allocation170_spill] sm:$0xff]  ;;  %v16691_v44 = vld [vmem:[#allocation159_spill] sm:$0xff]  ;;  %v16726_v20 = vld [vmem:[#allocation165_spill] sm:$0xff] (%p15185_p11) }
0x1065   : >> { %16614 = vst [vmem:[#allocation201_spill] sm:$0xff] %v15137_v17  ;;  %v4413_v3 = vmul.f32 %v16647_v38, %v8887_v62  ;;  %v16669_v29 = vmov %v15137_v17  ;;  %v16674_v17 = vld [vmem:[#allocation199_spill] sm:$0xff]  ;;  %v16675_v38 = vld [vmem:[#allocation197_spill] sm:$0xff]  ;;  %v16700_v34 = vmov %v16582_v13  ;;  %v16702_v62 = vmov %v16548_v10  ;;  %v16724_v42 = vld [vmem:[#allocation194_spill] sm:$0xff] (%p15185_p11) }
0x1066   : >> { %16616 = vst [vmem:[#allocation202_spill] sm:$0xff] %v15139_v5  ;;  %v16617_v23 = vmov %v15139_v5  ;;  %v16670_v39 = vmov %v16669_v29  ;;  %v16698_v51 = vld [vmem:[#allocation135_spill] sm:$0xff]  ;;  %v16703_v10 = vld [vmem:[#allocation129_spill] sm:$0xff]  ;;  %v16730_v62 = vld [vmem:[#allocation126_spill] sm:$0xff] (%p15185_p11) }
0x1067   : >> { %v16705_v13 = vld [vmem:[#allocation157_spill] sm:$0xff]  ;;  %v16717_v10 = vld [vmem:[#allocation166_spill] sm:$0xff] (%p15185_p11)  ;;  %v16729_v39 = vld [vmem:[#allocation127_spill] sm:$0xff] (%p15185_p11) }
0x1068   : >> { %v6631_v45 = vpop.f32.mrb[4].mxu1  ;;  %v16713_v13 = vld [vmem:[#allocation80_spill] sm:$0xff] (%p15185_p11) }
0x1069   : >> { %v15145_v18 = vadd.f32 %v6631_v45, %v4406_v27   ;;  %v4506_v25 = vpop.f32.mrb[5].mxu1  ;;  %v16692_v45 = vld [vmem:[#allocation163_spill] sm:$0xff]  ;;  %v16748_v38 = vld [vmem:[#allocation168_spill] sm:$0xff] (%p15185_p11) }
0x106a   : >> { %v15149_v8 = vadd.f32 %v4506_v25, %v4404_v1   ;;  %v6632_v28 = vpop.f32.mrb[6].mxu1  ;;  %v16697_v1 = vld [vmem:[#allocation136_spill] sm:$0xff] }
0x106b   : >> { %16620 = vst [vmem:[#allocation203_spill] sm:$0xff] %v15145_v18  ;;  %v16621_v46 = vmov %v15145_v18  ;;  %v15152_v0 = vadd.f32 %v6632_v28, %v4407_v31   ;;  %v4509_v4 = vpop.f32.mrb[7].mxu1  ;;  %v4411_v18 = vmul.f32 %v16634_v47, %v8879_v36  ;;  %v4415_v36 = vmul.f32 %v16644_v61, %v8889_v11  ;;  %v16683_v11 = vld [vmem:[#allocation168_spill] sm:$0xff]  ;;  %v16684_v47 = vld [vmem:[#allocation193_spill] sm:$0xff]  ;;  %v16685_v61 = vld [vmem:[#allocation167_spill] sm:$0xff] }
0x106c   : >> { %16623 = vst [vmem:[#allocation204_spill] sm:$0xff] %v15149_v8  ;;  %v15154_v26 = vadd.f32 %v4509_v4, %v4405_v63   ;;  %v16667_v14 = vmov %v15149_v8  ;;  %v16673_v31 = vmov %v16612_v32  ;;  %v16682_v8 = vld [vmem:[#allocation169_spill] sm:$0xff]  ;;  %v16689_v63 = vld [vmem:[#allocation166_spill] sm:$0xff]  ;;  %v8920_v11 = vpack.i.bf16 (%p15185_p11), %v16730_v62, %v16729_v39  ;;  %v16734_v54 = vld [vmem:[#allocation200_spill] sm:$0xff] (%p15185_p11) }
0x106d   : >> { %16626 = vst [vmem:[#allocation205_spill] sm:$0xff] %v15152_v0  ;;  %v16627_v16 = vmov %v15152_v0  ;;  %v4409_v0 = vmul.f32 %v16636_v33, %v8883_v53  ;;  %v16678_v33 = vld [vmem:[#allocation194_spill] sm:$0xff]  ;;  %v16746_v61 = vld [vmem:[#allocation95_spill] sm:$0xff] (%p15185_p11) }
0x106e   : >> { %16628 = vst [vmem:[#allocation206_spill] sm:$0xff] %v15154_v26  ;;  %v16665_v57 = vmov %v15154_v26  ;;  %v16694_v4 = vld [vmem:[#allocation158_spill] sm:$0xff]  ;;  %v16739_v33 = vld [vmem:[#allocation93_spill] sm:$0xff] (%p15185_p11) }
0x106f   : >> { %v16666_v26 = vmov %v16665_v57  ;;  %v16710_v57 = vld [vmem:[#allocation90_spill] sm:$0xff] (%p15185_p11) }
0x1070   : >> { %v6635_v30 = vpop.f32.mrb[8].mxu1  ;;  %v9011_v26 = vld [vmem:[#allocation19 + $0x8] sm:$0xff] (%p15185_p11)  }
0x1071   : >> { %v15160_v28 = vadd.f32 %v6635_v30, %v4410_v49   ;;  %v4522_v60 = vpop.f32.mrb[9].mxu1  ;;  %v16671_v49 = vmov %v16610_v50  ;;  %v16714_v50 = vld [vmem:[#allocation82_spill] sm:$0xff] (%p15185_p11) }
0x1072   : >> { %v15163_v19 = vadd.f32 %v4522_v60, %v4408_v22   ;;  %v6636_v9 = vpop.f32.mrb[10].mxu1  ;;  %v16681_v22 = vld [vmem:[#allocation171_spill] sm:$0xff]  ;;  %v16731_v31 = vld [vmem:[#allocation202_spill] sm:$0xff] (%p15185_p11) }
0x1073   : >> { %16632 = vst [vmem:[#allocation207_spill] sm:$0xff] %v15160_v28  ;;  %v16633_v27 = vmov %v15160_v28  ;;  %v15166_v21 = vadd.f32 %v6636_v9, %v4411_v18   ;;  %v4525_v35 = vpop.f32.mrb[11].mxu1  ;;  %v16664_v18 = vmov %v16621_v46  ;;  %v16693_v9 = vld [vmem:[#allocation162_spill] sm:$0xff]  ;;  %v16704_v60 = vld [vmem:[#allocation131_spill] sm:$0xff]  ;;  %v16735_v22 = vld [vmem:[#allocation201_spill] sm:$0xff] (%p15185_p11) }
0x1074   : >> { %v16635_v41 = vmov %v15163_v19  ;;  %v15168_v30 = vadd.f32 %v4525_v35, %v4409_v0   ;;  %v16660_v28 = vmov %v16633_v27  ;;  %v16663_v0 = vmov %v16627_v16  ;;  %v16686_v35 = vld [vmem:[#allocation165_spill] sm:$0xff]  ;;  %v16708_v46 = vld [vmem:[#allocation91_spill] sm:$0xff] (%p15185_p11)  ;;  %v16737_v47 = vld [vmem:[#allocation198_spill] sm:$0xff] (%p15185_p11) }
0x1075   : >> { %16637 = vst [vmem:[#allocation208_spill] sm:$0xff] %v15166_v21  ;;  %v16638_v40 = vmov %v15166_v21  ;;  %v16707_v16 = vld [vmem:[#allocation89_spill] sm:$0xff] (%p15185_p11)  ;;  %v16715_v27 = vld [vmem:[#allocation171_spill] sm:$0xff] (%p15185_p11) }
0x1076   : >> { %v16639_v15 = vmov %v15168_v30  ;;  %9012 = vrcp.f32 (%p15185_p11), %v16715_v27  ;;  %v16736_v60 = vld [vmem:[#allocation195_spill] sm:$0xff] (%p15185_p11) }
0x1077   : >> { %v16661_v30 = vmov %v16639_v15  ;;  %v16738_v9 = vld [vmem:[#allocation83_spill] sm:$0xff] (%p15185_p11) }
0x1078   : >> { %v6639_v12 = vpop.f32.mrb[12].mxu1  ;;  %v8955_v0 = vpack.i.bf16 (%p15185_p11), %v16739_v33, %v16738_v9  ;;  %v16740_v35 = vld [vmem:[#allocation167_spill] sm:$0xff] (%p15185_p11) }
0x1079   : >> { %v15172_v53 = vadd.f32 %v6639_v12, %v4414_v7   ;;  %v4538_v5 = vpop.f32.mrb[13].mxu1  ;;  %v16677_v7 = vld [vmem:[#allocation195_spill] sm:$0xff]  ;;  %v16680_v12 = vld [vmem:[#allocation196_spill] sm:$0xff]  ;;  %3909 = sbr.rel (!%p15185_p11) target bundleno = 3401 (0xd49), region = 238 }
0x107a   : >> { %v15175_v25 = vadd.f32 %v4538_v5, %v4412_v48   ;;  %v6640_v19 = vpop.f32.mrb[14].mxu1  ;;  %v16672_v5 = vmov %v16617_v23  ;;  %v16695_v48 = vld [vmem:[#allocation160_spill] sm:$0xff]  ;;  %v16732_v56 = vld [vmem:[#allocation207_spill] sm:$0xff] (%p15185_p11)  ;;  %v16742_v7 = vld [vmem:[#allocation85_spill] sm:$0xff] (%p15185_p11) }
0x107b   : >> { %16642 = vst [vmem:[#allocation209_spill] sm:$0xff] %v15172_v53  ;;  %v15178_v43 = vadd.f32 %v6640_v19, %v4415_v36   ;;  %v4541_v21 = vpop.f32.mrb[15].mxu1  ;;  %v16654_v58 = vmov %v15172_v53  ;;  %v16662_v19 = vmov %v16635_v41  ;;  %v16668_v36 = vmov %v16667_v14  ;;  %v16716_v23 = vld [vmem:[#allocation196_spill] sm:$0xff] (%p15185_p11)  ;;  %v16743_v12 = vld [vmem:[#allocation87_spill] sm:$0xff] (%p15185_p11)  ;;  %v16744_v48 = vld [vmem:[#allocation197_spill] sm:$0xff] (%p15185_p11) }
0x107c   : >> { %16645 = vst [vmem:[#allocation210_spill] sm:$0xff] %v15175_v25  ;;  %v15180_v59 = vadd.f32 %v4541_v21, %v4413_v3   ;;  %v16655_v53 = vmov %v16654_v58  ;;  %v16657_v55 = vmov %v15175_v25  ;;  %v16659_v21 = vmov %v16638_v40  ;;  %v16676_v3 = vld [vmem:[#allocation198_spill] sm:$0xff]  ;;  %v16709_v58 = vld [vmem:[#allocation88_spill] sm:$0xff] (%p15185_p11)  ;;  %v16745_v5 = vld [vmem:[#allocation199_spill] sm:$0xff] (%p15185_p11) }
0x107d   : >> { %16648 = vst [vmem:[#allocation211_spill] sm:$0xff] %v15178_v43  ;;  %v16649_v37 = vmov %v15178_v43  ;;  %v16658_v25 = vmov %v16657_v55  ;;  %v8890_v14 = vpack.i.bf16 (%p15185_p11), %v16710_v57, %v16709_v58  ;;  %v16712_v55 = vld [vmem:[#allocation81_spill] sm:$0xff] (%p15185_p11)  ;;  %v8895_v40 = vpack.i.bf16 (%p15185_p11), %v16714_v50, %v16713_v13  ;;  %v16722_v58 = vld [vmem:[#allocation123_spill] sm:$0xff] (%p15185_p11)  ;;  %v16733_v51 = vld [vmem:[#allocation208_spill] sm:$0xff] (%p15185_p11) }
0x107e   : >> { %16650 = vst [vmem:[#allocation212_spill] sm:$0xff] %v15180_v59  ;;  %v16651_v6 = vmov %v15180_v59  ;;  %v16653_v43 = vmov %v16649_v37  ;;  %v8900_v37 = vpack.i.bf16 (%p15185_p11), %v16708_v46, %v16707_v16  ;;  %9014 = vrcp.f32 (%p15185_p11), %v16716_v23  ;;  %v16718_v16 = vld [vmem:[#allocation170_spill] sm:$0xff] (%p15185_p11)  ;;  %v16721_v57 = vld [vmem:[#allocation125_spill] sm:$0xff] (%p15185_p11)  ;;  %v16725_v23 = vld [vmem:[#allocation164_spill] sm:$0xff] (%p15185_p11) }
0x107f   : >> { %v16656_v59 = vmov %v16651_v6  ;;  %8891 = vrot.lane.b32.xlu0 (%p15185_p11), %v8890_v14, %s11086_s1  ;;  %v16711_v6 = vld [vmem:[#allocation48_spill] sm:$0xff] (%p15185_p11)  ;;  %9016 = vrcp.f32 (%p15185_p11), %v16717_v10  ;;  %v16741_v43 = vld [vmem:[#allocation193_spill] sm:$0xff] (%p15185_p11)  ;;  %v8950_v2 = vpack.i.bf16 (%p15185_p11), %v16743_v12, %v16742_v7  ;;  %v16751_v13 = vld [vmem:[#allocation86_spill] sm:$0xff] (%p15185_p11) }
0x1080   : > { %8901 = vrot.lane.b32.xlu1 %v8900_v37, %s11086_s1  ;;  %v8905_v29 = vpack.i.bf16 %v16712_v55, %v16711_v6  ;;  %9018 = vrcp.f32 %v16718_v16  ;;  %v16719_v37 = vld [vmem:[#allocation94_spill] sm:$0xff]  ;;  %v16720_v14 = vld [vmem:[#allocation100_spill] sm:$0xff]  ;;  %v8910_v55 = vpack.i.bf16 %v16722_v58, %v16721_v57  ;;  %v9013_v44 = vpop.eup %9012  ;;  %v16749_v3 = vld [vmem:[#allocation169_spill] sm:$0xff] }
0x1081   : > { %v8915_v46 = vpack.i.bf16 %v16720_v14, %v16719_v37  ;;  %v16723_v6 = vld [vmem:[#allocation172_spill] sm:$0xff]  ;;  %v4593_v52 = vmul.f32 %v9013_v44, %v16635_v41  ;;  %v16752_v37 = vld [vmem:[#allocation99_spill] sm:$0xff]  ;;  %v16753_v14 = vld [vmem:[#allocation130_spill] sm:$0xff] }
0x1082   : > { %9020 = vrcp.f32 %v16723_v6  ;;  %v9010_v50 = vld [vmem:[#allocation19] sm:$0xff]  }
0x1083   : > { %8896 = vrot.lane.b32.xlu0 %v8895_v40, %s11086_s1  ;;  %9022 = vrcp.f32 %v16724_v42  ;;  %6641 = vmatprep.subr.bf16.mxu0 %v9010_v50  ;;  %v16727_v40 = vld [vmem:[#allocation96_spill] sm:$0xff] }
0x1084   : > { %8906 = vrot.lane.b32.xlu1 %v8905_v29, %s11086_s1  ;;  %9024 = vrcp.f32 %v16725_v23  ;;  %6665 = vmatprep.subr.bf16.mxu1 %v9010_v50  ;;  %v16728_v29 = vld [vmem:[#allocation98_spill] sm:$0xff]  ;;  %v16747_v36 = vld [vmem:[#allocation92_spill] sm:$0xff] }
0x1085   : > { %9026 = vrcp.f32 %v16726_v20  ;;  %6642 = vmatpush3.bf16.msra.mxu0 %v9010_v50  ;;  %6667 = vmatpush3.bf16.msra.mxu1 %v9010_v50  ;;  %v8925_v53 = vpack.i.bf16 %v16728_v29, %v16727_v40  ;;  %v8965_v19 = vpack.i.bf16 %v16747_v36, %v16746_v61  ;;  %v16750_v21 = vld [vmem:[#allocation84_spill] sm:$0xff]  ;;  %v16756_v20 = vld [vmem:[#allocation134_spill] sm:$0xff] }
0x1086   : > { %6643 = vmatprep.subr.bf16.mxu0 %v9011_v26  ;;  %6666 = vmatprep.subr.bf16.mxu1 %v9011_v26  ;;  %9028 = vrcp.f32 %v16736_v60  ;;  %v8960_v10 = vpack.i.bf16 %v16751_v13, %v16750_v21  ;;  %v16755_v6 = vld [vmem:[#allocation124_spill] sm:$0xff]  ;;  %v16769_v21 = vld [vmem:[#allocation78_spill] sm:$0xff] }
0x1087   : > { %8911 = vrot.lane.b32.xlu0 %v8910_v55, %s11087_s29  ;;  %9030 = vrcp.f32 %v16737_v47  ;;  %v16754_v55 = vld [vmem:[#allocation101_spill] sm:$0xff]  ;;  %v16757_v40 = vld [vmem:[#allocation128_spill] sm:$0xff] }
0x1088   : > { %8916 = vrot.lane.b32.xlu1 %v8915_v46, %s11087_s29  ;;  %v9015_v17 = vpop.eup %9014  ;;  %9032 = vrcp.f32 %v16740_v35  ;;  %v8975_v46 = vpack.i.bf16 %v16753_v14, %v16752_v37  ;;  %v8970_v50 = vpack.i.bf16 %v16755_v6, %v16754_v55  ;;  %v8985_v29 = vpack.i.bf16 %v16757_v40, %v16756_v20  ;;  %v16759_v62 = vld [vmem:[#allocation212_spill] sm:$0xff]  ;;  %v16771_v37 = vld [vmem:[#allocation67_spill] sm:$0xff] }
0x1089   : > { %6644 = vmatpush3.bf16.msra.mxu0 %v9011_v26  ;;  %6668 = vmatpush3.bf16.msra.mxu1 %v9011_v26  ;;  %v9017_v59 = vpop.eup %9016  ;;  %v4594_v45 = vmul.f32 %v9015_v17, %v16639_v15  ;;  %9034 = vrcp.f32 %v16741_v43  ;;  %v16760_v17 = vld [vmem:[#allocation97_spill] sm:$0xff] }
0x108a   : > { %v9019_v24 = vpop.eup %9018  ;;  %v4585_v1 = vmul.f32 %v9017_v59, %v16612_v32  ;;  %9036 = vrcp.f32 %v16744_v48 }
0x108b   : > { %8921 = vrot.lane.b32.xlu0 %v8920_v11, %s11087_s29  ;;  %v8935_v34 = vpack.i.bf16 %v4594_v45, %v4593_v52  ;;  %v4586_v8 = vmul.f32 %v9019_v24, %v16731_v31  ;;  %9038 = vrcp.f32 %v16745_v5  ;;  %v16761_v52 = vld [vmem:[#allocation102_spill] sm:$0xff]  ;;  %v16762_v45 = vld [vmem:[#allocation204_spill] sm:$0xff] }
0x108c   : > { %8926 = vrot.lane.b32.xlu1 %v8925_v53, %s11087_s29  ;;  %v9021_v25 = vpop.eup %9020  ;;  %9040 = vrcp.f32 %v16748_v38  ;;  %v16758_v53 = vld [vmem:[#allocation210_spill] sm:$0xff]  ;;  %v8980_v59 = vpack.i.bf16 %v16761_v52, %v16760_v17 }
0x108d   : > { %v9023_v28 = vpop.eup %9022  ;;  %v4595_v63 = vmul.f32 %v9021_v25, %v16732_v56  ;;  %v8930_v4 = vpack.i.bf16 %v4586_v8, %v4585_v1  ;;  %9042 = vrcp.f32 %v16749_v3  ;;  %v16763_v1 = vld [vmem:[#allocation206_spill] sm:$0xff]  ;;  %v16764_v8 = vld [vmem:[#allocation209_spill] sm:$0xff]  ;;  %v16765_v56 = vld [vmem:[#allocation211_spill] sm:$0xff] }
0x108e   : > { %v9025_v41 = vpop.eup %9024  ;;  %v4596_v49 = vmul.f32 %v9023_v28, %v16733_v51 }
0x108f   : > { %v9027_v30 = vpop.eup %9026  ;;  %v4587_v15 = vmul.f32 %v9025_v41, %v16734_v54  ;;  %8931 = vrot.lane.b32.xlu0 %v8930_v4, %s11088_s20  ;;  %v16766_v4 = vld [vmem:[#allocation203_spill] sm:$0xff] }
0x1090   : > { %8936 = vrot.lane.b32.xlu1 %v8935_v34, %s11088_s20  ;;  %v8945_v32 = vpack.i.bf16 %v4596_v49, %v4595_v63  ;;  %v4588_v27 = vmul.f32 %v9027_v30, %v16735_v22  ;;  %v9029_v16 = vpop.eup %9028  ;;  %v16767_v49 = vld [vmem:[#allocation205_spill] sm:$0xff] }
0x1091   : > { %v9031_v57 = vpop.eup %9030  ;;  %v4597_v39 = vmul.f32 %v9029_v16, %v16758_v53 }
0x1092   : > { %v8940_v18 = vpack.i.bf16 %v4588_v27, %v4587_v15  ;;  %v9033_v58 = vpop.eup %9032  ;;  %v4598_v11 = vmul.f32 %v9031_v57, %v16759_v62 }
0x1093   : > { %v9035_v42 = vpop.eup %9034  ;;  %v4589_v24 = vmul.f32 %v9033_v58, %v16762_v45  ;;  %v16773_v58 = vld [vmem:[#allocation70_spill] sm:$0xff] }
0x1094   : > { %8946 = vrot.lane.b32.xlu1 %v8945_v32, %s11088_s20  ;;  %8941 = vrot.lane.b32.xlu0 %v8940_v18, %s11088_s20  ;;  %v9037_v23 = vpop.eup %9036  ;;  %v4590_v25 = vmul.f32 %v9035_v42, %v16763_v1  ;;  %v8995_v31 = vpack.i.bf16 %v4598_v11, %v4597_v39  ;;  %v16774_v42 = vld [vmem:[#allocation71_spill] sm:$0xff] }
0x1095   : > { %v9039_v26 = vpop.eup %9038  ;;  %v4599_v28 = vmul.f32 %v9037_v23, %v16764_v8 }
0x1096   : > { %v9041_v44 = vpop.eup %9040  ;;  %v4600_v63 = vmul.f32 %v9039_v26, %v16765_v56  ;;  %v8990_v41 = vpack.i.bf16 %v4590_v25, %v4589_v24 }
0x1097   : > { %v9043_v34 = vpop.eup %9042  ;;  %v4591_v51 = vmul.f32 %v9041_v44, %v16766_v4 }
0x1098   : > { %8956 = vrot.lane.b32.xlu1 %v8955_v0, %s11086_s1  ;;  %8951 = vrot.lane.b32.xlu0 %v8950_v2, %s11086_s1  ;;  %v4592_v30 = vmul.f32 %v9043_v34, %v16767_v49  ;;  %v9005_v54 = vpack.i.bf16 %v4600_v63, %v4599_v28  ;;  %v16775_v63 = vld [vmem:[#allocation77_spill] sm:$0xff] }
0x109a   : > { %v9000_v15 = vpack.i.bf16 %v4592_v30, %v4591_v51 }
0x109c   : > { %8966 = vrot.lane.b32.xlu1 %v8965_v19, %s11086_s1  ;;  %8961 = vrot.lane.b32.xlu0 %v8960_v10, %s11086_s1  ;;  %v16768_v19 = vld [vmem:[#allocation76_spill] sm:$0xff]  ;;  %v16770_v10 = vld [vmem:[#allocation79_spill] sm:$0xff] }
0x10a0   : > { %8976 = vrot.lane.b32.xlu1 %v8975_v46, %s11087_s29  ;;  %8971 = vrot.lane.b32.xlu0 %v8970_v50, %s11087_s29  ;;  %v16772_v46 = vld [vmem:[#allocation69_spill] sm:$0xff] }
0x10a4   : > { %8986 = vrot.lane.b32.xlu1 %v8985_v29, %s11087_s29  ;;  %8981 = vrot.lane.b32.xlu0 %v8980_v59, %s11087_s29 }
0x10a8   : > { %8996 = vrot.lane.b32.xlu1 %v8995_v31, %s11088_s20  ;;  %8991 = vrot.lane.b32.xlu0 %v8990_v41, %s11088_s20 }
0x10ac   : > { %9006 = vrot.lane.b32.xlu1 %v9005_v54, %s11088_s20  ;;  %9001 = vrot.lane.b32.xlu0 %v9000_v15, %s11088_s20 }
0x10f1   : > { %v8892_v22 = vpop.permute.xlu0 %8891 }
0x10f2   : > { %v8902_v32 = vpop.permute.xlu1 %8901  ;;  %v8894_v33 = vunpack.i.h.bf16 %v8892_v22  ;;  %v8893_v0 = vunpack.i.l.bf16 %v8892_v22 }
0x10f3   : > { %v8904_v9 = vunpack.i.h.bf16 %v8902_v32  ;;  %v8903_v3 = vunpack.i.l.bf16 %v8902_v32 }
0x10f4   : > { %v4795_v13 = vsel %vm1974_vm2, %v16769_v21, %v8894_v33  ;;  %v4794_v16 = vsel %vm1974_vm2, %v16770_v10, %v8893_v0 }
0x10f5   : > { %v8897_v60 = vpop.permute.xlu0 %8896  ;;  %v4797_v38 = vsel %vm1974_vm2, %v16768_v19, %v8904_v9  ;;  %v4796_v41 = vsel %vm1974_vm2, %v16775_v63, %v8903_v3 }
0x10f6   : > { %v8907_v27 = vpop.permute.xlu1 %8906  ;;  %v8899_v7 = vunpack.i.h.bf16 %v8897_v60  ;;  %v8898_v48 = vunpack.i.l.bf16 %v8897_v60 }
0x10f7   : > { %v8909_v35 = vunpack.i.h.bf16 %v8907_v27  ;;  %v8908_v43 = vunpack.i.l.bf16 %v8907_v27 }
0x10f8   : > { %v4803_v55 = vsel %vm1974_vm2, %v16773_v58, %v8899_v7  ;;  %v4802_v23 = vsel %vm1974_vm2, %v16774_v42, %v8898_v48 }
0x10f9   : > { %v8912_v18 = vpop.permute.xlu0 %8911  ;;  %v4805_v14 = vsel %vm1974_vm2, %v16771_v37, %v8909_v35  ;;  %v4804_v57 = vsel %vm1974_vm2, %v16772_v46, %v8908_v43 }
0x10fa   : > { %v8917_v47 = vpop.permute.xlu1 %8916  ;;  %v8913_v5 = vunpack.i.l.bf16 %v8912_v18  ;;  %v8914_v6 = vunpack.i.h.bf16 %v8912_v18 }
0x10fb   : > { %v8919_v61 = vunpack.i.h.bf16 %v8917_v47  ;;  %v8918_v36 = vunpack.i.l.bf16 %v8917_v47 }
0x10fc   : > { %v4811_v29 = vsel %vm4810_vm3, %v4794_v16, %v8913_v5  ;;  %v4812_v25 = vsel %vm4810_vm3, %v4795_v13, %v8914_v6 }
0x10fd   : > { %v8922_v2 = vpop.permute.xlu0 %8921  ;;  %v4819_v11 = vsel %vm4810_vm3, %v4802_v23, %v8918_v36  ;;  %v4820_v26 = vsel %vm4810_vm3, %v4803_v55, %v8919_v61  ;;  %v16778_v55 = vld [vmem:[#allocation74_spill] sm:$0xff]  ;;  %v16780_v23 = vld [vmem:[#allocation47_spill] sm:$0xff] }
0x10fe   : > { %v8927_v12 = vpop.permute.xlu1 %8926  ;;  %v8924_v45 = vunpack.i.h.bf16 %v8922_v2  ;;  %v8923_v24 = vunpack.i.l.bf16 %v8922_v2 }
0x10ff   : > { %v8929_v53 = vunpack.i.h.bf16 %v8927_v12  ;;  %v8928_v39 = vunpack.i.l.bf16 %v8927_v12 }
0x1100   : > { %v4814_v27 = vsel %vm4810_vm3, %v4797_v38, %v8924_v45  ;;  %v4813_v60 = vsel %vm4810_vm3, %v4796_v41, %v8923_v24 }
0x1101   : > { %v8932_v62 = vpop.permute.xlu0 %8931  ;;  %v4821_v4 = vsel %vm4810_vm3, %v4804_v57, %v8928_v39  ;;  %v4822_v51 = vsel %vm4810_vm3, %v4805_v14, %v8929_v53  ;;  %v16776_v14 = vld [vmem:[#allocation68_spill] sm:$0xff]  ;;  %v16777_v57 = vld [vmem:[#allocation65_spill] sm:$0xff] }
0x1102   : > { %v8937_v50 = vpop.permute.xlu1 %8936  ;;  %v8934_v44 = vunpack.i.h.bf16 %v8932_v62  ;;  %v8933_v17 = vunpack.i.l.bf16 %v8932_v62 }
0x1103   : > { %v8939_v20 = vunpack.i.h.bf16 %v8937_v50  ;;  %v8938_v40 = vunpack.i.l.bf16 %v8937_v50  ;;  %v16779_v50 = vld [vmem:[#allocation75_spill] sm:$0xff] }
0x1104   : > { %v4828_v28 = vsel %vm4827_vm4, %v4811_v29, %v8933_v17  ;;  %v4829_v56 = vsel %vm4827_vm4, %v4812_v25, %v8934_v44 }
0x1105   : > { %v4836_v52 = vsel %vm4827_vm4, %v4819_v11, %v8938_v40  ;;  %v4837_v59 = vsel %vm4827_vm4, %v4820_v26, %v8939_v20  ;;  %v4844_v30 = vpack.c.bf16 %v4829_v56, %v4828_v28  ;;  %v16781_v40 = vld [vmem:[#allocation66_spill] sm:$0xff]  ;;  %v16782_v11 = vld [vmem:[#allocation72_spill] sm:$0xff] }
0x1106   : > { %v8947_v1 = vpop.permute.xlu1 %8946  ;;  %v4848_v34 = vpack.c.bf16 %v4837_v59, %v4836_v52  ;;  %v8942_v49 = vpop.permute.xlu0 %8941 }
0x1107   : > { %v8949_v31 = vunpack.i.h.bf16 %v8947_v1  ;;  %v8948_v8 = vunpack.i.l.bf16 %v8947_v1  ;;  %v8944_v54 = vunpack.i.h.bf16 %v8942_v49  ;;  %v8943_v15 = vunpack.i.l.bf16 %v8942_v49  ;;  %6645 = vmatprep.mubr.msk.bf16.mxu0 %vm1767_vm1, %v4844_v30 }
0x1108   : > { %6653 = vmatprep.mubr.msk.bf16.mxu1 %vm1767_vm1, %v4848_v34 }
0x1109   : > { %v4838_v32 = vsel %vm4827_vm4, %v4821_v4, %v8948_v8  ;;  %v4839_v22 = vsel %vm4827_vm4, %v4822_v51, %v8949_v31  ;;  %v4830_v9 = vsel %vm4827_vm4, %v4813_v60, %v8943_v15  ;;  %v4831_v33 = vsel %vm4827_vm4, %v4814_v27, %v8944_v54 }
0x110a   : > { %v8957_v47 = vpop.permute.xlu1 %8956  ;;  %v4849_v18 = vpack.c.bf16 %v4839_v22, %v4838_v32  ;;  %v8952_v0 = vpop.permute.xlu0 %8951  ;;  %v4845_v35 = vpack.c.bf16 %v4831_v33, %v4830_v9  ;;  %v16783_v32 = vld [vmem:[#allocation73_spill] sm:$0xff] }
0x110b   : > { %v8959_v48 = vunpack.i.h.bf16 %v8957_v47  ;;  %v8958_v5 = vunpack.i.l.bf16 %v8957_v47  ;;  %v8954_v61 = vunpack.i.h.bf16 %v8952_v0  ;;  %v8953_v36 = vunpack.i.l.bf16 %v8952_v0 }
0x110c   : > { %6654 = vmatmul.mubr.msk.bf16.vlgmr.msra.gmra.mrb[0].mxu1 %vm1767_vm1, %v4849_v18  ;;  %6646 = vmatmul.mubr.msk.bf16.vlgmr.msra.gmra.mrb[0].mxu0 %vm1767_vm1, %v4845_v35 }
0x110d   : > { %v4807_v46 = vsel %vm1974_vm2, %v16776_v14, %v8959_v48  ;;  %v4806_v58 = vsel %vm1974_vm2, %v16777_v57, %v8958_v5  ;;  %v4799_v6 = vsel %vm1974_vm2, %v16778_v55, %v8954_v61  ;;  %v4798_v42 = vsel %vm1974_vm2, %v16779_v50, %v8953_v36  ;;  %v6044_v61 = vld [vmem:[#allocation21] ss:$0 sm:$0xff] }
0x110e   : > { %v8967_v43 = vpop.permute.xlu1 %8966  ;;  %v8962_v7 = vpop.permute.xlu0 %8961 }
0x110f   : > { %v8969_v19 = vunpack.i.h.bf16 %v8967_v43  ;;  %v8968_v38 = vunpack.i.l.bf16 %v8967_v43  ;;  %v8964_v21 = vunpack.i.h.bf16 %v8962_v7  ;;  %v8963_v53 = vunpack.i.l.bf16 %v8962_v7 }
0x1111   : > { %v4809_v20 = vsel %vm1974_vm2, %v16780_v23, %v8969_v19  ;;  %v4808_v29 = vsel %vm1974_vm2, %v16781_v40, %v8968_v38  ;;  %v4801_v26 = vsel %vm1974_vm2, %v16782_v11, %v8964_v21  ;;  %v4800_v22 = vsel %vm1974_vm2, %v16783_v32, %v8963_v53 }
0x1112   : > { %v8977_v12 = vpop.permute.xlu1 %8976  ;;  %v8972_v2 = vpop.permute.xlu0 %8971 }
0x1113   : > { %v8978_v13 = vunpack.i.l.bf16 %v8977_v12  ;;  %v8979_v10 = vunpack.i.h.bf16 %v8977_v12  ;;  %v8973_v16 = vunpack.i.l.bf16 %v8972_v2  ;;  %v8974_v39 = vunpack.i.h.bf16 %v8972_v2 }
0x1115   : > { %v4823_v44 = vsel %vm4810_vm3, %v4806_v58, %v8978_v13  ;;  %v4824_v59 = vsel %vm4810_vm3, %v4807_v46, %v8979_v10  ;;  %v4815_v45 = vsel %vm4810_vm3, %v4798_v42, %v8973_v16  ;;  %v4816_v56 = vsel %vm4810_vm3, %v4799_v6, %v8974_v39 }
0x1116   : > { %v8987_v3 = vpop.permute.xlu1 %8986  ;;  %v8982_v37 = vpop.permute.xlu0 %8981 }
0x1117   : > { %v8989_v24 = vunpack.i.h.bf16 %v8987_v3  ;;  %v8988_v1 = vunpack.i.l.bf16 %v8987_v3  ;;  %v8984_v63 = vunpack.i.h.bf16 %v8982_v37  ;;  %v8983_v41 = vunpack.i.l.bf16 %v8982_v37 }
0x1119   : > { %v4825_v27 = vsel %vm4810_vm3, %v4808_v29, %v8988_v1  ;;  %v4826_v60 = vsel %vm4810_vm3, %v4809_v20, %v8989_v24  ;;  %v4817_v43 = vsel %vm4810_vm3, %v4800_v22, %v8983_v41  ;;  %v4818_v7 = vsel %vm4810_vm3, %v4801_v26, %v8984_v63 }
0x111a   : > { %v8997_v62 = vpop.permute.xlu1 %8996  ;;  %v8992_v25 = vpop.permute.xlu0 %8991 }
0x111b   : > { %v8999_v17 = vunpack.i.h.bf16 %v8997_v62  ;;  %v8998_v52 = vunpack.i.l.bf16 %v8997_v62  ;;  %v8994_v34 = vunpack.i.h.bf16 %v8992_v25  ;;  %v8993_v31 = vunpack.i.l.bf16 %v8992_v25 }
0x111d   : > { %v4840_v8 = vsel %vm4827_vm4, %v4823_v44, %v8998_v52  ;;  %v4841_v28 = vsel %vm4827_vm4, %v4824_v59, %v8999_v17  ;;  %v4832_v54 = vsel %vm4827_vm4, %v4815_v45, %v8993_v31  ;;  %v4833_v15 = vsel %vm4827_vm4, %v4816_v56, %v8994_v34 }
0x111e   : > { %v9007_v4 = vpop.permute.xlu1 %9006  ;;  %v4850_v51 = vpack.c.bf16 %v4841_v28, %v4840_v8  ;;  %v9002_v47 = vpop.permute.xlu0 %9001  ;;  %v4846_v18 = vpack.c.bf16 %v4833_v15, %v4832_v54 }
0x111f   : > { %v9009_v49 = vunpack.i.h.bf16 %v9007_v4  ;;  %v9008_v30 = vunpack.i.l.bf16 %v9007_v4  ;;  %v9004_v9 = vunpack.i.h.bf16 %v9002_v47  ;;  %v9003_v33 = vunpack.i.l.bf16 %v9002_v47 }
0x1120   : > { %6657 = vmatprep.mubr.msk.bf16.mxu1 %vm1767_vm1, %v4850_v51  ;;  %6649 = vmatprep.mubr.msk.bf16.mxu0 %vm1767_vm1, %v4846_v18 }
0x1121   : > { %v4842_v0 = vsel %vm4827_vm4, %v4825_v27, %v9008_v30  ;;  %v4843_v35 = vsel %vm4827_vm4, %v4826_v60, %v9009_v49  ;;  %v4834_v2 = vsel %vm4827_vm4, %v4817_v43, %v9003_v33  ;;  %v4835_v48 = vsel %vm4827_vm4, %v4818_v7, %v9004_v9 }
0x1122   : > { %v4851_v12 = vpack.c.bf16 %v4843_v35, %v4842_v0  ;;  %v4847_v5 = vpack.c.bf16 %v4835_v48, %v4834_v2 }
0x1124   : > { %6658 = vmatmul.mubr.msk.bf16.gmra.mrb[4].mxu1 %vm1767_vm1, %v4851_v12  ;;  %6650 = vmatmul.mubr.msk.bf16.gmra.mrb[4].mxu0 %vm1767_vm1, %v4847_v5 }
0x11df   : > { %v6655_v36 = vpop.f32.mrb[0].mxu1  ;;  %v6647_v3 = vpop.f32.mrb[0].mxu0 }
0x11e0   : > { %v4974_v19 = vadd.f32 %v6655_v36, %v6044_v61  ;;  %v4965_v38 = vpop.f32.mrb[1].mxu1  ;;  %v4942_v10 = vadd.f32 %v6647_v3, %v6044_v61  ;;  %v4933_v16 = vpop.f32.mrb[1].mxu0 }
0x11e1   : > { %v4966_v21 = vadd.f32 %v6044_v61, %v4965_v38  ;;  %v6656_v13 = vpop.f32.mrb[2].mxu1  ;;  %v4934_v46 = vadd.f32 %v6044_v61, %v4933_v16  ;;  %v6648_v57 = vpop.f32.mrb[2].mxu0 }
0x11e2   : > { %5006 = vst.msk [vmem:[%s11645_s30 + $0x50] sm:$0xff] %vm1767_vm1, %v4974_v19  ;;  %v4977_v37 = vadd.f32 %v6656_v13, %v6044_v61  ;;  %v4968_v14 = vpop.f32.mrb[3].mxu1  ;;  %4998 = vst.msk [vmem:[%s11645_s30 + $0x10] sm:$0xff] %vm1767_vm1, %v4942_v10  ;;  %v4945_v55 = vadd.f32 %v6648_v57, %v6044_v61  ;;  %v4936_v6 = vpop.f32.mrb[3].mxu0 }
0x11e3   : > { %5004 = vst.msk [vmem:[%s11645_s30 + $0x40] sm:$0xff] %vm1767_vm1, %v4966_v21  ;;  %v4969_v58 = vadd.f32 %v6044_v61, %v4968_v14  ;;  %4996 = vst.msk [vmem:[%s11645_s30] sm:$0xff] %vm1767_vm1, %v4934_v46  ;;  %v4937_v50 = vadd.f32 %v6044_v61, %v4936_v6 }
0x11e4   : > { %5007 = vst.msk [vmem:[%s11645_s30 + $0x58] sm:$0xff] %vm1767_vm1, %v4977_v37  ;;  %4999 = vst.msk [vmem:[%s11645_s30 + $0x18] sm:$0xff] %vm1767_vm1, %v4945_v55 }
0x11e5   : > { %5005 = vst.msk [vmem:[%s11645_s30 + $0x48] sm:$0xff] %vm1767_vm1, %v4969_v58  ;;  %4997 = vst.msk [vmem:[%s11645_s30 + $0x8] sm:$0xff] %vm1767_vm1, %v4937_v50 }
0x11f7   : > { %v6659_v42 = vpop.f32.mrb[4].mxu1  ;;  %v6651_v40 = vpop.f32.mrb[4].mxu0 }
0x11f8   : > { %v4990_v23 = vadd.f32 %v6659_v42, %v6044_v61  ;;  %v4981_v20 = vpop.f32.mrb[5].mxu1  ;;  %v4958_v39 = vadd.f32 %v6651_v40, %v6044_v61  ;;  %v4949_v62 = vpop.f32.mrb[5].mxu0 }
0x11f9   : > { %v4982_v29 = vadd.f32 %v6044_v61, %v4981_v20  ;;  %v6660_v53 = vpop.f32.mrb[6].mxu1  ;;  %v4950_v44 = vadd.f32 %v6044_v61, %v4949_v62  ;;  %v6652_v17 = vpop.f32.mrb[6].mxu0 }
0x11fa   : > { %5010 = vst.msk [vmem:[%s11645_s30 + $0x70] sm:$0xff] %vm1767_vm1, %v4990_v23  ;;  %v4993_v11 = vadd.f32 %v6660_v53, %v6044_v61  ;;  %v4984_v26 = vpop.f32.mrb[7].mxu1  ;;  %5002 = vst.msk [vmem:[%s11645_s30 + $0x30] sm:$0xff] %vm1767_vm1, %v4958_v39  ;;  %v4961_v59 = vadd.f32 %v6652_v17, %v6044_v61  ;;  %v4952_v45 = vpop.f32.mrb[7].mxu0 }
0x11fb   : > { %5008 = vst.msk [vmem:[%s11645_s30 + $0x60] sm:$0xff] %vm1767_vm1, %v4982_v29  ;;  %v4985_v52 = vadd.f32 %v6044_v61, %v4984_v26  ;;  %5000 = vst.msk [vmem:[%s11645_s30 + $0x20] sm:$0xff] %vm1767_vm1, %v4950_v44  ;;  %v4953_v24 = vadd.f32 %v6044_v61, %v4952_v45 }
0x11fc   : > { %5011 = vst.msk [vmem:[%s11645_s30 + $0x78] sm:$0xff] %vm1767_vm1, %v4993_v11  ;;  %5003 = vst.msk [vmem:[%s11645_s30 + $0x38] sm:$0xff] %vm1767_vm1, %v4961_v59 }
0x11fd   : > { %5009 = vst.msk [vmem:[%s11645_s30 + $0x68] sm:$0xff] %vm1767_vm1, %v4985_v52  ;;  %5001 = vst.msk [vmem:[%s11645_s30 + $0x28] sm:$0xff] %vm1767_vm1, %v4953_v24 }
0x11fe   : > { %9371 = shalt.err (!%p9368_p9)
}
0x11ff   : > { %s9372_s30 = scalar_lea.hbm %s15529_s16, 2048  ;;  %s9376_s28 = scalar_lea.hbm %s16786_s9, 8192 }
0x1200   : > { %p9373_p12 = scmp.ne.s32.totalorder %s15529_s16, %s9372_s30  ;;  %p9377_p7 = scmp.lt.u32.totalorder %s15529_s16, %s16786_s9 }
0x1201   : > { %p9378_p8 = scmp.lt.u32.totalorder %s9376_s28, %s9372_s30  ;;  %p9380_p3 = scmp.lt.u32.totalorder %s9372_s30, %s15529_s16 }
0x1202   : > { %p9374_p4 = pnand %p9373_p12, %p16787_p1 }
0x1203   : > { %p9379_p11 = por %p9378_p8, %p9377_p7 }
0x1204   : > { %p9375_p13 = pneg %p9374_p4 }
0x1205   : > { %p9381_p6 = por %p9380_p3, %p9379_p11 }
0x1207   : > { %p9382_p5 = pnand %p9381_p6, %p9375_p13 }
0x1209   : > { %9385 = shalt.err (!%p9382_p5)
}
0x120a   : > { %s11090_s14 = smov 128  }
0x120b   : > { %6744 = dma.vmem_to_hbm [thread:$0]  (%p16787_p1), %s15535_s11, 2048, %s15529_s16, %s5013_s21, %s11090_s14, %s11090_s14, %s11086_s1  }
0x120c PF: > { %s16788_s12 = sld [smem:[#allocation30_spill]]  ;;  %p6802_p2 = scmp.ge.s32.totalorder %s10284_s27, 2 }
0x120d   : > { %p16789_p10 = scmp.ne.s32.totalorder %s15811_s2, 0 }
0x120f   : > { %p6782_p0 = pnand %p6802_p2, %p16789_p10 }
0x1212   : > { %s5043_s13 = sand.u32 1, %s16788_s12  }
0x1213   : > { %s5044_s5 = scalar_lea.sflag [#allocation6], %s5043_s13 }
0x1214   : > { %10239 = dma.done.wait (!%p6782_p0), %s5044_s5, 2048  }
0x1215   : > { %10241 = vsyncadd (!%p6782_p0), %s5044_s5, 4294965248  ;;  %s34_s27 = sadd.s32 1, %s10284_s27   ;;  %s16790_s20 = sld [smem:[#allocation31_spill]] }
0x1216   : > { %p31_p9 = scmp.ge.s32.totalorder %s34_s27, 6   ;;  %s16791_s21 = sld [smem:[#allocation32_spill]] }
0x1217   : > { %s16792_s23 = sld [smem:[#allocation35_spill]]  ;;  %s16793_s25 = sld [smem:[#allocation37_spill]] }
0x1218   : > { %s16794_s4 = sld [smem:[#allocation38_spill]]  ;;  %s16795_s17 = smov %s10248_s18 }
0x1219   : > { %s16796_s18 = smov %s10252_s19  ;;  %s16797_s19 = smov %s11515_s24 }
0x121a   : > { %s16798_s22 = smov %s16808_s7  ;;  %s16799_s24 = smov %s10280_s26 }
0x121b   :  { %33 = sbr.rel (!%p31_p9) target bundleno = 28 (0x1c), region = 249 }
0x121e   : > { %s16800_s26 = smov %s16794_s4 }
0x1222   :  { %5049 = vsyncpa [#allocation5], 1 }
0x1223   :  { %5051 = vsyncpa [#allocation5 + $0x1], 1 }
0x1224   :  { %5052 = vsyncpa [#allocation8], 1 }
0x1225   :  { %5054 = vsyncpa [#allocation8 + $0x1], 1 }
0x1226   :  { %5055 = vsyncpa [#allocation11], 1 }
0x1227   :  { %5056 = vsyncpa [#allocation14], 1 }
0x1228   :  { %5057 = vsyncpa [#allocation17], 1 }
0x1229   :  { %5058 = vsyncpa [#allocation20], 1 }
0x122a   :  { %5059 = vsyncpa [#allocation6], 1 }
0x122b   :  { %5061 = vsyncpa [#allocation6 + $0x1], 1 }

</bundles_post_ra>
